<compile_context>
chip_gen: v6e
topology: v6e:2x2x1
jax: 0.10.0
libtpu: 0.0.40
codegen_flags: <defaults>
</compile_context>

<pallas_src>
import functools

import jax
import jax.numpy as jnp
from jax.experimental import pallas as pl
from jax.experimental.pallas import tpu as pltpu

N_EMBD = 384
N_HEADS = 6
HEAD_SIZE = N_EMBD // N_HEADS
HIDDEN = 4 * N_EMBD
LN_EPS = 1e-5
MAX_ROWS_PER_STEP = 512       # rows (seqs_per_step * T) handled per grid step


def _layernorm(x, gamma, beta):
    # x: (R, C); gamma/beta: (1, C). Biased variance (PyTorch LayerNorm).
    mu = jnp.mean(x, axis=-1, keepdims=True)
    var = jnp.mean((x - mu) * (x - mu), axis=-1, keepdims=True)
    return (x - mu) * jax.lax.rsqrt(var + LN_EPS) * gamma + beta


def _block_kernel(x_ref,
                  ln1_g_ref, ln1_b_ref,
                  wqkv_ref,                    # (C, 3C) bf16, scale folded into Q cols
                  wp_ref, bp_ref,              # (C, C) bf16, (1, C) f32
                  ln2_g_ref, ln2_b_ref,
                  w1_ref, b1_ref, w2_ref, b2_ref,
                  o_ref, *, seq_len, seqs_per_step):
    x = x_ref[...]                              # (R, C) f32, R = seqs_per_step * seq_len
    R, C = x.shape
    T = seq_len
    BB = seqs_per_step
    D = HEAD_SIZE

    # --- Self-attention branch -------------------------------------------
    xn1 = _layernorm(x, ln1_g_ref[...], ln1_b_ref[...]).astype(jnp.bfloat16)
    # Fused QKV: one lane-dense (R, 384) @ (384, 1152) matmul, f32 accumulate.
    qkv = jnp.dot(xn1, wqkv_ref[...], preferred_element_type=jnp.float32)   # (R, 3C)

    # One (T, T) causal mask shared by every head / sequence of this step.
    rows = jax.lax.broadcasted_iota(jnp.int32, (1, T, T), 1)
    cols = jax.lax.broadcasted_iota(jnp.int32, (1, T, T), 2)
    causal = cols <= rows

    head_outs = []
    for h in range(N_HEADS):        # static unroll; live set per head is small
        q_h = qkv[:, h * D:(h + 1) * D].astype(jnp.bfloat16)            # scale pre-folded
        k_h = qkv[:, C + h * D:C + (h + 1) * D].astype(jnp.bfloat16)
        v_h = qkv[:, 2 * C + h * D:2 * C + (h + 1) * D].astype(jnp.bfloat16)
        q_h = q_h.reshape(BB, T, D)
        k_h = k_h.reshape(BB, T, D)
        v_h = v_h.reshape(BB, T, D)

        # Per-sequence scores (BB, T, T): no flattened RxR waste.
        s = jax.lax.dot_general(
            q_h, k_h,
            dimension_numbers=(((2,), (2,)), ((0,), (0,))),
            preferred_element_type=jnp.float32)
        s = jnp.where(causal, s, -jnp.inf)
        s = s - jnp.max(s, axis=-1, keepdims=True)
        p = jnp.exp(s)
        p = p / jnp.sum(p, axis=-1, keepdims=True)       # exact softmax (no approx recip)

        o_h = jax.lax.dot_general(
            p.astype(jnp.bfloat16), v_h,
            dimension_numbers=(((2,), (1,)), ((0,), (0,))),
            preferred_element_type=jnp.float32)          # (BB, T, D)
        head_outs.append(o_h.reshape(R, D))

    # Lane-concat the heads and do one full-width K=384 output projection.
    attn = jnp.concatenate(head_outs, axis=-1).astype(jnp.bfloat16)      # (R, C)
    x1 = x + jnp.dot(attn, wp_ref[...], preferred_element_type=jnp.float32) + bp_ref[...]

    # --- Feed-forward branch ---------------------------------------------
    xn2 = _layernorm(x1, ln2_g_ref[...], ln2_b_ref[...]).astype(jnp.bfloat16)
    hdn = jnp.dot(xn2, w1_ref[...], preferred_element_type=jnp.float32) + b1_ref[...]
    hdn = jnp.maximum(hdn, 0.0).astype(jnp.bfloat16)
    ff = jnp.dot(hdn, w2_ref[...], preferred_element_type=jnp.float32) + b2_ref[...]

    o_ref[...] = (x1 + ff).astype(o_ref.dtype)


def _pick_seqs_per_step(batch, seq_len):
    # Largest divisor of the batch whose flattened row count fits the cap,
    # while leaving >= 2 grid steps (v7x has 2 TensorCores per chip).
    # Note: batches with no good divisor fall back to 1 seq/step; padding the
    # batch up to a friendlier size would keep M large but is not needed here.
    upper = min(batch, max(1, MAX_ROWS_PER_STEP // seq_len))
    if batch >= 2:
        upper = min(upper, batch // 2)
    upper = max(upper, 1)
    for cand in range(upper, 0, -1):
        if batch % cand == 0:
            return cand
    return 1


def make_params(key, dtype=jnp.float32):
    ks = jax.random.split(key, 8)
    s = 0.02
    return dict(
        ln1_g=jnp.ones((1, N_EMBD), dtype), ln1_b=jnp.zeros((1, N_EMBD), dtype),
        wq=s * jax.random.normal(ks[0], (N_EMBD, N_EMBD), dtype),
        wk=s * jax.random.normal(ks[1], (N_EMBD, N_EMBD), dtype),
        wv=s * jax.random.normal(ks[2], (N_EMBD, N_EMBD), dtype),
        wp=s * jax.random.normal(ks[3], (N_EMBD, N_EMBD), dtype),
        bp=s * jax.random.normal(ks[4], (1, N_EMBD), dtype),
        ln2_g=jnp.ones((1, N_EMBD), dtype), ln2_b=jnp.zeros((1, N_EMBD), dtype),
        w1=s * jax.random.normal(ks[5], (N_EMBD, HIDDEN), dtype),
        b1=s * jax.random.normal(ks[6], (1, HIDDEN), dtype),
        w2=s * jax.random.normal(ks[7], (HIDDEN, N_EMBD), dtype),
        b2=jnp.zeros((1, N_EMBD), dtype),
    )


def prepare_block_weights(params):
    # One-time weight relayout (outside the jitted forward): bf16 casts,
    # fused QKV concat, attention scale folded into the Q columns.
    p = params
    scale = float(N_EMBD) ** -0.5               # module scales by n_embd**-0.5
    wqkv = jnp.concatenate([p["wq"] * scale, p["wk"], p["wv"]],
                           axis=1).astype(jnp.bfloat16)             # (C, 3C)
    return dict(
        ln1_g=p["ln1_g"], ln1_b=p["ln1_b"],
        wqkv=wqkv,
        wp=p["wp"].astype(jnp.bfloat16), bp=p["bp"],
        ln2_g=p["ln2_g"], ln2_b=p["ln2_b"],
        w1=p["w1"].astype(jnp.bfloat16), b1=p["b1"],
        w2=p["w2"].astype(jnp.bfloat16), b2=p["b2"],
    )


@jax.jit
def block_forward(x, w):
    B, T, C = x.shape
    assert C == N_EMBD and T % 8 == 0

    BB = _pick_seqs_per_step(B, T)              # sequences per grid step
    R = BB * T                                  # flattened rows per grid step
    nsteps = B // BB

    weights = [w["ln1_g"], w["ln1_b"], w["wqkv"], w["wp"], w["bp"],
               w["ln2_g"], w["ln2_b"], w["w1"], w["b1"], w["w2"], w["b2"]]

    def resident(a):
        return pl.BlockSpec(a.shape, lambda g, n=a.ndim: (0,) * n)

    in_specs = [pl.BlockSpec((R, C), lambda g: (g, 0))] + [resident(a) for a in weights]
    out_specs = pl.BlockSpec((R, C), lambda g: (g, 0))

    # Advisory cost estimate (helps XLA schedule when this block is stacked).
    qkv_flops = 2 * R * C * 3 * C
    attn_flops = 4 * BB * N_HEADS * T * T * HEAD_SIZE
    proj_flops = 2 * R * C * C
    ffn_flops = 4 * R * C * HIDDEN
    flops = nsteps * (qkv_flops + attn_flops + proj_flops + ffn_flops)
    transcendentals = nsteps * BB * N_HEADS * T * T
    bytes_accessed = int(sum(a.size * a.dtype.itemsize for a in weights)
                         + 2 * B * T * C * x.dtype.itemsize)

    kernel = functools.partial(_block_kernel, seq_len=T, seqs_per_step=BB)

    out = pl.pallas_call(
        kernel,
        out_shape=jax.ShapeDtypeStruct((B * T, C), x.dtype),
        grid_spec=pltpu.PrefetchScalarGridSpec(
            num_scalar_prefetch=0,
            grid=(nsteps,),
            in_specs=in_specs,
            out_specs=out_specs,
        ),
        compiler_params=pltpu.CompilerParams(
            dimension_semantics=("parallel",),
            # Footprint is well under 16 MiB; 32 MiB fits every generation
            # (v7x has only 64 MiB physical VMEM per TensorCore).
            vmem_limit_bytes=32 * 1024 * 1024,
        ),
        cost_estimate=pl.CostEstimate(
            flops=int(flops),
            transcendentals=int(transcendentals),
            bytes_accessed=bytes_accessed),
    )(x.reshape(B * T, C), *weights)

    return out.reshape(B, T, C)


def block_forward_ref(x, p):
    # Pure-JAX f32 reference mirroring the PyTorch module (eval mode).
    def ln(z, g, b):
        mu = jnp.mean(z, axis=-1, keepdims=True)
        var = jnp.mean((z - mu) ** 2, axis=-1, keepdims=True)
        return (z - mu) / jnp.sqrt(var + LN_EPS) * g + b

    B, T, C = x.shape
    xn1 = ln(x, p["ln1_g"], p["ln1_b"])
    q = xn1 @ p["wq"]; k = xn1 @ p["wk"]; v = xn1 @ p["wv"]
    qh = q.reshape(B, T, N_HEADS, HEAD_SIZE).transpose(0, 2, 1, 3)
    kh = k.reshape(B, T, N_HEADS, HEAD_SIZE).transpose(0, 2, 1, 3)
    vh = v.reshape(B, T, N_HEADS, HEAD_SIZE).transpose(0, 2, 1, 3)
    wei = jnp.einsum("bhqd,bhkd->bhqk", qh, kh) * (C ** -0.5)
    tril = jnp.tril(jnp.ones((T, T), bool))
    wei = jnp.where(tril, wei, -jnp.inf)
    wei = jax.nn.softmax(wei, axis=-1)
    out = jnp.einsum("bhqk,bhkd->bhqd", wei, vh)
    out = out.transpose(0, 2, 1, 3).reshape(B, T, C)
    x1 = x + out @ p["wp"] + p["bp"]
    xn2 = ln(x1, p["ln2_g"], p["ln2_b"])
    ff = jnp.maximum(xn2 @ p["w1"] + p["b1"], 0.0) @ p["w2"] + p["b2"]
    return x1 + ff


def block_forward_mirror(x, w):
    # Pure-JAX reference mirroring the KERNEL's exact numerics (bf16 operand
    # casts, fused/scale-folded QKV, exact softmax) for a tight check.
    def ln(z, g, b):
        mu = jnp.mean(z, axis=-1, keepdims=True)
        var = jnp.mean((z - mu) ** 2, axis=-1, keepdims=True)
        return (z - mu) * jax.lax.rsqrt(var + LN_EPS) * g + b

    B, T, C = x.shape
    D = HEAD_SIZE
    xf = x.reshape(B * T, C)
    xn1 = ln(xf, w["ln1_g"], w["ln1_b"]).astype(jnp.bfloat16)
    qkv = jnp.dot(xn1, w["wqkv"], preferred_element_type=jnp.float32)
    causal = jnp.tril(jnp.ones((T, T), bool))
    outs = []
    for h in range(N_HEADS):
        q = qkv[:, h * D:(h + 1) * D].astype(jnp.bfloat16).reshape(B, T, D)
        k = qkv[:, C + h * D:C + (h + 1) * D].astype(jnp.bfloat16).reshape(B, T, D)
        v = qkv[:, 2 * C + h * D:2 * C + (h + 1) * D].astype(jnp.bfloat16).reshape(B, T, D)
        s = jnp.einsum("btd,bsd->bts", q, k, preferred_element_type=jnp.float32)
        s = jnp.where(causal, s, -jnp.inf)
        s = s - jnp.max(s, axis=-1, keepdims=True)
        pr = jnp.exp(s)
        pr = pr / jnp.sum(pr, axis=-1, keepdims=True)
        o = jnp.einsum("bts,bsd->btd", pr.astype(jnp.bfloat16), v,
                       preferred_element_type=jnp.float32)
        outs.append(o.reshape(B * T, D))
    attn = jnp.concatenate(outs, axis=-1).astype(jnp.bfloat16)
    x1 = xf + jnp.dot(attn, w["wp"], preferred_element_type=jnp.float32) + w["bp"]
    xn2 = ln(x1, w["ln2_g"], w["ln2_b"]).astype(jnp.bfloat16)
    hdn = jnp.dot(xn2, w["w1"], preferred_element_type=jnp.float32) + w["b1"]
    hdn = jnp.maximum(hdn, 0.0).astype(jnp.bfloat16)
    ff = jnp.dot(hdn, w["w2"], preferred_element_type=jnp.float32) + w["b2"]
    return (x1 + ff).reshape(B, T, C)


if __name__ == "__main__":
    key = jax.random.PRNGKey(0)
    k_x, k_p = jax.random.split(key)

    B, T = 2, 64                       # T <= block_size (256)
    x = jax.random.normal(k_x, (B, T, N_EMBD), jnp.float32)
    params = make_params(k_p)
    prepped = prepare_block_weights(params)    # one-time weight relayout

    y = jax.block_until_ready(block_forward(x, prepped))
    assert y.shape == (B, T, N_EMBD)

    # Strict check vs. a reference that mirrors the kernel's bf16 numerics.
    y_strict = block_forward_mirror(x, prepped)
    err_strict = float(jnp.max(jnp.abs(y - y_strict)))
    assert err_strict < 5e-3, f"mismatch vs bf16-mirrored reference: {err_strict}"

    # Looser check vs. the full-f32 PyTorch-equivalent reference (bf16 weights
    # introduce small, deliberate precision differences).
    y_f32 = block_forward_ref(x, params)
    err_f32 = float(jnp.max(jnp.abs(y - y_f32)))
    assert err_f32 < 3e-2, f"mismatch vs f32 reference: {err_f32}"

    print("KERNEL_OK")
</pallas_src>

<mosaic_0001>
module attributes {stable_mosaic.version = 11 : i64} {
  func.func @_block_kernel(%arg0: i32, %arg1: memref<64x384xf32, #tpu.memory_space<vmem>>, %arg2: memref<1x384xf32, #tpu.memory_space<vmem>>, %arg3: memref<1x384xf32, #tpu.memory_space<vmem>>, %arg4: memref<384x1152xbf16, #tpu.memory_space<vmem>>, %arg5: memref<384x384xbf16, #tpu.memory_space<vmem>>, %arg6: memref<1x384xf32, #tpu.memory_space<vmem>>, %arg7: memref<1x384xf32, #tpu.memory_space<vmem>>, %arg8: memref<1x384xf32, #tpu.memory_space<vmem>>, %arg9: memref<384x1536xbf16, #tpu.memory_space<vmem>>, %arg10: memref<1x1536xf32, #tpu.memory_space<vmem>>, %arg11: memref<1536x384xbf16, #tpu.memory_space<vmem>>, %arg12: memref<1x384xf32, #tpu.memory_space<vmem>>, %arg13: memref<64x384xf32, #tpu.memory_space<vmem>>) attributes {dimension_semantics = [#tpu.dimension_semantics<parallel>], iteration_bounds = array<i64: 2>, scalar_prefetch = 0 : i64, scratch_operands = 0 : i64, tpu.core_type = #tpu.core_type<tc>, window_params = [{transform_indices = @transform_0, window_bounds = array<i64: 64, 384>}, {pipeline_mode = #tpu.pipeline_mode<synchronous>, transform_indices = @transform_1, window_bounds = array<i64: 1, 384>}, {pipeline_mode = #tpu.pipeline_mode<synchronous>, transform_indices = @transform_2, window_bounds = array<i64: 1, 384>}, {pipeline_mode = #tpu.pipeline_mode<synchronous>, transform_indices = @transform_3, window_bounds = array<i64: 384, 1152>}, {pipeline_mode = #tpu.pipeline_mode<synchronous>, transform_indices = @transform_4, window_bounds = array<i64: 384, 384>}, {pipeline_mode = #tpu.pipeline_mode<synchronous>, transform_indices = @transform_5, window_bounds = array<i64: 1, 384>}, {pipeline_mode = #tpu.pipeline_mode<synchronous>, transform_indices = @transform_6, window_bounds = array<i64: 1, 384>}, {pipeline_mode = #tpu.pipeline_mode<synchronous>, transform_indices = @transform_7, window_bounds = array<i64: 1, 384>}, {pipeline_mode = #tpu.pipeline_mode<synchronous>, transform_indices = @transform_8, window_bounds = array<i64: 384, 1536>}, {pipeline_mode = #tpu.pipeline_mode<synchronous>, transform_indices = @transform_9, window_bounds = array<i64: 1, 1536>}, {pipeline_mode = #tpu.pipeline_mode<synchronous>, transform_indices = @transform_10, window_bounds = array<i64: 1536, 384>}, {pipeline_mode = #tpu.pipeline_mode<synchronous>, transform_indices = @transform_11, window_bounds = array<i64: 1, 384>}, {transform_indices = @transform_12, window_bounds = array<i64: 64, 384>}]} {
    %c0 = arith.constant 0 : index
    %c0_0 = arith.constant 0 : index
    %0 = vector.load %arg1[%c0, %c0_0] : memref<64x384xf32, #tpu.memory_space<vmem>>, vector<64x384xf32>
    %c0_1 = arith.constant 0 : index
    %c0_2 = arith.constant 0 : index
    %1 = vector.load %arg2[%c0_1, %c0_2] : memref<1x384xf32, #tpu.memory_space<vmem>>, vector<1x384xf32>
    %c0_3 = arith.constant 0 : index
    %c0_4 = arith.constant 0 : index
    %2 = vector.load %arg3[%c0_3, %c0_4] : memref<1x384xf32, #tpu.memory_space<vmem>>, vector<1x384xf32>
    %cst = arith.constant dense<0.000000e+00> : vector<64xf32>
    %3 = vector.multi_reduction <add>, %0, %cst [1] : vector<64x384xf32> to vector<64xf32>
    %4 = vector.shape_cast %3 : vector<64xf32> to vector<64x1xf32>
    %cst_5 = arith.constant 3.840000e+02 : f32
    %5 = vector.broadcast %cst_5 : f32 to vector<64x1xf32>
    %6 = arith.divf %4, %5 : vector<64x1xf32>
    %7 = vector.broadcast %6 : vector<64x1xf32> to vector<64x384xf32>
    %8 = arith.subf %0, %7 : vector<64x384xf32>
    %9 = vector.broadcast %6 : vector<64x1xf32> to vector<64x384xf32>
    %10 = arith.subf %0, %9 : vector<64x384xf32>
    %11 = arith.mulf %8, %10 : vector<64x384xf32>
    %cst_6 = arith.constant dense<0.000000e+00> : vector<64xf32>
    %12 = vector.multi_reduction <add>, %11, %cst_6 [1] : vector<64x384xf32> to vector<64xf32>
    %13 = vector.shape_cast %12 : vector<64xf32> to vector<64x1xf32>
    %cst_7 = arith.constant 3.840000e+02 : f32
    %14 = vector.broadcast %cst_7 : f32 to vector<64x1xf32>
    %15 = arith.divf %13, %14 : vector<64x1xf32>
    %16 = vector.broadcast %6 : vector<64x1xf32> to vector<64x384xf32>
    %17 = arith.subf %0, %16 : vector<64x384xf32>
    %cst_8 = arith.constant 9.99999974E-6 : f32
    %18 = vector.broadcast %cst_8 : f32 to vector<64x1xf32>
    %19 = arith.addf %15, %18 : vector<64x1xf32>
    %20 = math.rsqrt %19 : vector<64x1xf32>
    %21 = vector.broadcast %20 : vector<64x1xf32> to vector<64x384xf32>
    %22 = arith.mulf %17, %21 : vector<64x384xf32>
    %23 = vector.broadcast %1 : vector<1x384xf32> to vector<64x384xf32>
    %24 = arith.mulf %22, %23 : vector<64x384xf32>
    %25 = vector.broadcast %2 : vector<1x384xf32> to vector<64x384xf32>
    %26 = arith.addf %24, %25 : vector<64x384xf32>
    %27 = arith.truncf %26 : vector<64x384xf32> to vector<64x384xbf16>
    %c0_9 = arith.constant 0 : index
    %c0_10 = arith.constant 0 : index
    %28 = vector.load %arg4[%c0_9, %c0_10] : memref<384x1152xbf16, #tpu.memory_space<vmem>>, vector<384x1152xbf16>
    %cst_11 = arith.constant dense<0.000000e+00> : vector<64x1152xf32>
    %29 = tpu.matmul %27, %28, %cst_11 {dimension_numbers = #tpu.dot_dimension_numbers<[1], [0], [0], [1], [0, 0, 1, 1], [], []>} : vector<64x384xbf16>, vector<384x1152xbf16>, vector<64x1152xf32> -> vector<64x1152xf32>
    %30 = tpu.iota {dimensions = array<i32: 1>} : vector<1x64x64xi32>
    %31 = tpu.iota {dimensions = array<i32: 2>} : vector<1x64x64xi32>
    %32 = arith.cmpi sle, %31, %30 : vector<1x64x64xi32>
    %33 = vector.extract_strided_slice %29 {offsets = [0, 0], sizes = [64, 64], strides = [1, 1]} : vector<64x1152xf32> to vector<64x64xf32>
    %34 = arith.truncf %33 : vector<64x64xf32> to vector<64x64xbf16>
    %35 = vector.extract_strided_slice %29 {offsets = [0, 384], sizes = [64, 64], strides = [1, 1]} : vector<64x1152xf32> to vector<64x64xf32>
    %36 = arith.truncf %35 : vector<64x64xf32> to vector<64x64xbf16>
    %37 = vector.extract_strided_slice %29 {offsets = [0, 768], sizes = [64, 64], strides = [1, 1]} : vector<64x1152xf32> to vector<64x64xf32>
    %38 = arith.truncf %37 : vector<64x64xf32> to vector<64x64xbf16>
    %39 = vector.shape_cast %34 : vector<64x64xbf16> to vector<1x64x64xbf16>
    %40 = vector.shape_cast %36 : vector<64x64xbf16> to vector<1x64x64xbf16>
    %41 = vector.shape_cast %38 : vector<64x64xbf16> to vector<1x64x64xbf16>
    %cst_12 = arith.constant dense<0.000000e+00> : vector<1x64x64xf32>
    %42 = tpu.matmul %39, %40, %cst_12 {dimension_numbers = #tpu.dot_dimension_numbers<[2], [2], [1], [1], [0, 0, 0, 1, 1, 1], [0], [0]>} : vector<1x64x64xbf16>, vector<1x64x64xbf16>, vector<1x64x64xf32> -> vector<1x64x64xf32>
    %cst_13 = arith.constant 0xFF800000 : f32
    %43 = vector.broadcast %cst_13 : f32 to vector<1x64x64xf32>
    %44 = arith.select %32, %42, %43 : vector<1x64x64xi1>, vector<1x64x64xf32>
    %cst_14 = arith.constant dense<0xFF800000> : vector<1x64xf32>
    %45 = vector.multi_reduction <maximumf>, %44, %cst_14 [2] : vector<1x64x64xf32> to vector<1x64xf32>
    %46 = vector.shape_cast %45 : vector<1x64xf32> to vector<1x64x1xf32>
    %47 = vector.broadcast %46 : vector<1x64x1xf32> to vector<1x64x64xf32>
    %48 = arith.subf %44, %47 : vector<1x64x64xf32>
    %49 = math.exp %48 : vector<1x64x64xf32>
    %cst_15 = arith.constant dense<0.000000e+00> : vector<1x64xf32>
    %50 = vector.multi_reduction <add>, %49, %cst_15 [2] : vector<1x64x64xf32> to vector<1x64xf32>
    %51 = vector.shape_cast %50 : vector<1x64xf32> to vector<1x64x1xf32>
    %52 = vector.broadcast %51 : vector<1x64x1xf32> to vector<1x64x64xf32>
    %53 = arith.divf %49, %52 : vector<1x64x64xf32>
    %54 = arith.truncf %53 : vector<1x64x64xf32> to vector<1x64x64xbf16>
    %cst_16 = arith.constant dense<0.000000e+00> : vector<1x64x64xf32>
    %55 = tpu.matmul %54, %41, %cst_16 {dimension_numbers = #tpu.dot_dimension_numbers<[2], [1], [1], [2], [0, 0, 0, 1, 1, 2], [0], [0]>} : vector<1x64x64xbf16>, vector<1x64x64xbf16>, vector<1x64x64xf32> -> vector<1x64x64xf32>
    %56 = vector.shape_cast %55 : vector<1x64x64xf32> to vector<64x64xf32>
    %57 = vector.extract_strided_slice %29 {offsets = [0, 64], sizes = [64, 64], strides = [1, 1]} : vector<64x1152xf32> to vector<64x64xf32>
    %58 = arith.truncf %57 : vector<64x64xf32> to vector<64x64xbf16>
    %59 = vector.extract_strided_slice %29 {offsets = [0, 448], sizes = [64, 64], strides = [1, 1]} : vector<64x1152xf32> to vector<64x64xf32>
    %60 = arith.truncf %59 : vector<64x64xf32> to vector<64x64xbf16>
    %61 = vector.extract_strided_slice %29 {offsets = [0, 832], sizes = [64, 64], strides = [1, 1]} : vector<64x1152xf32> to vector<64x64xf32>
    %62 = arith.truncf %61 : vector<64x64xf32> to vector<64x64xbf16>
    %63 = vector.shape_cast %58 : vector<64x64xbf16> to vector<1x64x64xbf16>
    %64 = vector.shape_cast %60 : vector<64x64xbf16> to vector<1x64x64xbf16>
    %65 = vector.shape_cast %62 : vector<64x64xbf16> to vector<1x64x64xbf16>
    %cst_17 = arith.constant dense<0.000000e+00> : vector<1x64x64xf32>
    %66 = tpu.matmul %63, %64, %cst_17 {dimension_numbers = #tpu.dot_dimension_numbers<[2], [2], [1], [1], [0, 0, 0, 1, 1, 1], [0], [0]>} : vector<1x64x64xbf16>, vector<1x64x64xbf16>, vector<1x64x64xf32> -> vector<1x64x64xf32>
    %cst_18 = arith.constant 0xFF800000 : f32
    %67 = vector.broadcast %cst_18 : f32 to vector<1x64x64xf32>
    %68 = arith.select %32, %66, %67 : vector<1x64x64xi1>, vector<1x64x64xf32>
    %cst_19 = arith.constant dense<0xFF800000> : vector<1x64xf32>
    %69 = vector.multi_reduction <maximumf>, %68, %cst_19 [2] : vector<1x64x64xf32> to vector<1x64xf32>
    %70 = vector.shape_cast %69 : vector<1x64xf32> to vector<1x64x1xf32>
    %71 = vector.broadcast %70 : vector<1x64x1xf32> to vector<1x64x64xf32>
    %72 = arith.subf %68, %71 : vector<1x64x64xf32>
    %73 = math.exp %72 : vector<1x64x64xf32>
    %cst_20 = arith.constant dense<0.000000e+00> : vector<1x64xf32>
    %74 = vector.multi_reduction <add>, %73, %cst_20 [2] : vector<1x64x64xf32> to vector<1x64xf32>
    %75 = vector.shape_cast %74 : vector<1x64xf32> to vector<1x64x1xf32>
    %76 = vector.broadcast %75 : vector<1x64x1xf32> to vector<1x64x64xf32>
    %77 = arith.divf %73, %76 : vector<1x64x64xf32>
    %78 = arith.truncf %77 : vector<1x64x64xf32> to vector<1x64x64xbf16>
    %cst_21 = arith.constant dense<0.000000e+00> : vector<1x64x64xf32>
    %79 = tpu.matmul %78, %65, %cst_21 {dimension_numbers = #tpu.dot_dimension_numbers<[2], [1], [1], [2], [0, 0, 0, 1, 1, 2], [0], [0]>} : vector<1x64x64xbf16>, vector<1x64x64xbf16>, vector<1x64x64xf32> -> vector<1x64x64xf32>
    %80 = vector.shape_cast %79 : vector<1x64x64xf32> to vector<64x64xf32>
    %81 = vector.extract_strided_slice %29 {offsets = [0, 128], sizes = [64, 64], strides = [1, 1]} : vector<64x1152xf32> to vector<64x64xf32>
    %82 = arith.truncf %81 : vector<64x64xf32> to vector<64x64xbf16>
    %83 = vector.extract_strided_slice %29 {offsets = [0, 512], sizes = [64, 64], strides = [1, 1]} : vector<64x1152xf32> to vector<64x64xf32>
    %84 = arith.truncf %83 : vector<64x64xf32> to vector<64x64xbf16>
    %85 = vector.extract_strided_slice %29 {offsets = [0, 896], sizes = [64, 64], strides = [1, 1]} : vector<64x1152xf32> to vector<64x64xf32>
    %86 = arith.truncf %85 : vector<64x64xf32> to vector<64x64xbf16>
    %87 = vector.shape_cast %82 : vector<64x64xbf16> to vector<1x64x64xbf16>
    %88 = vector.shape_cast %84 : vector<64x64xbf16> to vector<1x64x64xbf16>
    %89 = vector.shape_cast %86 : vector<64x64xbf16> to vector<1x64x64xbf16>
    %cst_22 = arith.constant dense<0.000000e+00> : vector<1x64x64xf32>
    %90 = tpu.matmul %87, %88, %cst_22 {dimension_numbers = #tpu.dot_dimension_numbers<[2], [2], [1], [1], [0, 0, 0, 1, 1, 1], [0], [0]>} : vector<1x64x64xbf16>, vector<1x64x64xbf16>, vector<1x64x64xf32> -> vector<1x64x64xf32>
    %cst_23 = arith.constant 0xFF800000 : f32
    %91 = vector.broadcast %cst_23 : f32 to vector<1x64x64xf32>
    %92 = arith.select %32, %90, %91 : vector<1x64x64xi1>, vector<1x64x64xf32>
    %cst_24 = arith.constant dense<0xFF800000> : vector<1x64xf32>
    %93 = vector.multi_reduction <maximumf>, %92, %cst_24 [2] : vector<1x64x64xf32> to vector<1x64xf32>
    %94 = vector.shape_cast %93 : vector<1x64xf32> to vector<1x64x1xf32>
    %95 = vector.broadcast %94 : vector<1x64x1xf32> to vector<1x64x64xf32>
    %96 = arith.subf %92, %95 : vector<1x64x64xf32>
    %97 = math.exp %96 : vector<1x64x64xf32>
    %cst_25 = arith.constant dense<0.000000e+00> : vector<1x64xf32>
    %98 = vector.multi_reduction <add>, %97, %cst_25 [2] : vector<1x64x64xf32> to vector<1x64xf32>
    %99 = vector.shape_cast %98 : vector<1x64xf32> to vector<1x64x1xf32>
    %100 = vector.broadcast %99 : vector<1x64x1xf32> to vector<1x64x64xf32>
    %101 = arith.divf %97, %100 : vector<1x64x64xf32>
    %102 = arith.truncf %101 : vector<1x64x64xf32> to vector<1x64x64xbf16>
    %cst_26 = arith.constant dense<0.000000e+00> : vector<1x64x64xf32>
    %103 = tpu.matmul %102, %89, %cst_26 {dimension_numbers = #tpu.dot_dimension_numbers<[2], [1], [1], [2], [0, 0, 0, 1, 1, 2], [0], [0]>} : vector<1x64x64xbf16>, vector<1x64x64xbf16>, vector<1x64x64xf32> -> vector<1x64x64xf32>
    %104 = vector.shape_cast %103 : vector<1x64x64xf32> to vector<64x64xf32>
    %105 = vector.extract_strided_slice %29 {offsets = [0, 192], sizes = [64, 64], strides = [1, 1]} : vector<64x1152xf32> to vector<64x64xf32>
    %106 = arith.truncf %105 : vector<64x64xf32> to vector<64x64xbf16>
    %107 = vector.extract_strided_slice %29 {offsets = [0, 576], sizes = [64, 64], strides = [1, 1]} : vector<64x1152xf32> to vector<64x64xf32>
    %108 = arith.truncf %107 : vector<64x64xf32> to vector<64x64xbf16>
    %109 = vector.extract_strided_slice %29 {offsets = [0, 960], sizes = [64, 64], strides = [1, 1]} : vector<64x1152xf32> to vector<64x64xf32>
    %110 = arith.truncf %109 : vector<64x64xf32> to vector<64x64xbf16>
    %111 = vector.shape_cast %106 : vector<64x64xbf16> to vector<1x64x64xbf16>
    %112 = vector.shape_cast %108 : vector<64x64xbf16> to vector<1x64x64xbf16>
    %113 = vector.shape_cast %110 : vector<64x64xbf16> to vector<1x64x64xbf16>
    %cst_27 = arith.constant dense<0.000000e+00> : vector<1x64x64xf32>
    %114 = tpu.matmul %111, %112, %cst_27 {dimension_numbers = #tpu.dot_dimension_numbers<[2], [2], [1], [1], [0, 0, 0, 1, 1, 1], [0], [0]>} : vector<1x64x64xbf16>, vector<1x64x64xbf16>, vector<1x64x64xf32> -> vector<1x64x64xf32>
    %cst_28 = arith.constant 0xFF800000 : f32
    %115 = vector.broadcast %cst_28 : f32 to vector<1x64x64xf32>
    %116 = arith.select %32, %114, %115 : vector<1x64x64xi1>, vector<1x64x64xf32>
    %cst_29 = arith.constant dense<0xFF800000> : vector<1x64xf32>
    %117 = vector.multi_reduction <maximumf>, %116, %cst_29 [2] : vector<1x64x64xf32> to vector<1x64xf32>
    %118 = vector.shape_cast %117 : vector<1x64xf32> to vector<1x64x1xf32>
    %119 = vector.broadcast %118 : vector<1x64x1xf32> to vector<1x64x64xf32>
    %120 = arith.subf %116, %119 : vector<1x64x64xf32>
    %121 = math.exp %120 : vector<1x64x64xf32>
    %cst_30 = arith.constant dense<0.000000e+00> : vector<1x64xf32>
    %122 = vector.multi_reduction <add>, %121, %cst_30 [2] : vector<1x64x64xf32> to vector<1x64xf32>
    %123 = vector.shape_cast %122 : vector<1x64xf32> to vector<1x64x1xf32>
    %124 = vector.broadcast %123 : vector<1x64x1xf32> to vector<1x64x64xf32>
    %125 = arith.divf %121, %124 : vector<1x64x64xf32>
    %126 = arith.truncf %125 : vector<1x64x64xf32> to vector<1x64x64xbf16>
    %cst_31 = arith.constant dense<0.000000e+00> : vector<1x64x64xf32>
    %127 = tpu.matmul %126, %113, %cst_31 {dimension_numbers = #tpu.dot_dimension_numbers<[2], [1], [1], [2], [0, 0, 0, 1, 1, 2], [0], [0]>} : vector<1x64x64xbf16>, vector<1x64x64xbf16>, vector<1x64x64xf32> -> vector<1x64x64xf32>
    %128 = vector.shape_cast %127 : vector<1x64x64xf32> to vector<64x64xf32>
    %129 = vector.extract_strided_slice %29 {offsets = [0, 256], sizes = [64, 64], strides = [1, 1]} : vector<64x1152xf32> to vector<64x64xf32>
    %130 = arith.truncf %129 : vector<64x64xf32> to vector<64x64xbf16>
    %131 = vector.extract_strided_slice %29 {offsets = [0, 640], sizes = [64, 64], strides = [1, 1]} : vector<64x1152xf32> to vector<64x64xf32>
    %132 = arith.truncf %131 : vector<64x64xf32> to vector<64x64xbf16>
    %133 = vector.extract_strided_slice %29 {offsets = [0, 1024], sizes = [64, 64], strides = [1, 1]} : vector<64x1152xf32> to vector<64x64xf32>
    %134 = arith.truncf %133 : vector<64x64xf32> to vector<64x64xbf16>
    %135 = vector.shape_cast %130 : vector<64x64xbf16> to vector<1x64x64xbf16>
    %136 = vector.shape_cast %132 : vector<64x64xbf16> to vector<1x64x64xbf16>
    %137 = vector.shape_cast %134 : vector<64x64xbf16> to vector<1x64x64xbf16>
    %cst_32 = arith.constant dense<0.000000e+00> : vector<1x64x64xf32>
    %138 = tpu.matmul %135, %136, %cst_32 {dimension_numbers = #tpu.dot_dimension_numbers<[2], [2], [1], [1], [0, 0, 0, 1, 1, 1], [0], [0]>} : vector<1x64x64xbf16>, vector<1x64x64xbf16>, vector<1x64x64xf32> -> vector<1x64x64xf32>
    %cst_33 = arith.constant 0xFF800000 : f32
    %139 = vector.broadcast %cst_33 : f32 to vector<1x64x64xf32>
    %140 = arith.select %32, %138, %139 : vector<1x64x64xi1>, vector<1x64x64xf32>
    %cst_34 = arith.constant dense<0xFF800000> : vector<1x64xf32>
    %141 = vector.multi_reduction <maximumf>, %140, %cst_34 [2] : vector<1x64x64xf32> to vector<1x64xf32>
    %142 = vector.shape_cast %141 : vector<1x64xf32> to vector<1x64x1xf32>
    %143 = vector.broadcast %142 : vector<1x64x1xf32> to vector<1x64x64xf32>
    %144 = arith.subf %140, %143 : vector<1x64x64xf32>
    %145 = math.exp %144 : vector<1x64x64xf32>
    %cst_35 = arith.constant dense<0.000000e+00> : vector<1x64xf32>
    %146 = vector.multi_reduction <add>, %145, %cst_35 [2] : vector<1x64x64xf32> to vector<1x64xf32>
    %147 = vector.shape_cast %146 : vector<1x64xf32> to vector<1x64x1xf32>
    %148 = vector.broadcast %147 : vector<1x64x1xf32> to vector<1x64x64xf32>
    %149 = arith.divf %145, %148 : vector<1x64x64xf32>
    %150 = arith.truncf %149 : vector<1x64x64xf32> to vector<1x64x64xbf16>
    %cst_36 = arith.constant dense<0.000000e+00> : vector<1x64x64xf32>
    %151 = tpu.matmul %150, %137, %cst_36 {dimension_numbers = #tpu.dot_dimension_numbers<[2], [1], [1], [2], [0, 0, 0, 1, 1, 2], [0], [0]>} : vector<1x64x64xbf16>, vector<1x64x64xbf16>, vector<1x64x64xf32> -> vector<1x64x64xf32>
    %152 = vector.shape_cast %151 : vector<1x64x64xf32> to vector<64x64xf32>
    %153 = vector.extract_strided_slice %29 {offsets = [0, 320], sizes = [64, 64], strides = [1, 1]} : vector<64x1152xf32> to vector<64x64xf32>
    %154 = arith.truncf %153 : vector<64x64xf32> to vector<64x64xbf16>
    %155 = vector.extract_strided_slice %29 {offsets = [0, 704], sizes = [64, 64], strides = [1, 1]} : vector<64x1152xf32> to vector<64x64xf32>
    %156 = arith.truncf %155 : vector<64x64xf32> to vector<64x64xbf16>
    %157 = vector.extract_strided_slice %29 {offsets = [0, 1088], sizes = [64, 64], strides = [1, 1]} : vector<64x1152xf32> to vector<64x64xf32>
    %158 = arith.truncf %157 : vector<64x64xf32> to vector<64x64xbf16>
    %159 = vector.shape_cast %154 : vector<64x64xbf16> to vector<1x64x64xbf16>
    %160 = vector.shape_cast %156 : vector<64x64xbf16> to vector<1x64x64xbf16>
    %161 = vector.shape_cast %158 : vector<64x64xbf16> to vector<1x64x64xbf16>
    %cst_37 = arith.constant dense<0.000000e+00> : vector<1x64x64xf32>
    %162 = tpu.matmul %159, %160, %cst_37 {dimension_numbers = #tpu.dot_dimension_numbers<[2], [2], [1], [1], [0, 0, 0, 1, 1, 1], [0], [0]>} : vector<1x64x64xbf16>, vector<1x64x64xbf16>, vector<1x64x64xf32> -> vector<1x64x64xf32>
    %cst_38 = arith.constant 0xFF800000 : f32
    %163 = vector.broadcast %cst_38 : f32 to vector<1x64x64xf32>
    %164 = arith.select %32, %162, %163 : vector<1x64x64xi1>, vector<1x64x64xf32>
    %cst_39 = arith.constant dense<0xFF800000> : vector<1x64xf32>
    %165 = vector.multi_reduction <maximumf>, %164, %cst_39 [2] : vector<1x64x64xf32> to vector<1x64xf32>
    %166 = vector.shape_cast %165 : vector<1x64xf32> to vector<1x64x1xf32>
    %167 = vector.broadcast %166 : vector<1x64x1xf32> to vector<1x64x64xf32>
    %168 = arith.subf %164, %167 : vector<1x64x64xf32>
    %169 = math.exp %168 : vector<1x64x64xf32>
    %cst_40 = arith.constant dense<0.000000e+00> : vector<1x64xf32>
    %170 = vector.multi_reduction <add>, %169, %cst_40 [2] : vector<1x64x64xf32> to vector<1x64xf32>
    %171 = vector.shape_cast %170 : vector<1x64xf32> to vector<1x64x1xf32>
    %172 = vector.broadcast %171 : vector<1x64x1xf32> to vector<1x64x64xf32>
    %173 = arith.divf %169, %172 : vector<1x64x64xf32>
    %174 = arith.truncf %173 : vector<1x64x64xf32> to vector<1x64x64xbf16>
    %cst_41 = arith.constant dense<0.000000e+00> : vector<1x64x64xf32>
    %175 = tpu.matmul %174, %161, %cst_41 {dimension_numbers = #tpu.dot_dimension_numbers<[2], [1], [1], [2], [0, 0, 0, 1, 1, 2], [0], [0]>} : vector<1x64x64xbf16>, vector<1x64x64xbf16>, vector<1x64x64xf32> -> vector<1x64x64xf32>
    %176 = vector.shape_cast %175 : vector<1x64x64xf32> to vector<64x64xf32>
    %177 = tpu.concatenate %56, %80, %104, %128, %152, %176 in 1 : vector<64x64xf32>, vector<64x64xf32>, vector<64x64xf32>, vector<64x64xf32>, vector<64x64xf32>, vector<64x64xf32> -> vector<64x384xf32>
    %178 = arith.truncf %177 : vector<64x384xf32> to vector<64x384xbf16>
    %c0_42 = arith.constant 0 : index
    %c0_43 = arith.constant 0 : index
    %179 = vector.load %arg5[%c0_42, %c0_43] : memref<384x384xbf16, #tpu.memory_space<vmem>>, vector<384x384xbf16>
    %cst_44 = arith.constant dense<0.000000e+00> : vector<64x384xf32>
    %180 = tpu.matmul %178, %179, %cst_44 {dimension_numbers = #tpu.dot_dimension_numbers<[1], [0], [0], [1], [0, 0, 1, 1], [], []>} : vector<64x384xbf16>, vector<384x384xbf16>, vector<64x384xf32> -> vector<64x384xf32>
    %181 = arith.addf %0, %180 : vector<64x384xf32>
    %c0_45 = arith.constant 0 : index
    %c0_46 = arith.constant 0 : index
    %182 = vector.load %arg6[%c0_45, %c0_46] : memref<1x384xf32, #tpu.memory_space<vmem>>, vector<1x384xf32>
    %183 = vector.broadcast %182 : vector<1x384xf32> to vector<64x384xf32>
    %184 = arith.addf %181, %183 : vector<64x384xf32>
    %c0_47 = arith.constant 0 : index
    %c0_48 = arith.constant 0 : index
    %185 = vector.load %arg7[%c0_47, %c0_48] : memref<1x384xf32, #tpu.memory_space<vmem>>, vector<1x384xf32>
    %c0_49 = arith.constant 0 : index
    %c0_50 = arith.constant 0 : index
    %186 = vector.load %arg8[%c0_49, %c0_50] : memref<1x384xf32, #tpu.memory_space<vmem>>, vector<1x384xf32>
    %cst_51 = arith.constant dense<0.000000e+00> : vector<64xf32>
    %187 = vector.multi_reduction <add>, %184, %cst_51 [1] : vector<64x384xf32> to vector<64xf32>
    %188 = vector.shape_cast %187 : vector<64xf32> to vector<64x1xf32>
    %cst_52 = arith.constant 3.840000e+02 : f32
    %189 = vector.broadcast %cst_52 : f32 to vector<64x1xf32>
    %190 = arith.divf %188, %189 : vector<64x1xf32>
    %191 = vector.broadcast %190 : vector<64x1xf32> to vector<64x384xf32>
    %192 = arith.subf %184, %191 : vector<64x384xf32>
    %193 = vector.broadcast %190 : vector<64x1xf32> to vector<64x384xf32>
    %194 = arith.subf %184, %193 : vector<64x384xf32>
    %195 = arith.mulf %192, %194 : vector<64x384xf32>
    %cst_53 = arith.constant dense<0.000000e+00> : vector<64xf32>
    %196 = vector.multi_reduction <add>, %195, %cst_53 [1] : vector<64x384xf32> to vector<64xf32>
    %197 = vector.shape_cast %196 : vector<64xf32> to vector<64x1xf32>
    %cst_54 = arith.constant 3.840000e+02 : f32
    %198 = vector.broadcast %cst_54 : f32 to vector<64x1xf32>
    %199 = arith.divf %197, %198 : vector<64x1xf32>
    %200 = vector.broadcast %190 : vector<64x1xf32> to vector<64x384xf32>
    %201 = arith.subf %184, %200 : vector<64x384xf32>
    %cst_55 = arith.constant 9.99999974E-6 : f32
    %202 = vector.broadcast %cst_55 : f32 to vector<64x1xf32>
    %203 = arith.addf %199, %202 : vector<64x1xf32>
    %204 = math.rsqrt %203 : vector<64x1xf32>
    %205 = vector.broadcast %204 : vector<64x1xf32> to vector<64x384xf32>
    %206 = arith.mulf %201, %205 : vector<64x384xf32>
    %207 = vector.broadcast %185 : vector<1x384xf32> to vector<64x384xf32>
    %208 = arith.mulf %206, %207 : vector<64x384xf32>
    %209 = vector.broadcast %186 : vector<1x384xf32> to vector<64x384xf32>
    %210 = arith.addf %208, %209 : vector<64x384xf32>
    %211 = arith.truncf %210 : vector<64x384xf32> to vector<64x384xbf16>
    %c0_56 = arith.constant 0 : index
    %c0_57 = arith.constant 0 : index
    %212 = vector.load %arg9[%c0_56, %c0_57] : memref<384x1536xbf16, #tpu.memory_space<vmem>>, vector<384x1536xbf16>
    %cst_58 = arith.constant dense<0.000000e+00> : vector<64x1536xf32>
    %213 = tpu.matmul %211, %212, %cst_58 {dimension_numbers = #tpu.dot_dimension_numbers<[1], [0], [0], [1], [0, 0, 1, 1], [], []>} : vector<64x384xbf16>, vector<384x1536xbf16>, vector<64x1536xf32> -> vector<64x1536xf32>
    %c0_59 = arith.constant 0 : index
    %c0_60 = arith.constant 0 : index
    %214 = vector.load %arg10[%c0_59, %c0_60] : memref<1x1536xf32, #tpu.memory_space<vmem>>, vector<1x1536xf32>
    %215 = vector.broadcast %214 : vector<1x1536xf32> to vector<64x1536xf32>
    %216 = arith.addf %213, %215 : vector<64x1536xf32>
    %cst_61 = arith.constant 0.000000e+00 : f32
    %217 = vector.broadcast %cst_61 : f32 to vector<64x1536xf32>
    %218 = arith.maximumf %216, %217 : vector<64x1536xf32>
    %219 = arith.truncf %218 : vector<64x1536xf32> to vector<64x1536xbf16>
    %c0_62 = arith.constant 0 : index
    %c0_63 = arith.constant 0 : index
    %220 = vector.load %arg11[%c0_62, %c0_63] : memref<1536x384xbf16, #tpu.memory_space<vmem>>, vector<1536x384xbf16>
    %cst_64 = arith.constant dense<0.000000e+00> : vector<64x384xf32>
    %221 = tpu.matmul %219, %220, %cst_64 {dimension_numbers = #tpu.dot_dimension_numbers<[1], [0], [0], [1], [0, 0, 1, 1], [], []>} : vector<64x1536xbf16>, vector<1536x384xbf16>, vector<64x384xf32> -> vector<64x384xf32>
    %c0_65 = arith.constant 0 : index
    %c0_66 = arith.constant 0 : index
    %222 = vector.load %arg12[%c0_65, %c0_66] : memref<1x384xf32, #tpu.memory_space<vmem>>, vector<1x384xf32>
    %223 = vector.broadcast %222 : vector<1x384xf32> to vector<64x384xf32>
    %224 = arith.addf %221, %223 : vector<64x384xf32>
    %225 = arith.addf %184, %224 : vector<64x384xf32>
    %c0_67 = arith.constant 0 : index
    %c0_68 = arith.constant 0 : index
    %226 = vector.load %arg13[%c0_67, %c0_68] : memref<64x384xf32, #tpu.memory_space<vmem>>, vector<64x384xf32>
    tpu.vector_store %arg13[%c0_67, %c0_68], %225 {strides = array<i32>} : memref<64x384xf32, #tpu.memory_space<vmem>>, vector<64x384xf32>,
    return
  }
  func.func @transform_0(%arg0: i32) -> (i32, i32) {
    %c0_i32 = arith.constant 0 : i32
    %c0_i32_0 = arith.constant 0 : i32
    return %arg0, %c0_i32 : i32, i32
  }
  func.func @transform_1(%arg0: i32) -> (i32, i32) {
    %c0_i32 = arith.constant 0 : i32
    %c0_i32_0 = arith.constant 0 : i32
    %c0_i32_1 = arith.constant 0 : i32
    return %c0_i32, %c0_i32_0 : i32, i32
  }
  func.func @transform_2(%arg0: i32) -> (i32, i32) {
    %c0_i32 = arith.constant 0 : i32
    %c0_i32_0 = arith.constant 0 : i32
    %c0_i32_1 = arith.constant 0 : i32
    return %c0_i32, %c0_i32_0 : i32, i32
  }
  func.func @transform_3(%arg0: i32) -> (i32, i32) {
    %c0_i32 = arith.constant 0 : i32
    %c0_i32_0 = arith.constant 0 : i32
    %c0_i32_1 = arith.constant 0 : i32
    return %c0_i32, %c0_i32_0 : i32, i32
  }
  func.func @transform_4(%arg0: i32) -> (i32, i32) {
    %c0_i32 = arith.constant 0 : i32
    %c0_i32_0 = arith.constant 0 : i32
    %c0_i32_1 = arith.constant 0 : i32
    return %c0_i32, %c0_i32_0 : i32, i32
  }
  func.func @transform_5(%arg0: i32) -> (i32, i32) {
    %c0_i32 = arith.constant 0 : i32
    %c0_i32_0 = arith.constant 0 : i32
    %c0_i32_1 = arith.constant 0 : i32
    return %c0_i32, %c0_i32_0 : i32, i32
  }
  func.func @transform_6(%arg0: i32) -> (i32, i32) {
    %c0_i32 = arith.constant 0 : i32
    %c0_i32_0 = arith.constant 0 : i32
    %c0_i32_1 = arith.constant 0 : i32
    return %c0_i32, %c0_i32_0 : i32, i32
  }
  func.func @transform_7(%arg0: i32) -> (i32, i32) {
    %c0_i32 = arith.constant 0 : i32
    %c0_i32_0 = arith.constant 0 : i32
    %c0_i32_1 = arith.constant 0 : i32
    return %c0_i32, %c0_i32_0 : i32, i32
  }
  func.func @transform_8(%arg0: i32) -> (i32, i32) {
    %c0_i32 = arith.constant 0 : i32
    %c0_i32_0 = arith.constant 0 : i32
    %c0_i32_1 = arith.constant 0 : i32
    return %c0_i32, %c0_i32_0 : i32, i32
  }
  func.func @transform_9(%arg0: i32) -> (i32, i32) {
    %c0_i32 = arith.constant 0 : i32
    %c0_i32_0 = arith.constant 0 : i32
    %c0_i32_1 = arith.constant 0 : i32
    return %c0_i32, %c0_i32_0 : i32, i32
  }
  func.func @transform_10(%arg0: i32) -> (i32, i32) {
    %c0_i32 = arith.constant 0 : i32
    %c0_i32_0 = arith.constant 0 : i32
    %c0_i32_1 = arith.constant 0 : i32
    return %c0_i32, %c0_i32_0 : i32, i32
  }
  func.func @transform_11(%arg0: i32) -> (i32, i32) {
    %c0_i32 = arith.constant 0 : i32
    %c0_i32_0 = arith.constant 0 : i32
    %c0_i32_1 = arith.constant 0 : i32
    return %c0_i32, %c0_i32_0 : i32, i32
  }
  func.func @transform_12(%arg0: i32) -> (i32, i32) {
    %c0_i32 = arith.constant 0 : i32
    %c0_i32_0 = arith.constant 0 : i32
    return %arg0, %c0_i32 : i32, i32
  }
}

</mosaic_0001>

<bundles_post_ra>
// kernel: block_forward.1
= control target key start
LH: loop header
LB: loop body
LE: loop exit
PB: predicated region body
PF: predicated region fallthrough
CT: control target
= control target key end

     0   :  { %s19049_s0 = inlined_call_operand.hbm [shape: f32[128,384], index: 0, kind: input, shape index: {}]   ;;  %s19050_s1 = inlined_call_operand.hbm [shape: f32[1,384], index: 1, kind: input, shape index: {}]   ;;  %s19051_s2 = inlined_call_operand.hbm [shape: f32[1,384], index: 2, kind: input, shape index: {}]   ;;  %s19052_s3 = inlined_call_operand.hbm [shape: bf16[384,1152], index: 3, kind: input, shape index: {}]   ;;  %s19053_s4 = inlined_call_operand.hbm [shape: bf16[384,384], index: 4, kind: input, shape index: {}]   ;;  %s19054_s5 = inlined_call_operand.hbm [shape: f32[1,384], index: 5, kind: input, shape index: {}]   ;;  %s19055_s6 = inlined_call_operand.hbm [shape: f32[1,384], index: 6, kind: input, shape index: {}]   ;;  %s19056_s7 = inlined_call_operand.hbm [shape: f32[1,384], index: 7, kind: input, shape index: {}]   ;;  %s19057_s8 = inlined_call_operand.hbm [shape: bf16[384,1536], index: 8, kind: input, shape index: {}]   ;;  %s19058_s9 = inlined_call_operand.hbm [shape: f32[1,1536], index: 9, kind: input, shape index: {}]   ;;  %s19059_s10 = inlined_call_operand.hbm [shape: bf16[1536,384], index: 10, kind: input, shape index: {}]   ;;  %s19060_s11 = inlined_call_operand.hbm [shape: f32[1,384], index: 11, kind: input, shape index: {}]   ;;  %s19061_s12 = inlined_call_operand.hbm [shape: f32[128,384], index: 12, kind: output, shape index: {}]  }
   0x1   :  { %19124 = sst [smem:[#allocation89_spill]] %s19050_s1 }
   0x2   :  { %19125 = sst [smem:[#allocation90_spill]] %s19051_s2 }
   0x3   :  { %19126 = sst [smem:[#allocation91_spill]] %s19052_s3 }
   0x4   :  { %19127 = sst [smem:[#allocation92_spill]] %s19053_s4 }
   0x5   :  { %19128 = sst [smem:[#allocation93_spill]] %s19054_s5 }
   0x6   :  { %19129 = sst [smem:[#allocation94_spill]] %s19055_s6 }
   0x7   :  { %17 = vsyncpa [#allocation3], 0 }
   0x8   :  { %19 = vsyncpa [#allocation3 + $0x1], 0 }
   0x9   :  { %20 = vsyncpa [#allocation6], 0 }
   0xa   :  { %21 = vsyncpa [#allocation9], 0 }
   0xb   :  { %22 = vsyncpa [#allocation12], 0 }
   0xc   :  { %23 = vsyncpa [#allocation15], 0 }
   0xd   :  { %24 = vsyncpa [#allocation18], 0 }
   0xe   :  { %25 = vsyncpa [#allocation21], 0 }
   0xf   :  { %26 = vsyncpa [#allocation4], 0 }
  0x10   :  { %28 = vsyncpa [#allocation4 + $0x1], 0  ;;  %s15594_s21 = smov 0   ;;  %s15596_s22 = smov 0  }
  0x11   :  { %s15598_s23 = smov 0   ;;  %s15600_s24 = smov 0  }
  0x12 LB: > { %s15504_s25 = smov [#allocation5]   ;;  %s15615_s27 = sadd.s32 4294967295, %s15502_s24   ;;  %s15502_s24 = sphi %s15600_s24, %s19442_s24   ;;  %s15498_s23 = sphi %s15598_s23, %s19441_s23   ;;  %s15494_s22 = sphi %s15596_s22, %s19440_s22   ;;  %s15490_s21 = sphi %s15594_s21, %s19439_s21  }
  0x13   : > { %s335_s26 = sshll.u32 %s15504_s25, 4  ;;  %p11733_p0 = scmp.ge.s32.totalorder %s15502_s24, 1  ;;  %s336_s26 = int_to_ptr.vmem [resolvable:$true] %s335_s26 }
  0x14   : > { %p19062_p1 = scmp.eq.s32.totalorder %s15615_s27, 0  ;;  %p322_p2 = scmp.lt.s32.totalorder %s15502_s24, 3 }
  0x15   : > { %s15505_s29 = smov [#allocation8]   ;;  %s15506_s14 = smov [#allocation11]  }
  0x16   : > { %p15620_p3 = pnand %p11733_p0, %p322_p2  ;;  %s356_s30 = sshll.u32 %s15505_s29, 4  ;;  %s15627_s30 = int_to_ptr.vmem [resolvable:$true] %s356_s30 }
  0x17   : > { %s383_s15 = sshll.u32 %s15506_s14, 4  ;;  %s15111_s17 = scalar_lea.vmem %s336_s26, 48  ;;  %s15635_s15 = int_to_ptr.vmem [resolvable:$true] %s383_s15 }
  0x18   : > { %s19130_s28 = scalar_select %p15620_p3, 1, 0 }
  0x19   : > { %p13434_p5 = pneg %p15620_p3  ;;  %p15112_p8 = scmp.ne.s32.totalorder %s336_s26, %s15111_s17 }
  0x1a   : > { %s15118_s18 = scalar_lea.vmem %s336_s26, 64  ;;  %p15119_p11 = scmp.lt.s32.totalorder %s336_s26, %s336_s26 }
  0x1b   : > { %p15631_p6 = pnand %p13434_p5, %p19062_p1  ;;  %p15120_p12 = scmp.lt.s32.totalorder %s15118_s18, %s15111_s17 }
  0x1d   : > { %p15639_p7 = pneg %p15631_p6  ;;  %p15121_p13 = por %p15120_p12, %p15119_p11 }
  0x1f   : > { %p15114_p9 = pnand %p15112_p8, %p15639_p7 }
  0x21   : > { %p15115_p10 = pneg %p15114_p9 }
  0x23   : > { %p15122_p0 = pnand %p15121_p13, %p15115_p10 }
  0x25   : > { %15125 = shalt.err (!%p15122_p0)
}
  0x26   : > { %s19133_s1 = sld [smem:[#allocation89_spill]]  ;;  %s15137_s25 = scalar_lea.vmem %s15627_s30, 27648 }
  0x27   : > { %p15138_p2 = scmp.ne.s32.totalorder %s15627_s30, %s15137_s25  ;;  %p15145_p9 = scmp.lt.s32.totalorder %s15627_s30, %s15627_s30 }
  0x28   : > { %p15146_p11 = scmp.lt.s32.totalorder %s15137_s25, %s15137_s25 }
  0x29   : > { %p15140_p5 = pnand %p15138_p2, %p15639_p7 }
  0x2a   : > { %p15147_p10 = por %p15146_p11, %p15145_p9 }
  0x2b   : > { %p15141_p8 = pneg %p15140_p5 }
  0x2c   : > { %13437 = dma.hbm_to_vmem [thread:$0]  (!%p15631_p6), %s19133_s1, 48, %s336_s26, [#allocation6]  }
  0x2d   : > { %p15148_p12 = pnand %p15147_p10, %p15141_p8 }
  0x2f   : > { %15151 = shalt.err (!%p15148_p12)
}
  0x30   : > { %s15507_s29 = smov 576   ;;  %s15508_s26 = smov 36  }
  0x31   : > { %s19134_s3 = sld [smem:[#allocation91_spill]]  ;;  %s15163_s18 = scalar_lea.vmem %s15635_s15, 48 }
  0x32   : > { %p15164_p13 = scmp.ne.s32.totalorder %s15635_s15, %s15163_s18  ;;  %s15170_s19 = scalar_lea.vmem %s15635_s15, 64 }
  0x33   : > { %p15171_p5 = scmp.lt.s32.totalorder %s15635_s15, %s15635_s15  ;;  %p15172_p8 = scmp.lt.s32.totalorder %s15170_s19, %s15163_s18 }
  0x34   : > { %p15166_p0 = pnand %p15164_p13, %p15639_p7 }
  0x35   : > { %p15173_p9 = por %p15172_p8, %p15171_p5 }
  0x36   : > { %p15167_p2 = pneg %p15166_p0 }
  0x37   : > { %13443 = dma.hbm_to_vmem [thread:$0]  (!%p15631_p6), %s19134_s3, 27648, %s15627_s30, [#allocation9], %s15507_s29, %s15507_s29, %s15508_s26  }
  0x38   : > { %p15174_p11 = pnand %p15173_p9, %p15167_p2 }
  0x3a   : > { %15177 = shalt.err (!%p15174_p11)
}
  0x3b   : > { %s19135_s5 = sld [smem:[#allocation93_spill]]  ;;  %s15509_s30 = smov [#allocation14]  }
  0x3c   : > { %s405_s29 = sshll.u32 %s15509_s30, 4  ;;  %s15510_s26 = smov [#allocation17]   ;;  %s406_s29 = int_to_ptr.vmem [resolvable:$true] %s405_s29 }
  0x3d   : > { %s429_s14 = sshll.u32 %s15510_s26, 4  ;;  %s15189_s17 = scalar_lea.vmem %s406_s29, 48  ;;  %s430_s14 = int_to_ptr.vmem [resolvable:$true] %s429_s14 }
  0x3e   : > { %p15190_p10 = scmp.ne.s32.totalorder %s406_s29, %s15189_s17  ;;  %s15196_s18 = scalar_lea.vmem %s406_s29, 64 }
  0x3f   : > { %p15197_p0 = scmp.lt.s32.totalorder %s406_s29, %s406_s29  ;;  %p15198_p2 = scmp.lt.s32.totalorder %s15196_s18, %s15189_s17 }
  0x40   : > { %p15192_p12 = pnand %p15190_p10, %p15639_p7 }
  0x41   : > { %13449 = dma.hbm_to_vmem [thread:$0]  (!%p15631_p6), %s19135_s5, 48, %s15635_s15, [#allocation12]  }
  0x42   : > { %p15193_p13 = pneg %p15192_p12  ;;  %p15199_p5 = por %p15198_p2, %p15197_p0 }
  0x44   : > { %p15200_p8 = pnand %p15199_p5, %p15193_p13 }
  0x46   : > { %15203 = shalt.err (!%p15200_p8)
}
  0x47   : > { %13455 = dma.hbm_to_vmem [thread:$0]  (!%p15631_p6), %s19056_s7, 48, %s406_s29, [#allocation15]  }
  0x48   : > { %s15215_s20 = scalar_lea.vmem %s430_s14, 192  ;;  %p15223_p12 = scmp.lt.s32.totalorder %s430_s14, %s430_s14 }
  0x49   : > { %p15216_p9 = scmp.ne.s32.totalorder %s430_s14, %s15215_s20  ;;  %p15224_p4 = scmp.lt.s32.totalorder %s15215_s20, %s15215_s20 }
  0x4b   : > { %p15218_p11 = pnand %p15216_p9, %p15639_p7  ;;  %p15225_p1 = por %p15224_p4, %p15223_p12 }
  0x4d   : > { %p15219_p10 = pneg %p15218_p11 }
  0x4f   : > { %p15226_p3 = pnand %p15225_p1, %p15219_p10 }
  0x51   : > { %15229 = shalt.err (!%p15226_p3)
}
  0x52   : > { %13461 = dma.hbm_to_vmem [thread:$0]  (!%p15631_p6), %s19058_s9, 192, %s430_s14, [#allocation18]  }
  0x53   : > { %s15511_s26 = smov [#allocation7]   ;;  %s15512_s17 = smov [#allocation10]  }
  0x54   : > { %s346_s29 = sshll.u32 %s15511_s26, 4  ;;  %s369_s18 = sshll.u32 %s15512_s17, 4  ;;  %s347_s29 = int_to_ptr.vmem [resolvable:$true] %s346_s29  ;;  %s370_s18 = int_to_ptr.vmem [resolvable:$true] %s369_s18 }
  0x55   : > { %s15241_s19 = scalar_lea.vmem %s347_s29, 48  ;;  %s15248_s15 = scalar_lea.vmem %s347_s29, 64 }
  0x56   : > { %p15242_p13 = scmp.ne.s32.totalorder %s347_s29, %s15241_s19  ;;  %p15249_p1 = scmp.lt.s32.totalorder %s347_s29, %s347_s29 }
  0x57   : > { %p15250_p3 = scmp.lt.s32.totalorder %s15248_s15, %s15241_s19 }
  0x58   : > { %p15244_p0 = pnand %p15242_p13, %p15639_p7 }
  0x59   : > { %p15251_p4 = por %p15250_p3, %p15249_p1 }
  0x5a   : > { %p15245_p2 = pneg %p15244_p0 }
  0x5c   : > { %p15252_p5 = pnand %p15251_p4, %p15245_p2 }
  0x5e   : > { %15255 = shalt.err (!%p15252_p5)
}
  0x5f   : > { %s19136_s2 = sld [smem:[#allocation90_spill]]  ;;  %s15267_s25 = scalar_lea.vmem %s370_s18, 9216 }
  0x60   : > { %p15268_p8 = scmp.ne.s32.totalorder %s370_s18, %s15267_s25  ;;  %p15275_p10 = scmp.lt.s32.totalorder %s370_s18, %s370_s18 }
  0x61   : > { %p15276_p12 = scmp.lt.s32.totalorder %s15267_s25, %s15267_s25 }
  0x62   : > { %p15270_p9 = pnand %p15268_p8, %p15639_p7 }
  0x63   : > { %p15277_p13 = por %p15276_p12, %p15275_p10 }
  0x64   : > { %p15271_p11 = pneg %p15270_p9 }
  0x65   : > { %13440 = dma.hbm_to_vmem [thread:$0]  (!%p15631_p6), %s19136_s2, 48, %s347_s29, [#allocation6]  }
  0x66   : > { %p15278_p0 = pnand %p15277_p13, %p15271_p11 }
  0x68   : > { %15281 = shalt.err (!%p15278_p0)
}
  0x69   : > { %s19064_s30 = smov 192   ;;  %s19065_s26 = smov 12  }
  0x6a   : > { %s19137_s4 = sld [smem:[#allocation92_spill]]  ;;  %s15515_s19 = smov [#allocation13]  }
  0x6b   : > { %s394_s15 = sshll.u32 %s15515_s19, 4  ;;  %s15516_s20 = smov [#allocation16]   ;;  %s395_s15 = int_to_ptr.vmem [resolvable:$true] %s394_s15 }
  0x6c   : > { %s415_s14 = sshll.u32 %s15516_s20, 4  ;;  %s15293_s25 = scalar_lea.vmem %s395_s15, 48  ;;  %s416_s14 = int_to_ptr.vmem [resolvable:$true] %s415_s14 }
  0x6d   : > { %p15294_p2 = scmp.ne.s32.totalorder %s395_s15, %s15293_s25  ;;  %s15300_s1 = scalar_lea.vmem %s395_s15, 64 }
  0x6e   : > { %p15301_p4 = scmp.lt.s32.totalorder %s395_s15, %s395_s15  ;;  %p15302_p5 = scmp.lt.s32.totalorder %s15300_s1, %s15293_s25 }
  0x6f   : > { %p15296_p1 = pnand %p15294_p2, %p15639_p7 }
  0x70   : > { %13446 = dma.hbm_to_vmem [thread:$0]  (!%p15631_p6), %s19137_s4, 9216, %s370_s18, [#allocation9], %s19064_s30, %s19064_s30, %s19065_s26  }
  0x71   : > { %p15297_p3 = pneg %p15296_p1  ;;  %p15303_p8 = por %p15302_p5, %p15301_p4 }
  0x73   : > { %p15304_p9 = pnand %p15303_p8, %p15297_p3 }
  0x75   : > { %15307 = shalt.err (!%p15304_p9)
}
  0x76   : > { %s19138_s6 = sld [smem:[#allocation94_spill]]  ;;  %s15319_s17 = scalar_lea.vmem %s416_s14, 36864 }
  0x77   : > { %p15320_p11 = scmp.ne.s32.totalorder %s416_s14, %s15319_s17  ;;  %p15327_p13 = scmp.lt.s32.totalorder %s416_s14, %s416_s14 }
  0x78   : > { %p15328_p0 = scmp.lt.s32.totalorder %s15319_s17, %s15319_s17 }
  0x79   : > { %p15322_p10 = pnand %p15320_p11, %p15639_p7 }
  0x7a   : > { %p15329_p2 = por %p15328_p0, %p15327_p13 }
  0x7b   : > { %p15323_p12 = pneg %p15322_p10 }
  0x7c   : > { %13452 = dma.hbm_to_vmem [thread:$0]  (!%p15631_p6), %s19138_s6, 48, %s395_s15, [#allocation12]  }
  0x7d   : > { %p15330_p1 = pnand %p15329_p2, %p15323_p12 }
  0x7f   : > { %15333 = shalt.err (!%p15330_p1)
}
  0x80   : > { %s15517_s1 = smov 768   ;;  %s15518_s19 = smov 48  }
  0x81   : > { %13458 = dma.hbm_to_vmem [thread:$0]  (!%p15631_p6), %s19057_s8, 36864, %s416_s14, [#allocation15], %s15517_s1, %s15517_s1, %s15518_s19  }
  0x82   : > { %s15519_s15 = smov [#allocation19]   ;;  %s15520_s18 = smov [#allocation20]  }
  0x83   : > { %s439_s29 = sshll.u32 %s15519_s15, 4  ;;  %s453_s30 = sshll.u32 %s15520_s18, 4  ;;  %s440_s29 = int_to_ptr.vmem [resolvable:$true] %s439_s29  ;;  %s454_s30 = int_to_ptr.vmem [resolvable:$true] %s453_s30 }
  0x84   : > { %s15345_s26 = scalar_lea.vmem %s440_s29, 36864  ;;  %p15353_p8 = scmp.lt.s32.totalorder %s440_s29, %s440_s29 }
  0x85   : > { %p15346_p3 = scmp.ne.s32.totalorder %s440_s29, %s15345_s26  ;;  %p15354_p9 = scmp.lt.s32.totalorder %s15345_s26, %s15345_s26 }
  0x87   : > { %p15348_p4 = pnand %p15346_p3, %p15639_p7  ;;  %p15355_p11 = por %p15354_p9, %p15353_p8 }
  0x89   : > { %p15349_p5 = pneg %p15348_p4 }
  0x8b   : > { %p15356_p10 = pnand %p15355_p11, %p15349_p5 }
  0x8d   : > { %15359 = shalt.err (!%p15356_p10)
}
  0x8e   : > { %s19139_s17 = smov 12   ;;  %s19140_s20 = smov 192  }
  0x8f   : > { %13464 = dma.hbm_to_vmem [thread:$0]  (!%p15631_p6), %s19059_s10, 36864, %s440_s29, [#allocation18], %s19140_s20, %s19140_s20, %s19139_s17  }
  0x90   : > { %s15371_s19 = scalar_lea.vmem %s454_s30, 48  ;;  %s15378_s26 = scalar_lea.vmem %s454_s30, 64 }
  0x91   : > { %p15372_p12 = scmp.ne.s32.totalorder %s454_s30, %s15371_s19  ;;  %p15379_p2 = scmp.lt.s32.totalorder %s454_s30, %s454_s30 }
  0x92   : > { %p15380_p1 = scmp.lt.s32.totalorder %s15378_s26, %s15371_s19 }
  0x93   : > { %p15374_p13 = pnand %p15372_p12, %p15639_p7 }
  0x94   : > { %p15381_p3 = por %p15380_p1, %p15379_p2 }
  0x95   : > { %p15375_p0 = pneg %p15374_p13 }
  0x97   : > { %p15382_p4 = pnand %p15381_p3, %p15375_p0 }
  0x99   : > { %15385 = shalt.err (!%p15382_p4)
}
  0x9a   : > { %13467 = dma.hbm_to_vmem [thread:$0]  (!%p15631_p6), %s19060_s11, 48, %s454_s30, [#allocation21]  }
  0x9b   : > { %s11732_s16 = sadd.s32 4294967294, %s15502_s24   ;;  %s15739_s13 = sadd.s32 1, %s15502_s24  }
  0x9c   : > { %s41_s29 = sadd.s32 1, %s15498_s23  ;;  %s38_s18 = ssub.s32 %s15502_s24, %s15739_s13 }
  0x9d   : > { %p48_p7 = scmp.ne.s32.totalorder %s15498_s23, %s15494_s22  ;;  %p39_p5 = scmp.eq.s32.totalorder %s38_s18, 0 }
  0x9e   : > { %p49_p8 = scmp.eq.s32.totalorder %s15502_s24, 0  ;;  %p54_p9 = scmp.ne.s32.totalorder %s15494_s22, %s15490_s21 }
  0x9f   : > { %p309_p11 = scmp.eq.s32.totalorder %s15615_s27, 1  ;;  %p19141_p12 = scmp.eq.s32.totalorder %s15615_s27, 0 }
  0xa0   : > { %s15751_s17 = scalar_select %p39_p5, %s15498_s23, %s41_s29  }
  0xa1   : > { %p50_p10 = por %p49_p8, %p48_p7  ;;  %p15755_p13 = por %p19141_p12, %p54_p9 }
  0xa2   : > { %p15759_p6 = por %p309_p11, %p48_p7  ;;  %p315_p0 = scmp.eq.s32.totalorder %s11732_s16, 1 }
  0xa3   : > { %s19142_s20 = scalar_select %p15755_p13, 1, 0 }
  0xa4   : > { %s19143_s30 = scalar_select %p15759_p6, 1, 0 }
  0xa5   : > { %p13487_p2 = scmp.lt.s32.totalorder %s15502_s24, 2  ;;  %s464_s14 = sand.u32 1, %s15498_s23  }
  0xa6   : > { %p15765_p1 = por %p315_p0, %p54_p9  ;;  %s13382_s19 = smul.u32 192, %s464_s14 }
  0xa7   : > { %p15769_p3 = pnand %p13487_p2, %p50_p10  ;;  %s13383_s25 = smul.u32 3072, %s15502_s24 }
  0xa8   : > { %s19144_s1 = scalar_select %p15765_p1, 1, 0 }
  0xa9   : > { %s15777_s18 = scalar_lea.hbm %s19049_s0, %s13383_s25  ;;  %s468_s16 = scalar_lea.vmem [#allocation2], %s13382_s19 }
  0xaa   : > { %s476_s2 = sshll.u32 %s468_s16, 4  ;;  %s15781_s3 = scalar_lea.sflag [#allocation3], %s464_s14  ;;  %s15779_s2 = int_to_ptr.vmem [resolvable:$true] %s476_s2 }
  0xab   : > { %s15386_s4 = scalar_lea.hbm %s15777_s18, 3072  ;;  %p15388_p7 = pneg %p15769_p3 }
  0xac   : > { %p15387_p4 = scmp.ne.s32.totalorder %s15777_s18, %s15386_s4  ;;  %s15391_s25 = scalar_lea.hbm %s19049_s0, 6144 }
  0xad   : > { %p15392_p9 = scmp.lt.s32.totalorder %s15777_s18, %s19049_s0  ;;  %p15393_p11 = scmp.lt.s32.totalorder %s15391_s25, %s15386_s4 }
  0xae   : > { %p15389_p5 = pnand %p15388_p7, %p15387_p4 }
  0xaf   : > { %p15394_p10 = por %p15393_p11, %p15392_p9 }
  0xb0   : > { %p15390_p8 = pneg %p15389_p5 }
  0xb2   : > { %p15395_p12 = pnand %p15394_p10, %p15390_p8 }
  0xb4   : > { %15398 = shalt.err (!%p15395_p12)
}
  0xb5   : > { %s15399_s14 = scalar_lea.vmem %s15779_s2, 3072  ;;  %s15521_s19 = smov [#allocation2]  }
  0xb6   : > { %p15400_p0 = scmp.ne.s32.totalorder %s15779_s2, %s15399_s14  ;;  %s15404_s16 = sshll.u32 %s15521_s19, 4  ;;  %s15405_s16 = int_to_ptr.vmem [resolvable:$false] %s15404_s16 }
  0xb7   : > { %s15406_s5 = scalar_lea.vmem %s15405_s16, 6144  ;;  %p15407_p5 = scmp.lt.s32.totalorder %s15779_s2, %s15405_s16 }
  0xb8   : > { %p15402_p2 = pnand %p15400_p0, %p15388_p7  ;;  %p15408_p1 = scmp.lt.s32.totalorder %s15406_s5, %s15399_s14 }
  0xba   : > { %p15403_p4 = pneg %p15402_p2  ;;  %p15409_p6 = por %p15408_p1, %p15407_p5 }
  0xbc   : > { %p15410_p13 = pnand %p15409_p6, %p15403_p4 }
  0xbe   : > { %15413 = shalt.err (!%p15410_p13)
}
  0xbf   : > { %s15522_s4 = smov 384   ;;  %s15523_s6 = smov 24  }
  0xc0   : > { %13471 = dma.hbm_to_vmem [thread:$0]  (!%p15769_p3), %s15777_s18, 3072, %s15779_s2, %s15781_s3, %s15522_s4, %s15522_s4, %s15523_s6  }
  0xc1   : > { %p19146_p7 = scmp.ne.s32.totalorder %s19130_s28, 0 }
  0xc3   : > { %488 = sbr.rel (%p19146_p7) target bundleno = 5431 (0x1537), region = 68 }
  0xc8   : > { %s15805_s25 = sand.u32 1, %s15494_s22   ;;  %p19147_p13 = scmp.ne.s32.totalorder %s19142_s20, 0 }
  0xc9   : > { %s13384_s15 = smul.u32 192, %s15805_s25  ;;  %s491_s29 = scalar_lea.sflag [#allocation3], %s15805_s25 }
  0xcb   : > { %s15811_s14 = scalar_lea.vmem [#allocation2], %s13384_s15 }
  0xcc   : > { %15457 = dma.done.wait (%p19147_p13), %s491_s29, 3072  }
  0xcd   : > { %15459 = vsyncadd (%p19147_p13), %s491_s29, 4294964224  ;;  %p19148_p6 = scmp.eq.s32.totalorder %s15615_s27, 0 }
  0xcf   : > { %15461 = dma.done.wait (%p19148_p6), [#allocation6], 96   ;;  %p19149_p1 = pmov %p19148_p6 }
  0xd1   : > { %15463 = vsyncadd (%p19149_p1), [#allocation6], 4294967200  ;;  %p19150_p3 = pmov %p19149_p1 }
  0xd2   : > { %p19151_p8 = pmov %p19149_p1 }
  0xd3   : > { %15465 = dma.done.wait (%p19150_p3), [#allocation9], 36864  }
  0xd4   : > { %15467 = vsyncadd (%p19151_p8), [#allocation9], 4294930432  ;;  %p19152_p9 = pmov %p19149_p1 }
  0xd5   : > { %p19153_p11 = pmov %p19149_p1 }
  0xd6   : > { %15469 = dma.done.wait (%p19152_p9), [#allocation12], 96  }
  0xd7   : > { %15471 = vsyncadd (%p19153_p11), [#allocation12], 4294967200  ;;  %p19154_p10 = pmov %p19149_p1 }
  0xd8   : > { %p19155_p12 = pmov %p19149_p1 }
  0xd9   : > { %15473 = dma.done.wait (%p19154_p10), [#allocation15], 36912  }
  0xda   : > { %15475 = vsyncadd (%p19155_p12), [#allocation15], 4294930384  ;;  %p19156_p0 = pmov %p19149_p1 }
  0xdc   : > { %15477 = dma.done.wait (%p19156_p0), [#allocation18], 37056   ;;  %p19157_p2 = pmov %p19156_p0 }
  0xdd   : > { %p19158_p4 = pmov %p19156_p0 }
  0xde   : > { %15479 = vsyncadd (%p19157_p2), [#allocation18], 4294930240 }
  0xdf   : > { %15481 = dma.done.wait (%p19158_p4), [#allocation21], 48   ;;  %p19159_p5 = pmov %p19156_p0 }
  0xe0   : > { %v15842_v0 = vld [vmem:[%s15811_s14] sm:$0xff]  ;;  %v15845_v1 = vld [vmem:[%s15811_s14 + $0x8] sm:$0xff]  ;;  %v15848_v2 = vld [vmem:[%s15811_s14 + $0x10] sm:$0xff]  ;;  %vm2958_vm0 = vcmask 523264   ;;  %s15525_s2 = smov 64   ;;  %s18744_s3 = scalar_lea.vmem [#allocation22], %s13384_s15 }
  0xe1   : > { %15483 = vsyncadd (%p19159_p5), [#allocation21], 4294967248  ;;  %v608_v3 = vadd.f32 %v15845_v1, %v15842_v0  ;;  %v15853_v4 = vld [vmem:[%s15811_s14 + $0x30] sm:$0xff]  ;;  %v15856_v5 = vld [vmem:[%s15811_s14 + $0x38] sm:$0xff]  ;;  %s13385_s28 = smul.u32 3072, %s15615_s27  ;;  %s11554_s20 = sshll.u32 %s18744_s3, 4  ;;  %s19005_s20 = int_to_ptr.vmem [resolvable:$true] %s11554_s20 }
  0xe2   : > { %v15859_v6 = vld [vmem:[%s15811_s14 + $0x40] sm:$0xff]  ;;  %v616_v7 = vadd.f32 %v15856_v5, %v15853_v4  ;;  %v15864_v8 = vld [vmem:[%s15811_s14 + $0x18] sm:$0xff]  ;;  %v15870_v10 = vld [vmem:[%s15811_s14 + $0x28] sm:$0xff]  ;;  %s11540_s27 = scalar_lea.sflag [#allocation4], %s15805_s25  ;;  %s15414_s16 = scalar_lea.vmem %s19005_s20, 3072 }
  0xe3   : > { %v15867_v9 = vld [vmem:[%s15811_s14 + $0x20] sm:$0xff]  ;;  %v609_v11 = vadd.f32 %v608_v3, %v15848_v2  ;;  %v15876_v13 = vld [vmem:[%s15811_s14 + $0x48] sm:$0xff]  ;;  %v15879_v14 = vld [vmem:[%s15811_s14 + $0x50] sm:$0xff]  ;;  %s19002_s19 = scalar_lea.hbm %s19061_s12, %s13385_s28  ;;  %p15415_p7 = scmp.ne.s32.totalorder %s19005_s20, %s15414_s16 }
  0xe4   : > { %v612_v12 = vadd.f32 %v15867_v9, %v15864_v8  ;;  %v15882_v15 = vld [vmem:[%s15811_s14 + $0x58] sm:$0xff]  ;;  %v617_v16 = vadd.f32 %v616_v7, %v15859_v6  ;;  %v620_v17 = vadd.f32 %v15879_v14, %v15876_v13  ;;  %v594_v18 = vld [vmem:[%s15811_s14 + $0x60] sm:$0xff]  ;;  %v595_v19 = vld [vmem:[%s15811_s14 + $0x68] sm:$0xff]  ;;  %p19436_p13 = scmp.ne.s32.totalorder %s19143_s30, 0  ;;  %s15526_s5 = smov [#allocation22]  }
  0xe5   : > { %610 = vadd.xlane.f32.xlu0 %v609_v11  ;;  %v624_v21 = vadd.f32 %v595_v19, %v594_v18  ;;  %v597_v22 = vld [vmem:[%s15811_s14 + $0x78] sm:$0xff]  ;;  %v598_v23 = vld [vmem:[%s15811_s14 + $0x80] sm:$0xff]  ;;  %v596_v25 = vld [vmem:[%s15811_s14 + $0x70] sm:$0xff]  ;;  %s15418_s4 = sshll.u32 %s15526_s5, 4  ;;  %s15419_s4 = int_to_ptr.vmem [resolvable:$false] %s15418_s4 }
  0xe6   : > { %v613_v20 = vadd.f32 %v612_v12, %v15870_v10  ;;  %618 = vadd.xlane.f32.xlu1 %v617_v16  ;;  %v621_v24 = vadd.f32 %v620_v17, %v15882_v15  ;;  %v628_v26 = vadd.f32 %v598_v23, %v597_v22  ;;  %v600_v27 = vld [vmem:[%s15811_s14 + $0x90] sm:$0xff]  ;;  %v601_v28 = vld [vmem:[%s15811_s14 + $0x98] sm:$0xff]  ;;  %v599_v29 = vld [vmem:[%s15811_s14 + $0x88] sm:$0xff]  ;;  %p15416_p6 = pnand %p15415_p7, %p19436_p13  ;;  %s15420_s6 = scalar_lea.vmem %s15419_s4, 6144 }
  0xe7   : > { %v603_v30 = vld [vmem:[%s15811_s14 + $0xa8] sm:$0xff]  ;;  %v604_v31 = vld [vmem:[%s15811_s14 + $0xb0] sm:$0xff]  ;;  %v602_v32 = vld [vmem:[%s15811_s14 + $0xa0] sm:$0xff]  ;;  %v625_v33 = vadd.f32 %v624_v21, %v596_v25  ;;  %v632_v34 = vadd.f32 %v601_v28, %v600_v27  ;;  %p15421_p3 = scmp.lt.s32.totalorder %s19005_s20, %s15419_s4  ;;  %p15422_p8 = scmp.lt.s32.totalorder %s15420_s6, %s15414_s16 }
  0xe8   : > { %v605_v35 = vld [vmem:[%s15811_s14 + $0xb8] sm:$0xff]  ;;  %v629_v36 = vadd.f32 %v628_v26, %v599_v29  ;;  %v636_v37 = vadd.f32 %v604_v31, %v603_v30  ;;  %v13615_v40 = vld [vmem:[#allocation8 + $0x1fc] ss:$36 sps:$4 sm:$0xff]   ;;  %v13623_v45 = vld [vmem:[#allocation8 + $0x168] ss:$36 sps:$4 sm:$0xff]   ;;  %p15417_p1 = pneg %p15416_p6 }
  0xe9   : > { %614 = vadd.xlane.f32.xlu0 %v613_v20  ;;  %v633_v38 = vadd.f32 %v632_v34, %v602_v32  ;;  %v13617_v41 = vld [vmem:[#allocation8 + $0x1f8] ss:$36 sps:$4 sm:$0xff]   ;;  %2213 = vmatprep.subr.bf16.mxu0 %v13615_v40  ;;  %v13620_v43 = vld [vmem:[#allocation8 + $0x1b0] ss:$36 sps:$4 sm:$0xff]   ;;  %v13624_v47 = vld [vmem:[#allocation8 + $0x124] ss:$36 sps:$4 sm:$0xff]   ;;  %p15423_p9 = por %p15422_p8, %p15421_p3 }
  0xea   : > { %622 = vadd.xlane.f32.xlu1 %v621_v24  ;;  %v637_v39 = vadd.f32 %v636_v37, %v605_v35  ;;  %v13618_v42 = vld [vmem:[#allocation8 + $0x1b4] ss:$36 sps:$4 sm:$0xff]   ;;  %2214 = vmatpush1.bf16.msra.mxu0 %v13617_v41  ;;  %v13621_v44 = vld [vmem:[#allocation8 + $0x16c] ss:$36 sps:$4 sm:$0xff]   ;;  %v13639_v46 = vld [vmem:[#allocation8 + $0x67c] ss:$36 sps:$4 sm:$0xff]  }
  0xeb   : > { %2215 = vmatprep.subr.bf16.mxu0 %v13618_v42  ;;  %v13643_v48 = vld [vmem:[#allocation8 + $0x678] ss:$36 sps:$4 sm:$0xff]   ;;  %2286 = vmatprep.subr.bf16.mxu1 %v13639_v46  ;;  %v13626_v49 = vld [vmem:[#allocation8 + $0x120] ss:$36 sps:$4 sm:$0xff]   ;;  %v13632_v53 = vld [vmem:[#allocation8 + $0x90] ss:$36 sps:$4 sm:$0xff]   ;;  %p15424_p11 = pnand %p15423_p9, %p15417_p1 }
  0xec   : > { %2287 = vmatpush1.bf16.msra.mxu1 %v13643_v48  ;;  %v13627_v50 = vld [vmem:[#allocation8 + $0xdc] ss:$36 sps:$4 sm:$0xff]   ;;  %v13630_v52 = vld [vmem:[#allocation8 + $0x94] ss:$36 sps:$4 sm:$0xff]   ;;  %v13633_v54 = vld [vmem:[#allocation8 + $0x4c] ss:$36 sps:$4 sm:$0xff]  }
  0xed   : > { %626 = vadd.xlane.f32.xlu0 %v625_v33  ;;  %v13629_v51 = vld [vmem:[#allocation8 + $0xd8] ss:$36 sps:$4 sm:$0xff]   ;;  %v13635_v55 = vld [vmem:[#allocation8 + $0x48] ss:$36 sps:$4 sm:$0xff]   ;;  %v13638_v57 = vld [vmem:[#allocation8] ss:$36 sps:$4 sm:$0xff]  }
  0xee   : > { %630 = vadd.xlane.f32.xlu1 %v629_v36  ;;  %2216 = vmatpush1.bf16.msra.mxu0 %v13620_v43  ;;  %v13636_v56 = vld [vmem:[#allocation8 + $0x4] ss:$36 sps:$4 sm:$0xff]   ;;  %v13641_v58 = vld [vmem:[#allocation8 + $0x43c] ss:$36 sps:$4 sm:$0xff]   ;;  %v15065_v40 = vld [vmem:[%s15811_s14 + $0x78] sm:$0xff] }
  0xef   : > { %2217 = vmatprep.subr.bf16.mxu0 %v13621_v44  ;;  %v13644_v59 = vld [vmem:[#allocation8 + $0x438] ss:$36 sps:$4 sm:$0xff]   ;;  %v15064_v36 = vld [vmem:[%s15811_s14 + $0x68] sm:$0xff]  ;;  %v15067_v46 = vld [vmem:[%s15811_s14 + $0x70] sm:$0xff] }
  0xf0   : > { %v15063_v34 = vld [vmem:[%s15811_s14 + $0x60] sm:$0xff] }
  0xf1   : > { %634 = vadd.xlane.f32.xlu0 %v633_v38  ;;  %v15066_v42 = vld [vmem:[%s15811_s14 + $0x80] sm:$0xff] }
  0xf2   : > { %638 = vadd.xlane.f32.xlu1 %v637_v39  ;;  %2218 = vmatpush1.bf16.msra.mxu0 %v13623_v45 }
  0xf3   : > { %2219 = vmatprep.subr.bf16.mxu0 %v13624_v47 }
  0xf6   : > { %2220 = vmatpush1.bf16.msra.mxu0 %v13626_v49 }
  0xf7   : > { %2221 = vmatprep.subr.bf16.mxu0 %v13627_v50 }
  0xfa   : > { %2222 = vmatpush1.bf16.msra.mxu0 %v13629_v51 }
  0xfb   : > { %2223 = vmatprep.subr.bf16.mxu0 %v13630_v52 }
  0xfe   : > { %2224 = vmatpush1.bf16.msra.mxu0 %v13632_v53 }
  0xff   : > { %2225 = vmatprep.subr.bf16.mxu0 %v13633_v54 }
 0x102   : > { %2226 = vmatpush1.bf16.msra.mxu0 %v13635_v55 }
 0x103   : > { %2227 = vmatprep.subr.bf16.mxu0 %v13636_v56  ;;  %v15068_v56 = vld [vmem:[%s15811_s14 + $0x88] sm:$0xff] }
 0x106   : > { %2228 = vmatpush1.bf16.msra.mxu0 %v13638_v57 }
 0x107   : > { %2229 = vmatprep.subr.bf16.mxu0 %v13641_v58  ;;  %v15069_v58 = vld [vmem:[%s15811_s14 + $0x90] sm:$0xff] }
 0x10a   : > { %2230 = vmatpush2.bf16.msra.mxu0 %v13644_v59 }
 0x16e   : > { %v611_v60 = vpop.xlane.xlu0 %610 }
 0x16f   : > { %v641_v61 = vmul.f32 0.0026041667, %v611_v60  ;;  %v619_v62 = vpop.xlane.xlu1 %618  ;;  %v15070_v60 = vld [vmem:[%s15811_s14 + $0x98] sm:$0xff] }
 0x170   : > { %v643_v63 = vmul.f32 0.0026041667, %v619_v62 }
 0x171   : > { %v15902_v3 = vsub.f32 %v15842_v0, %v641_v61  ;;  %v15905_v7 = vsub.f32 %v15845_v1, %v641_v61  ;;  %v15908_v11 = vsub.f32 %v15848_v2, %v641_v61 }
 0x172   : > { %v15911_v12 = vsub.f32 %v15853_v4, %v643_v63  ;;  %v15914_v16 = vsub.f32 %v15856_v5, %v643_v63  ;;  %v615_v17 = vpop.xlane.xlu0 %614  ;;  %v15917_v18 = vsub.f32 %v15859_v6, %v643_v63  ;;  %v15071_v63 = vld [vmem:[%s15811_s14 + $0xa8] sm:$0xff] }
 0x173   : > { %v642_v19 = vmul.f32 0.0026041667, %v615_v17  ;;  %v623_v20 = vpop.xlane.xlu1 %622  ;;  %v673_v0 = vmul.f32 %v15902_v3, %v15902_v3  ;;  %v674_v1 = vmul.f32 %v15905_v7, %v15905_v7  ;;  %v675_v2 = vmul.f32 %v15908_v11, %v15908_v11 }
 0x174   : > { %v644_v4 = vmul.f32 0.0026041667, %v623_v20  ;;  %v679_v5 = vmul.f32 %v15911_v12, %v15911_v12  ;;  %v680_v21 = vmul.f32 %v15914_v16, %v15914_v16  ;;  %v681_v6 = vmul.f32 %v15917_v18, %v15917_v18 }
 0x175   : > { %v15932_v22 = vsub.f32 %v15864_v8, %v642_v19  ;;  %v15935_v23 = vsub.f32 %v15867_v9, %v642_v19  ;;  %v697_v24 = vadd.f32 %v674_v1, %v673_v0  ;;  %v15938_v25 = vsub.f32 %v15870_v10, %v642_v19  ;;  %v15072_v19 = vld [vmem:[%s15811_s14 + $0xb0] sm:$0xff] }
 0x176   : > { %v15941_v26 = vsub.f32 %v15876_v13, %v644_v4  ;;  %v15944_v27 = vsub.f32 %v15879_v14, %v644_v4  ;;  %v627_v28 = vpop.xlane.xlu0 %626  ;;  %v705_v29 = vadd.f32 %v680_v21, %v679_v5  ;;  %v15947_v8 = vsub.f32 %v15882_v15, %v644_v4  ;;  %v15073_v5 = vld [vmem:[%s15811_s14 + $0xa0] sm:$0xff] }
 0x177   : > { %v645_v30 = vmul.f32 0.0026041667, %v627_v28  ;;  %v698_v9 = vadd.f32 %v697_v24, %v675_v2  ;;  %v631_v31 = vpop.xlane.xlu1 %630  ;;  %v676_v10 = vmul.f32 %v15932_v22, %v15932_v22  ;;  %v677_v13 = vmul.f32 %v15935_v23, %v15935_v23 }
 0x178   : > { %v646_v32 = vmul.f32 0.0026041667, %v631_v31  ;;  %v706_v33 = vadd.f32 %v705_v29, %v681_v6  ;;  %v678_v14 = vmul.f32 %v15938_v25, %v15938_v25  ;;  %v682_v15 = vmul.f32 %v15941_v26, %v15941_v26  ;;  %v15074_v29 = vld [vmem:[%s15811_s14 + $0xb8] sm:$0xff] }
 0x179   : > { %v15958_v35 = vsub.f32 %v15063_v34, %v645_v30  ;;  %v15961_v37 = vsub.f32 %v15064_v36, %v645_v30  ;;  %699 = vadd.xlane.f32.xlu0 %v698_v9  ;;  %v701_v38 = vadd.f32 %v677_v13, %v676_v10  ;;  %v683_v39 = vmul.f32 %v15944_v27, %v15944_v27  ;;  %v13645_v34 = vld [vmem:[#allocation8 + $0x634] ss:$36 sps:$4 sm:$0xff]  }
 0x17a   : > { %v15966_v41 = vsub.f32 %v15065_v40, %v646_v32  ;;  %v15969_v43 = vsub.f32 %v15066_v42, %v646_v32  ;;  %v635_v44 = vpop.xlane.xlu0 %634  ;;  %v684_v45 = vmul.f32 %v15947_v8, %v15947_v8  ;;  %v15974_v47 = vsub.f32 %v15067_v46, %v645_v30  ;;  %2288 = vmatprep.subr.bf16.mxu1 %v13645_v34  ;;  %v13650_v42 = vld [vmem:[#allocation8 + $0x3f0] ss:$36 sps:$4 sm:$0xff]   ;;  %v13655_v46 = vld [vmem:[#allocation8 + $0x5e8] ss:$36 sps:$4 sm:$0xff]  }
 0x17b   : > { %v647_v48 = vmul.f32 0.0026041667, %v635_v44  ;;  %v702_v49 = vadd.f32 %v701_v38, %v678_v14  ;;  %v639_v50 = vpop.xlane.xlu1 %638  ;;  %v709_v51 = vadd.f32 %v683_v39, %v682_v15  ;;  %v685_v52 = vmul.f32 %v15958_v35, %v15958_v35  ;;  %v13647_v38 = vld [vmem:[#allocation8 + $0x3f4] ss:$36 sps:$4 sm:$0xff]   ;;  %v13651_v44 = vld [vmem:[#allocation8 + $0x5ec] ss:$36 sps:$4 sm:$0xff]  }
 0x17c   : > { %v648_v53 = vmul.f32 0.0026041667, %v639_v50  ;;  %v686_v54 = vmul.f32 %v15961_v37, %v15961_v37  ;;  %v687_v55 = vmul.f32 %v15974_v47, %v15974_v47  ;;  %v15983_v57 = vsub.f32 %v15068_v56, %v646_v32  ;;  %v13649_v39 = vld [vmem:[#allocation8 + $0x630] ss:$36 sps:$4 sm:$0xff]   ;;  %2231 = vmatprep.subr.bf16.mxu0 %v13647_v38  ;;  %v13659_v50 = vld [vmem:[#allocation8 + $0x364] ss:$36 sps:$4 sm:$0xff]  }
 0x17d   : > { %v15986_v59 = vsub.f32 %v15069_v58, %v647_v48  ;;  %v15989_v61 = vsub.f32 %v15070_v60, %v647_v48  ;;  %707 = vadd.xlane.f32.xlu0 %v706_v33  ;;  %703 = vadd.xlane.f32.xlu1 %v702_v49  ;;  %v710_v62 = vadd.f32 %v709_v51, %v684_v45  ;;  %v13653_v45 = vld [vmem:[#allocation8 + $0x3ac] ss:$36 sps:$4 sm:$0xff]   ;;  %v13657_v49 = vld [vmem:[#allocation8 + $0x5a4] ss:$36 sps:$4 sm:$0xff]   ;;  %v13668_v56 = vld [vmem:[#allocation8 + $0x318] ss:$36 sps:$4 sm:$0xff]   ;;  %v19070_v34 = vlaneseq }
 0x17e   : > { %v15992_v17 = vsub.f32 %v15071_v63, %v648_v53  ;;  %v15995_v20 = vsub.f32 %v15072_v19, %v648_v53  ;;  %v713_v0 = vadd.f32 %v686_v54, %v685_v52  ;;  %v688_v1 = vmul.f32 %v15966_v41, %v15966_v41  ;;  %2289 = vmatpush1.bf16.msra.mxu1 %v13649_v39  ;;  %v13661_v51 = vld [vmem:[#allocation8 + $0x5a0] ss:$36 sps:$4 sm:$0xff]   ;;  %v13669_v58 = vld [vmem:[#allocation8 + $0x514] ss:$36 sps:$4 sm:$0xff]   ;;  %v13675_v19 = vld [vmem:[#allocation8 + $0x4cc] ss:$36 sps:$4 sm:$0xff]  }
 0x17f   : > { %v689_v2 = vmul.f32 %v15969_v43, %v15969_v43  ;;  %v690_v4 = vmul.f32 %v15983_v57, %v15983_v57  ;;  %v16004_v21 = vsub.f32 %v15073_v5, %v647_v48  ;;  %v691_v6 = vmul.f32 %v15986_v59, %v15986_v59  ;;  %2232 = vmatpush2.bf16.msra.mxu0 %v13650_v42  ;;  %v13656_v48 = vld [vmem:[#allocation8 + $0x3a8] ss:$36 sps:$4 sm:$0xff]   ;;  %v13662_v52 = vld [vmem:[#allocation8 + $0x360] ss:$36 sps:$4 sm:$0xff]   ;;  %v13671_v60 = vld [vmem:[#allocation8 + $0x2d4] ss:$36 sps:$4 sm:$0xff]  }
 0x180   : > { %v714_v24 = vadd.f32 %v713_v0, %v687_v55  ;;  %v692_v28 = vmul.f32 %v15989_v61, %v15989_v61  ;;  %v16011_v30 = vsub.f32 %v15074_v29, %v648_v53  ;;  %v694_v9 = vmul.f32 %v15992_v17, %v15992_v17  ;;  %2290 = vmatprep.subr.bf16.mxu1 %v13651_v44  ;;  %v13663_v53 = vld [vmem:[#allocation8 + $0x55c] ss:$36 sps:$4 sm:$0xff]   ;;  %v13674_v63 = vld [vmem:[#allocation8 + $0x2d0] ss:$36 sps:$4 sm:$0xff]   ;;  %v13683_v5 = vld [vmem:[#allocation8 + $0x244] ss:$36 sps:$4 sm:$0xff]  }
 0x181   : > { %711 = vadd.xlane.f32.xlu1 %v710_v62  ;;  %v717_v31 = vadd.f32 %v689_v2, %v688_v1  ;;  %v693_v10 = vmul.f32 %v16004_v21, %v16004_v21  ;;  %v695_v13 = vmul.f32 %v15995_v20, %v15995_v20  ;;  %2233 = vmatprep.subr.bf16.mxu0 %v13653_v45  ;;  %v13665_v54 = vld [vmem:[#allocation8 + $0x31c] ss:$36 sps:$4 sm:$0xff]   ;;  %v13673_v62 = vld [vmem:[#allocation8 + $0x510] ss:$36 sps:$4 sm:$0xff]   ;;  %v13679_v1 = vld [vmem:[#allocation8 + $0x4c8] ss:$36 sps:$4 sm:$0xff]  }
 0x182   : > { %715 = vadd.xlane.f32.xlu0 %v714_v24  ;;  %v721_v32 = vadd.f32 %v692_v28, %v691_v6  ;;  %v696_v33 = vmul.f32 %v16011_v30, %v16011_v30  ;;  %2291 = vmatpush1.bf16.msra.mxu1 %v13655_v46  ;;  %v13667_v55 = vld [vmem:[#allocation8 + $0x558] ss:$36 sps:$4 sm:$0xff]   ;;  %v13677_v0 = vld [vmem:[#allocation8 + $0x28c] ss:$36 sps:$4 sm:$0xff]   ;;  %v13685_v6 = vld [vmem:[#allocation8 + $0x480] ss:$36 sps:$4 sm:$0xff]  }
 0x183   : > { %v718_v14 = vadd.f32 %v717_v31, %v690_v4  ;;  %v725_v15 = vadd.f32 %v695_v13, %v694_v9  ;;  %2234 = vmatpush2.bf16.msra.mxu0 %v13656_v48  ;;  %2292 = vmatprep.subr.bf16.mxu1 %v13657_v49  ;;  %v13680_v2 = vld [vmem:[#allocation8 + $0x288] ss:$36 sps:$4 sm:$0xff]   ;;  %v13686_v24 = vld [vmem:[#allocation8 + $0x240] ss:$36 sps:$4 sm:$0xff]   ;;  %v19068_v28 = vmov 0   ;;  %v16023_v44 = vshrl.u32 %v19070_v34, 7 }
 0x184   : > { %v722_v36 = vadd.f32 %v721_v32, %v693_v10  ;;  %2235 = vmatprep.subr.bf16.mxu0 %v13659_v50  ;;  %v13681_v4 = vld [vmem:[#allocation8 + $0x484] ss:$36 sps:$4 sm:$0xff]   ;;  %2318 = vmatprep.mubr.bf16.mxu1 %v19068_v28  ;;  %v606_v50 = vld [vmem:[#allocation5] sm:$0x7] }
 0x185   : > { %719 = vadd.xlane.f32.xlu1 %v718_v14  ;;  %v726_v40 = vadd.f32 %v725_v15, %v696_v33  ;;  %v13689_v29 = vld [vmem:[#allocation8 + $0x204] ss:$36 sps:$4 sm:$0xff]   ;;  %19160 = vst [vmem:[#allocation31_spill] sm:$0xff] %v16023_v44 }
 0x186   : > { %723 = vadd.xlane.f32.xlu0 %v722_v36  ;;  %2293 = vmatpush1.bf16.msra.mxu1 %v13661_v51  ;;  %v13692_v9 = vld [vmem:[#allocation8 + $0x684] ss:$36 sps:$4 sm:$0xff]  }
 0x187   : > { %2236 = vmatpush2.bf16.msra.mxu0 %v13662_v52  ;;  %2294 = vmatprep.subr.bf16.mxu1 %v13663_v53  ;;  %v16026_v53 = vsub.s32 1, %v16023_v44 }
 0x188   : > { %2237 = vmatprep.subr.bf16.mxu0 %v13665_v54 }
 0x189   : > { %727 = vadd.xlane.f32.xlu1 %v726_v40  ;;  %19161 = vst [vmem:[#allocation32_spill] sm:$0xff] %v16026_v53 }
 0x18a   : > { %2295 = vmatpush1.bf16.msra.mxu1 %v13667_v55  ;;  %v16029_v55 = vsub.s32 2, %v16023_v44 }
 0x18b   : > { %2238 = vmatpush2.bf16.msra.mxu0 %v13668_v56  ;;  %2296 = vmatprep.subr.bf16.mxu1 %v13669_v58 }
 0x18c   : > { %2239 = vmatprep.subr.bf16.mxu0 %v13671_v60  ;;  %19162 = vst [vmem:[#allocation33_spill] sm:$0xff] %v16029_v55 }
 0x18e   : > { %2297 = vmatpush1.bf16.msra.mxu1 %v13673_v62  ;;  %v16032_v62 = vsub.s32 0, %v16023_v44 }
 0x18f   : > { %2240 = vmatpush2.bf16.msra.mxu0 %v13674_v63  ;;  %2298 = vmatprep.subr.bf16.mxu1 %v13675_v19  ;;  %v607_v19 = vld [vmem:[#allocation7] sm:$0x7] }
 0x190   : > { %2241 = vmatprep.subr.bf16.mxu0 %v13677_v0  ;;  %19163 = vst [vmem:[#allocation34_spill] sm:$0xff] %v16032_v62  ;;  %v16035_v0 = vrot.slane %v606_v50, %v16026_v53 }
 0x192   : > { %2299 = vmatpush1.bf16.msra.mxu1 %v13679_v1 }
 0x193   : > { %2242 = vmatpush2.bf16.msra.mxu0 %v13680_v2  ;;  %2300 = vmatprep.subr.bf16.mxu1 %v13681_v4  ;;  %v16038_v2 = vrot.slane %v606_v50, %v16029_v55 }
 0x194   : > { %2243 = vmatprep.subr.bf16.mxu0 %v13683_v5 }
 0x196   : > { %2301 = vmatpush1.bf16.msra.mxu1 %v13685_v6 }
 0x197   : > { %2244 = vmatpush2.bf16.msra.mxu0 %v13686_v24  ;;  %2359 = vmatprep.subr.bf16.mxu1 %v13689_v29  ;;  %v16044_v29 = vrot.slane %v606_v50, %v16032_v62 }
 0x198   : > { %2432 = vmatprep.subr.bf16.mxu0 %v13692_v9 }
 0x202   : > { %v700_v31 = vpop.xlane.xlu0 %699 }
 0x203   : > { %v729_v10 = vmul.f32 0.0026041667, %v700_v31  ;;  %v16048_v31 = vrot.slane %v607_v19, %v16026_v53 }
 0x205   : > { %v737_v13 = vadd.f32 1e-05, %v729_v10 }
 0x206   : > { %v704_v32 = vpop.xlane.xlu1 %703  ;;  %v708_v33 = vpop.xlane.xlu0 %707 }
 0x207   : > { %14839 = vrsqrt.f32 %v737_v13  ;;  %v730_v14 = vmul.f32 0.0026041667, %v704_v32  ;;  %v731_v15 = vmul.f32 0.0026041667, %v708_v33  ;;  %v16052_v32 = vrot.slane %v607_v19, %v16029_v55 }
 0x209   : > { %v738_v36 = vadd.f32 1e-05, %v730_v14  ;;  %v739_v38 = vadd.f32 1e-05, %v731_v15  ;;  %v16059_v15 = vrot.slane %v607_v19, %v16032_v62  ;;  %v13695_v19 = vld [vmem:[#allocation8 + $0x1bc] ss:$36 sps:$4 sm:$0xff]  }
 0x20a   : > { %v712_v39 = vpop.xlane.xlu1 %711 }
 0x20b   : > { %14841 = vrsqrt.f32 %v738_v36  ;;  %v732_v40 = vmul.f32 0.0026041667, %v712_v39  ;;  %v716_v42 = vpop.xlane.xlu0 %715 }
 0x20c   : > { %14843 = vrsqrt.f32 %v739_v38  ;;  %v733_v45 = vmul.f32 0.0026041667, %v716_v42 }
 0x20d   : > { %v740_v46 = vadd.f32 1e-05, %v732_v40 }
 0x20e   : > { %v741_v48 = vadd.f32 1e-05, %v733_v45  ;;  %v720_v49 = vpop.xlane.xlu1 %719 }
 0x20f   : > { %14845 = vrsqrt.f32 %v740_v46  ;;  %v734_v51 = vmul.f32 0.0026041667, %v720_v49  ;;  %v724_v52 = vpop.xlane.xlu0 %723 }
 0x210   : > { %14847 = vrsqrt.f32 %v741_v48  ;;  %v735_v54 = vmul.f32 0.0026041667, %v724_v52  ;;  %v13690_v52 = vld [vmem:[#allocation8 + $0x680] ss:$36 sps:$4 sm:$0xff]  }
 0x211   : > { %v742_v56 = vadd.f32 1e-05, %v734_v51  ;;  %v13687_v51 = vld [vmem:[#allocation8 + $0x200] ss:$36 sps:$4 sm:$0xff]  }
 0x212   : > { %v743_v58 = vadd.f32 1e-05, %v735_v54  ;;  %v728_v60 = vpop.xlane.xlu1 %727 }
 0x213   : > { %14849 = vrsqrt.f32 %v742_v56  ;;  %v736_v63 = vmul.f32 0.0026041667, %v728_v60 }
 0x214   : > { %v14840_v1 = vpop.eup %14839  ;;  %14851 = vrsqrt.f32 %v743_v58 }
 0x215   : > { %v744_v4 = vadd.f32 1e-05, %v736_v63  ;;  %v754_v5 = vmul.f32 %v14840_v1, %v15905_v7  ;;  %v755_v6 = vmul.f32 %v14840_v1, %v15908_v11  ;;  %v753_v24 = vmul.f32 %v14840_v1, %v15902_v3 }
 0x217   : > { %14853 = vrsqrt.f32 %v744_v4  ;;  %v794_v9 = vmul.f32 %v16035_v0, %v754_v5  ;;  %v795_v13 = vmul.f32 %v16038_v2, %v755_v6  ;;  %v793_v14 = vmul.f32 %v16044_v29, %v753_v24 }
 0x218   : > { %v14842_v10 = vpop.eup %14841 }
 0x219   : > { %v14844_v7 = vpop.eup %14843  ;;  %v757_v11 = vmul.f32 %v14842_v10, %v15935_v23  ;;  %v758_v3 = vmul.f32 %v14842_v10, %v15938_v25  ;;  %v756_v33 = vmul.f32 %v14842_v10, %v15932_v22  ;;  %v834_v39 = vadd.f32 %v16048_v31, %v794_v9 }
 0x21a   : > { %v760_v36 = vmul.f32 %v14844_v7, %v15914_v16  ;;  %v835_v23 = vadd.f32 %v16052_v32, %v795_v13  ;;  %v761_v45 = vmul.f32 %v14844_v7, %v15917_v18  ;;  %v833_v54 = vadd.f32 %v16059_v15, %v793_v14  ;;  %v13693_v13 = vld [vmem:[#allocation8 + $0x1b8] ss:$36 sps:$4 sm:$0xff]  }
 0x21b   : > { %v797_v38 = vmul.f32 %v16035_v0, %v757_v11  ;;  %v798_v40 = vmul.f32 %v16038_v2, %v758_v3  ;;  %v796_v25 = vmul.f32 %v16044_v29, %v756_v33  ;;  %v759_v58 = vmul.f32 %v14844_v7, %v15911_v12  ;;  %v13696_v7 = vld [vmem:[#allocation8 + $0x638] ss:$36 sps:$4 sm:$0xff]  }
 0x21c   : > { %v14846_v42 = vpop.eup %14845  ;;  %v800_v22 = vmul.f32 %v16035_v0, %v760_v36  ;;  %v801_v6 = vmul.f32 %v16038_v2, %v761_v45  ;;  %v13701_v14 = vld [vmem:[#allocation8 + $0x174] ss:$36 sps:$4 sm:$0xff]  }
 0x21d   : > { %v14848_v46 = vpop.eup %14847  ;;  %v837_v48 = vadd.f32 %v16048_v31, %v797_v38  ;;  %v838_v16 = vadd.f32 %v16052_v32, %v798_v40  ;;  %v763_v49 = vmul.f32 %v14846_v42, %v15944_v27  ;;  %v764_v50 = vmul.f32 %v14846_v42, %v15947_v8  ;;  %v13698_v27 = vld [vmem:[#allocation8 + $0x63c] ss:$36 sps:$4 sm:$0xff]   ;;  %v13704_v36 = vld [vmem:[#allocation8 + $0x5f4] ss:$36 sps:$4 sm:$0xff]  }
 0x21e   : > { %v836_v56 = vadd.f32 %v16059_v15, %v796_v25  ;;  %v762_v60 = vmul.f32 %v14846_v42, %v15941_v26  ;;  %v766_v12 = vmul.f32 %v14848_v46, %v15961_v37  ;;  %v840_v26 = vadd.f32 %v16048_v31, %v800_v22 }
 0x21f   : > { %v16077_v18 = vpack.c.bf16 %v837_v48, %v834_v39  ;;  %v16079_v63 = vpack.c.bf16 %v838_v16, %v835_v23  ;;  %v803_v1 = vmul.f32 %v16035_v0, %v763_v49  ;;  %v804_v8 = vmul.f32 %v16038_v2, %v764_v50  ;;  %v13699_v48 = vld [vmem:[#allocation8 + $0x170] ss:$36 sps:$4 sm:$0xff]  }
 0x220   : > { %v14850_v4 = vpop.eup %14849  ;;  %v16083_v5 = vpack.c.bf16 %v836_v56, %v833_v54  ;;  %v802_v24 = vmul.f32 %v16044_v29, %v762_v60  ;;  %v799_v3 = vmul.f32 %v16044_v29, %v759_v58  ;;  %v806_v38 = vmul.f32 %v16035_v0, %v766_v12  ;;  %v13702_v49 = vld [vmem:[#allocation8 + $0x5f0] ss:$36 sps:$4 sm:$0xff]  }
 0x221   : > { %2245 = vmatprep.mubr.bf16.mxu0 %v16077_v18  ;;  %2319 = vmatmul.mubr.bf16.vlgmr.msra.gmra.mxu1 %v16079_v63  ;;  %v843_v9 = vadd.f32 %v16048_v31, %v803_v1  ;;  %v769_v10 = vmul.f32 %v14850_v4, %v15969_v43  ;;  %v844_v11 = vadd.f32 %v16052_v32, %v804_v8  ;;  %v16096_v37 = vpop.eup %14851  ;;  %v13710_v56 = vld [vmem:[#allocation8 + $0x5ac] ss:$36 sps:$4 sm:$0xff]  }
 0x222   : > { %2360 = vmatpush1.bf16.msra.mxu1 %v13687_v51  ;;  %2246 = vmatmul.mubr.bf16.vlgmr.msra.gmra.mxu0 %v16083_v5  ;;  %v841_v40 = vadd.f32 %v16052_v32, %v801_v6  ;;  %v842_v42 = vadd.f32 %v16059_v15, %v802_v24  ;;  %v767_v25 = vmul.f32 %v14848_v46, %v15974_v47  ;;  %v13707_v47 = vld [vmem:[#allocation8 + $0x12c] ss:$36 sps:$4 sm:$0xff]  }
 0x223   : > { %2433 = vmatpush1.bf16.msra.mxu0 %v13690_v52  ;;  %2361 = vmatprep.subr.bf16.mxu1 %v13695_v19  ;;  %v16098_v33 = vpack.c.bf16 %v843_v9, %v840_v26  ;;  %v809_v43 = vmul.f32 %v16035_v0, %v769_v10  ;;  %v770_v22 = vmul.f32 %v14850_v4, %v15983_v57  ;;  %v13705_v19 = vld [vmem:[#allocation8 + $0x128] ss:$36 sps:$4 sm:$0xff]  }
 0x224   : > { %v14854_v39 = vpop.eup %14853  ;;  %2434 = vmatprep.subr.bf16.mxu0 %v13698_v27  ;;  %2328 = vmatprep.mubr.bf16.mxu1 %v19068_v28  ;;  %v768_v45 = vmul.f32 %v14850_v4, %v15966_v41  ;;  %v16110_v16 = vpack.c.bf16 %v844_v11, %v841_v40  ;;  %v839_v50 = vadd.f32 %v16059_v15, %v799_v3  ;;  %v13708_v1 = vld [vmem:[#allocation8 + $0x5a8] ss:$36 sps:$4 sm:$0xff]  }
 0x225   : > { %2255 = vmatprep.mubr.bf16.mxu0 %v16098_v33  ;;  %v849_v23 = vadd.f32 %v16048_v31, %v809_v43  ;;  %v765_v51 = vmul.f32 %v14848_v46, %v15958_v35  ;;  %v775_v52 = vmul.f32 %v14854_v39, %v15995_v20  ;;  %v846_v54 = vadd.f32 %v16048_v31, %v806_v38  ;;  %v13713_v27 = vld [vmem:[#allocation8 + $0xe4] ss:$36 sps:$4 sm:$0xff]   ;;  %v13722_v38 = vld [vmem:[#allocation8 + $0x51c] ss:$36 sps:$4 sm:$0xff]  }
 0x226   : > { %2362 = vmatpush1.bf16.msra.mxu1 %v13693_v13  ;;  %v810_v57 = vmul.f32 %v16038_v2, %v770_v22  ;;  %v772_v41 = vmul.f32 %v16096_v37, %v15989_v61  ;;  %v16119_v58 = vpack.c.bf16 %v842_v42, %v839_v50  ;;  %v808_v60 = vmul.f32 %v16044_v29, %v768_v45  ;;  %v13716_v4 = vld [vmem:[#allocation8 + $0x564] ss:$36 sps:$4 sm:$0xff]   ;;  %v13725_v42 = vld [vmem:[#allocation8 + $0x54] ss:$36 sps:$4 sm:$0xff]   ;;  %v13731_v50 = vld [vmem:[#allocation8 + $0xc] ss:$36 sps:$4 sm:$0xff]  }
 0x227   : > { %2435 = vmatpush1.bf16.msra.mxu0 %v13696_v7  ;;  %2363 = vmatprep.subr.bf16.mxu1 %v13701_v14  ;;  %v16123_v35 = vpack.c.bf16 %v849_v23, %v846_v54  ;;  %v807_v20 = vmul.f32 %v16038_v2, %v767_v25  ;;  %v815_v46 = vmul.f32 %v16035_v0, %v775_v52  ;;  %v13711_v7 = vld [vmem:[#allocation8 + $0xe0] ss:$36 sps:$4 sm:$0xff]   ;;  %v13728_v25 = vld [vmem:[#allocation8 + $0x4d4] ss:$36 sps:$4 sm:$0xff]   ;;  %v13732_v54 = vld [vmem:[#allocation8 + $0x488] ss:$36 sps:$4 sm:$0xff]  }
 0x228   : > { %2436 = vmatprep.subr.bf16.mxu0 %v13704_v36  ;;  %v805_v61 = vmul.f32 %v16044_v29, %v765_v51  ;;  %v850_v8 = vadd.f32 %v16052_v32, %v810_v57  ;;  %v812_v6 = vmul.f32 %v16035_v0, %v772_v41  ;;  %v776_v24 = vmul.f32 %v14854_v39, %v16011_v30  ;;  %v13714_v0 = vld [vmem:[#allocation8 + $0x560] ss:$36 sps:$4 sm:$0xff]   ;;  %v13723_v45 = vld [vmem:[#allocation8 + $0x50] ss:$36 sps:$4 sm:$0xff]   ;;  %v13738_v57 = vld [vmem:[#allocation8 + $0x208] ss:$36 sps:$4 sm:$0xff]  }
 0x229   : > { %2329 = vmatmul.mubr.bf16.gmra.mxu1 %v16110_v16  ;;  %v848_v12 = vadd.f32 %v16059_v15, %v808_v60  ;;  %v847_v26 = vadd.f32 %v16052_v32, %v807_v20  ;;  %v855_v9 = vadd.f32 %v16048_v31, %v815_v46  ;;  %v773_v10 = vmul.f32 %v16096_v37, %v16004_v21  ;;  %v13719_v36 = vld [vmem:[#allocation8 + $0x9c] ss:$36 sps:$4 sm:$0xff]   ;;  %v13734_v51 = vld [vmem:[#allocation8 + $0x48c] ss:$36 sps:$4 sm:$0xff]   ;;  %v13746_v60 = vld [vmem:[#allocation8 + $0x1c4] ss:$36 sps:$4 sm:$0xff]  }
 0x22a   : > { %2364 = vmatpush1.bf16.msra.mxu1 %v13699_v48  ;;  %2256 = vmatmul.mubr.bf16.gmra.mxu0 %v16119_v58  ;;  %v774_v13 = vmul.f32 %v14854_v39, %v15992_v17  ;;  %v845_v30 = vadd.f32 %v16059_v15, %v805_v61  ;;  %v771_v11 = vmul.f32 %v16096_v37, %v15986_v59  ;;  %v13717_v37 = vld [vmem:[#allocation8 + $0x98] ss:$36 sps:$4 sm:$0xff]   ;;  %v13726_v48 = vld [vmem:[#allocation8 + $0x4d0] ss:$36 sps:$4 sm:$0xff]   ;;  %v13744_v46 = vld [vmem:[#allocation8 + $0x1c0] ss:$36 sps:$4 sm:$0xff]  }
 0x22b   : > { %2437 = vmatpush1.bf16.msra.mxu0 %v13702_v49  ;;  %2265 = vmatprep.mubr.bf16.mxu0 %v16123_v35  ;;  %v16143_v3 = vpack.c.bf16 %v850_v8, %v847_v26  ;;  %v852_v14 = vadd.f32 %v16048_v31, %v812_v6  ;;  %v816_v21 = vmul.f32 %v16038_v2, %v776_v24  ;;  %v13720_v31 = vld [vmem:[#allocation8 + $0x518] ss:$36 sps:$4 sm:$0xff]   ;;  %v13747_v61 = vld [vmem:[#allocation8 + $0x3b0] ss:$36 sps:$4 sm:$0xff]   ;;  %v13753_v6 = vld [vmem:[#allocation8 + $0x368] ss:$36 sps:$4 sm:$0xff]  }
 0x22c   : > { %2365 = vmatprep.subr.bf16.mxu1 %v13707_v47  ;;  %2438 = vmatprep.subr.bf16.mxu0 %v13710_v56  ;;  %v16147_v17 = vpack.c.bf16 %v848_v12, %v845_v30  ;;  %v814_v43 = vmul.f32 %v16044_v29, %v774_v13  ;;  %v813_v59 = vmul.f32 %v16038_v2, %v773_v10  ;;  %v13740_v47 = vld [vmem:[#allocation8 + $0x20c] ss:$36 sps:$4 sm:$0xff]   ;;  %v13735_v56 = vld [vmem:[#allocation8 + $0x440] ss:$36 sps:$4 sm:$0xff]   ;;  %v13741_v20 = vld [vmem:[#allocation8 + $0x3f8] ss:$36 sps:$4 sm:$0xff]  }
 0x22d   : > { %2338 = vmatprep.mubr.bf16.mxu1 %v19068_v28  ;;  %v16151_v39 = vpack.c.bf16 %v855_v9, %v852_v14  ;;  %v811_v40 = vmul.f32 %v16044_v29, %v771_v11  ;;  %v856_v23 = vadd.f32 %v16052_v32, %v816_v21  ;;  %v13743_v41 = vld [vmem:[#allocation8 + $0x3fc] ss:$36 sps:$4 sm:$0xff]   ;;  %v13755_v8 = vld [vmem:[#allocation8 + $0x36c] ss:$36 sps:$4 sm:$0xff]   ;;  %v13761_v12 = vld [vmem:[#allocation8 + $0x324] ss:$36 sps:$4 sm:$0xff]  }
 0x22e   : > { %2366 = vmatpush1.bf16.msra.mxu1 %v13705_v19  ;;  %v854_v22 = vadd.f32 %v16059_v15, %v814_v43  ;;  %v853_v2 = vadd.f32 %v16052_v32, %v813_v59  ;;  %v13729_v32 = vld [vmem:[#allocation8 + $0x8] ss:$36 sps:$4 sm:$0xff]   ;;  %v13749_v19 = vld [vmem:[#allocation8 + $0x3b4] ss:$36 sps:$4 sm:$0xff]   ;;  %v13759_v9 = vld [vmem:[#allocation8 + $0x320] ss:$36 sps:$4 sm:$0xff]  }
 0x22f   : > { %2439 = vmatpush1.bf16.msra.mxu0 %v13708_v1  ;;  %2367 = vmatprep.subr.bf16.mxu1 %v13713_v27  ;;  %v851_v29 = vadd.f32 %v16059_v15, %v811_v40  ;;  %v13737_v15 = vld [vmem:[#allocation8 + $0x444] ss:$36 sps:$4 sm:$0xff]   ;;  %v13752_v1 = vld [vmem:[#allocation8 + $0x17c] ss:$36 sps:$4 sm:$0xff]   ;;  %v13756_v24 = vld [vmem:[#allocation8 + $0x130] ss:$36 sps:$4 sm:$0xff]  }
 0x230   : > { %2440 = vmatprep.subr.bf16.mxu0 %v13716_v4  ;;  %v16162_v49 = vpack.c.bf16 %v856_v23, %v853_v2  ;;  %v13750_v27 = vld [vmem:[#allocation8 + $0x178] ss:$36 sps:$4 sm:$0xff]   ;;  %v13764_v26 = vld [vmem:[#allocation8 + $0xec] ss:$36 sps:$4 sm:$0xff]   ;;  %v13768_v30 = vld [vmem:[#allocation8 + $0xa0] ss:$36 sps:$4 sm:$0xff]  }
 0x231   : > { %2339 = vmatmul.mubr.bf16.gmra.mxu1 %v16143_v3  ;;  %v16164_v52 = vpack.c.bf16 %v854_v22, %v851_v29  ;;  %v13758_v4 = vld [vmem:[#allocation8 + $0x134] ss:$36 sps:$4 sm:$0xff]   ;;  %v13762_v10 = vld [vmem:[#allocation8 + $0xe8] ss:$36 sps:$4 sm:$0xff]   ;;  %v13767_v13 = vld [vmem:[#allocation8 + $0x2dc] ss:$36 sps:$4 sm:$0xff]  }
 0x232   : > { %2368 = vmatpush1.bf16.msra.mxu1 %v13711_v7  ;;  %2266 = vmatmul.mubr.bf16.gmra.mxu0 %v16147_v17  ;;  %v13770_v7 = vld [vmem:[#allocation8 + $0xa4] ss:$36 sps:$4 sm:$0xff]   ;;  %v13773_v11 = vld [vmem:[#allocation8 + $0x294] ss:$36 sps:$4 sm:$0xff]   ;;  %v13776_v14 = vld [vmem:[#allocation8 + $0x5c] ss:$36 sps:$4 sm:$0xff]  }
 0x233   : > { %2441 = vmatpush1.bf16.msra.mxu0 %v13714_v0  ;;  %2275 = vmatprep.mubr.bf16.mxu0 %v16151_v39  ;;  %v13765_v0 = vld [vmem:[#allocation8 + $0x2d8] ss:$36 sps:$4 sm:$0xff]   ;;  %v13779_v21 = vld [vmem:[#allocation8 + $0x24c] ss:$36 sps:$4 sm:$0xff]   ;;  %v13794_v22 = vld [vmem:[#allocation8 + $0x404] ss:$36 sps:$4 sm:$0xff]  }
 0x234   : > { %2369 = vmatprep.subr.bf16.mxu1 %v13719_v36  ;;  %2442 = vmatprep.subr.bf16.mxu0 %v13722_v38  ;;  %v13771_v36 = vld [vmem:[#allocation8 + $0x290] ss:$36 sps:$4 sm:$0xff]   ;;  %v13774_v38 = vld [vmem:[#allocation8 + $0x58] ss:$36 sps:$4 sm:$0xff]   ;;  %v13777_v59 = vld [vmem:[#allocation8 + $0x248] ss:$36 sps:$4 sm:$0xff]  }
 0x235   : > { %2348 = vmatprep.mubr.bf16.mxu1 %v19068_v28  ;;  %v13782_v43 = vld [vmem:[#allocation8 + $0x14] ss:$36 sps:$4 sm:$0xff]   ;;  %v13788_v40 = vld [vmem:[#allocation8 + $0x44c] ss:$36 sps:$4 sm:$0xff]   ;;  %v13789_v2 = vld [vmem:[#allocation8 + $0x640] ss:$36 sps:$4 sm:$0xff]  }
 0x236   : > { %2370 = vmatpush1.bf16.msra.mxu1 %v13717_v37  ;;  %v13780_v37 = vld [vmem:[#allocation8 + $0x10] ss:$36 sps:$4 sm:$0xff]   ;;  %v13786_v23 = vld [vmem:[#allocation8 + $0x448] ss:$36 sps:$4 sm:$0xff]   ;;  %v13800_v29 = vld [vmem:[#allocation8 + $0x3bc] ss:$36 sps:$4 sm:$0xff]  }
 0x237   : > { %2443 = vmatpush1.bf16.msra.mxu0 %v13720_v31  ;;  %2371 = vmatprep.subr.bf16.mxu1 %v13725_v42  ;;  %v13785_v31 = vld [vmem:[#allocation8 + $0x68c] ss:$36 sps:$4 sm:$0xff]  }
 0x238   : > { %2444 = vmatprep.subr.bf16.mxu0 %v13728_v25  ;;  %v13783_v42 = vld [vmem:[#allocation8 + $0x688] ss:$36 sps:$4 sm:$0xff]  }
 0x239   : > { %2349 = vmatmul.mubr.bf16.gmra.mxu1 %v16162_v49  ;;  %v13791_v25 = vld [vmem:[#allocation8 + $0x644] ss:$36 sps:$4 sm:$0xff]  }
 0x23a   : > { %2372 = vmatpush1.bf16.msra.mxu1 %v13723_v45  ;;  %2276 = vmatmul.mubr.bf16.gmra.mxu0 %v16164_v52  ;;  %v13792_v45 = vld [vmem:[#allocation8 + $0x400] ss:$36 sps:$4 sm:$0xff]  }
 0x23b   : > { %2391 = vmatprep.mubr.bf16.mxu1 %v16077_v18  ;;  %2445 = vmatpush1.bf16.msra.mxu0 %v13726_v48  ;;  %v13797_v48 = vld [vmem:[#allocation8 + $0x5fc] ss:$36 sps:$4 sm:$0xff]  }
 0x23c   : > { %2373 = vmatprep.subr.bf16.mxu1 %v13731_v50  ;;  %2446 = vmatprep.subr.bf16.mxu0 %v13734_v51  ;;  %v13795_v50 = vld [vmem:[#allocation8 + $0x5f8] ss:$36 sps:$4 sm:$0xff]  }
 0x23d   : > { %2464 = vmatprep.mubr.bf16.mxu0 %v19068_v28  ;;  %v13798_v51 = vld [vmem:[#allocation8 + $0x3b8] ss:$36 sps:$4 sm:$0xff]  }
 0x23e   : > { %2374 = vmatpush1.bf16.msra.mxu1 %v13729_v32  ;;  %v13803_v32 = vld [vmem:[#allocation8 + $0x5b4] ss:$36 sps:$4 sm:$0xff]  }
 0x23f   : > { %2447 = vmatpush1.bf16.msra.mxu0 %v13732_v54  ;;  %2375 = vmatprep.subr.bf16.mxu1 %v13737_v15  ;;  %v13806_v54 = vld [vmem:[#allocation8 + $0x374] ss:$36 sps:$4 sm:$0xff]  }
 0x240   : > { %2505 = vmatprep.subr.bf16.mxu0 %v13740_v47  ;;  %v13801_v15 = vld [vmem:[#allocation8 + $0x5b0] ss:$36 sps:$4 sm:$0xff]  }
 0x241   : > { %v13804_v47 = vld [vmem:[#allocation8 + $0x370] ss:$36 sps:$4 sm:$0xff]  }
 0x242   : > { %2376 = vmatpush2.bf16.msra.mxu1 %v13735_v56  ;;  %2465 = vmatmul.mubr.bf16.vlgmr.msra.gmra.mxu0 %v16079_v63  ;;  %v13809_v56 = vld [vmem:[#allocation8 + $0x56c] ss:$36 sps:$4 sm:$0xff]  }
 0x243   : > { %2506 = vmatpush1.bf16.msra.mxu0 %v13738_v57  ;;  %2377 = vmatprep.subr.bf16.mxu1 %v13743_v41  ;;  %v13812_v57 = vld [vmem:[#allocation8 + $0x32c] ss:$36 sps:$4 sm:$0xff]  }
 0x244   : > { %2507 = vmatprep.subr.bf16.mxu0 %v13746_v60  ;;  %2474 = vmatprep.mubr.bf16.mxu0 %v19068_v28  ;;  %v13807_v41 = vld [vmem:[#allocation8 + $0x568] ss:$36 sps:$4 sm:$0xff]  }
 0x245   : > { %v13810_v60 = vld [vmem:[#allocation8 + $0x328] ss:$36 sps:$4 sm:$0xff]  }
 0x246   : > { %2378 = vmatpush2.bf16.msra.mxu1 %v13741_v20  ;;  %v13815_v20 = vld [vmem:[#allocation8 + $0x524] ss:$36 sps:$4 sm:$0xff]  }
 0x247   : > { %2508 = vmatpush1.bf16.msra.mxu0 %v13744_v46  ;;  %2379 = vmatprep.subr.bf16.mxu1 %v13749_v19  ;;  %v13818_v46 = vld [vmem:[#allocation8 + $0x2e4] ss:$36 sps:$4 sm:$0xff]  }
 0x248   : > { %2509 = vmatprep.subr.bf16.mxu0 %v13752_v1  ;;  %v13813_v19 = vld [vmem:[#allocation8 + $0x520] ss:$36 sps:$4 sm:$0xff]  }
 0x249   : > { %v13816_v1 = vld [vmem:[#allocation8 + $0x2e0] ss:$36 sps:$4 sm:$0xff]  }
 0x24a   : > { %2380 = vmatpush2.bf16.msra.mxu1 %v13747_v61  ;;  %2475 = vmatmul.mubr.bf16.gmra.mxu0 %v16110_v16  ;;  %v13821_v61 = vld [vmem:[#allocation8 + $0x4dc] ss:$36 sps:$4 sm:$0xff]  }
 0x24b   : > { %2510 = vmatpush1.bf16.msra.mxu0 %v13750_v27  ;;  %2381 = vmatprep.subr.bf16.mxu1 %v13755_v8  ;;  %v13824_v27 = vld [vmem:[#allocation8 + $0x29c] ss:$36 sps:$4 sm:$0xff]  }
 0x24c   : > { %2511 = vmatprep.subr.bf16.mxu0 %v13758_v4  ;;  %2484 = vmatprep.mubr.bf16.mxu0 %v19068_v28  ;;  %v13819_v8 = vld [vmem:[#allocation8 + $0x4d8] ss:$36 sps:$4 sm:$0xff]  }
 0x24d   : > { %v13822_v4 = vld [vmem:[#allocation8 + $0x298] ss:$36 sps:$4 sm:$0xff]  }
 0x24e   : > { %2382 = vmatpush2.bf16.msra.mxu1 %v13753_v6  ;;  %v13827_v6 = vld [vmem:[#allocation8 + $0x494] ss:$36 sps:$4 sm:$0xff]  }
 0x24f   : > { %2512 = vmatpush1.bf16.msra.mxu0 %v13756_v24  ;;  %2383 = vmatprep.subr.bf16.mxu1 %v13761_v12  ;;  %v13830_v24 = vld [vmem:[#allocation8 + $0x254] ss:$36 sps:$4 sm:$0xff]  }
 0x250   : > { %2513 = vmatprep.subr.bf16.mxu0 %v13764_v26  ;;  %v13825_v12 = vld [vmem:[#allocation8 + $0x490] ss:$36 sps:$4 sm:$0xff]  }
 0x251   : > { %v13828_v26 = vld [vmem:[#allocation8 + $0x250] ss:$36 sps:$4 sm:$0xff]  }
 0x252   : > { %2384 = vmatpush2.bf16.msra.mxu1 %v13759_v9  ;;  %2485 = vmatmul.mubr.bf16.gmra.mxu0 %v16143_v3  ;;  %v13833_v9 = vld [vmem:[#allocation8 + $0x214] ss:$36 sps:$4 sm:$0xff]  }
 0x253   : > { %2514 = vmatpush1.bf16.msra.mxu0 %v13762_v10  ;;  %2385 = vmatprep.subr.bf16.mxu1 %v13767_v13  ;;  %v13836_v10 = vld [vmem:[#allocation8 + $0x694] ss:$36 sps:$4 sm:$0xff]  }
 0x254   : > { %2515 = vmatprep.subr.bf16.mxu0 %v13770_v7  ;;  %2494 = vmatprep.mubr.bf16.mxu0 %v19068_v28  ;;  %v13831_v13 = vld [vmem:[#allocation8 + $0x210] ss:$36 sps:$4 sm:$0xff]  }
 0x255   : > { %v13834_v7 = vld [vmem:[#allocation8 + $0x690] ss:$36 sps:$4 sm:$0xff]  }
 0x256   : > { %2386 = vmatpush2.bf16.msra.mxu1 %v13765_v0  ;;  %v13839_v0 = vld [vmem:[#allocation8 + $0x1cc] ss:$36 sps:$4 sm:$0xff]  }
 0x257   : > { %2516 = vmatpush1.bf16.msra.mxu0 %v13768_v30  ;;  %2387 = vmatprep.subr.bf16.mxu1 %v13773_v11  ;;  %v13842_v30 = vld [vmem:[#allocation8 + $0x64c] ss:$36 sps:$4 sm:$0xff]  }
 0x258   : > { %2517 = vmatprep.subr.bf16.mxu0 %v13776_v14  ;;  %v13837_v11 = vld [vmem:[#allocation8 + $0x1c8] ss:$36 sps:$4 sm:$0xff]  }
 0x259   : > { %v13840_v14 = vld [vmem:[#allocation8 + $0x648] ss:$36 sps:$4 sm:$0xff]  }
 0x25a   : > { %2388 = vmatpush2.bf16.msra.mxu1 %v13771_v36  ;;  %2495 = vmatmul.mubr.bf16.gmra.mxu0 %v16162_v49  ;;  %v13845_v36 = vld [vmem:[#allocation8 + $0x184] ss:$36 sps:$4 sm:$0xff]  }
 0x25b   : > { %2518 = vmatpush1.bf16.msra.mxu0 %v13774_v38  ;;  %2537 = vmatprep.mubr.bf16.mxu0 %v16077_v18  ;;  %v13848_v38 = vld [vmem:[#allocation8 + $0x604] ss:$36 sps:$4 sm:$0xff]  }
 0x25c   : > { %2389 = vmatprep.subr.bf16.mxu1 %v13779_v21  ;;  %2519 = vmatprep.subr.bf16.mxu0 %v13782_v43  ;;  %v13843_v21 = vld [vmem:[#allocation8 + $0x180] ss:$36 sps:$4 sm:$0xff]  }
 0x25d   : > { %v13846_v43 = vld [vmem:[#allocation8 + $0x600] ss:$36 sps:$4 sm:$0xff]  }
 0x25e   : > { %2390 = vmatpush2.bf16.msra.mxu1 %v13777_v59  ;;  %v13851_v59 = vld [vmem:[#allocation8 + $0x13c] ss:$36 sps:$4 sm:$0xff]  }
 0x25f   : > { %2520 = vmatpush1.bf16.msra.mxu0 %v13780_v37  ;;  %2578 = vmatprep.subr.bf16.mxu1 %v13785_v31  ;;  %v13854_v37 = vld [vmem:[#allocation8 + $0x5bc] ss:$36 sps:$4 sm:$0xff]  }
 0x260   : > { %2521 = vmatprep.subr.bf16.mxu0 %v13788_v40  ;;  %v13849_v31 = vld [vmem:[#allocation8 + $0x138] ss:$36 sps:$4 sm:$0xff]  }
 0x261   : > { %2392 = vmatmul.mubr.bf16.vlgmr.msra.gmra.mxu1 %v16083_v5  ;;  %v13852_v40 = vld [vmem:[#allocation8 + $0x5b8] ss:$36 sps:$4 sm:$0xff]  }
 0x262   : > { %2401 = vmatprep.mubr.bf16.mxu1 %v16098_v33  ;;  %2579 = vmatpush1.bf16.msra.mxu1 %v13783_v42  ;;  %v13857_v42 = vld [vmem:[#allocation8 + $0xf4] ss:$36 sps:$4 sm:$0xff]  }
 0x263   : > { %2522 = vmatpush2.bf16.msra.mxu0 %v13786_v23  ;;  %2580 = vmatprep.subr.bf16.mxu1 %v13791_v25  ;;  %v13860_v23 = vld [vmem:[#allocation8 + $0x574] ss:$36 sps:$4 sm:$0xff]  }
 0x264   : > { %2523 = vmatprep.subr.bf16.mxu0 %v13794_v22  ;;  %v13855_v25 = vld [vmem:[#allocation8 + $0xf0] ss:$36 sps:$4 sm:$0xff]  }
 0x265   : > { %v13858_v22 = vld [vmem:[#allocation8 + $0x570] ss:$36 sps:$4 sm:$0xff]  }
 0x266   : > { %2581 = vmatpush1.bf16.msra.mxu1 %v13789_v2  ;;  %v13863_v2 = vld [vmem:[#allocation8 + $0xac] ss:$36 sps:$4 sm:$0xff]  }
 0x267   : > { %2524 = vmatpush2.bf16.msra.mxu0 %v13792_v45  ;;  %2582 = vmatprep.subr.bf16.mxu1 %v13797_v48  ;;  %v13866_v45 = vld [vmem:[#allocation8 + $0x52c] ss:$36 sps:$4 sm:$0xff]  }
 0x268   : > { %2525 = vmatprep.subr.bf16.mxu0 %v13800_v29  ;;  %v13861_v48 = vld [vmem:[#allocation8 + $0xa8] ss:$36 sps:$4 sm:$0xff]  }
 0x269   : > { %2402 = vmatmul.mubr.bf16.gmra.mxu1 %v16119_v58  ;;  %v13864_v29 = vld [vmem:[#allocation8 + $0x528] ss:$36 sps:$4 sm:$0xff]  }
 0x26a   : > { %2411 = vmatprep.mubr.bf16.mxu1 %v16123_v35  ;;  %2583 = vmatpush1.bf16.msra.mxu1 %v13795_v50  ;;  %v13869_v50 = vld [vmem:[#allocation8 + $0x64] ss:$36 sps:$4 sm:$0xff]  }
 0x26b   : > { %2526 = vmatpush2.bf16.msra.mxu0 %v13798_v51  ;;  %2584 = vmatprep.subr.bf16.mxu1 %v13803_v32  ;;  %v13872_v51 = vld [vmem:[#allocation8 + $0x4e4] ss:$36 sps:$4 sm:$0xff]  }
 0x26c   : > { %2527 = vmatprep.subr.bf16.mxu0 %v13806_v54  ;;  %v13867_v32 = vld [vmem:[#allocation8 + $0x60] ss:$36 sps:$4 sm:$0xff]  }
 0x26d   : > { %v13870_v54 = vld [vmem:[#allocation8 + $0x4e0] ss:$36 sps:$4 sm:$0xff]  }
 0x26e   : > { %2585 = vmatpush1.bf16.msra.mxu1 %v13801_v15  ;;  %v13875_v15 = vld [vmem:[#allocation8 + $0x1c] ss:$36 sps:$4 sm:$0xff]  }
 0x26f   : > { %2528 = vmatpush2.bf16.msra.mxu0 %v13804_v47  ;;  %2586 = vmatprep.subr.bf16.mxu1 %v13809_v56  ;;  %v13878_v47 = vld [vmem:[#allocation8 + $0x49c] ss:$36 sps:$4 sm:$0xff]  }
 0x270   : > { %2529 = vmatprep.subr.bf16.mxu0 %v13812_v57  ;;  %v13873_v56 = vld [vmem:[#allocation8 + $0x18] ss:$36 sps:$4 sm:$0xff]  }
 0x271   : > { %2412 = vmatmul.mubr.bf16.gmra.mxu1 %v16147_v17  ;;  %v13876_v57 = vld [vmem:[#allocation8 + $0x498] ss:$36 sps:$4 sm:$0xff]  }
 0x272   : > { %2421 = vmatprep.mubr.bf16.mxu1 %v16151_v39  ;;  %2587 = vmatpush1.bf16.msra.mxu1 %v13807_v41  ;;  %v13881_v41 = vld [vmem:[#allocation8 + $0x454] ss:$36 sps:$4 sm:$0xff]  }
 0x273   : > { %2530 = vmatpush2.bf16.msra.mxu0 %v13810_v60  ;;  %2588 = vmatprep.subr.bf16.mxu1 %v13815_v20  ;;  %v13882_v60 = vld [vmem:[#allocation8 + $0x458] ss:$36 sps:$4 sm:$0xff]   ;;  %v13879_v20 = vld [vmem:[#allocation8 + $0x450] ss:$36 sps:$4 sm:$0xff]  }
 0x274   : > { %2531 = vmatprep.subr.bf16.mxu0 %v13818_v46  ;;  %v13883_v46 = vld [vmem:[#allocation8 + $0x218] ss:$36 sps:$4 sm:$0xff]  }
 0x276   : > { %2589 = vmatpush1.bf16.msra.mxu1 %v13813_v19  ;;  %v13886_v19 = vld [vmem:[#allocation8 + $0x40c] ss:$36 sps:$4 sm:$0xff]  }
 0x277   : > { %2532 = vmatpush2.bf16.msra.mxu0 %v13816_v1  ;;  %2590 = vmatprep.subr.bf16.mxu1 %v13821_v61  ;;  %v13887_v1 = vld [vmem:[#allocation8 + $0x410] ss:$36 sps:$4 sm:$0xff]   ;;  %v13884_v61 = vld [vmem:[#allocation8 + $0x408] ss:$36 sps:$4 sm:$0xff]  }
 0x278   : > { %2533 = vmatprep.subr.bf16.mxu0 %v13824_v27  ;;  %v13888_v27 = vld [vmem:[#allocation8 + $0x1d0] ss:$36 sps:$4 sm:$0xff]  }
 0x279   : > { %2422 = vmatmul.mubr.bf16.gmra.mxu1 %v16164_v52 }
 0x27a   : > { %2591 = vmatpush1.bf16.msra.mxu1 %v13819_v8  ;;  %2610 = vmatprep.mubr.bf16.mxu1 %v19068_v28  ;;  %v13891_v8 = vld [vmem:[#allocation8 + $0x3c4] ss:$36 sps:$4 sm:$0xff]  }
 0x27b   : > { %2534 = vmatpush2.bf16.msra.mxu0 %v13822_v4  ;;  %2592 = vmatprep.subr.bf16.mxu1 %v13827_v6  ;;  %v13892_v4 = vld [vmem:[#allocation8 + $0x3c8] ss:$36 sps:$4 sm:$0xff]   ;;  %v13889_v6 = vld [vmem:[#allocation8 + $0x3c0] ss:$36 sps:$4 sm:$0xff]  }
 0x27c   : > { %2535 = vmatprep.subr.bf16.mxu0 %v13830_v24  ;;  %v13893_v24 = vld [vmem:[#allocation8 + $0x188] ss:$36 sps:$4 sm:$0xff]  }
 0x27e   : > { %2593 = vmatpush1.bf16.msra.mxu1 %v13825_v12  ;;  %v13896_v12 = vld [vmem:[#allocation8 + $0x37c] ss:$36 sps:$4 sm:$0xff]  }
 0x27f   : > { %2536 = vmatpush2.bf16.msra.mxu0 %v13828_v26  ;;  %2651 = vmatprep.subr.bf16.mxu1 %v13833_v9  ;;  %v13897_v26 = vld [vmem:[#allocation8 + $0x380] ss:$36 sps:$4 sm:$0xff]   ;;  %v13894_v9 = vld [vmem:[#allocation8 + $0x378] ss:$36 sps:$4 sm:$0xff]  }
 0x280   : > { %2724 = vmatprep.subr.bf16.mxu0 %v13836_v10  ;;  %v13898_v10 = vld [vmem:[#allocation8 + $0x140] ss:$36 sps:$4 sm:$0xff]  }
 0x281   : > { %2611 = vmatmul.mubr.bf16.vlgmr.msra.gmra.mxu1 %v16079_v63 }
 0x282   : > { %2538 = vmatmul.mubr.bf16.vlgmr.msra.gmra.mxu0 %v16083_v5  ;;  %2652 = vmatpush1.bf16.msra.mxu1 %v13831_v13  ;;  %v13901_v13 = vld [vmem:[#allocation8 + $0x334] ss:$36 sps:$4 sm:$0xff]  }
 0x283   : > { %2547 = vmatprep.mubr.bf16.mxu0 %v16098_v33  ;;  %2725 = vmatpush1.bf16.msra.mxu0 %v13834_v7  ;;  %v13902_v7 = vld [vmem:[#allocation8 + $0x338] ss:$36 sps:$4 sm:$0xff]  }
 0x284   : > { %2653 = vmatprep.subr.bf16.mxu1 %v13839_v0  ;;  %2726 = vmatprep.subr.bf16.mxu0 %v13842_v30  ;;  %v13899_v0 = vld [vmem:[#allocation8 + $0x330] ss:$36 sps:$4 sm:$0xff]   ;;  %v13903_v30 = vld [vmem:[#allocation8 + $0xf8] ss:$36 sps:$4 sm:$0xff]  }
 0x285   : > { %2620 = vmatprep.mubr.bf16.mxu1 %v19068_v28 }
 0x286   : > { %2654 = vmatpush1.bf16.msra.mxu1 %v13837_v11  ;;  %v13906_v11 = vld [vmem:[#allocation8 + $0x2ec] ss:$36 sps:$4 sm:$0xff]  }
 0x287   : > { %2727 = vmatpush1.bf16.msra.mxu0 %v13840_v14  ;;  %2655 = vmatprep.subr.bf16.mxu1 %v13845_v36  ;;  %v13907_v14 = vld [vmem:[#allocation8 + $0x2f0] ss:$36 sps:$4 sm:$0xff]   ;;  %v13904_v36 = vld [vmem:[#allocation8 + $0x2e8] ss:$36 sps:$4 sm:$0xff]  }
 0x288   : > { %2728 = vmatprep.subr.bf16.mxu0 %v13848_v38  ;;  %v13908_v38 = vld [vmem:[#allocation8 + $0xb0] ss:$36 sps:$4 sm:$0xff]  }
 0x289   : > { %2621 = vmatmul.mubr.bf16.gmra.mxu1 %v16110_v16 }
 0x28a   : > { %2548 = vmatmul.mubr.bf16.gmra.mxu0 %v16119_v58  ;;  %2656 = vmatpush1.bf16.msra.mxu1 %v13843_v21  ;;  %v13911_v21 = vld [vmem:[#allocation8 + $0x2a4] ss:$36 sps:$4 sm:$0xff]  }
 0x28b   : > { %2557 = vmatprep.mubr.bf16.mxu0 %v16123_v35  ;;  %2729 = vmatpush1.bf16.msra.mxu0 %v13846_v43  ;;  %v13912_v43 = vld [vmem:[#allocation8 + $0x2a8] ss:$36 sps:$4 sm:$0xff]  }
 0x28c   : > { %2657 = vmatprep.subr.bf16.mxu1 %v13851_v59  ;;  %2730 = vmatprep.subr.bf16.mxu0 %v13854_v37  ;;  %v13909_v59 = vld [vmem:[#allocation8 + $0x2a0] ss:$36 sps:$4 sm:$0xff]   ;;  %v13913_v37 = vld [vmem:[#allocation8 + $0x68] ss:$36 sps:$4 sm:$0xff]  }
 0x28d   : > { %2630 = vmatprep.mubr.bf16.mxu1 %v19068_v28 }
 0x28e   : > { %2658 = vmatpush1.bf16.msra.mxu1 %v13849_v31  ;;  %v13916_v31 = vld [vmem:[#allocation8 + $0x25c] ss:$36 sps:$4 sm:$0xff]  }
 0x28f   : > { %2731 = vmatpush1.bf16.msra.mxu0 %v13852_v40  ;;  %2659 = vmatprep.subr.bf16.mxu1 %v13857_v42  ;;  %v13917_v40 = vld [vmem:[#allocation8 + $0x260] ss:$36 sps:$4 sm:$0xff]   ;;  %v13914_v42 = vld [vmem:[#allocation8 + $0x258] ss:$36 sps:$4 sm:$0xff]  }
 0x290   : > { %2732 = vmatprep.subr.bf16.mxu0 %v13860_v23  ;;  %v13918_v23 = vld [vmem:[#allocation8 + $0x20] ss:$36 sps:$4 sm:$0xff]  }
 0x291   : > { %2631 = vmatmul.mubr.bf16.gmra.mxu1 %v16143_v3 }
 0x292   : > { %2558 = vmatmul.mubr.bf16.gmra.mxu0 %v16147_v17  ;;  %2660 = vmatpush1.bf16.msra.mxu1 %v13855_v25  ;;  %v13919_v25 = vld [vmem:[#allocation8 + $0x698] ss:$36 sps:$4 sm:$0xff]  }
 0x293   : > { %2567 = vmatprep.mubr.bf16.mxu0 %v16151_v39  ;;  %2733 = vmatpush1.bf16.msra.mxu0 %v13858_v22  ;;  %v13920_v22 = vld [vmem:[#allocation8 + $0x650] ss:$36 sps:$4 sm:$0xff]  }
 0x294   : > { %2661 = vmatprep.subr.bf16.mxu1 %v13863_v2  ;;  %2734 = vmatprep.subr.bf16.mxu0 %v13866_v45  ;;  %v13921_v2 = vld [vmem:[#allocation8 + $0x608] ss:$36 sps:$4 sm:$0xff]   ;;  %v13923_v45 = vld [vmem:[#allocation8 + $0x578] ss:$36 sps:$4 sm:$0xff]  }
 0x295   : > { %2640 = vmatprep.mubr.bf16.mxu1 %v19068_v28 }
 0x296   : > { %2662 = vmatpush1.bf16.msra.mxu1 %v13861_v48 }
 0x297   : > { %2735 = vmatpush1.bf16.msra.mxu0 %v13864_v29  ;;  %2663 = vmatprep.subr.bf16.mxu1 %v13869_v50 }
 0x298   : > { %2736 = vmatprep.subr.bf16.mxu0 %v13872_v51 }
 0x299   : > { %2641 = vmatmul.mubr.bf16.gmra.mxu1 %v16162_v49 }
 0x29a   : > { %2568 = vmatmul.mubr.bf16.gmra.mxu0 %v16164_v52  ;;  %2664 = vmatpush1.bf16.msra.mxu1 %v13867_v32 }
 0x29b   : > { %2683 = vmatprep.mubr.bf16.mxu1 %v16077_v18  ;;  %2737 = vmatpush1.bf16.msra.mxu0 %v13870_v54 }
 0x29c   : > { %2665 = vmatprep.subr.bf16.mxu1 %v13875_v15  ;;  %2738 = vmatprep.subr.bf16.mxu0 %v13878_v47 }
 0x29d   : > { %2756 = vmatprep.mubr.bf16.mxu0 %v19068_v28 }
 0x29e   : > { %2666 = vmatpush1.bf16.msra.mxu1 %v13873_v56 }
 0x29f   : > { %2739 = vmatpush1.bf16.msra.mxu0 %v13876_v57  ;;  %2667 = vmatprep.subr.bf16.mxu1 %v13881_v41 }
 0x2a0   : > { %12678 = vmatprep.subr.bf16.mxu0 %v13882_v60 }
 0x2a2   : > { %2668 = vmatpush2.bf16.msra.mxu1 %v13879_v20  ;;  %2757 = vmatmul.mubr.bf16.vlgmr.msra.gmra.mxu0 %v16079_v63 }
 0x2a3   : > { %12679 = vmatpush3.bf16.msra.mxu0 %v13883_v46  ;;  %2669 = vmatprep.subr.bf16.mxu1 %v13886_v19 }
 0x2a4   : > { %12680 = vmatprep.subr.bf16.mxu0 %v13887_v1  ;;  %2766 = vmatprep.mubr.bf16.mxu0 %v19068_v28 }
 0x2a6   : > { %2670 = vmatpush2.bf16.msra.mxu1 %v13884_v61 }
 0x2a7   : > { %12681 = vmatpush3.bf16.msra.mxu0 %v13888_v27  ;;  %2671 = vmatprep.subr.bf16.mxu1 %v13891_v8 }
 0x2a8   : > { %12682 = vmatprep.subr.bf16.mxu0 %v13892_v4 }
 0x2aa   : > { %2672 = vmatpush2.bf16.msra.mxu1 %v13889_v6  ;;  %2767 = vmatmul.mubr.bf16.gmra.mxu0 %v16110_v16 }
 0x2ab   : > { %12683 = vmatpush3.bf16.msra.mxu0 %v13893_v24  ;;  %2673 = vmatprep.subr.bf16.mxu1 %v13896_v12 }
 0x2ac   : > { %12684 = vmatprep.subr.bf16.mxu0 %v13897_v26  ;;  %2776 = vmatprep.mubr.bf16.mxu0 %v19068_v28 }
 0x2ae   : > { %2674 = vmatpush2.bf16.msra.mxu1 %v13894_v9 }
 0x2af   : > { %12685 = vmatpush3.bf16.msra.mxu0 %v13898_v10  ;;  %2675 = vmatprep.subr.bf16.mxu1 %v13901_v13 }
 0x2b0   : > { %12686 = vmatprep.subr.bf16.mxu0 %v13902_v7 }
 0x2b2   : > { %2676 = vmatpush2.bf16.msra.mxu1 %v13899_v0  ;;  %2777 = vmatmul.mubr.bf16.gmra.mxu0 %v16143_v3 }
 0x2b3   : > { %12687 = vmatpush3.bf16.msra.mxu0 %v13903_v30  ;;  %2677 = vmatprep.subr.bf16.mxu1 %v13906_v11 }
 0x2b4   : > { %12688 = vmatprep.subr.bf16.mxu0 %v13907_v14  ;;  %2786 = vmatprep.mubr.bf16.mxu0 %v19068_v28 }
 0x2b6   : > { %2678 = vmatpush2.bf16.msra.mxu1 %v13904_v36 }
 0x2b7   : > { %12689 = vmatpush3.bf16.msra.mxu0 %v13908_v38  ;;  %2679 = vmatprep.subr.bf16.mxu1 %v13911_v21 }
 0x2b8   : > { %12690 = vmatprep.subr.bf16.mxu0 %v13912_v43 }
 0x2ba   : > { %2680 = vmatpush2.bf16.msra.mxu1 %v13909_v59  ;;  %2787 = vmatmul.mubr.bf16.gmra.mxu0 %v16162_v49 }
 0x2bb   : > { %12691 = vmatpush3.bf16.msra.mxu0 %v13913_v37  ;;  %2829 = vmatprep.mubr.bf16.mxu0 %v16077_v18  ;;  %v13922_v18 = vld [vmem:[#allocation8 + $0x5c0] ss:$36 sps:$4 sm:$0xff]  }
 0x2bc   : > { %2681 = vmatprep.subr.bf16.mxu1 %v13916_v31  ;;  %12692 = vmatprep.subr.bf16.mxu0 %v13917_v40 }
 0x2be   : > { %2682 = vmatpush2.bf16.msra.mxu1 %v13914_v42 }
 0x2bf   : > { %12693 = vmatpush3.bf16.msra.mxu0 %v13918_v23  ;;  %13118 = vmatprep.subr.bf16.mxu1 %v13919_v25 }
 0x2c1   : > { %2684 = vmatmul.mubr.bf16.vlgmr.msra.gmra.mxu1 %v16083_v5 }
 0x2c2   : > { %2693 = vmatprep.mubr.bf16.mxu1 %v16098_v33  ;;  %2830 = vmatmul.mubr.bf16.vlgmr.msra.gmra.mxu0 %v16083_v5  ;;  %v13924_v5 = vld [vmem:[#allocation8 + $0x530] ss:$36 sps:$4 sm:$0xff]  }
 0x2c3   : > { %13119 = vmatpush3.bf16.msra.mxu1 %v13919_v25  ;;  %2837 = vmatprep.mubr.bf16.mxu0 %v16098_v33  ;;  %v13925_v33 = vld [vmem:[#allocation8 + $0x4e8] ss:$36 sps:$4 sm:$0xff]  }
 0x2c4   : > { %13120 = vmatprep.subr.bf16.mxu1 %v13920_v22 }
 0x2c7   : > { %13121 = vmatpush3.bf16.msra.mxu1 %v13920_v22 }
 0x2c8   : > { %13122 = vmatprep.subr.bf16.mxu1 %v13921_v2 }
 0x2c9   : > { %2694 = vmatmul.mubr.bf16.gmra.mxu1 %v16119_v58 }
 0x2ca   : > { %2703 = vmatprep.mubr.bf16.mxu1 %v16123_v35  ;;  %2838 = vmatmul.mubr.bf16.gmra.mxu0 %v16119_v58  ;;  %v13926_v58 = vld [vmem:[#allocation8 + $0x4a0] ss:$36 sps:$4 sm:$0xff]  }
 0x2cb   : > { %13123 = vmatpush3.bf16.msra.mxu1 %v13921_v2  ;;  %2845 = vmatprep.mubr.bf16.mxu0 %v16123_v35 }
 0x2cc   : > { %13124 = vmatprep.subr.bf16.mxu1 %v13922_v18 }
 0x2cf   : > { %13125 = vmatpush3.bf16.msra.mxu1 %v13922_v18 }
 0x2d0   : > { %13126 = vmatprep.subr.bf16.mxu1 %v13923_v45 }
 0x2d1   : > { %2704 = vmatmul.mubr.bf16.gmra.mxu1 %v16147_v17 }
 0x2d2   : > { %2713 = vmatprep.mubr.bf16.mxu1 %v16151_v39  ;;  %2846 = vmatmul.mubr.bf16.gmra.mxu0 %v16147_v17 }
 0x2d3   : > { %13127 = vmatpush3.bf16.msra.mxu1 %v13923_v45  ;;  %2853 = vmatprep.mubr.bf16.mxu0 %v16151_v39 }
 0x2d4   : > { %13128 = vmatprep.subr.bf16.mxu1 %v13924_v5 }
 0x2d7   : > { %13129 = vmatpush3.bf16.msra.mxu1 %v13924_v5 }
 0x2d8   : > { %13130 = vmatprep.subr.bf16.mxu1 %v13925_v33 }
 0x2d9   : > { %2714 = vmatmul.mubr.bf16.gmra.mxu1 %v16164_v52 }
 0x2da   : > { %2854 = vmatmul.mubr.bf16.gmra.mxu0 %v16164_v52  ;;  %13134 = vmatprep.mubr.bf16.mxu1 %v16079_v63 }
 0x2db   : > { %13131 = vmatpush3.bf16.msra.mxu1 %v13925_v33 }
 0x2dc   : > { %13132 = vmatprep.subr.bf16.mxu1 %v13926_v58 }
 0x2df   : > { %13133 = vmatpush3.bf16.msra.mxu1 %v13926_v58 }
 0x2e1   : > { %v2320_v35 = vpop.f32.mrf.mxu1 }
 0x2e2   : > { %13135 = vmatmul.mubr.bf16.vlgmr.msra.gmra.mxu1 %v16110_v16  ;;  %v2247_v17 = vpop.f32.mrf.mxu0 }
 0x2e3   : > { %13138 = vmatprep.mubr.bf16.mxu1 %v16143_v3  ;;  %v2322_v39 = vpop.f32.mrf.mxu1  ;;  %v2321_v32 = vadd.f32 %v2320_v35, %v2247_v17 }
 0x2e4   : > { %v2249_v48 = vpop.f32.mrf.mxu0 }
 0x2e5   : > { %v16227_v29 = vadd.f32 %v2322_v39, %v2249_v48  ;;  %v2324_v50 = vpop.f32.mrf.mxu1 }
 0x2e6   : > { %v2251_v51 = vpop.f32.mrf.mxu0 }
 0x2e7   : > { %v2325_v54 = vadd.f32 %v2324_v50, %v2251_v51  ;;  %v16229_v52 = vpop.f32.mrf.mxu1 }
 0x2e8   : > { %v16231_v63 = vpop.f32.mrf.mxu0 }
 0x2e9   : > { %v16233_v15 = vpack.c.bf16 %v2325_v54, %v2321_v32  ;;  %v2330_v47 = vpop.f32.mrf.mxu1 }
 0x2ea   : > { %13139 = vmatmul.mubr.bf16.gmra.mxu1 %v16162_v49  ;;  %v2257_v16 = vpop.f32.mrf.mxu0 }
 0x2eb   : > { %v2331_v3 = vadd.f32 %v2330_v47, %v2257_v16  ;;  %v2332_v56 = vpop.f32.mrf.mxu1  ;;  %13150 = vmatprep.mubr.msk.bf16.mxu0 %vm2958_vm0, %v16233_v15 }
 0x2ec   : > { %v2259_v57 = vpop.f32.mrf.mxu0 }
 0x2ed   : > { %v16238_v41 = vadd.f32 %v2332_v56, %v2259_v57  ;;  %v2334_v60 = vpop.f32.mrf.mxu1 }
 0x2ee   : > { %v2261_v20 = vpop.f32.mrf.mxu0 }
 0x2ef   : > { %v2335_v46 = vadd.f32 %v2334_v60, %v2261_v20  ;;  %v16240_v19 = vpop.f32.mrf.mxu1 }
 0x2f0   : > { %v16242_v1 = vpop.f32.mrf.mxu0 }
 0x2f1   : > { %v16244_v61 = vpack.c.bf16 %v2335_v46, %v2331_v3  ;;  %v2340_v27 = vpop.f32.mrf.mxu1 }
 0x2f2   : > { %v2267_v49 = vpop.f32.mrf.mxu0 }
 0x2f3   : > { %v2341_v8 = vadd.f32 %v2340_v27, %v2267_v49  ;;  %v2342_v4 = vpop.f32.mrf.mxu1 }
 0x2f4   : > { %v2269_v6 = vpop.f32.mrf.mxu0 }
 0x2f5   : > { %v16246_v24 = vadd.f32 %v2342_v4, %v2269_v6  ;;  %v2344_v12 = vpop.f32.mrf.mxu1 }
 0x2f6   : > { %v2271_v26 = vpop.f32.mrf.mxu0 }
 0x2f7   : > { %v2345_v9 = vadd.f32 %v2344_v12, %v2271_v26  ;;  %v16248_v10 = vpop.f32.mrf.mxu1 }
 0x2f8   : > { %v16250_v13 = vpop.f32.mrf.mxu0 }
 0x2f9   : > { %v16252_v7 = vpack.c.bf16 %v2345_v9, %v2341_v8  ;;  %v2350_v0 = vpop.f32.mrf.mxu1 }
 0x2fa   : > { %v2277_v30 = vpop.f32.mrf.mxu0 }
 0x2fb   : > { %v2351_v11 = vadd.f32 %v2350_v0, %v2277_v30  ;;  %v2352_v14 = vpop.f32.mrf.mxu1 }
 0x2fc   : > { %v2279_v36 = vpop.f32.mrf.mxu0 }
 0x2fd   : > { %v16254_v38 = vadd.f32 %v2352_v14, %v2279_v36  ;;  %v2354_v21 = vpop.f32.mrf.mxu1 }
 0x2fe   : > { %v2281_v43 = vpop.f32.mrf.mxu0 }
 0x2ff   : > { %v2355_v59 = vadd.f32 %v2354_v21, %v2281_v43  ;;  %v16264_v45 = vpop.f32.mrf.mxu1 }
 0x300   : > { %v16256_v37 = vpop.f32.mrf.mxu0 }
 0x301   : > { %v16258_v31 = vpack.c.bf16 %v2355_v59, %v2351_v11 }
 0x302   : > { %v2466_v40 = vpop.f32.mrf.mxu0 }
 0x304   : > { %v16260_v42 = vpop.f32.mrf.mxu0 }
 0x306   : > { %v2470_v23 = vpop.f32.mrf.mxu0 }
 0x308   : > { %v16262_v25 = vpop.f32.mrf.mxu0 }
 0x30a   : > { %v2476_v22 = vpop.f32.mrf.mxu0 }
 0x30c   : > { %v2478_v2 = vpop.f32.mrf.mxu0 }
 0x30e   : > { %v2480_v18 = vpop.f32.mrf.mxu0 }
 0x310   : > { %v2482_v5 = vpop.f32.mrf.mxu0 }
 0x312   : > { %v2486_v35 = vpop.f32.mrf.mxu0 }
 0x314   : > { %v2488_v50 = vpop.f32.mrf.mxu0 }
 0x316   : > { %v2490_v16 = vpop.f32.mrf.mxu0 }
 0x318   : > { %v2492_v60 = vpop.f32.mrf.mxu0 }
 0x31a   : > { %v2496_v8 = vpop.f32.mrf.mxu0 }
 0x31c   : > { %v2498_v26 = vpop.f32.mrf.mxu0 }
 0x31e   : > { %v2500_v14 = vpop.f32.mrf.mxu0 }
 0x320   : > { %v2502_v59 = vpop.f32.mrf.mxu0 }
 0x321   : > { %v2393_v33 = vpop.f32.mrf.mxu1 }
 0x322   : > { %v2467_v58 = vadd.f32 %v2466_v40, %v2393_v33 }
 0x323   : > { %v16266_v17 = vpop.f32.mrf.mxu1 }
 0x325   : > { %v2397_v39 = vpop.f32.mrf.mxu1 }
 0x326   : > { %v2471_v48 = vadd.f32 %v2470_v23, %v2397_v39 }
 0x327   : > { %v2399_v51 = vpop.f32.mrf.mxu1 }
 0x328   : > { %v16268_v32 = vpack.c.bf16 %v2471_v48, %v2467_v58 }
 0x329   : > { %v2403_v54 = vpop.f32.mrf.mxu1 }
 0x32a   : > { %19164 = vst [vmem:[#allocation35_spill] sm:$0xff] %v16268_v32  ;;  %v2477_v47 = vadd.f32 %v2476_v22, %v2403_v54 }
 0x32b   : > { %v2405_v3 = vpop.f32.mrf.mxu1 }
 0x32d   : > { %v2407_v56 = vpop.f32.mrf.mxu1 }
 0x32e   : > { %v2481_v57 = vadd.f32 %v2480_v18, %v2407_v56 }
 0x32f   : > { %v2409_v20 = vpop.f32.mrf.mxu1 }
 0x330   : > { %v16270_v46 = vpack.c.bf16 %v2481_v57, %v2477_v47 }
 0x331   : > { %v2413_v27 = vpop.f32.mrf.mxu1 }
 0x332   : > { %19165 = vst [vmem:[#allocation36_spill] sm:$0xff] %v16270_v46  ;;  %v2487_v49 = vadd.f32 %v2486_v35, %v2413_v27 }
 0x333   : > { %v2415_v4 = vpop.f32.mrf.mxu1 }
 0x334   : > { %v2489_v35 = vadd.f32 %v2488_v50, %v2415_v4 }
 0x335   : > { %v2417_v6 = vpop.f32.mrf.mxu1 }
 0x336   : > { %v2491_v12 = vadd.f32 %v2490_v16, %v2417_v6  ;;  %v2479_v6 = vadd.f32 %v2478_v2, %v2405_v3  ;;  %v2473_v2 = vadd.f32 %v16262_v25, %v2399_v51 }
 0x337   : > { %v2419_v9 = vpop.f32.mrf.mxu1 }
 0x338   : > { %v16272_v0 = vpack.c.bf16 %v2491_v12, %v2487_v49  ;;  %v2493_v23 = vadd.f32 %v2492_v60, %v2419_v9  ;;  %v2483_v49 = vadd.f32 %v2482_v5, %v2409_v20 }
 0x339   : > { %v2423_v30 = vpop.f32.mrf.mxu1 }
 0x33a   : > { %19166 = vst [vmem:[#allocation37_spill] sm:$0xff] %v16272_v0  ;;  %v2497_v11 = vadd.f32 %v2496_v8, %v2423_v30  ;;  %v16282_v47 = vpack.c.bf16 %v2493_v23, %v2489_v35  ;;  %v16300_v9 = vpack.c.bf16 %v2483_v49, %v2479_v6 }
 0x33b   : > { %v2425_v36 = vpop.f32.mrf.mxu1 }
 0x33c   : > { %v2499_v22 = vadd.f32 %v2498_v26, %v2425_v36 }
 0x33d   : > { %v2427_v21 = vpop.f32.mrf.mxu1 }
 0x33e   : > { %v2501_v43 = vadd.f32 %v2500_v14, %v2427_v21 }
 0x33f   : > { %v2429_v40 = vpop.f32.mrf.mxu1 }
 0x340   : > { %v16274_v18 = vpack.c.bf16 %v2501_v43, %v2497_v11  ;;  %v2503_v33 = vadd.f32 %v2502_v59, %v2429_v40  ;;  %v2978_v11 = vsel %vm2958_vm0, %v16282_v47, 0  ;;  %v2469_v43 = vadd.f32 %v16260_v42, %v16266_v17 }
 0x341   : > { %v16276_v58 = vpop.f32.mrf.mxu1 }
 0x342   : > { %19167 = vst [vmem:[#allocation38_spill] sm:$0xff] %v16274_v18  ;;  %v16278_v39 = vpack.c.bf16 %v2503_v33, %v2499_v22  ;;  %v16280_v48 = vpop.f32.mrf.mxu0  ;;  %v16315_v23 = vpack.c.bf16 %v2473_v2, %v2469_v43  ;;  %v2975_v33 = vsel %vm2958_vm0, %v16300_v9, 0 }
 0x343   : > { %v2614_v54 = vpop.f32.mrf.mxu1 }
 0x344   : > { %v2541_v16 = vpop.f32.mrf.mxu0  ;;  %13358 = vmatprep.subr.msk.bf16.mxu0 %vm2958_vm0, %v16278_v39  ;;  %v2981_v56 = vsel %vm2958_vm0, %v16278_v39, 0  ;;  %v2972_v6 = vsel %vm2958_vm0, %v16315_v23, 0 }
 0x345   : > { %v16288_v57 = vadd.f32 %v2614_v54, %v2541_v16  ;;  %v16290_v60 = vpop.f32.mrf.mxu1  ;;  %13143 = vmatpush3.bf16.xpose.msra.mxu0 %v2981_v56 }
 0x346   : > { %v16292_v50 = vpop.f32.mrf.mxu0  ;;  %13359 = vmatprep.subr.msk.bf16.mxu0 %vm2958_vm0, %v16282_v47 }
 0x347   : > { %19168 = vst [vmem:[#allocation39_spill] sm:$0xff] %v16288_v57  ;;  %v16296_v27 = vpop.f32.mrf.mxu1 }
 0x348   : > { %19169 = vst [vmem:[#allocation40_spill] sm:$0xff] %v16296_v27  ;;  %v16298_v8 = vpop.f32.mrf.mxu0 }
 0x349   : > { %19170 = vst [vmem:[#allocation41_spill] sm:$0xff] %v16298_v8  ;;  %v2622_v4 = vpop.f32.mrf.mxu1 }
 0x34a   : > { %v2549_v12 = vpop.f32.mrf.mxu0 }
 0x34b   : > { %v2624_v26 = vpop.f32.mrf.mxu1 }
 0x34c   : > { %v2551_v30 = vpop.f32.mrf.mxu0 }
 0x34d   : > { %v16304_v14 = vadd.f32 %v2624_v26, %v2551_v30  ;;  %v2626_v36 = vpop.f32.mrf.mxu1  ;;  %13145 = vmatpush3.bf16.xpose.msra.mxu0 %v2978_v11 }
 0x34e   : > { %v2553_v21 = vpop.f32.mrf.mxu0  ;;  %13360 = vmatprep.subr.msk.bf16.mxu0 %vm2958_vm0, %v16300_v9 }
 0x34f   : > { %19171 = vst [vmem:[#allocation42_spill] sm:$0xff] %v16304_v14  ;;  %v16308_v5 = vpop.f32.mrf.mxu1 }
 0x350   : > { %19172 = vst [vmem:[#allocation43_spill] sm:$0xff] %v16308_v5  ;;  %v16311_v3 = vpop.f32.mrf.mxu0 }
 0x351   : > { %19173 = vst [vmem:[#allocation44_spill] sm:$0xff] %v16311_v3  ;;  %v2632_v20 = vpop.f32.mrf.mxu1 }
 0x352   : > { %v2559_v59 = vpop.f32.mrf.mxu0 }
 0x353   : > { %v2634_v40 = vpop.f32.mrf.mxu1  ;;  %v2633_v28 = vadd.f32 %v2632_v20, %v2559_v59  ;;  %v2327_v20 = vadd.f32 %v16229_v52, %v16231_v63  ;;  %v2627_v59 = vadd.f32 %v2626_v36, %v2553_v21 }
 0x354   : > { %v2561_v22 = vpop.f32.mrf.mxu0 }
 0x355   : > { %v16319_v35 = vadd.f32 %v2634_v40, %v2561_v22  ;;  %v2636_v54 = vpop.f32.mrf.mxu1  ;;  %13147 = vmatpush3.bf16.xpose.msra.mxu0 %v2975_v33 }
 0x356   : > { %v2563_v16 = vpop.f32.mrf.mxu0  ;;  %13361 = vmatprep.subr.msk.bf16.mxu0 %vm2958_vm0, %v16315_v23 }
 0x357   : > { %19174 = vst [vmem:[#allocation45_spill] sm:$0xff] %v16319_v35  ;;  %v16323_v25 = vpop.f32.mrf.mxu1  ;;  %v2637_v40 = vadd.f32 %v2636_v54, %v2563_v16 }
 0x358   : > { %19175 = vst [vmem:[#allocation46_spill] sm:$0xff] %v16323_v25  ;;  %v16325_v51 = vpop.f32.mrf.mxu0 }
 0x359   : > { %19176 = vst [vmem:[#allocation47_spill] sm:$0xff] %v16325_v51  ;;  %v2642_v42 = vpop.f32.mrf.mxu1 }
 0x35a   : > { %v2569_v17 = vpop.f32.mrf.mxu0 }
 0x35b   : > { %v2644_v56 = vpop.f32.mrf.mxu1  ;;  %v2643_v2 = vadd.f32 %v2642_v42, %v2569_v17  ;;  %v16358_v17 = vpack.c.bf16 %v2327_v20, %v16227_v29  ;;  %v2617_v29 = vadd.f32 %v16290_v60, %v16292_v50 }
 0x35c   : > { %v2571_v49 = vpop.f32.mrf.mxu0 }
 0x35d   : > { %v16329_v26 = vadd.f32 %v2644_v56, %v2571_v49  ;;  %v2646_v30 = vpop.f32.mrf.mxu1  ;;  %13149 = vmatpush3.bf16.xpose.msra.mxu0 %v2972_v6  ;;  %v16341_v49 = vpack.c.bf16 %v2637_v40, %v2633_v28  ;;  %v2623_v28 = vadd.f32 %v2622_v4, %v2549_v12  ;;  %v2613_v4 = vadd.f32 %v16276_v58, %v16280_v48 }
 0x35e   : > { %v2573_v11 = vpop.f32.mrf.mxu0  ;;  %v2337_v48 = vadd.f32 %v16240_v19, %v16242_v1 }
 0x35f   : > { %19177 = vst [vmem:[#allocation48_spill] sm:$0xff] %v16329_v26  ;;  %v2647_v43 = vadd.f32 %v2646_v30, %v2573_v11  ;;  %v16360_v30 = vpack.c.bf16 %v2627_v59, %v2623_v28  ;;  %v16380_v36 = vpack.c.bf16 %v2617_v29, %v2613_v4  ;;  %v2347_v59 = vadd.f32 %v16248_v10, %v16250_v13  ;;  %v16394_v28 = vpop.f32.mrf.mxu1 }
 0x360   : > { %v16331_v22 = vpop.f32.mrf.mxu0  ;;  %19180 = vst [vmem:[#allocation51_spill] sm:$0xff] %v16394_v28  ;;  %v16401_v4 = vpack.c.bf16 %v2337_v48, %v16238_v41  ;;  %v2357_v41 = vadd.f32 %v16264_v45, %v16256_v37 }
 0x361   : > { %19178 = vst [vmem:[#allocation49_spill] sm:$0xff] %v16331_v22  ;;  %v16333_v33 = vpack.c.bf16 %v2647_v43, %v2643_v2  ;;  %v3562_v2 = vsel %vm2958_vm0, %v16341_v49, 0  ;;  %v3559_v43 = vsel %vm2958_vm0, %v16360_v30, 0  ;;  %v3556_v58 = vsel %vm2958_vm0, %v16380_v36, 0 }
 0x362   : > { %v16335_v34 = vpop.f32.mrf.mxu0  ;;  %v16404_v55 = vpack.c.bf16 %v2347_v59, %v16246_v24 }
 0x363   : > { %13366 = vmatprep.subr.msk.bf16.mxu0 %vm2958_vm0, %v16333_v33  ;;  %v3565_v56 = vsel %vm2958_vm0, %v16333_v33, 0 }
 0x364   : > { %v2760_v6 = vpop.f32.mrf.mxu0  ;;  %13151 = vmatmul.mubr.msk.bf16.vlgmr.msra.gmra.mxu0 %vm2958_vm0, %v16244_v61 }
 0x365   : > { %13154 = vmatprep.mubr.msk.bf16.mxu0 %vm2958_vm0, %v16252_v7  ;;  %13207 = vmatpush3.bf16.xpose.msra.mxu0 %v3565_v56 }
 0x366   : > { %v16347_v54 = vpop.f32.mrf.mxu0  ;;  %13367 = vmatprep.subr.msk.bf16.mxu0 %vm2958_vm0, %v16341_v49 }
 0x368   : > { %v16353_v16 = vpop.f32.mrf.mxu0 }
 0x369   : > { %19179 = vst [vmem:[#allocation50_spill] sm:$0xff] %v16353_v16 }
 0x36a   : > { %v16355_v42 = vpop.f32.mrf.mxu0 }
 0x36c   : > { %v2770_v11 = vpop.f32.mrf.mxu0  ;;  %13155 = vmatmul.mubr.msk.bf16.gmra.mxu0 %vm2958_vm0, %v16258_v31 }
 0x36d   : > { %13209 = vmatpush3.bf16.xpose.msra.mxu0 %v3562_v2  ;;  %13214 = vmatprep.mubr.msk.bf16.mxu0 %vm2958_vm0, %v16358_v17 }
 0x36e   : > { %v16368_v52 = vpop.f32.mrf.mxu0  ;;  %13368 = vmatprep.subr.msk.bf16.mxu0 %vm2958_vm0, %v16360_v30 }
 0x370   : > { %v16374_v63 = vpop.f32.mrf.mxu0 }
 0x372   : > { %v16378_v12 = vpop.f32.mrf.mxu0 }
 0x374   : > { %v2780_v21 = vpop.f32.mrf.mxu0 }
 0x375   : > { %13211 = vmatpush3.bf16.xpose.msra.mxu0 %v3559_v43 }
 0x376   : > { %v2782_v40 = vpop.f32.mrf.mxu0  ;;  %13369 = vmatprep.subr.msk.bf16.mxu0 %vm2958_vm0, %v16380_v36 }
 0x378   : > { %v16386_v56 = vpop.f32.mrf.mxu0 }
 0x37a   : > { %v2788_v60 = vpop.f32.mrf.mxu0 }
 0x37c   : > { %v2790_v50 = vpop.f32.mrf.mxu0 }
 0x37d   : > { %13213 = vmatpush3.bf16.xpose.msra.mxu0 %v3556_v58 }
 0x37e   : > { %v2792_v20 = vpop.f32.mrf.mxu0 }
 0x380   : > { %v16396_v2 = vpop.f32.mrf.mxu0 }
 0x381   : > { %v16398_v29 = vpop.f32.mrf.mxu1 }
 0x382   : > { %v12694_v43 = vpop.f32.mrf.mxu0 }
 0x383   : > { %v2687_v58 = vpop.f32.mrf.mxu1 }
 0x384   : > { %v16406_v62 = vadd.f32 %v2760_v6, %v2687_v58  ;;  %v12695_v19 = vpop.f32.mrf.mxu0  ;;  %13215 = vmatmul.mubr.msk.bf16.vlgmr.msra.gmra.mxu0 %vm2958_vm0, %v16401_v4  ;;  %v16417_v6 = vpack.c.bf16 %v2357_v41, %v16254_v38 }
 0x385   : > { %v12696_v1 = vadd.f32 %v12695_v19, %v12694_v43  ;;  %v2689_v10 = vpop.f32.mrf.mxu1  ;;  %13218 = vmatprep.mubr.msk.bf16.mxu0 %vm2958_vm0, %v16404_v55 }
 0x386   : > { %19181 = vst [vmem:[#allocation52_spill] sm:$0xff] %v16406_v62  ;;  %v12697_v13 = vpop.f32.mrf.mxu0 }
 0x387   : > { %v16414_v48 = vpop.f32.mrf.mxu1 }
 0x388   : > { %v12698_v24 = vpop.f32.mrf.mxu0 }
 0x389   : > { %v2695_v59 = vpop.f32.mrf.mxu1 }
 0x38a   : > { %v12700_v58 = vpop.f32.mrf.mxu0 }
 0x38b   : > { %v2697_v53 = vpop.f32.mrf.mxu1 }
 0x38c   : > { %v16419_v18 = vadd.f32 %v2770_v11, %v2697_v53  ;;  %v12701_v43 = vpop.f32.mrf.mxu0  ;;  %13219 = vmatmul.mubr.msk.bf16.gmra.mxu0 %vm2958_vm0, %v16417_v6 }
 0x38d   : > { %v12702_v19 = vadd.f32 %v12701_v43, %v12700_v58  ;;  %v2699_v0 = vpop.f32.mrf.mxu1 }
 0x38e   : > { %19182 = vst [vmem:[#allocation53_spill] sm:$0xff] %v16419_v18  ;;  %v12703_v46 = vpop.f32.mrf.mxu0 }
 0x38f   : > { %v16423_v37 = vpop.f32.mrf.mxu1 }
 0x390   : > { %v12704_v45 = vpop.f32.mrf.mxu0 }
 0x391   : > { %v2705_v32 = vpop.f32.mrf.mxu1 }
 0x392   : > { %v12706_v57 = vpop.f32.mrf.mxu0 }
 0x393   : > { %v2707_v27 = vpop.f32.mrf.mxu1 }
 0x394   : > { %v16425_v8 = vadd.f32 %v2780_v21, %v2707_v27  ;;  %v12707_v38 = vpop.f32.mrf.mxu0 }
 0x395   : > { %v12708_v41 = vadd.f32 %v12707_v38, %v12706_v57  ;;  %v2709_v14 = vpop.f32.mrf.mxu1  ;;  %v2779_v57 = vadd.f32 %v16378_v12, %v2705_v32  ;;  %v2773_v38 = vadd.f32 %v16368_v52, %v2699_v0 }
 0x396   : > { %v12709_v53 = vpop.f32.mrf.mxu0  ;;  %v2783_v28 = vadd.f32 %v2782_v40, %v2709_v14  ;;  %v2769_v14 = vadd.f32 %v16355_v42, %v2695_v59 }
 0x397   : > { %v16427_v11 = vpop.f32.mrf.mxu1 }
 0x398   : > { %v12710_v5 = vpop.f32.mrf.mxu0  ;;  %v16437_v18 = vpack.c.bf16 %v2783_v28, %v2779_v57  ;;  %v16444_v32 = vpack.c.bf16 %v2773_v38, %v2769_v14  ;;  %v19185_v57 = vlaneseq }
 0x399   : > { %v2715_v3 = vpop.f32.mrf.mxu1 }
 0x39a   : > { %v12712_v35 = vpop.f32.mrf.mxu0  ;;  %v2789_v22 = vadd.f32 %v2788_v60, %v2715_v3  ;;  %v2937_v38 = vand.u32 127, %v19185_v57 }
 0x39b   : > { %v2717_v58 = vpop.f32.mrf.mxu1 }
 0x39c   : > { %v16429_v43 = vadd.f32 %v2790_v50, %v2717_v58  ;;  %v12713_v25 = vpop.f32.mrf.mxu0  ;;  %vm16466_vm1 = vcmp.le.s32.totalorder %v2937_v38, %v16023_v44 }
 0x39d   : > { %v12714_v51 = vadd.f32 %v12713_v25, %v12712_v35  ;;  %v2719_v26 = vpop.f32.mrf.mxu1  ;;  %v12705_v35 = vadd.f32 %v12704_v45, %v12703_v46 }
 0x39e   : > { %v2793_v62 = vadd.f32 %v2792_v20, %v2719_v26  ;;  %v12715_v0 = vpop.f32.mrf.mxu0 }
 0x39f   : > { %v16431_v27 = vpop.f32.mrf.mxu1 }
 0x3a0   : > { %v16434_v21 = vpack.c.bf16 %v2793_v62, %v2789_v22  ;;  %v2763_v62 = vadd.f32 %v16347_v54, %v2689_v10  ;;  %v12699_v22 = vadd.f32 %v12698_v24, %v12697_v13  ;;  %v12716_v54 = vpop.f32.mrf.mxu0  ;;  %v12711_v13 = vadd.f32 %v12710_v5, %v12709_v53 }
 0x3a1   : > { %v12717_v10 = vadd.f32 %v12716_v54, %v12715_v0  ;;  %v2929_v5 = vadd.s32 8, %v16023_v44 }
 0x3a2   : > { %v13136_v16 = vpop.f32.mrf.mxu1  ;;  %13158 = vmatprep.subr.bf16.mxu1 %v16434_v21 }
 0x3a3   : > { %v2905_v50 = vadd.f32 %v13136_v16, %v12702_v19  ;;  %13159 = vmatpush3.bf16.msra.mxu1 %v16434_v21  ;;  %v2759_v16 = vadd.f32 %v16335_v34, %v16398_v29  ;;  %vm16479_vm3 = vcmp.le.s32.totalorder %v2937_v38, %v2929_v5 }
 0x3a4   : > { %v2896_v3 = vpop.f32.mrf.mxu1  ;;  %13160 = vmatprep.subr.bf16.mxu1 %v16437_v18 }
 0x3a5   : > { %v2897_v25 = vadd.f32 %v12696_v1, %v2896_v3  ;;  %v16452_v40 = vpack.c.bf16 %v2763_v62, %v2759_v16  ;;  %v2931_v3 = vadd.s32 24, %v16023_v44 }
 0x3a6   : > { %v13137_v26 = vpop.f32.mrf.mxu1 }
 0x3a7   : > { %v2908_v52 = vadd.f32 %v13137_v26, %v12705_v35  ;;  %13161 = vmatpush3.bf16.msra.mxu1 %v16437_v18  ;;  %v2932_v26 = vadd.s32 32, %v16023_v44  ;;  %vm16486_vm4 = vcmp.le.s32.totalorder %v2937_v38, %v2931_v3 }
 0x3a8   : > { %v2899_v12 = vpop.f32.mrf.mxu1  ;;  %13162 = vmatprep.subr.bf16.mxu1 %v16444_v32 }
 0x3a9   : > { %v16450_v42 = vpack.c.bf16 %v2908_v52, %v2905_v50  ;;  %v2900_v46 = vadd.f32 %v12699_v22, %v2899_v12  ;;  %v2934_v12 = vadd.s32 48, %v16023_v44  ;;  %vm16495_vm5 = vcmp.le.s32.totalorder %v2937_v38, %v2932_v26 }
 0x3aa   : > { %v13140_v60 = vpop.f32.mrf.mxu1 }
 0x3ab   : > { %19183 = vst [vmem:[#allocation54_spill] sm:$0xff] %v16450_v42  ;;  %v16454_v20 = vpack.c.bf16 %v2900_v46, %v2897_v25  ;;  %v2921_v28 = vadd.f32 %v13140_v60, %v12714_v51  ;;  %13163 = vmatpush3.bf16.msra.mxu1 %v16444_v32  ;;  %v2930_v51 = vadd.s32 16, %v16023_v44  ;;  %vm16502_vm6 = vcmp.le.s32.totalorder %v2937_v38, %v2934_v12 }
 0x3ac   : > { %v2912_v1 = vpop.f32.mrf.mxu1  ;;  %13164 = vmatprep.subr.bf16.mxu1 %v16452_v40 }
 0x3ad   : > { %19184 = vst [vmem:[#allocation55_spill] sm:$0xff] %v16454_v20  ;;  %v2913_v34 = vadd.f32 %v12708_v41, %v2912_v1  ;;  %vm16471_vm2 = vcmp.le.s32.totalorder %v2937_v38, %v2930_v51 }
 0x3ae   : > { %v13141_v29 = vpop.f32.mrf.mxu1 }
 0x3af   : > { %v2924_v24 = vadd.f32 %v13141_v29, %v12717_v10  ;;  %13165 = vmatpush3.bf16.msra.mxu1 %v16452_v40  ;;  %v2933_v10 = vadd.s32 40, %v16023_v44 }
 0x3b0   : > { %v2915_v59 = vpop.f32.mrf.mxu1 }
 0x3b1   : > { %v16459_v19 = vpack.c.bf16 %v2924_v24, %v2921_v28  ;;  %v2916_v45 = vadd.f32 %v12711_v13, %v2915_v59  ;;  %v2935_v24 = vadd.s32 56, %v16023_v44  ;;  %vm16511_vm7 = vcmp.le.s32.totalorder %v2937_v38, %v2933_v10 }
 0x3b3   : > { %v16461_v58 = vpack.c.bf16 %v2916_v45, %v2913_v34  ;;  %vm16517_vm8 = vcmp.le.s32.totalorder %v2937_v38, %v2935_v24 }
 0x424   : > { %v13152_v50 = vpop.f32.mrf.mxu0 }
 0x425   : > { %v3050_v22 = vsel %vm16471_vm2, %v13152_v50, -inf }
 0x426   : > { %v3017_v53 = vpop.f32.mrf.mxu0  ;;  %v3062_v60 = vsel %vm2958_vm0, %v3050_v22, -inf }
 0x427   : > { %v3048_v35 = vsel %vm16466_vm1, %v3017_v53, -inf }
 0x428   : > { %v13153_v25 = vpop.f32.mrf.mxu0  ;;  %v3056_v62 = vsel %vm2958_vm0, %v3048_v35, -inf }
 0x429   : > { %3057 = vmax.xlane.f32.xlu0 %v3056_v62  ;;  %v3051_v34 = vsel %vm16486_vm4, %v13153_v25, -inf }
 0x42a   : > { %v3020_v16 = vpop.f32.mrf.mxu0  ;;  %v3065_v51 = vsel %vm2958_vm0, %v3051_v34, -inf }
 0x42b   : > { %v3049_v46 = vsel %vm16479_vm3, %v3020_v16, -inf }
 0x42c   : > { %v13156_v54 = vpop.f32.mrf.mxu0  ;;  %v3059_v28 = vsel %vm2958_vm0, %v3049_v46, -inf }
 0x42d   : > { %3063 = vmax.xlane.f32.xlu0 %v3062_v60  ;;  %3060 = vmax.xlane.f32.xlu1 %v3059_v28  ;;  %v3054_v5 = vsel %vm16502_vm6, %v13156_v54, -inf }
 0x42e   : > { %v3033_v13 = vpop.f32.mrf.mxu0  ;;  %v3074_v62 = vsel %vm2958_vm0, %v3054_v5, -inf }
 0x42f   : > { %v3052_v59 = vsel %vm16495_vm5, %v3033_v13, -inf }
 0x430   : > { %v13157_v45 = vpop.f32.mrf.mxu0  ;;  %v3068_v57 = vsel %vm2958_vm0, %v3052_v59, -inf }
 0x431   : > { %3066 = vmax.xlane.f32.xlu1 %v3065_v51  ;;  %3069 = vmax.xlane.f32.xlu0 %v3068_v57  ;;  %v3055_v16 = vsel %vm16517_vm8, %v13157_v45, -inf }
 0x432   : > { %v3036_v3 = vpop.f32.mrf.mxu0  ;;  %v3077_v12 = vsel %vm2958_vm0, %v3055_v16, -inf }
 0x433   : > { %v3053_v25 = vsel %vm16511_vm7, %v3036_v3, -inf }
 0x434   : > { %v3071_v26 = vsel %vm2958_vm0, %v3053_v25, -inf }
 0x435   : > { %3075 = vmax.xlane.f32.xlu0 %v3074_v62  ;;  %3072 = vmax.xlane.f32.xlu1 %v3071_v26 }
 0x439   : > { %3078 = vmax.xlane.f32.xlu1 %v3077_v12 }
 0x4b2   : > { %v3058_v38 = vpop.xlane.xlu0 %3057 }
 0x4b3   : > { %v3080_v54 = vsub.f32 %v3048_v35, %v3058_v38 }
 0x4b5   : > { %v3088_v13 = vmul.f32 1.442695, %v3080_v54 }
 0x4b6   : > { %v3064_v60 = vpop.xlane.xlu0 %3063  ;;  %v3061_v28 = vpop.xlane.xlu1 %3060 }
 0x4b7   : > { %v3082_v10 = vsub.f32 %v3050_v22, %v3064_v60  ;;  %v3081_v51 = vsub.f32 %v3049_v46, %v3061_v28 }
 0x4b9   : > { %v3092_v24 = vmul.f32 1.442695, %v3082_v10  ;;  %v3090_v20 = vmul.f32 1.442695, %v3081_v51 }
 0x4ba   : > { %v3067_v57 = vpop.xlane.xlu1 %3066  ;;  %v3070_v3 = vpop.xlane.xlu0 %3069 }
 0x4bb   : > { %14855 = vpow2.f32 %v3092_v24  ;;  %v3083_v44 = vsub.f32 %v3051_v34, %v3067_v57  ;;  %v3084_v62 = vsub.f32 %v3052_v59, %v3070_v3 }
 0x4bc   : > { %14857 = vpow2.f32 %v3088_v13 }
 0x4bd   : > { %v3094_v45 = vmul.f32 1.442695, %v3083_v44  ;;  %v3096_v12 = vmul.f32 1.442695, %v3084_v62 }
 0x4be   : > { %v3076_v26 = vpop.xlane.xlu0 %3075  ;;  %v3073_v10 = vpop.xlane.xlu1 %3072 }
 0x4bf   : > { %14859 = vpow2.f32 %v3094_v45  ;;  %v3086_v42 = vsub.f32 %v3054_v5, %v3076_v26  ;;  %v3085_v51 = vsub.f32 %v3053_v25, %v3073_v10  ;;  %v16553_v45 = vpop.f32.mrf.mxu0 }
 0x4c0   : > { %14861 = vpow2.f32 %v3090_v20 }
 0x4c1   : > { %v3100_v35 = vmul.f32 1.442695, %v3086_v42  ;;  %v3098_v3 = vmul.f32 1.442695, %v3085_v51 }
 0x4c2   : > { %v3079_v13 = vpop.xlane.xlu1 %3078 }
 0x4c3   : > { %14863 = vpow2.f32 %v3100_v35  ;;  %v3087_v24 = vsub.f32 %v3055_v16, %v3079_v13 }
 0x4c4   : > { %14865 = vpow2.f32 %v3096_v12 }
 0x4c5   : > { %v3102_v57 = vmul.f32 1.442695, %v3087_v24 }
 0x4c7   : > { %14867 = vpow2.f32 %v3102_v57 }
 0x4c8   : > { %v16528_v22 = vpop.eup %14855  ;;  %14869 = vpow2.f32 %v3098_v3 }
 0x4c9   : > { %v3110_v46 = vsel %vm2958_vm0, %v16528_v22, 0.0  ;;  %v14858_v38 = vpop.eup %14857 }
 0x4ca   : > { %3111 = vadd.xlane.f32.xlu0 %v3110_v46  ;;  %v3104_v54 = vsel %vm2958_vm0, %v14858_v38, 0.0 }
 0x4cc   : > { %v14860_v34 = vpop.eup %14859 }
 0x4cd   : > { %v3113_v44 = vsel %vm2958_vm0, %v14860_v34, 0.0  ;;  %v14862_v59 = vpop.eup %14861 }
 0x4ce   : > { %3105 = vadd.xlane.f32.xlu0 %v3104_v54  ;;  %3114 = vadd.xlane.f32.xlu1 %v3113_v44  ;;  %v3107_v5 = vsel %vm2958_vm0, %v14862_v59, 0.0 }
 0x4d0   : > { %v16534_v20 = vpop.eup %14863 }
 0x4d1   : > { %v3122_v42 = vsel %vm2958_vm0, %v16534_v20, 0.0  ;;  %v16539_v60 = vpop.eup %14865 }
 0x4d2   : > { %3123 = vadd.xlane.f32.xlu0 %v3122_v42  ;;  %3108 = vadd.xlane.f32.xlu1 %v3107_v5  ;;  %v3116_v28 = vsel %vm2958_vm0, %v16539_v60, 0.0 }
 0x4d6   : > { %3117 = vadd.xlane.f32.xlu0 %v3116_v28 }
 0x4e3   : > { %3245 = vrot.lane.b32.xlu1 %v16282_v47, %s15525_s2  ;;  %v14868_v47 = vpop.eup %14867 }
 0x4e4   : > { %v14870_v62 = vpop.eup %14869 }
 0x4e5   : > { %v3119_v26 = vsel %vm2958_vm0, %v14870_v62, 0.0 }
 0x4e7   : > { %3243 = vrot.lane.b32.xlu1 %v16300_v9, %s15525_s2  ;;  %v3125_v9 = vsel %vm2958_vm0, %v14868_v47, 0.0 }
 0x4ec   : > { %3247 = vrot.lane.b32.xlu0 %v16278_v39, %s15525_s2  ;;  %v3601_v39 = vpop.f32.mrf.mxu0 }
 0x4f0   : > { %3229 = vrot.lane.b32.xlu0 %v16233_v15, %s15525_s2  ;;  %v16559_v15 = vsel %vm16466_vm1, %v3601_v39, -inf }
 0x4f4   : > { %3233 = vrot.lane.b32.xlu0 %v16252_v7, %s15525_s2  ;;  %v3640_v7 = vsel %vm2958_vm0, %v16559_v15, -inf }
 0x50b   : > { %3126 = vadd.xlane.f32.xlu1 %v3125_v9 }
 0x50f   : > { %3120 = vadd.xlane.f32.xlu1 %v3119_v26 }
 0x513   : > { %3641 = vmax.xlane.f32.xlu0 %v3640_v7 }
 0x520   : > { %3241 = vrot.lane.b32.xlu1 %v16315_v23, %s15525_s2 }
 0x524   : > { %3231 = vrot.lane.b32.xlu1 %v16244_v61, %s15525_s2 }
 0x528   : > { %3235 = vrot.lane.b32.xlu1 %v16258_v31, %s15525_s2 }
 0x553   : > { %v3112_v25 = vpop.xlane.xlu0 %3111 }
 0x557   : > { %v3106_v16 = vpop.xlane.xlu0 %3105  ;;  %v3115_v12 = vpop.xlane.xlu1 %3114 }
 0x558   : > { %14871 = vrcp.f32 %v3115_v12 }
 0x559   : > { %14873 = vrcp.f32 %v3106_v16 }
 0x55a   : > { %14875 = vrcp.f32 %v3112_v25 }
 0x55b   : > { %v3124_v35 = vpop.xlane.xlu0 %3123  ;;  %v3109_v46 = vpop.xlane.xlu1 %3108 }
 0x55c   : > { %14877 = vrcp.f32 %v3109_v46 }
 0x55f   : > { %v3118_v54 = vpop.xlane.xlu0 %3117  ;;  %v3246_v3 = vpop.permute.xlu1 %3245 }
 0x560   : > { %v3268_v9 = vsel %vm2958_vm0, %v3246_v3, 0 }
 0x563   : > { %v3248_v44 = vpop.permute.xlu0 %3247  ;;  %v3244_v39 = vpop.permute.xlu1 %3243 }
 0x564   : > { %13362 = vmatprep.subr.msk.bf16.mxu1 %vm2958_vm0, %v3248_v44  ;;  %v3271_v57 = vsel %vm2958_vm0, %v3248_v44, 0 }
 0x565   : > { %v14872_v23 = vpop.eup %14871 }
 0x566   : > { %v14874_v42 = vpop.eup %14873  ;;  %v3135_v28 = vmul.f32 %v14872_v23, %v14860_v34 }
 0x567   : > { %v14876_v5 = vpop.eup %14875  ;;  %v3129_v10 = vmul.f32 %v14874_v42, %v14858_v38 }
 0x568   : > { %v3133_v13 = vmul.f32 %v14876_v5, %v16528_v22  ;;  %v3265_v22 = vsel %vm2958_vm0, %v3244_v39, 0  ;;  %v3230_v5 = vpop.permute.xlu0 %3229 }
 0x569   : > { %v14878_v61 = vpop.eup %14877 }
 0x56a   : > { %v3131_v31 = vmul.f32 %v14878_v61, %v14862_v59  ;;  %v3145_v51 = vpack.c.bf16 %v3135_v28, %v3133_v13 }
 0x56c   : > { %v3144_v24 = vpack.c.bf16 %v3131_v31, %v3129_v10  ;;  %v3234_v28 = vpop.permute.xlu0 %3233 }
 0x56e   : > { %13166 = vmatprep.mubr.msk.bf16.mxu1 %vm2958_vm0, %v3144_v24 }
 0x56f   : > { %13167 = vmatmul.mubr.msk.bf16.vlgmr.msra.gmra.mxu1 %vm2958_vm0, %v3145_v51 }
 0x570   : > { %13175 = vmatpush3.bf16.xpose.msra.mxu1 %v3271_v57 }
 0x571   : > { %13363 = vmatprep.subr.msk.bf16.mxu1 %vm2958_vm0, %v3246_v3 }
 0x578   : > { %13177 = vmatpush3.bf16.xpose.msra.mxu1 %v3268_v9 }
 0x579   : > { %13364 = vmatprep.subr.msk.bf16.mxu1 %vm2958_vm0, %v3244_v39 }
 0x580   : > { %13179 = vmatpush3.bf16.xpose.msra.mxu1 %v3265_v22 }
 0x594   : > { %v3127_v38 = vpop.xlane.xlu1 %3126 }
 0x595   : > { %14879 = vrcp.f32 %v3127_v38  ;;  %v13217_v38 = vpop.f32.mrf.mxu0 }
 0x596   : > { %14881 = vrcp.f32 %v3118_v54 }
 0x597   : > { %14883 = vrcp.f32 %v3124_v35 }
 0x598   : > { %v3121_v34 = vpop.xlane.xlu1 %3120 }
 0x599   : > { %14885 = vrcp.f32 %v3121_v34 }
 0x59c   : > { %v3242_v59 = vpop.permute.xlu1 %3241 }
 0x59d   : > { %13365 = vmatprep.subr.msk.bf16.mxu1 %vm2958_vm0, %v3242_v59  ;;  %v3262_v26 = vsel %vm2958_vm0, %v3242_v59, 0 }
 0x59e   : > { %13181 = vmatpush3.bf16.xpose.msra.mxu1 %v3262_v26 }
 0x5a0   : > { %v3232_v61 = vpop.permute.xlu1 %3231 }
 0x5a2   : > { %v14880_v7 = vpop.eup %14879 }
 0x5a3   : > { %v14882_v25 = vpop.eup %14881  ;;  %v3143_v46 = vmul.f32 %v14880_v7, %v14868_v47 }
 0x5a4   : > { %v14884_v16 = vpop.eup %14883  ;;  %v3137_v44 = vmul.f32 %v14882_v25, %v16539_v60  ;;  %v3236_v47 = vpop.permute.xlu1 %3235 }
 0x5a5   : > { %v3141_v42 = vmul.f32 %v14884_v16, %v16534_v20  ;;  %v3604_v16 = vpop.f32.mrf.mxu0 }
 0x5a6   : > { %v14886_v12 = vpop.eup %14885 }
 0x5a7   : > { %v3139_v23 = vmul.f32 %v14886_v12, %v14870_v62  ;;  %v3147_v35 = vpack.c.bf16 %v3143_v46, %v3141_v42  ;;  %v3642_v42 = vpop.xlane.xlu0 %3641 }
 0x5a9   : > { %v3146_v54 = vpack.c.bf16 %v3139_v23, %v3137_v44 }
 0x5ab   : > { %13170 = vmatprep.mubr.msk.bf16.mxu1 %vm2958_vm0, %v3146_v54 }
 0x5ac   : > { %13171 = vmatmul.mubr.msk.bf16.gmra.mxu1 %vm2958_vm0, %v3147_v35  ;;  %v13220_v35 = vpop.f32.mrf.mxu0 }
 0x5ad   : > { %13182 = vmatprep.mubr.msk.bf16.mxu1 %vm2958_vm0, %v3230_v5 }
 0x5b4   : > { %13183 = vmatmul.mubr.msk.bf16.vlgmr.msra.gmra.mxu1 %vm2958_vm0, %v3232_v61 }
 0x5b5   : > { %13186 = vmatprep.mubr.msk.bf16.mxu1 %vm2958_vm0, %v3234_v28  ;;  %v3664_v28 = vsub.f32 %v16559_v15, %v3642_v42 }
 0x5bc   : > { %13187 = vmatmul.mubr.msk.bf16.gmra.mxu1 %vm2958_vm0, %v3236_v47 }
 0x62f   : > { %v16588_v60 = vpop.f32.mrf.mxu1 }
 0x630   : > { %19202 = vst [vmem:[#allocation56_spill] sm:$0xff] %v16588_v60 }
 0x631   : > { %v16590_v20 = vpop.f32.mrf.mxu1 }
 0x632   : > { %19203 = vst [vmem:[#allocation57_spill] sm:$0xff] %v16590_v20 }
 0x633   : > { %v16592_v62 = vpop.f32.mrf.mxu1 }
 0x634   : > { %19204 = vst [vmem:[#allocation58_spill] sm:$0xff] %v16592_v62 }
 0x635   : > { %v16594_v10 = vpop.f32.mrf.mxu1 }
 0x66c   : > { %v16596_v31 = vpop.f32.mrf.mxu1 }
 0x66d   : > { %19205 = vst [vmem:[#allocation59_spill] sm:$0xff] %v16596_v31 }
 0x66e   : > { %v16598_v13 = vpop.f32.mrf.mxu1 }
 0x66f   : > { %19206 = vst [vmem:[#allocation60_spill] sm:$0xff] %v16598_v13 }
 0x670   : > { %v16600_v24 = vpop.f32.mrf.mxu1 }
 0x671   : > { %19207 = vst [vmem:[#allocation61_spill] sm:$0xff] %v16600_v24 }
 0x672   : > { %v16602_v51 = vpop.f32.mrf.mxu1 }
 0x673   : > { %19208 = vst [vmem:[#allocation62_spill] sm:$0xff] %v16602_v51 }
 0x674   : > { %v13184_v57 = vpop.f32.mrf.mxu1 }
 0x675   : > { %v16606_v3 = vsel %vm16471_vm2, %v13184_v57, -inf }
 0x676   : > { %v3307_v9 = vpop.f32.mrf.mxu1  ;;  %v3352_v39 = vsel %vm2958_vm0, %v16606_v3, -inf }
 0x677   : > { %v16612_v22 = vsel %vm16466_vm1, %v3307_v9, -inf  ;;  %3353 = vmax.xlane.f32.xlu0 %v3352_v39 }
 0x678   : > { %v13185_v34 = vpop.f32.mrf.mxu1  ;;  %v3346_v26 = vsel %vm2958_vm0, %v16612_v22, -inf }
 0x679   : > { %v16618_v7 = vsel %vm16486_vm4, %v13185_v34, -inf }
 0x67a   : > { %v3310_v59 = vpop.f32.mrf.mxu1  ;;  %v3355_v23 = vsel %vm2958_vm0, %v16618_v7, -inf }
 0x67b   : > { %3347 = vmax.xlane.f32.xlu0 %v3346_v26  ;;  %v16622_v25 = vsel %vm16479_vm3, %v3310_v59, -inf  ;;  %v3617_v59 = vpop.f32.mrf.mxu0  ;;  %v3672_v26 = vmul.f32 1.442695, %v3664_v28  ;;  %v3635_v28 = vsel %vm16486_vm4, %v13217_v38, -inf }
 0x67c   : > { %v13188_v12 = vpop.f32.mrf.mxu1  ;;  %v3349_v46 = vsel %vm2958_vm0, %v16622_v25, -inf }
 0x67d   : > { %3350 = vmax.xlane.f32.xlu1 %v3349_v46  ;;  %v3344_v54 = vsel %vm16502_vm6, %v13188_v12, -inf  ;;  %v3634_v46 = vsel %vm16471_vm2, %v16553_v45, -inf  ;;  %14887 = vpow2.f32 %v3672_v26 }
 0x67e   : > { %v3323_v44 = vpop.f32.mrf.mxu1  ;;  %v3364_v57 = vsel %vm2958_vm0, %v3344_v54, -inf  ;;  %v3646_v42 = vsel %vm2958_vm0, %v3634_v46, -inf }
 0x67f   : > { %3356 = vmax.xlane.f32.xlu0 %v3355_v23  ;;  %v3342_v39 = vsel %vm16495_vm5, %v3323_v44, -inf  ;;  %v3633_v44 = vsel %vm16479_vm3, %v3604_v16, -inf  ;;  %v13221_v23 = vpop.f32.mrf.mxu0 }
 0x680   : > { %v13189_v5 = vpop.f32.mrf.mxu1  ;;  %v3358_v12 = vsel %vm2958_vm0, %v3342_v39, -inf }
 0x681   : > { %v16632_v61 = vsel %vm16517_vm8, %v13189_v5, -inf  ;;  %v3643_v5 = vsel %vm2958_vm0, %v3633_v44, -inf  ;;  %v3620_v45 = vpop.f32.mrf.mxu0 }
 0x682   : > { %v3326_v47 = vpop.f32.mrf.mxu1  ;;  %v3367_v9 = vsel %vm2958_vm0, %v16632_v61, -inf  ;;  %v16669_v38 = vsel %vm16511_vm7, %v3620_v45, -inf }
 0x683   : > { %3365 = vmax.xlane.f32.xlu0 %v3364_v57  ;;  %3368 = vmax.xlane.f32.xlu1 %v3367_v9  ;;  %v16642_v34 = vsel %vm16511_vm7, %v3326_v47, -inf  ;;  %v16658_v47 = vsel %vm16495_vm5, %v3617_v59, -inf  ;;  %v3649_v57 = vsel %vm2958_vm0, %v3635_v28, -inf  ;;  %v16665_v9 = vsel %vm16502_vm6, %v13220_v35, -inf }
 0x684   : > { %v3361_v15 = vsel %vm2958_vm0, %v16642_v34, -inf  ;;  %v3652_v16 = vsel %vm2958_vm0, %v16658_v47, -inf  ;;  %v3658_v59 = vsel %vm2958_vm0, %v16665_v9, -inf  ;;  %v3655_v26 = vsel %vm2958_vm0, %v16669_v38, -inf }
 0x687   : > { %3359 = vmax.xlane.f32.xlu0 %v3358_v12  ;;  %3362 = vmax.xlane.f32.xlu1 %v3361_v15  ;;  %v16677_v12 = vsel %vm16517_vm8, %v13221_v23, -inf }
 0x688   : > { %v3661_v35 = vsel %vm2958_vm0, %v16677_v12, -inf }
 0x68a   : > { %v16681_v15 = vpop.eup %14887 }
 0x68b   : > { %3647 = vmax.xlane.f32.xlu0 %v3646_v42  ;;  %3644 = vmax.xlane.f32.xlu1 %v3643_v5  ;;  %v3688_v42 = vsel %vm2958_vm0, %v16681_v15, 0.0 }
 0x68f   : > { %3650 = vmax.xlane.f32.xlu1 %v3649_v57  ;;  %3653 = vmax.xlane.f32.xlu0 %v3652_v16 }
 0x693   : > { %3659 = vmax.xlane.f32.xlu0 %v3658_v59  ;;  %3656 = vmax.xlane.f32.xlu1 %v3655_v26 }
 0x697   : > { %3662 = vmax.xlane.f32.xlu1 %v3661_v35 }
 0x69b   : > { %3689 = vadd.xlane.f32.xlu1 %v3688_v42 }
 0x6a9   : > { %3448 = vrot.lane.b32.xlu0 %v16434_v21, %s15525_s2 }
 0x700   : > { %v3354_v5 = vpop.xlane.xlu0 %3353 }
 0x701   : > { %v3372_v45 = vsub.f32 %v16606_v3, %v3354_v5 }
 0x703   : > { %v3382_v23 = vmul.f32 1.442695, %v3372_v45 }
 0x704   : > { %v3348_v57 = vpop.xlane.xlu0 %3347 }
 0x705   : > { %14889 = vpow2.f32 %v3382_v23  ;;  %v3370_v16 = vsub.f32 %v16612_v22, %v3348_v57 }
 0x706   : > { %v3351_v26 = vpop.xlane.xlu1 %3350 }
 0x707   : > { %v3378_v59 = vmul.f32 1.442695, %v3370_v16 }
 0x708   : > { %v3357_v31 = vpop.xlane.xlu0 %3356 }
 0x709   : > { %14891 = vpow2.f32 %v3378_v59 }
 0x70c   : > { %v3366_v35 = vpop.xlane.xlu0 %3365  ;;  %v3369_v24 = vpop.xlane.xlu1 %3368 }
 0x70d   : > { %v3376_v13 = vsub.f32 %v3344_v54, %v3366_v35 }
 0x70f   : > { %v3390_v51 = vmul.f32 1.442695, %v3376_v13 }
 0x710   : > { %v3360_v42 = vpop.xlane.xlu0 %3359  ;;  %v3363_v60 = vpop.xlane.xlu1 %3362 }
 0x711   : > { %14893 = vpow2.f32 %v3390_v51  ;;  %v3374_v21 = vsub.f32 %v3342_v39, %v3360_v42  ;;  %v3373_v42 = vsub.f32 %v16618_v7, %v3357_v31 }
 0x712   : > { %v16689_v62 = vpop.eup %14889 }
 0x713   : > { %v3386_v3 = vmul.f32 1.442695, %v3374_v21  ;;  %v3400_v5 = vsel %vm2958_vm0, %v16689_v62, 0.0 }
 0x714   : > { %v3648_v45 = vpop.xlane.xlu0 %3647  ;;  %v3645_v22 = vpop.xlane.xlu1 %3644  ;;  %3401 = vadd.xlane.f32.xlu0 %v3400_v5 }
 0x715   : > { %14895 = vpow2.f32 %v3386_v3  ;;  %v3666_v23 = vsub.f32 %v3634_v46, %v3648_v45  ;;  %v3665_v57 = vsub.f32 %v3633_v44, %v3645_v22  ;;  %v3371_v44 = vsub.f32 %v16622_v25, %v3351_v26 }
 0x716   : > { %v16693_v16 = vpop.eup %14891  ;;  %v3384_v45 = vmul.f32 1.442695, %v3373_v42  ;;  %v3375_v26 = vsub.f32 %v16642_v34, %v3363_v60 }
 0x717   : > { %v3674_v54 = vmul.f32 1.442695, %v3665_v57  ;;  %v3394_v13 = vsel %vm2958_vm0, %v16693_v16, 0.0  ;;  %v3676_v51 = vmul.f32 1.442695, %v3666_v23 }
 0x718   : > { %v3651_v39 = vpop.xlane.xlu1 %3650  ;;  %3395 = vadd.xlane.f32.xlu0 %v3394_v13  ;;  %v3654_v59 = vpop.xlane.xlu0 %3653  ;;  %v3380_v7 = vmul.f32 1.442695, %v3371_v44 }
 0x719   : > { %v3667_v35 = vsub.f32 %v3635_v28, %v3651_v39  ;;  %14897 = vpow2.f32 %v3674_v54  ;;  %v3377_v28 = vsub.f32 %v16632_v61, %v3369_v24 }
 0x71a   : > { %14899 = vpow2.f32 %v3676_v51  ;;  %v3388_v51 = vmul.f32 1.442695, %v3375_v26 }
 0x71b   : > { %v3678_v21 = vmul.f32 1.442695, %v3667_v35  ;;  %v3392_v25 = vmul.f32 1.442695, %v3377_v28 }
 0x71c   : > { %v3660_v5 = vpop.xlane.xlu0 %3659 }
 0x71d   : > { %14901 = vpow2.f32 %v3678_v21  ;;  %v3670_v28 = vsub.f32 %v16665_v9, %v3660_v5 }
 0x71e   : > { %v16698_v3 = vpop.eup %14893  ;;  %14903 = vpow2.f32 %v3384_v45 }
 0x71f   : > { %v3412_v46 = vsel %vm2958_vm0, %v16698_v3, 0.0  ;;  %14905 = vpow2.f32 %v3380_v7 }
 0x720   : > { %3413 = vadd.xlane.f32.xlu0 %v3412_v46  ;;  %v3449_v22 = vpop.permute.xlu0 %3448  ;;  %14907 = vpow2.f32 %v3392_v25  ;;  %v3684_v25 = vmul.f32 1.442695, %v3670_v28 }
 0x721   : > { %13190 = vmatprep.subr.bf16.mxu1 %v3449_v22  ;;  %14909 = vpow2.f32 %v3388_v51 }
 0x722   : > { %v16703_v23 = vpop.eup %14895  ;;  %13191 = vmatpush3.bf16.msra.mxu1 %v3449_v22  ;;  %v3657_v22 = vpop.xlane.xlu1 %3656 }
 0x723   : > { %v3406_v31 = vsel %vm2958_vm0, %v16703_v23, 0.0  ;;  %v3669_v9 = vsub.f32 %v16669_v38, %v3657_v22 }
 0x724   : > { %3407 = vadd.xlane.f32.xlu0 %v3406_v31  ;;  %v3668_v31 = vsub.f32 %v16658_v47, %v3654_v59 }
 0x725   : > { %v3682_v5 = vmul.f32 1.442695, %v3669_v9 }
 0x726   : > { %v16708_v57 = vpop.eup %14897  ;;  %v3680_v7 = vmul.f32 1.442695, %v3668_v31 }
 0x727   : > { %v3691_v54 = vsel %vm2958_vm0, %v16708_v57, 0.0  ;;  %v16713_v13 = vpop.eup %14899 }
 0x728   : > { %3692 = vadd.xlane.f32.xlu1 %v3691_v54  ;;  %v3694_v39 = vsel %vm2958_vm0, %v16713_v13, 0.0  ;;  %14911 = vpow2.f32 %v3680_v7 }
 0x729   : > { %14913 = vpow2.f32 %v3684_v25 }
 0x72a   : > { %v16717_v35 = vpop.eup %14901 }
 0x72b   : > { %v3697_v24 = vsel %vm2958_vm0, %v16717_v35, 0.0  ;;  %v16721_v61 = vpop.eup %14903 }
 0x72c   : > { %3695 = vadd.xlane.f32.xlu1 %v3694_v39  ;;  %v3403_v60 = vsel %vm2958_vm0, %v16721_v61, 0.0  ;;  %v16725_v34 = vpop.eup %14905 }
 0x72d   : > { %v3397_v42 = vsel %vm2958_vm0, %v16725_v34, 0.0  ;;  %v16729_v21 = vpop.eup %14907 }
 0x72e   : > { %v3415_v46 = vsel %vm2958_vm0, %v16729_v21, 0.0  ;;  %v16735_v44 = vpop.eup %14909 }
 0x72f   : > { %v3409_v45 = vsel %vm2958_vm0, %v16735_v44, 0.0 }
 0x730   : > { %3698 = vadd.xlane.f32.xlu1 %v3697_v24 }
 0x734   : > { %3404 = vadd.xlane.f32.xlu1 %v3403_v60 }
 0x738   : > { %3398 = vadd.xlane.f32.xlu1 %v3397_v42 }
 0x73a   : > { %3444 = vrot.lane.b32.xlu0 %v16444_v32, %s15525_s2  ;;  %v3663_v32 = vpop.xlane.xlu1 %3662 }
 0x73b   : > { %v3671_v26 = vsub.f32 %v16677_v12, %v3663_v32 }
 0x73c   : > { %3416 = vadd.xlane.f32.xlu1 %v3415_v46 }
 0x73d   : > { %v3686_v54 = vmul.f32 1.442695, %v3671_v26  ;;  %v2795_v26 = vadd.f32 %v16396_v2, %v16431_v27 }
 0x73e   : > { %3442 = vrot.lane.b32.xlu0 %v16452_v40, %s15525_s2  ;;  %v16746_v40 = vpop.eup %14911 }
 0x73f   : > { %14915 = vpow2.f32 %v3686_v54  ;;  %v3700_v51 = vsel %vm2958_vm0, %v16746_v40, 0.0  ;;  %v16750_v47 = vpop.eup %14913 }
 0x740   : > { %3410 = vadd.xlane.f32.xlu1 %v3409_v45  ;;  %v3706_v59 = vsel %vm2958_vm0, %v16750_v47, 0.0  ;;  %14917 = vpow2.f32 %v3682_v5 }
 0x74c   : > { %v16755_v12 = vpop.eup %14915 }
 0x74d   : > { %v16759_v39 = vpop.eup %14917 }
 0x74e   : > { %v3703_v24 = vsel %vm2958_vm0, %v16759_v39, 0.0 }
 0x751   : > { %3446 = vrot.lane.b32.xlu1 %v16437_v18, %s15525_s2  ;;  %v3709_v18 = vsel %vm2958_vm0, %v16755_v12, 0.0 }
 0x75d   : > { %3701 = vadd.xlane.f32.xlu0 %v3700_v51 }
 0x761   : > { %3707 = vadd.xlane.f32.xlu0 %v3706_v59 }
 0x765   : > { %3710 = vadd.xlane.f32.xlu0 %v3709_v18 }
 0x775   : > { %3704 = vadd.xlane.f32.xlu1 %v3703_v24 }
 0x77b   : > { %3831 = vrot.lane.b32.xlu0 %v16333_v33, %s15525_s2  ;;  %v3690_v33 = vpop.xlane.xlu1 %3689 }
 0x77f   : > { %3813 = vrot.lane.b32.xlu0 %v16358_v17, %s15525_s2 }
 0x783   : > { %3817 = vrot.lane.b32.xlu0 %v16404_v55, %s15525_s2 }
 0x786   : > { %3829 = vrot.lane.b32.xlu1 %v16341_v49, %s15525_s2 }
 0x78a   : > { %3827 = vrot.lane.b32.xlu1 %v16360_v30, %s15525_s2 }
 0x78e   : > { %3825 = vrot.lane.b32.xlu1 %v16380_v36, %s15525_s2 }
 0x792   : > { %3815 = vrot.lane.b32.xlu1 %v16401_v4, %s15525_s2 }
 0x796   : > { %3819 = vrot.lane.b32.xlu1 %v16417_v6, %s15525_s2 }
 0x79d   : > { %v3402_v38 = vpop.xlane.xlu0 %3401 }
 0x7a1   : > { %v3396_v42 = vpop.xlane.xlu0 %3395 }
 0x7a2   : > { %14919 = vrcp.f32 %v3396_v42 }
 0x7a9   : > { %v3414_v49 = vpop.xlane.xlu0 %3413 }
 0x7ad   : > { %v3408_v30 = vpop.xlane.xlu0 %3407 }
 0x7af   : > { %v14920_v6 = vpop.eup %14919 }
 0x7b0   : > { %v3419_v28 = vmul.f32 %v14920_v6, %v16693_v16  ;;  %v2785_v16 = vadd.f32 %v16386_v56, %v16427_v11  ;;  %v2775_v56 = vadd.f32 %v16374_v63, %v16423_v37  ;;  %v19209_v63 = vld [vmem:[#allocation50_spill] sm:$0xff] }
 0x7b1   : > { %v3693_v17 = vpop.xlane.xlu1 %3692  ;;  %v3445_v22 = vpop.permute.xlu0 %3444  ;;  %v2765_v37 = vadd.f32 %v19209_v63, %v16414_v48 }
 0x7b2   : > { %v16797_v11 = vpack.c.bf16 %v2785_v16, %v16425_v8  ;;  %v19210_v8 = vld [vmem:[#allocation53_spill] sm:$0xff] }
 0x7b5   : > { %v3696_v60 = vpop.xlane.xlu1 %3695  ;;  %v3443_v9 = vpop.permute.xlu0 %3442 }
 0x7b9   : > { %v3699_v55 = vpop.xlane.xlu1 %3698 }
 0x7bd   : > { %v3405_v46 = vpop.xlane.xlu1 %3404 }
 0x7c1   : > { %v3399_v45 = vpop.xlane.xlu1 %3398 }
 0x7c2   : > { %14921 = vrcp.f32 %v3399_v45 }
 0x7c3   : > { %14923 = vrcp.f32 %v3405_v46 }
 0x7c4   : > { %14925 = vrcp.f32 %v3402_v38 }
 0x7c5   : > { %v3417_v36 = vpop.xlane.xlu1 %3416  ;;  %14927 = vrcp.f32 %v3408_v30 }
 0x7c9   : > { %v3411_v4 = vpop.xlane.xlu1 %3410 }
 0x7ca   : > { %14929 = vrcp.f32 %v3411_v4 }
 0x7cb   : > { %14931 = vrcp.f32 %v3417_v36 }
 0x7cc   : > { %14933 = vrcp.f32 %v3693_v17 }
 0x7cd   : > { %v3447_v31 = vpop.permute.xlu1 %3446  ;;  %14935 = vrcp.f32 %v3414_v49 }
 0x7ce   : > { %13192 = vmatprep.subr.bf16.mxu1 %v3447_v31  ;;  %14937 = vrcp.f32 %v3690_v33 }
 0x7cf   : > { %v14922_v7 = vpop.eup %14921  ;;  %13193 = vmatpush3.bf16.msra.mxu1 %v3447_v31  ;;  %14939 = vrcp.f32 %v3699_v55 }
 0x7d0   : > { %13194 = vmatprep.subr.bf16.mxu1 %v3445_v22  ;;  %v3421_v32 = vmul.f32 %v14922_v7, %v16725_v34  ;;  %v14924_v25 = vpop.eup %14923  ;;  %v16788_v34 = vpack.c.bf16 %v2795_v26, %v16429_v43  ;;  %14941 = vrcp.f32 %v3696_v60  ;;  %v16808_v60 = vpack.c.bf16 %v2775_v56, %v19210_v8 }
 0x7d1   : > { %v14926_v51 = vpop.eup %14925  ;;  %v3425_v59 = vmul.f32 %v14924_v25, %v16721_v61 }
 0x7d2   : > { %v3434_v54 = vpack.c.bf16 %v3421_v32, %v3419_v28  ;;  %v14928_v5 = vpop.eup %14927  ;;  %v3423_v18 = vmul.f32 %v14926_v51, %v16689_v62 }
 0x7d3   : > { %13195 = vmatpush3.bf16.msra.mxu1 %v3445_v22  ;;  %v3427_v61 = vmul.f32 %v14928_v5, %v16703_v23 }
 0x7d4   : > { %13196 = vmatprep.subr.bf16.mxu1 %v3443_v9  ;;  %13198 = vmatprep.mubr.msk.bf16.mxu1 %vm2958_vm0, %v3434_v54  ;;  %v3435_v27 = vpack.c.bf16 %v3425_v59, %v3423_v18 }
 0x7d7   : > { %v14930_v2 = vpop.eup %14929  ;;  %13197 = vmatpush3.bf16.msra.mxu1 %v3443_v9 }
 0x7d8   : > { %13222 = vmatprep.subr.bf16.mxu1 %v16788_v34  ;;  %v3429_v24 = vmul.f32 %v14930_v2, %v16735_v44  ;;  %v14932_v33 = vpop.eup %14931 }
 0x7d9   : > { %v14934_v17 = vpop.eup %14933  ;;  %v3433_v23 = vmul.f32 %v14932_v33, %v16729_v21  ;;  %v19211_v21 = vld [vmem:[#allocation52_spill] sm:$0xff]  ;;  %v19213_v33 = vld [vmem:[#allocation55_spill] sm:$0xff] }
 0x7da   : > { %13199 = vmatmul.mubr.msk.bf16.vlgmr.msra.gmra.mxu1 %vm2958_vm0, %v3435_v27  ;;  %v3436_v43 = vpack.c.bf16 %v3429_v24, %v3427_v61  ;;  %v14936_v62 = vpop.eup %14935  ;;  %v3715_v44 = vmul.f32 %v14934_v17, %v16708_v57  ;;  %v16815_v30 = vpack.c.bf16 %v2765_v37, %v19211_v21 }
 0x7db   : > { %13223 = vmatpush3.bf16.msra.mxu1 %v16788_v34  ;;  %v14938_v38 = vpop.eup %14937  ;;  %v3431_v55 = vmul.f32 %v14936_v62, %v16698_v3 }
 0x7dc   : > { %13202 = vmatprep.mubr.msk.bf16.mxu1 %vm2958_vm0, %v3436_v43  ;;  %13224 = vmatprep.subr.bf16.mxu1 %v16797_v11  ;;  %v3713_v42 = vmul.f32 %v14938_v38, %v16681_v15  ;;  %v14940_v49 = vpop.eup %14939 }
 0x7dd   : > { %v3437_v46 = vpack.c.bf16 %v3433_v23, %v3431_v55  ;;  %v14942_v48 = vpop.eup %14941  ;;  %v3719_v3 = vmul.f32 %v14940_v49, %v16717_v35 }
 0x7de   : > { %v3728_v45 = vpack.c.bf16 %v3715_v44, %v3713_v42  ;;  %v3717_v57 = vmul.f32 %v14942_v48, %v16713_v13 }
 0x7df   : > { %13225 = vmatpush3.bf16.msra.mxu1 %v16797_v11 }
 0x7e0   : > { %13226 = vmatprep.subr.bf16.mxu1 %v16808_v60  ;;  %v3729_v36 = vpack.c.bf16 %v3719_v3, %v3717_v57 }
 0x7e2   : > { %13203 = vmatmul.mubr.msk.bf16.gmra.mxu1 %vm2958_vm0, %v3437_v46 }
 0x7e3   : > { %13227 = vmatpush3.bf16.msra.mxu1 %v16808_v60  ;;  %13230 = vmatprep.mubr.msk.bf16.mxu1 %vm2958_vm0, %v3728_v45 }
 0x7e4   : > { %13228 = vmatprep.subr.bf16.mxu1 %v16815_v30 }
 0x7e6   : > { %v3702_v15 = vpop.xlane.xlu0 %3701 }
 0x7e7   : > { %13229 = vmatpush3.bf16.msra.mxu1 %v16815_v30 }
 0x7ea   : > { %v3708_v4 = vpop.xlane.xlu0 %3707  ;;  %13231 = vmatmul.mubr.msk.bf16.vlgmr.msra.gmra.mxu1 %vm2958_vm0, %v3729_v36 }
 0x7ee   : > { %v3711_v6 = vpop.xlane.xlu0 %3710 }
 0x7ef   : > { %14943 = vrcp.f32 %v3711_v6 }
 0x7f0   : > { %14945 = vrcp.f32 %v3702_v15 }
 0x7f1   : > { %14947 = vrcp.f32 %v3708_v4 }
 0x7f2   : > { %v3832_v22 = vpop.permute.xlu0 %3831 }
 0x7f3   : > { %13370 = vmatprep.subr.msk.bf16.mxu1 %vm2958_vm0, %v3832_v22  ;;  %v3855_v31 = vsel %vm2958_vm0, %v3832_v22, 0 }
 0x7f4   : > { %13239 = vmatpush3.bf16.xpose.msra.mxu1 %v3855_v31 }
 0x7f6   : > { %v3814_v61 = vpop.permute.xlu0 %3813 }
 0x7fc   : > { %v14944_v32 = vpop.eup %14943 }
 0x7fd   : > { %v14946_v25 = vpop.eup %14945  ;;  %v3727_v59 = vmul.f32 %v14944_v32, %v16755_v12 }
 0x7fe   : > { %v3705_v35 = vpop.xlane.xlu1 %3704  ;;  %v14948_v26 = vpop.eup %14947  ;;  %v3721_v5 = vmul.f32 %v14946_v25, %v16746_v40 }
 0x7ff   : > { %14949 = vrcp.f32 %v3705_v35  ;;  %v3725_v18 = vmul.f32 %v14948_v26, %v16750_v47  ;;  %v3818_v40 = vpop.permute.xlu0 %3817  ;;  %v19212_v47 = vld [vmem:[#allocation54_spill] sm:$0xff] }
 0x801   : > { %v3731_v27 = vpack.c.bf16 %v3727_v59, %v3725_v18 }
 0x802   : > { %v3830_v7 = vpop.permute.xlu1 %3829 }
 0x803   : > { %v3852_v13 = vsel %vm2958_vm0, %v3830_v7, 0  ;;  %13371 = vmatprep.subr.msk.bf16.mxu1 %vm2958_vm0, %v3830_v7 }
 0x804   : > { %13241 = vmatpush3.bf16.xpose.msra.mxu1 %v3852_v13 }
 0x806   : > { %v3828_v28 = vpop.permute.xlu1 %3827 }
 0x807   : > { %13372 = vmatprep.subr.msk.bf16.mxu1 %vm2958_vm0, %v3828_v28  ;;  %v3849_v54 = vsel %vm2958_vm0, %v3828_v28, 0 }
 0x80a   : > { %v3826_v9 = vpop.permute.xlu1 %3825 }
 0x80b   : > { %v3846_v24 = vsel %vm2958_vm0, %v3826_v9, 0 }
 0x80c   : > { %v14950_v51 = vpop.eup %14949  ;;  %13243 = vmatpush3.bf16.xpose.msra.mxu1 %v3849_v54 }
 0x80d   : > { %13373 = vmatprep.subr.msk.bf16.mxu1 %vm2958_vm0, %v3826_v9  ;;  %v3723_v16 = vmul.f32 %v14950_v51, %v16759_v39 }
 0x80e   : > { %v3816_v12 = vpop.permute.xlu1 %3815 }
 0x80f   : > { %v3730_v2 = vpack.c.bf16 %v3723_v16, %v3721_v5 }
 0x811   : > { %13234 = vmatprep.mubr.msk.bf16.mxu1 %vm2958_vm0, %v3730_v2 }
 0x812   : > { %13235 = vmatmul.mubr.msk.bf16.gmra.mxu1 %vm2958_vm0, %v3731_v27  ;;  %v3820_v39 = vpop.permute.xlu1 %3819 }
 0x813   : > { %13246 = vmatprep.mubr.msk.bf16.mxu1 %vm2958_vm0, %v3814_v61 }
 0x814   : > { %13245 = vmatpush3.bf16.xpose.msra.mxu1 %v3846_v24 }
 0x815   : > { %13286 = vmatprep.subr.bf16.mxu1 %v16459_v19 }
 0x81b   : > { %13247 = vmatmul.mubr.msk.bf16.vlgmr.msra.gmra.mxu1 %vm2958_vm0, %v3816_v12 }
 0x81c   : > { %13250 = vmatprep.mubr.msk.bf16.mxu1 %vm2958_vm0, %v3818_v40  ;;  %13287 = vmatpush3.bf16.msra.mxu1 %v16459_v19 }
 0x81d   : > { %13288 = vmatprep.subr.bf16.mxu1 %v16461_v58 }
 0x820   : > { %13289 = vmatpush3.bf16.msra.mxu1 %v16461_v58 }
 0x821   : > { %13290 = vmatprep.subr.bf16.mxu1 %v19212_v47 }
 0x823   : > { %13251 = vmatmul.mubr.msk.bf16.gmra.mxu1 %vm2958_vm0, %v3820_v39 }
 0x824   : > { %13291 = vmatpush3.bf16.msra.mxu1 %v19212_v47 }
 0x825   : > { %13292 = vmatprep.subr.bf16.mxu1 %v19213_v33 }
 0x828   : > { %13293 = vmatpush3.bf16.msra.mxu1 %v19213_v33 }
 0x89a   : > { %v16851_v17 = vpop.f32.mrf.mxu1 }
 0x89c   : > { %v16853_v56 = vpop.f32.mrf.mxu1 }
 0x89e   : > { %v16855_v43 = vpop.f32.mrf.mxu1 }
 0x8a0   : > { %v16859_v38 = vpop.f32.mrf.mxu1 }
 0x8a2   : > { %v16861_v23 = vpop.f32.mrf.mxu1 }
 0x8a4   : > { %v16863_v44 = vpop.f32.mrf.mxu1 }
 0x8a6   : > { %v16865_v63 = vpop.f32.mrf.mxu1 }
 0x8a8   : > { %v16869_v8 = vpop.f32.mrf.mxu1 }
 0x8aa   : > { %v16871_v55 = vpop.f32.mrf.mxu1 }
 0x8ac   : > { %v16873_v42 = vpop.f32.mrf.mxu1 }
 0x8ae   : > { %v16875_v46 = vpop.f32.mrf.mxu1 }
 0x8b0   : > { %v16877_v49 = vpop.f32.mrf.mxu1 }
 0x8d2   : > { %v16879_v45 = vpop.f32.mrf.mxu1 }
 0x8d3   : > { %19214 = vst [vmem:[#allocation50_spill] sm:$0xff] %v16879_v45 }
 0x8d4   : > { %v16881_v21 = vpop.f32.mrf.mxu1 }
 0x8d5   : > { %19215 = vst [vmem:[#allocation53_spill] sm:$0xff] %v16881_v21 }
 0x8d6   : > { %v16883_v48 = vpop.f32.mrf.mxu1 }
 0x8d7   : > { %19216 = vst [vmem:[#allocation52_spill] sm:$0xff] %v16883_v48 }
 0x8d8   : > { %v16885_v3 = vpop.f32.mrf.mxu1 }
 0x8d9   : > { %19217 = vst [vmem:[#allocation54_spill] sm:$0xff] %v16885_v3 }
 0x8db   : > { %v13248_v15 = vpop.f32.mrf.mxu1 }
 0x8dc   : > { %v3924_v22 = vsel %vm16471_vm2, %v13248_v15, -inf }
 0x8dd   : > { %v3891_v57 = vpop.f32.mrf.mxu1  ;;  %v3936_v13 = vsel %vm2958_vm0, %v3924_v22, -inf }
 0x8de   : > { %v3922_v36 = vsel %vm16466_vm1, %v3891_v57, -inf }
 0x8df   : > { %v13249_v4 = vpop.f32.mrf.mxu1  ;;  %v3930_v6 = vsel %vm2958_vm0, %v3922_v36, -inf }
 0x8e0   : > { %3931 = vmax.xlane.f32.xlu0 %v3930_v6  ;;  %v3925_v32 = vsel %vm16486_vm4, %v13249_v4, -inf }
 0x8e1   : > { %v3894_v31 = vpop.f32.mrf.mxu1  ;;  %v3939_v54 = vsel %vm2958_vm0, %v3925_v32, -inf }
 0x8e2   : > { %v3923_v35 = vsel %vm16479_vm3, %v3894_v31, -inf }
 0x8e3   : > { %v13252_v7 = vpop.f32.mrf.mxu1  ;;  %v3933_v28 = vsel %vm2958_vm0, %v3923_v35, -inf }
 0x8e4   : > { %3937 = vmax.xlane.f32.xlu0 %v3936_v13  ;;  %3934 = vmax.xlane.f32.xlu1 %v3933_v28  ;;  %v3928_v2 = vsel %vm16502_vm6, %v13252_v7, -inf }
 0x8e5   : > { %v3907_v25 = vpop.f32.mrf.mxu1  ;;  %v3948_v61 = vsel %vm2958_vm0, %v3928_v2, -inf }
 0x8e6   : > { %v3926_v51 = vsel %vm16495_vm5, %v3907_v25, -inf }
 0x8e7   : > { %v13253_v26 = vpop.f32.mrf.mxu1  ;;  %v3942_v18 = vsel %vm2958_vm0, %v3926_v51, -inf }
 0x8e8   : > { %v3929_v9 = vsel %vm16517_vm8, %v13253_v26, -inf  ;;  %3940 = vmax.xlane.f32.xlu0 %v3939_v54 }
 0x8e9   : > { %v3910_v59 = vpop.f32.mrf.mxu1  ;;  %v3951_v5 = vsel %vm2958_vm0, %v3929_v9, -inf }
 0x8ea   : > { %3952 = vmax.xlane.f32.xlu1 %v3951_v5  ;;  %v3927_v16 = vsel %vm16511_vm7, %v3910_v59, -inf }
 0x8eb   : > { %v3945_v27 = vsel %vm2958_vm0, %v3927_v16, -inf }
 0x8ec   : > { %3943 = vmax.xlane.f32.xlu0 %v3942_v18 }
 0x8ee   : > { %3946 = vmax.xlane.f32.xlu1 %v3945_v27 }
 0x8f0   : > { %3949 = vmax.xlane.f32.xlu0 %v3948_v61 }
 0x8ff   : > { %4030 = vrot.lane.b32.xlu1 %v16797_v11, %s15525_s2 }
 0x903   : > { %4028 = vrot.lane.b32.xlu1 %v16808_v60, %s15525_s2 }
 0x969   : > { %v3932_v24 = vpop.xlane.xlu0 %3931 }
 0x96a   : > { %v3954_v12 = vsub.f32 %v3922_v36, %v3932_v24 }
 0x96c   : > { %v3962_v57 = vmul.f32 1.442695, %v3954_v12 }
 0x96d   : > { %v3938_v40 = vpop.xlane.xlu0 %3937  ;;  %v3935_v39 = vpop.xlane.xlu1 %3934 }
 0x96e   : > { %v3956_v15 = vsub.f32 %v3924_v22, %v3938_v40  ;;  %v3955_v6 = vsub.f32 %v3923_v35, %v3935_v39 }
 0x970   : > { %v3966_v4 = vmul.f32 1.442695, %v3956_v15  ;;  %v3964_v13 = vmul.f32 1.442695, %v3955_v6 }
 0x971   : > { %v3941_v31 = vpop.xlane.xlu0 %3940 }
 0x972   : > { %14951 = vpow2.f32 %v3966_v4  ;;  %v3957_v7 = vsub.f32 %v3925_v32, %v3941_v31 }
 0x973   : > { %14953 = vpow2.f32 %v3962_v57  ;;  %v3953_v27 = vpop.xlane.xlu1 %3952 }
 0x974   : > { %v3968_v28 = vmul.f32 1.442695, %v3957_v7  ;;  %v3961_v15 = vsub.f32 %v3929_v9, %v3953_v27 }
 0x975   : > { %v3944_v25 = vpop.xlane.xlu0 %3943 }
 0x976   : > { %14955 = vpow2.f32 %v3968_v28  ;;  %v3958_v11 = vsub.f32 %v3926_v51, %v3944_v25  ;;  %v3976_v4 = vmul.f32 1.442695, %v3961_v15 }
 0x977   : > { %14957 = vpow2.f32 %v3964_v13  ;;  %v3947_v12 = vpop.xlane.xlu1 %3946 }
 0x978   : > { %v3970_v26 = vmul.f32 1.442695, %v3958_v11  ;;  %v3959_v40 = vsub.f32 %v3927_v16, %v3947_v12  ;;  %v19220_v12 = vld [vmem:[#allocation48_spill] sm:$0xff] }
 0x979   : > { %v3950_v61 = vpop.xlane.xlu0 %3949 }
 0x97a   : > { %14959 = vpow2.f32 %v3970_v26  ;;  %v3960_v24 = vsub.f32 %v3928_v2, %v3950_v61  ;;  %v3972_v57 = vmul.f32 1.442695, %v3959_v40 }
 0x97b   : > { %v4031_v16 = vpop.permute.xlu1 %4030 }
 0x97c   : > { %v3974_v39 = vmul.f32 1.442695, %v3960_v24 }
 0x97e   : > { %14961 = vpow2.f32 %v3974_v39 }
 0x97f   : > { %v16915_v60 = vpop.eup %14951  ;;  %14963 = vpow2.f32 %v3972_v57  ;;  %v4029_v7 = vpop.permute.xlu1 %4028 }
 0x980   : > { %v3984_v36 = vsel %vm2958_vm0, %v16915_v60, 0.0  ;;  %v16919_v22 = vpop.eup %14953  ;;  %14965 = vpow2.f32 %v3976_v4 }
 0x981   : > { %3985 = vadd.xlane.f32.xlu0 %v3984_v36  ;;  %v3978_v32 = vsel %vm2958_vm0, %v16919_v22, 0.0 }
 0x983   : > { %v14956_v35 = vpop.eup %14955 }
 0x984   : > { %v3987_v54 = vsel %vm2958_vm0, %v14956_v35, 0.0  ;;  %v14958_v59 = vpop.eup %14957 }
 0x985   : > { %3979 = vadd.xlane.f32.xlu0 %v3978_v32  ;;  %3988 = vadd.xlane.f32.xlu1 %v3987_v54  ;;  %v3981_v51 = vsel %vm2958_vm0, %v14958_v59, 0.0  ;;  %v19218_v32 = vld [vmem:[#allocation49_spill] sm:$0xff]  ;;  %v19219_v54 = vld [vmem:[#allocation51_spill] sm:$0xff] }
 0x987   : > { %v16925_v5 = vpop.eup %14959 }
 0x988   : > { %v3990_v18 = vsel %vm2958_vm0, %v16925_v5, 0.0 }
 0x989   : > { %3982 = vadd.xlane.f32.xlu1 %v3981_v51  ;;  %v2649_v51 = vadd.f32 %v19219_v54, %v19218_v32  ;;  %v19227_v54 = vld [vmem:[#allocation41_spill] sm:$0xff] }
 0x98b   : > { %v16933_v6 = vpop.eup %14961  ;;  %v16948_v40 = vpack.c.bf16 %v2649_v51, %v19220_v12  ;;  %v19228_v51 = vld [vmem:[#allocation40_spill] sm:$0xff] }
 0x98c   : > { %v16937_v31 = vpop.eup %14963 }
 0x98d   : > { %3991 = vadd.xlane.f32.xlu1 %v3990_v18  ;;  %v16941_v2 = vpop.eup %14965 }
 0x98e   : > { %v3999_v9 = vsel %vm2958_vm0, %v16941_v2, 0.0 }
 0x99b   : > { %4032 = vrot.lane.b32.xlu0 %v16788_v34, %s15525_s2  ;;  %v3996_v34 = vsel %vm2958_vm0, %v16933_v6, 0.0 }
 0x99e   : > { %4026 = vrot.lane.b32.xlu1 %v16815_v30, %s15525_s2  ;;  %v3993_v30 = vsel %vm2958_vm0, %v16937_v31, 0.0 }
 0x9ba   : > { %3997 = vadd.xlane.f32.xlu0 %v3996_v34  ;;  %v19221_v34 = vld [vmem:[#allocation47_spill] sm:$0xff] }
 0x9be   : > { %3994 = vadd.xlane.f32.xlu0 %v3993_v30  ;;  %v19222_v30 = vld [vmem:[#allocation46_spill] sm:$0xff] }
 0x9c2   : > { %4000 = vadd.xlane.f32.xlu0 %v3999_v9  ;;  %v2639_v9 = vadd.f32 %v19222_v30, %v19221_v34 }
 0xa0a   : > { %v3986_v13 = vpop.xlane.xlu0 %3985 }
 0xa0e   : > { %v3980_v28 = vpop.xlane.xlu0 %3979  ;;  %v3989_v25 = vpop.xlane.xlu1 %3988 }
 0xa0f   : > { %14967 = vrcp.f32 %v3989_v25 }
 0xa10   : > { %14969 = vrcp.f32 %v3980_v28  ;;  %v19223_v28 = vld [vmem:[#allocation45_spill] sm:$0xff] }
 0xa11   : > { %14971 = vrcp.f32 %v3986_v13  ;;  %v16958_v25 = vpack.c.bf16 %v2639_v9, %v19223_v28 }
 0xa12   : > { %v4033_v11 = vpop.permute.xlu0 %4032  ;;  %v3983_v26 = vpop.xlane.xlu1 %3982 }
 0xa13   : > { %14973 = vrcp.f32 %v3983_v26  ;;  %13254 = vmatprep.subr.bf16.mxu0 %v4033_v11  ;;  %v4146_v32 = vsel %vm2958_vm0, %v16958_v25, 0 }
 0xa14   : > { %13255 = vmatpush3.bf16.msra.mxu0 %v4033_v11 }
 0xa15   : > { %13256 = vmatprep.subr.bf16.mxu0 %v4031_v16 }
 0xa16   : > { %v3992_v36 = vpop.xlane.xlu1 %3991 }
 0xa17   : > { %14975 = vrcp.f32 %v3992_v36 }
 0xa18   : > { %13257 = vmatpush3.bf16.msra.mxu0 %v4031_v16 }
 0xa19   : > { %13258 = vmatprep.subr.bf16.mxu0 %v4029_v7 }
 0xa1a   : > { %v4027_v18 = vpop.permute.xlu1 %4026 }
 0xa1c   : > { %13259 = vmatpush3.bf16.msra.mxu0 %v4029_v7  ;;  %v14968_v27 = vpop.eup %14967 }
 0xa1d   : > { %13260 = vmatprep.subr.bf16.mxu0 %v4027_v18  ;;  %v14970_v61 = vpop.eup %14969  ;;  %v4009_v15 = vmul.f32 %v14968_v27, %v14956_v35  ;;  %v4149_v35 = vsel %vm2958_vm0, %v16948_v40, 0  ;;  %v19229_v27 = vld [vmem:[#allocation39_spill] sm:$0xff] }
 0xa1e   : > { %v14972_v24 = vpop.eup %14971  ;;  %v4003_v57 = vmul.f32 %v14970_v61, %v16919_v22  ;;  %v19224_v22 = vld [vmem:[#allocation44_spill] sm:$0xff] }
 0xa1f   : > { %v4007_v16 = vmul.f32 %v14972_v24, %v16915_v60  ;;  %v19226_v60 = vld [vmem:[#allocation42_spill] sm:$0xff] }
 0xa20   : > { %v14974_v39 = vpop.eup %14973  ;;  %13261 = vmatpush3.bf16.msra.mxu0 %v4027_v18  ;;  %v2619_v18 = vadd.f32 %v19228_v51, %v19227_v54 }
 0xa21   : > { %13374 = vmatprep.subr.msk.bf16.mxu0 %vm2958_vm0, %v16948_v40  ;;  %v4005_v4 = vmul.f32 %v14974_v39, %v14958_v59  ;;  %v4019_v13 = vpack.c.bf16 %v4009_v15, %v4007_v16  ;;  %v19225_v59 = vld [vmem:[#allocation43_spill] sm:$0xff] }
 0xa22   : > { %v2629_v11 = vadd.f32 %v19225_v59, %v19224_v22  ;;  %v16977_v61 = vpack.c.bf16 %v2619_v18, %v19229_v27  ;;  %v19230_v22 = vld [vmem:[#allocation35_spill] sm:$0xff]  ;;  %v19231_v59 = vld [vmem:[#allocation36_spill] sm:$0xff] }
 0xa23   : > { %v4018_v7 = vpack.c.bf16 %v4005_v4, %v4003_v57 }
 0xa24   : > { %v16968_v26 = vpack.c.bf16 %v2629_v11, %v19226_v60  ;;  %v4140_v12 = vsel %vm2958_vm0, %v16977_v61, 0  ;;  %v14976_v4 = vpop.eup %14975 }
 0xa25   : > { %13262 = vmatprep.mubr.msk.bf16.mxu0 %vm2958_vm0, %v4018_v7  ;;  %v4011_v30 = vmul.f32 %v14976_v4, %v16925_v5  ;;  %v19232_v5 = vld [vmem:[#allocation37_spill] sm:$0xff] }
 0xa26   : > { %13263 = vmatmul.mubr.msk.bf16.vlgmr.msra.gmra.mxu0 %vm2958_vm0, %v4019_v13  ;;  %v4143_v24 = vsel %vm2958_vm0, %v16968_v26, 0 }
 0xa27   : > { %13271 = vmatpush3.bf16.xpose.msra.mxu0 %v4149_v35 }
 0xa28   : > { %13375 = vmatprep.subr.msk.bf16.mxu0 %vm2958_vm0, %v16958_v25 }
 0xa2f   : > { %13273 = vmatpush3.bf16.xpose.msra.mxu0 %v4146_v32 }
 0xa30   : > { %13376 = vmatprep.subr.msk.bf16.mxu0 %vm2958_vm0, %v16968_v26 }
 0xa37   : > { %13275 = vmatpush3.bf16.xpose.msra.mxu0 %v4143_v24 }
 0xa38   : > { %13377 = vmatprep.subr.msk.bf16.mxu0 %vm2958_vm0, %v16977_v61 }
 0xa3f   : > { %13277 = vmatpush3.bf16.xpose.msra.mxu0 %v4140_v12 }
 0xa43   : > { %v3998_v39 = vpop.xlane.xlu0 %3997 }
 0xa47   : > { %v3995_v15 = vpop.xlane.xlu0 %3994 }
 0xa48   : > { %14977 = vrcp.f32 %v3995_v15 }
 0xa49   : > { %14979 = vrcp.f32 %v3998_v39 }
 0xa4b   : > { %v4001_v57 = vpop.xlane.xlu0 %4000 }
 0xa4c   : > { %14981 = vrcp.f32 %v4001_v57 }
 0xa55   : > { %v14978_v34 = vpop.eup %14977 }
 0xa56   : > { %v4013_v9 = vmul.f32 %v14978_v34, %v16937_v31  ;;  %v14980_v16 = vpop.eup %14979  ;;  %v19233_v31 = vld [vmem:[#allocation38_spill] sm:$0xff] }
 0xa57   : > { %v4015_v28 = vmul.f32 %v14980_v16, %v16933_v6 }
 0xa58   : > { %v4020_v7 = vpack.c.bf16 %v4013_v9, %v4011_v30 }
 0xa59   : > { %v14982_v13 = vpop.eup %14981 }
 0xa5a   : > { %13266 = vmatprep.mubr.msk.bf16.mxu0 %vm2958_vm0, %v4020_v7  ;;  %v4017_v36 = vmul.f32 %v14982_v13, %v16941_v2 }
 0xa5c   : > { %v4021_v35 = vpack.c.bf16 %v4017_v36, %v4015_v28 }
 0xa5e   : > { %13267 = vmatmul.mubr.msk.bf16.gmra.mxu0 %vm2958_vm0, %v4021_v35 }
 0xa5f   : > { %13278 = vmatprep.mubr.msk.bf16.mxu0 %vm2958_vm0, %v19230_v22 }
 0xa66   : > { %13279 = vmatmul.mubr.msk.bf16.vlgmr.msra.gmra.mxu0 %vm2958_vm0, %v19231_v59 }
 0xa67   : > { %13282 = vmatprep.mubr.msk.bf16.mxu0 %vm2958_vm0, %v19232_v5 }
 0xa6e   : > { %13283 = vmatmul.mubr.msk.bf16.gmra.mxu0 %vm2958_vm0, %v19233_v31 }
 0xae6   : > { %v16999_v11 = vpop.f32.mrf.mxu0 }
 0xae8   : > { %v17001_v6 = vpop.f32.mrf.mxu0 }
 0xaea   : > { %v17003_v2 = vpop.f32.mrf.mxu0 }
 0xaec   : > { %v17007_v32 = vpop.f32.mrf.mxu0 }
 0xb1e   : > { %v17009_v54 = vpop.f32.mrf.mxu0 }
 0xb20   : > { %v17011_v51 = vpop.f32.mrf.mxu0 }
 0xb22   : > { %v17013_v18 = vpop.f32.mrf.mxu0 }
 0xb24   : > { %v17017_v24 = vpop.f32.mrf.mxu0 }
 0xb26   : > { %v13280_v12 = vpop.f32.mrf.mxu0 }
 0xb27   : > { %v4218_v39 = vsel %vm16471_vm2, %v13280_v12, -inf }
 0xb28   : > { %v4230_v15 = vsel %vm2958_vm0, %v4218_v39, -inf  ;;  %v4185_v57 = vpop.f32.mrf.mxu0 }
 0xb29   : > { %v4216_v4 = vsel %vm16466_vm1, %v4185_v57, -inf  ;;  %4231 = vmax.xlane.f32.xlu0 %v4230_v15 }
 0xb2a   : > { %v13281_v34 = vpop.f32.mrf.mxu0  ;;  %v4224_v30 = vsel %vm2958_vm0, %v4216_v4, -inf }
 0xb2b   : > { %v4219_v36 = vsel %vm16486_vm4, %v13281_v34, -inf }
 0xb2c   : > { %v4188_v9 = vpop.f32.mrf.mxu0  ;;  %v4233_v57 = vsel %vm2958_vm0, %v4219_v36, -inf }
 0xb2d   : > { %v4217_v16 = vsel %vm16479_vm3, %v4188_v9, -inf  ;;  %4225 = vmax.xlane.f32.xlu0 %v4224_v30 }
 0xb2e   : > { %v13284_v7 = vpop.f32.mrf.mxu0  ;;  %v4227_v28 = vsel %vm2958_vm0, %v4217_v16, -inf }
 0xb2f   : > { %v4222_v30 = vsel %vm16502_vm6, %v13284_v7, -inf }
 0xb30   : > { %v4201_v13 = vpop.f32.mrf.mxu0  ;;  %v4242_v37 = vsel %vm2958_vm0, %v4222_v30, -inf }
 0xb31   : > { %v4220_v35 = vsel %vm16495_vm5, %v4201_v13, -inf  ;;  %4228 = vmax.xlane.f32.xlu0 %v4227_v28 }
 0xb32   : > { %v4236_v12 = vsel %vm2958_vm0, %v4220_v35, -inf  ;;  %v13285_v15 = vpop.f32.mrf.mxu0 }
 0xb33   : > { %4237 = vmax.xlane.f32.xlu1 %v4236_v12  ;;  %v4223_v28 = vsel %vm16517_vm8, %v13285_v15, -inf }
 0xb34   : > { %v4204_v9 = vpop.f32.mrf.mxu0  ;;  %v4245_v12 = vsel %vm2958_vm0, %v4223_v28, -inf }
 0xb35   : > { %4234 = vmax.xlane.f32.xlu0 %v4233_v57  ;;  %v4221_v34 = vsel %vm16511_vm7, %v4204_v9, -inf }
 0xb36   : > { %v4239_v13 = vsel %vm2958_vm0, %v4221_v34, -inf }
 0xb39   : > { %4243 = vmax.xlane.f32.xlu0 %v4242_v37 }
 0xb3d   : > { %4240 = vmax.xlane.f32.xlu0 %v4239_v13 }
 0xb41   : > { %4246 = vmax.xlane.f32.xlu0 %v4245_v12 }
 0xb44   : > { %4415 = vrot.lane.b32.xlu1 %v16948_v40, %s15525_s2 }
 0xbb2   : > { %v4232_v7 = vpop.xlane.xlu0 %4231 }
 0xbb3   : > { %v4250_v57 = vsub.f32 %v4218_v39, %v4232_v7 }
 0xbb5   : > { %v4260_v27 = vmul.f32 1.442695, %v4250_v57 }
 0xbb6   : > { %v4226_v62 = vpop.xlane.xlu0 %4225 }
 0xbb7   : > { %14983 = vpow2.f32 %v4260_v27  ;;  %v4248_v60 = vsub.f32 %v4216_v4, %v4226_v62 }
 0xbb9   : > { %v4256_v9 = vmul.f32 1.442695, %v4248_v60 }
 0xbba   : > { %v4229_v37 = vpop.xlane.xlu0 %4228 }
 0xbbb   : > { %14985 = vpow2.f32 %v4256_v9  ;;  %v4249_v45 = vsub.f32 %v4217_v16, %v4229_v37 }
 0xbbc   : > { %v4238_v48 = vpop.xlane.xlu1 %4237 }
 0xbbd   : > { %v4258_v21 = vmul.f32 1.442695, %v4249_v45  ;;  %v4252_v12 = vsub.f32 %v4220_v35, %v4238_v48 }
 0xbbe   : > { %v4235_v3 = vpop.xlane.xlu0 %4234 }
 0xbbf   : > { %v4251_v15 = vsub.f32 %v4219_v36, %v4235_v3  ;;  %v4264_v62 = vmul.f32 1.442695, %v4252_v12 }
 0xbc0   : > { %v17045_v13 = vpop.permute.xlu1 %4415 }
 0xbc1   : > { %v4262_v20 = vmul.f32 1.442695, %v4251_v15  ;;  %13378 = vmatprep.subr.msk.bf16.mxu1 %vm2958_vm0, %v17045_v13 }
 0xbc2   : > { %v4244_v40 = vpop.xlane.xlu0 %4243 }
 0xbc3   : > { %14987 = vpow2.f32 %v4262_v20  ;;  %v4254_v39 = vsub.f32 %v4222_v30, %v4244_v40 }
 0xbc4   : > { %v17049_v27 = vpop.eup %14983  ;;  %14989 = vpow2.f32 %v4258_v21 }
 0xbc5   : > { %v4268_v60 = vmul.f32 1.442695, %v4254_v39  ;;  %v4278_v4 = vsel %vm2958_vm0, %v17049_v27, 0.0 }
 0xbc6   : > { %4279 = vadd.xlane.f32.xlu0 %v4278_v4  ;;  %v4241_v3 = vpop.xlane.xlu0 %4240 }
 0xbc7   : > { %14991 = vpow2.f32 %v4268_v60  ;;  %v4253_v48 = vsub.f32 %v4221_v34, %v4241_v3 }
 0xbc8   : > { %v14986_v45 = vpop.eup %14985  ;;  %14993 = vpow2.f32 %v4264_v62 }
 0xbc9   : > { %v4272_v16 = vsel %vm2958_vm0, %v14986_v45, 0.0  ;;  %v4266_v35 = vmul.f32 1.442695, %v4253_v48 }
 0xbca   : > { %4273 = vadd.xlane.f32.xlu0 %v4272_v16  ;;  %v4247_v36 = vpop.xlane.xlu0 %4246 }
 0xbcb   : > { %v4255_v20 = vsub.f32 %v4223_v28, %v4247_v36 }
 0xbcd   : > { %v4270_v30 = vmul.f32 1.442695, %v4255_v20 }
 0xbcf   : > { %14995 = vpow2.f32 %v4270_v30 }
 0xbd0   : > { %v14988_v21 = vpop.eup %14987  ;;  %14997 = vpow2.f32 %v4266_v35 }
 0xbd1   : > { %v4281_v7 = vsel %vm2958_vm0, %v14988_v21, 0.0  ;;  %v14990_v57 = vpop.eup %14989 }
 0xbd2   : > { %4282 = vadd.xlane.f32.xlu0 %v4281_v7  ;;  %v4275_v15 = vsel %vm2958_vm0, %v14990_v57, 0.0 }
 0xbd4   : > { %v14992_v9 = vpop.eup %14991 }
 0xbd5   : > { %v4290_v37 = vsel %vm2958_vm0, %v14992_v9, 0.0  ;;  %v14994_v34 = vpop.eup %14993 }
 0xbd6   : > { %4291 = vadd.xlane.f32.xlu1 %v4290_v37  ;;  %4276 = vadd.xlane.f32.xlu0 %v4275_v15  ;;  %v4284_v12 = vsel %vm2958_vm0, %v14994_v34, 0.0  ;;  %v4439_v15 = vsel %vm2958_vm0, %v17045_v13, 0 }
 0xbda   : > { %4285 = vadd.xlane.f32.xlu0 %v4284_v12 }
 0xbdc   : > { %v14996_v28 = vpop.eup %14995 }
 0xbdd   : > { %v4293_v40 = vsel %vm2958_vm0, %v14996_v28, 0.0  ;;  %v14998_v39 = vpop.eup %14997 }
 0xbde   : > { %4294 = vadd.xlane.f32.xlu0 %v4293_v40  ;;  %v4287_v62 = vsel %vm2958_vm0, %v14998_v39, 0.0 }
 0xbe2   : > { %4288 = vadd.xlane.f32.xlu0 %v4287_v62 }
 0xbe7   : > { %4411 = vrot.lane.b32.xlu1 %v16968_v26, %s15525_s2 }
 0xbeb   : > { %4409 = vrot.lane.b32.xlu1 %v16977_v61, %s15525_s2 }
 0xbef   : > { %4399 = vrot.lane.b32.xlu1 %v19231_v59, %s15525_s2 }
 0xbf3   : > { %4403 = vrot.lane.b32.xlu1 %v19233_v31, %s15525_s2 }
 0xbf8   : > { %4413 = vrot.lane.b32.xlu0 %v16958_v25, %s15525_s2 }
 0xbfc   : > { %4397 = vrot.lane.b32.xlu0 %v19230_v22, %s15525_s2 }
 0xc00   : > { %4401 = vrot.lane.b32.xlu0 %v19232_v5, %s15525_s2 }
 0xc4f   : > { %v4280_v60 = vpop.xlane.xlu0 %4279 }
 0xc53   : > { %v4274_v26 = vpop.xlane.xlu0 %4273 }
 0xc5b   : > { %v4283_v4 = vpop.xlane.xlu0 %4282 }
 0xc5c   : > { %14999 = vrcp.f32 %v4283_v4 }
 0xc5d   : > { %15001 = vrcp.f32 %v4274_v26 }
 0xc5e   : > { %15003 = vrcp.f32 %v4280_v60 }
 0xc5f   : > { %v4277_v61 = vpop.xlane.xlu0 %4276  ;;  %v4292_v31 = vpop.xlane.xlu1 %4291 }
 0xc60   : > { %15005 = vrcp.f32 %v4277_v61 }
 0xc63   : > { %v4286_v59 = vpop.xlane.xlu0 %4285 }
 0xc67   : > { %v4295_v3 = vpop.xlane.xlu0 %4294 }
 0xc68   : > { %15007 = vrcp.f32 %v4295_v3 }
 0xc69   : > { %15009 = vrcp.f32 %v4286_v59  ;;  %v15000_v25 = vpop.eup %14999  ;;  %v4412_v59 = vpop.permute.xlu1 %4411 }
 0xc6a   : > { %15011 = vrcp.f32 %v4292_v31  ;;  %v15002_v22 = vpop.eup %15001  ;;  %v4303_v36 = vmul.f32 %v15000_v25, %v14988_v21 }
 0xc6b   : > { %v4289_v48 = vpop.xlane.xlu0 %4288  ;;  %v15004_v16 = vpop.eup %15003  ;;  %v4297_v20 = vmul.f32 %v15002_v22, %v14986_v45 }
 0xc6c   : > { %15013 = vrcp.f32 %v4289_v48  ;;  %v4301_v30 = vmul.f32 %v15004_v16, %v17049_v27  ;;  %v19234_v48 = vmov 0  }
 0xc6d   : > { %v15006_v5 = vpop.eup %15005 }
 0xc6e   : > { %v4299_v35 = vmul.f32 %v15006_v5, %v14990_v57  ;;  %v4313_v37 = vpack.c.bf16 %v4303_v36, %v4301_v30 }
 0xc6f   : > { %v4414_v12 = vpop.permute.xlu0 %4413 }
 0xc70   : > { %v4312_v7 = vpack.c.bf16 %v4299_v35, %v4297_v20  ;;  %v4436_v4 = vsel %vm2958_vm0, %v4414_v12, 0 }
 0xc72   : > { %13294 = vmatprep.mubr.msk.bf16.mxu1 %vm2958_vm0, %v4312_v7 }
 0xc73   : > { %13295 = vmatmul.mubr.msk.bf16.vlgmr.msra.gmra.mxu1 %vm2958_vm0, %v4313_v37  ;;  %v4398_v3 = vpop.permute.xlu0 %4397 }
 0xc74   : > { %13303 = vmatpush3.bf16.xpose.msra.mxu1 %v4439_v15 }
 0xc75   : > { %v15008_v40 = vpop.eup %15007  ;;  %13379 = vmatprep.subr.msk.bf16.mxu1 %vm2958_vm0, %v4414_v12 }
 0xc76   : > { %v15010_v62 = vpop.eup %15009  ;;  %v4311_v57 = vmul.f32 %v15008_v40, %v14996_v28  ;;  %v4433_v28 = vsel %vm2958_vm0, %v4412_v59, 0 }
 0xc77   : > { %v15012_v21 = vpop.eup %15011  ;;  %v4305_v60 = vmul.f32 %v15010_v62, %v14994_v34  ;;  %v4410_v34 = vpop.permute.xlu1 %4409 }
 0xc78   : > { %v4309_v26 = vmul.f32 %v15012_v21, %v14992_v9  ;;  %v4430_v9 = vsel %vm2958_vm0, %v4410_v34, 0  ;;  %v4402_v31 = vpop.permute.xlu0 %4401 }
 0xc79   : > { %v15014_v45 = vpop.eup %15013 }
 0xc7a   : > { %v4307_v27 = vmul.f32 %v15014_v45, %v14998_v39  ;;  %v4315_v13 = vpack.c.bf16 %v4311_v57, %v4309_v26 }
 0xc7b   : > { %v4400_v39 = vpop.permute.xlu1 %4399 }
 0xc7c   : > { %v4314_v61 = vpack.c.bf16 %v4307_v27, %v4305_v60  ;;  %13305 = vmatpush3.bf16.xpose.msra.mxu1 %v4436_v4 }
 0xc7d   : > { %13380 = vmatprep.subr.msk.bf16.mxu1 %vm2958_vm0, %v4412_v59 }
 0xc7e   : > { %13298 = vmatprep.mubr.msk.bf16.mxu1 %vm2958_vm0, %v4314_v61 }
 0xc7f   : > { %13299 = vmatmul.mubr.msk.bf16.gmra.mxu1 %vm2958_vm0, %v4315_v13  ;;  %v4404_v25 = vpop.permute.xlu1 %4403 }
 0xc80   : > { %13310 = vmatprep.mubr.msk.bf16.mxu1 %vm2958_vm0, %v4398_v3 }
 0xc84   : > { %13307 = vmatpush3.bf16.xpose.msra.mxu1 %v4433_v28 }
 0xc85   : > { %13381 = vmatprep.subr.msk.bf16.mxu1 %vm2958_vm0, %v4410_v34 }
 0xc8c   : > { %13309 = vmatpush3.bf16.xpose.msra.mxu1 %v4430_v9 }
 0xc93   : > { %13311 = vmatmul.mubr.msk.bf16.vlgmr.msra.gmra.mxu1 %vm2958_vm0, %v4400_v39 }
 0xc94   : > { %13314 = vmatprep.mubr.msk.bf16.mxu1 %vm2958_vm0, %v4402_v31 }
 0xc9b   : > { %13315 = vmatmul.mubr.msk.bf16.gmra.mxu1 %vm2958_vm0, %v4404_v25 }
 0xc9c   : > { %5416 = vmatprep.mubr.bf16.mxu1 %v19234_v48 }
 0xd33   : > { %v17092_v22 = vpop.f32.mrf.mxu1 }
 0xd35   : > { %v17094_v16 = vpop.f32.mrf.mxu1 }
 0xd37   : > { %v17096_v5 = vpop.f32.mrf.mxu1 }
 0xd39   : > { %v17098_v36 = vpop.f32.mrf.mxu1 }
 0xd3f   : > { %v17100_v20 = vpop.f32.mrf.mxu1 }
 0xd41   : > { %v17102_v35 = vpop.f32.mrf.mxu1 }
 0xd43   : > { %v17104_v30 = vpop.f32.mrf.mxu1 }
 0xd45   : > { %v17106_v7 = vpop.f32.mrf.mxu1 }
 0xd53   : > { %v13312_v37 = vpop.f32.mrf.mxu1 }
 0xd54   : > { %v4508_v21 = vsel %vm16471_vm2, %v13312_v37, -inf }
 0xd55   : > { %v4475_v15 = vpop.f32.mrf.mxu1  ;;  %v4520_v60 = vsel %vm2958_vm0, %v4508_v21, -inf }
 0xd56   : > { %v4506_v12 = vsel %vm16466_vm1, %v4475_v15, -inf }
 0xd57   : > { %v4514_v40 = vsel %vm2958_vm0, %v4506_v12, -inf  ;;  %v13313_v62 = vpop.f32.mrf.mxu1 }
 0xd58   : > { %4515 = vmax.xlane.f32.xlu0 %v4514_v40  ;;  %v4509_v14 = vsel %vm16486_vm4, %v13313_v62, -inf }
 0xd59   : > { %v4478_v45 = vpop.f32.mrf.mxu1  ;;  %v4523_v61 = vsel %vm2958_vm0, %v4509_v14, -inf }
 0xd5a   : > { %v4507_v57 = vsel %vm16479_vm3, %v4478_v45, -inf }
 0xd5b   : > { %v13316_v27 = vpop.f32.mrf.mxu1  ;;  %v4517_v26 = vsel %vm2958_vm0, %v4507_v57, -inf }
 0xd5c   : > { %4521 = vmax.xlane.f32.xlu0 %v4520_v60  ;;  %4518 = vmax.xlane.f32.xlu1 %v4517_v26  ;;  %v4512_v13 = vsel %vm16502_vm6, %v13316_v27, -inf }
 0xd5d   : > { %v4491_v4 = vpop.f32.mrf.mxu1  ;;  %v4532_v28 = vsel %vm2958_vm0, %v4512_v13, -inf }
 0xd5e   : > { %v4510_v41 = vsel %vm16495_vm5, %v4491_v4, -inf }
 0xd5f   : > { %v4526_v59 = vsel %vm2958_vm0, %v4510_v41, -inf  ;;  %v13317_v0 = vpop.f32.mrf.mxu1 }
 0xd60   : > { %4524 = vmax.xlane.f32.xlu0 %v4523_v61  ;;  %4527 = vmax.xlane.f32.xlu1 %v4526_v59  ;;  %v4513_v1 = vsel %vm16517_vm8, %v13317_v0, -inf }
 0xd61   : > { %v4494_v3 = vpop.f32.mrf.mxu1  ;;  %v4535_v9 = vsel %vm2958_vm0, %v4513_v1, -inf }
 0xd62   : > { %v4511_v52 = vsel %vm16511_vm7, %v4494_v3, -inf }
 0xd63   : > { %v4529_v34 = vsel %vm2958_vm0, %v4511_v52, -inf }
 0xd64   : > { %4533 = vmax.xlane.f32.xlu1 %v4532_v28  ;;  %4530 = vmax.xlane.f32.xlu0 %v4529_v34 }
 0xd68   : > { %4536 = vmax.xlane.f32.xlu0 %v4535_v9 }
 0xd75   : > { %4616 = vrot.lane.b32.xlu1 %v16459_v19, %s15525_s2 }
 0xd79   : > { %4614 = vrot.lane.b32.xlu1 %v16461_v58, %s15525_s2 }
 0xde1   : > { %v4516_v29 = vpop.xlane.xlu0 %4515 }
 0xde2   : > { %v4538_v50 = vsub.f32 %v4506_v12, %v4516_v29 }
 0xde4   : > { %v4546_v15 = vmul.f32 1.442695, %v4538_v50 }
 0xde5   : > { %v4519_v39 = vpop.xlane.xlu1 %4518  ;;  %v4522_v31 = vpop.xlane.xlu0 %4521 }
 0xde6   : > { %v4540_v25 = vsub.f32 %v4508_v21, %v4522_v31  ;;  %v4539_v53 = vsub.f32 %v4507_v57, %v4519_v39 }
 0xde8   : > { %v4550_v37 = vmul.f32 1.442695, %v4540_v25  ;;  %v4548_v27 = vmul.f32 1.442695, %v4539_v53 }
 0xde9   : > { %v4528_v40 = vpop.xlane.xlu1 %4527  ;;  %v4525_v62 = vpop.xlane.xlu0 %4524 }
 0xdea   : > { %v4541_v45 = vsub.f32 %v4509_v14, %v4525_v62  ;;  %15015 = vpow2.f32 %v4550_v37  ;;  %v4542_v58 = vsub.f32 %v4510_v41, %v4528_v40  ;;  %v13555_v62 = vpack.i.bf16 %v17007_v32, %v17001_v6 }
 0xdeb   : > { %15017 = vpow2.f32 %v4546_v15 }
 0xdec   : > { %v4552_v60 = vmul.f32 1.442695, %v4541_v45  ;;  %v4554_v21 = vmul.f32 1.442695, %v4542_v58 }
 0xded   : > { %v4534_v26 = vpop.xlane.xlu1 %4533  ;;  %v4531_v19 = vpop.xlane.xlu0 %4530 }
 0xdee   : > { %v4544_v4 = vsub.f32 %v4512_v13, %v4534_v26  ;;  %15019 = vpow2.f32 %v4552_v60  ;;  %v4543_v3 = vsub.f32 %v4511_v52, %v4531_v19  ;;  %v19235_v60 = vpack.i.bf16 %v17003_v2, %v16999_v11 }
 0xdef   : > { %15021 = vpow2.f32 %v4548_v27 }
 0xdf0   : > { %v4558_v12 = vmul.f32 1.442695, %v4544_v4  ;;  %v4556_v9 = vmul.f32 1.442695, %v4543_v3 }
 0xdf1   : > { %v4617_v61 = vpop.permute.xlu1 %4616  ;;  %v4537_v59 = vpop.xlane.xlu0 %4536 }
 0xdf2   : > { %13318 = vmatprep.subr.bf16.mxu0 %v4617_v61  ;;  %15023 = vpow2.f32 %v4558_v12  ;;  %v4545_v57 = vsub.f32 %v4513_v1, %v4537_v59 }
 0xdf3   : > { %13319 = vmatpush3.bf16.msra.mxu0 %v4617_v61  ;;  %15025 = vpow2.f32 %v4554_v21 }
 0xdf4   : > { %v4560_v28 = vmul.f32 1.442695, %v4545_v57 }
 0xdf5   : > { %v4615_v0 = vpop.permute.xlu1 %4614 }
 0xdf6   : > { %13320 = vmatprep.subr.bf16.mxu0 %v4615_v0  ;;  %15027 = vpow2.f32 %v4560_v28 }
 0xdf7   : > { %13321 = vmatpush3.bf16.msra.mxu0 %v4615_v0  ;;  %v17136_v14 = vpop.eup %15015  ;;  %15029 = vpow2.f32 %v4556_v9 }
 0xdf8   : > { %v4568_v13 = vsel %vm2958_vm0, %v17136_v14, 0.0  ;;  %v15018_v41 = vpop.eup %15017 }
 0xdf9   : > { %4569 = vadd.xlane.f32.xlu1 %v4568_v13  ;;  %v4562_v29 = vsel %vm2958_vm0, %v15018_v41, 0.0 }
 0xdfb   : > { %v15020_v34 = vpop.eup %15019 }
 0xdfc   : > { %v4571_v1 = vsel %vm2958_vm0, %v15020_v34, 0.0  ;;  %v15022_v50 = vpop.eup %15021 }
 0xdfd   : > { %4563 = vadd.xlane.f32.xlu1 %v4562_v29  ;;  %4572 = vadd.xlane.f32.xlu0 %v4571_v1  ;;  %v4565_v39 = vsel %vm2958_vm0, %v15022_v50, 0.0 }
 0xdff   : > { %v17143_v52 = vpop.eup %15023 }
 0xe00   : > { %v4580_v31 = vsel %vm2958_vm0, %v17143_v52, 0.0  ;;  %v15026_v25 = vpop.eup %15025 }
 0xe01   : > { %4566 = vadd.xlane.f32.xlu0 %v4565_v39  ;;  %v4574_v37 = vsel %vm2958_vm0, %v15026_v25, 0.0 }
 0xe03   : > { %v15028_v15 = vpop.eup %15027 }
 0xe04   : > { %v4583_v53 = vsel %vm2958_vm0, %v15028_v15, 0.0  ;;  %v15030_v40 = vpop.eup %15029 }
 0xe05   : > { %4581 = vadd.xlane.f32.xlu0 %v4580_v31  ;;  %v4577_v45 = vsel %vm2958_vm0, %v15030_v40, 0.0 }
 0xe09   : > { %4575 = vadd.xlane.f32.xlu0 %v4574_v37 }
 0xe0d   : > { %4584 = vadd.xlane.f32.xlu0 %v4583_v53 }
 0xe0e   : > { %4610 = vrot.lane.b32.xlu1 %v19213_v33, %s15525_s2 }
 0xe11   : > { %4578 = vadd.xlane.f32.xlu0 %v4577_v45 }
 0xe12   : > { %13556 = vrot.lane.b32.xlu1 %v13555_v62, %s15525_s2 }
 0xe27   : > { %4612 = vrot.lane.b32.xlu0 %v19212_v47, %s15525_s2 }
 0xe2b   : > { %13576 = vrot.lane.b32.xlu0 %v19235_v60, %s15525_s2 }
 0xe82   : > { %v4570_v27 = vpop.xlane.xlu1 %4569 }
 0xe86   : > { %v4564_v26 = vpop.xlane.xlu1 %4563  ;;  %v4573_v19 = vpop.xlane.xlu0 %4572 }
 0xe87   : > { %15031 = vrcp.f32 %v4564_v26 }
 0xe8a   : > { %v4567_v33 = vpop.xlane.xlu0 %4566  ;;  %v4611_v21 = vpop.permute.xlu1 %4610 }
 0xe8b   : > { %15033 = vrcp.f32 %v4567_v33  ;;  %v13953_v33 = vld [vmem:[#allocation10 + $0x22c] ss:$12 sps:$4 sm:$0xff]  }
 0xe8c   : > { %15035 = vrcp.f32 %v4573_v19  ;;  %v13951_v19 = vld [vmem:[#allocation10 + $0x228] ss:$12 sps:$4 sm:$0xff]   ;;  %5384 = vmatprep.subr.bf16.mxu1 %v13953_v33 }
 0xe8d   : > { %15037 = vrcp.f32 %v4570_v27  ;;  %5385 = vmatpush1.bf16.msra.mxu1 %v13951_v19  ;;  %v13993_v19 = vld [vmem:[#allocation10 + $0x180] ss:$12 sps:$4 sm:$0xff]  }
 0xe8e   : > { %v4582_v6 = vpop.xlane.xlu0 %4581  ;;  %v13557_v13 = vpop.permute.xlu1 %13556 }
 0xe8f   : > { %v13558_v39 = vunpack.i.l.bf16 %v13557_v13 }
 0xe92   : > { %v4576_v32 = vpop.xlane.xlu0 %4575 }
 0xe93   : > { %15039 = vrcp.f32 %v4576_v32  ;;  %v13938_v32 = vld [vmem:[#allocation10 + $0x64] ss:$12 sps:$4 sm:$0xff]  }
 0xe94   : > { %v15032_v4 = vpop.eup %15031 }
 0xe95   : > { %v4587_v47 = vmul.f32 %v15032_v4, %v15018_v41  ;;  %v13957_v4 = vld [vmem:[#allocation10 + $0x210] ss:$12 sps:$4 sm:$0xff]  }
 0xe96   : > { %v4585_v58 = vpop.xlane.xlu0 %4584 }
 0xe97   : > { %15041 = vrcp.f32 %v4585_v58  ;;  %v13965_v58 = vld [vmem:[#allocation10 + $0x1fc] ss:$12 sps:$4 sm:$0xff]  }
 0xe98   : > { %v15034_v12 = vpop.eup %15033  ;;  %15043 = vrcp.f32 %v4582_v6  ;;  %v13959_v6 = vld [vmem:[#allocation10 + $0x214] ss:$12 sps:$4 sm:$0xff]  }
 0xe99   : > { %v4589_v61 = vmul.f32 %v15034_v12, %v15022_v50  ;;  %v15036_v59 = vpop.eup %15035  ;;  %v13559_v50 = vunpack.i.h.bf16 %v13557_v13  ;;  %5386 = vmatprep.subr.bf16.mxu1 %v13959_v6  ;;  %v13936_v12 = vld [vmem:[#allocation10 + $0x60] ss:$12 sps:$4 sm:$0xff]  }
 0xe9a   : > { %v4579_v11 = vpop.xlane.xlu0 %4578  ;;  %v15038_v0 = vpop.eup %15037  ;;  %v4593_v3 = vmul.f32 %v15036_v59, %v15020_v34  ;;  %5387 = vmatpush1.bf16.msra.mxu1 %v13957_v4  ;;  %v13944_v59 = vld [vmem:[#allocation10 + $0x34] ss:$12 sps:$4 sm:$0xff]   ;;  %v13998_v4 = vld [vmem:[#allocation10 + $0xc4] ss:$12 sps:$4 sm:$0xff]  }
 0xe9b   : > { %15045 = vrcp.f32 %v4579_v11  ;;  %v4602_v2 = vpack.c.bf16 %v4589_v61, %v4587_v47  ;;  %v4591_v28 = vmul.f32 %v15038_v0, %v17136_v14  ;;  %v4803_v14 = vsel %vm2958_vm0, %v16873_v42, %v13558_v39  ;;  %v13935_v42 = vld [vmem:[#allocation10 + $0x7c] ss:$12 sps:$4 sm:$0xff]   ;;  %v13941_v47 = vld [vmem:[#allocation10 + $0x4c] ss:$12 sps:$4 sm:$0xff]   ;;  %5388 = vmatprep.subr.bf16.mxu1 %v13965_v58  ;;  %v13971_v11 = vld [vmem:[#allocation10 + $0x1e4] ss:$12 sps:$4 sm:$0xff]  }
 0xe9c   : > { %v4804_v60 = vsel %vm2958_vm0, %v16877_v49, %v13559_v50  ;;  %v13933_v49 = vld [vmem:[#allocation10 + $0x78] ss:$12 sps:$4 sm:$0xff]   ;;  %v13942_v0 = vld [vmem:[#allocation10 + $0x30] ss:$12 sps:$4 sm:$0xff]   ;;  %v13983_v13 = vld [vmem:[#allocation10 + $0x1b4] ss:$12 sps:$4 sm:$0xff]  }
 0xe9d   : > { %13326 = vmatprep.mubr.msk.bf16.mxu0 %vm2958_vm0, %v4602_v2  ;;  %v4603_v9 = vpack.c.bf16 %v4593_v3, %v4591_v28  ;;  %v17170_v26 = vpack.c.bf16 %v4804_v60, %v4803_v14  ;;  %v13963_v61 = vld [vmem:[#allocation10 + $0x1f8] ss:$12 sps:$4 sm:$0xff]   ;;  %v13939_v2 = vld [vmem:[#allocation10 + $0x48] ss:$12 sps:$4 sm:$0xff]   ;;  %v13948_v50 = vld [vmem:[#allocation10] ss:$12 sps:$4 sm:$0xff]  }
 0xe9e   : > { %v4613_v57 = vpop.permute.xlu0 %4612  ;;  %5389 = vmatpush1.bf16.msra.mxu1 %v13963_v61  ;;  %v13947_v3 = vld [vmem:[#allocation10 + $0x1c] ss:$12 sps:$4 sm:$0xff]   ;;  %v13956_v39 = vld [vmem:[#allocation10 + $0x16c] ss:$12 sps:$4 sm:$0xff]   ;;  %v13974_v14 = vld [vmem:[#allocation10 + $0x124] ss:$12 sps:$4 sm:$0xff]  }
 0xe9f   : > { %13322 = vmatprep.subr.bf16.mxu0 %v4613_v57  ;;  %5390 = vmatprep.subr.bf16.mxu1 %v13971_v11  ;;  %v13975_v28 = vld [vmem:[#allocation10 + $0x1c8] ss:$12 sps:$4 sm:$0xff]   ;;  %v13972_v60 = vld [vmem:[#allocation10 + $0x120] ss:$12 sps:$4 sm:$0xff]   ;;  %v13999_v58 = vld [vmem:[#allocation10 + $0x170] ss:$12 sps:$4 sm:$0xff]  }
 0xea0   : > { %13323 = vmatpush3.bf16.msra.mxu0 %v4613_v57  ;;  %v15040_v41 = vpop.eup %15039  ;;  %v13977_v57 = vld [vmem:[#allocation10 + $0x1cc] ss:$12 sps:$4 sm:$0xff]   ;;  %v14002_v11 = vld [vmem:[#allocation10 + $0x230] ss:$12 sps:$4 sm:$0xff]  }
 0xea1   : > { %13324 = vmatprep.subr.bf16.mxu0 %v4611_v21  ;;  %v4595_v37 = vmul.f32 %v15040_v41, %v15026_v25  ;;  %v13927_v25 = vld [vmem:[#allocation10 + $0xa8] ss:$12 sps:$4 sm:$0xff]   ;;  %v13945_v41 = vld [vmem:[#allocation10 + $0x18] ss:$12 sps:$4 sm:$0xff]  }
 0xea4   : > { %13325 = vmatpush3.bf16.msra.mxu0 %v4611_v21  ;;  %v15042_v29 = vpop.eup %15041  ;;  %v13969_v21 = vld [vmem:[#allocation10 + $0x1e0] ss:$12 sps:$4 sm:$0xff]  }
 0xea5   : > { %v15044_v1 = vpop.eup %15043  ;;  %v4601_v62 = vmul.f32 %v15042_v29, %v15028_v15  ;;  %v13929_v15 = vld [vmem:[#allocation10 + $0xac] ss:$12 sps:$4 sm:$0xff]   ;;  %5391 = vmatpush1.bf16.msra.mxu1 %v13969_v21  ;;  %v13981_v29 = vld [vmem:[#allocation10 + $0x1b0] ss:$12 sps:$4 sm:$0xff]   ;;  %v13565_v21 = vpack.i.bf16 %v16859_v38, %v16853_v56  ;;  %v13585_v56 = vpack.i.bf16 %v17017_v24, %v17011_v51  ;;  %v19237_v38 = vpack.i.bf16 %v17013_v18, %v17009_v54 }
 0xea6   : > { %v4599_v34 = vmul.f32 %v15044_v1, %v17143_v52  ;;  %5311 = vmatprep.subr.bf16.mxu0 %v13929_v15  ;;  %v13930_v52 = vld [vmem:[#allocation10 + $0x90] ss:$12 sps:$4 sm:$0xff]   ;;  %5392 = vmatprep.subr.bf16.mxu1 %v13977_v57  ;;  %v13986_v15 = vld [vmem:[#allocation10 + $0xf4] ss:$12 sps:$4 sm:$0xff]  }
 0xea7   : > { %13327 = vmatmul.mubr.msk.bf16.vlgmr.msra.gmra.mxu0 %vm2958_vm0, %v4603_v9  ;;  %v13950_v9 = vld [vmem:[#allocation10 + $0x4] ss:$12 sps:$4 sm:$0xff]   ;;  %v13989_v1 = vld [vmem:[#allocation10 + $0x19c] ss:$12 sps:$4 sm:$0xff]  }
 0xea8   : > { %v15046_v31 = vpop.eup %15045  ;;  %v4605_v27 = vpack.c.bf16 %v4601_v62, %v4599_v34  ;;  %5312 = vmatpush1.bf16.msra.mxu0 %v13927_v25  ;;  %v13960_v62 = vld [vmem:[#allocation10 + $0x150] ss:$12 sps:$4 sm:$0xff]   ;;  %v13966_v34 = vld [vmem:[#allocation10 + $0x138] ss:$12 sps:$4 sm:$0xff]   ;;  %v13978_v25 = vld [vmem:[#allocation10 + $0x108] ss:$12 sps:$4 sm:$0xff]  }
 0xea9   : > { %v4597_v53 = vmul.f32 %v15046_v31, %v15030_v40  ;;  %v13932_v40 = vld [vmem:[#allocation10 + $0x94] ss:$12 sps:$4 sm:$0xff]   ;;  %5393 = vmatpush1.bf16.msra.mxu1 %v13975_v28  ;;  %v13987_v31 = vld [vmem:[#allocation10 + $0x198] ss:$12 sps:$4 sm:$0xff]   ;;  %v14000_v18 = vld [vmem:[#allocation10 + $0xb0] ss:$12 sps:$4 sm:$0xff]  }
 0xeaa   : > { %5313 = vmatprep.subr.bf16.mxu0 %v13932_v40  ;;  %5394 = vmatprep.subr.bf16.mxu1 %v13983_v13  ;;  %v13984_v40 = vld [vmem:[#allocation10 + $0xf0] ss:$12 sps:$4 sm:$0xff]   ;;  %v13595_v13 = vpack.i.bf16 %v16869_v8, %v16863_v44 }
 0xeab   : > { %v4604_v45 = vpack.c.bf16 %v4597_v53, %v4595_v37  ;;  %v13954_v37 = vld [vmem:[#allocation10 + $0x168] ss:$12 sps:$4 sm:$0xff]  }
 0xeac   : > { %5314 = vmatpush1.bf16.msra.mxu0 %v13930_v52  ;;  %v13962_v53 = vld [vmem:[#allocation10 + $0x154] ss:$12 sps:$4 sm:$0xff]   ;;  %v13990_v52 = vld [vmem:[#allocation10 + $0xd8] ss:$12 sps:$4 sm:$0xff]  }
 0xead   : > { %13330 = vmatprep.mubr.msk.bf16.mxu0 %vm2958_vm0, %v4604_v45  ;;  %5315 = vmatprep.subr.bf16.mxu0 %v13935_v42  ;;  %v13968_v45 = vld [vmem:[#allocation10 + $0x13c] ss:$12 sps:$4 sm:$0xff]  }
 0xeae   : > { %5395 = vmatpush1.bf16.msra.mxu1 %v13981_v29  ;;  %v13992_v42 = vld [vmem:[#allocation10 + $0xdc] ss:$12 sps:$4 sm:$0xff]  }
 0xeaf   : > { %13331 = vmatmul.mubr.msk.bf16.gmra.mxu0 %vm2958_vm0, %v4605_v27  ;;  %5396 = vmatprep.subr.bf16.mxu1 %v13989_v1  ;;  %v13980_v27 = vld [vmem:[#allocation10 + $0x10c] ss:$12 sps:$4 sm:$0xff]  }
 0xeb0   : > { %5343 = vmatprep.mubr.bf16.mxu0 %v17170_v26  ;;  %5316 = vmatpush1.bf16.msra.mxu0 %v13933_v49  ;;  %v13995_v49 = vld [vmem:[#allocation10 + $0x184] ss:$12 sps:$4 sm:$0xff]  }
 0xeb1   : > { %5317 = vmatprep.subr.bf16.mxu0 %v13938_v32  ;;  %v13996_v32 = vld [vmem:[#allocation10 + $0xc0] ss:$12 sps:$4 sm:$0xff]  }
 0xeb2   : > { %5397 = vmatpush1.bf16.msra.mxu1 %v13987_v31  ;;  %v14001_v31 = vld [vmem:[#allocation10 + $0x158] ss:$12 sps:$4 sm:$0xff]  }
 0xeb3   : > { %5398 = vmatprep.subr.bf16.mxu1 %v13995_v49 }
 0xeb4   : > { %5318 = vmatpush1.bf16.msra.mxu0 %v13936_v12 }
 0xeb5   : > { %5319 = vmatprep.subr.bf16.mxu0 %v13941_v47 }
 0xeb6   : > { %5399 = vmatpush1.bf16.msra.mxu1 %v13993_v19 }
 0xeb7   : > { %12826 = vmatprep.subr.bf16.mxu1 %v13999_v58  ;;  %v14007_v58 = vld [vmem:[#allocation10 + $0x128] ss:$12 sps:$4 sm:$0xff]  }
 0xeb8   : > { %5320 = vmatpush1.bf16.msra.mxu0 %v13939_v2 }
 0xeb9   : > { %5321 = vmatprep.subr.bf16.mxu0 %v13944_v59 }
 0xebc   : > { %5322 = vmatpush1.bf16.msra.mxu0 %v13942_v0 }
 0xebd   : > { %5323 = vmatprep.subr.bf16.mxu0 %v13947_v3 }
 0xec0   : > { %5324 = vmatpush1.bf16.msra.mxu0 %v13945_v41  ;;  %v19236_v41 = vpack.i.bf16 %v16855_v43, %v16851_v17  ;;  %v19238_v17 = vpack.i.bf16 %v16865_v63, %v16861_v23  ;;  %v13577_v43 = vpop.permute.xlu0 %13576 }
 0xec1   : > { %5325 = vmatprep.subr.bf16.mxu0 %v13950_v9  ;;  %v13579_v51 = vunpack.i.h.bf16 %v13577_v43  ;;  %v13578_v24 = vunpack.i.l.bf16 %v13577_v43 }
 0xec3   : > { %v4805_v63 = vsel %vm2958_vm0, %v16871_v55, %v13578_v24  ;;  %v19245_v24 = vld [vmem:[#allocation60_spill] sm:$0xff] }
 0xec4   : > { %5326 = vmatpush1.bf16.msra.mxu0 %v13948_v50 }
 0xec5   : > { %5327 = vmatprep.subr.bf16.mxu0 %v13956_v39 }
 0xec8   : > { %5328 = vmatpush2.bf16.msra.mxu0 %v13954_v37 }
 0xec9   : > { %5329 = vmatprep.subr.bf16.mxu0 %v13962_v53  ;;  %v4806_v53 = vsel %vm2958_vm0, %v16875_v46, %v13579_v51  ;;  %v14004_v46 = vld [vmem:[#allocation10 + $0x140] ss:$12 sps:$4 sm:$0xff]  }
 0xecc   : > { %5330 = vmatpush2.bf16.msra.mxu0 %v13960_v62  ;;  %v19239_v62 = vld [vmem:[#allocation57_spill] sm:$0xff] }
 0xecd   : > { %5331 = vmatprep.subr.bf16.mxu0 %v13968_v45 }
 0xed0   : > { %5332 = vmatpush2.bf16.msra.mxu0 %v13966_v34 }
 0xed1   : > { %5333 = vmatprep.subr.bf16.mxu0 %v13974_v14 }
 0xed4   : > { %5334 = vmatpush2.bf16.msra.mxu0 %v13972_v60  ;;  %v14003_v60 = vld [vmem:[#allocation10 + $0x98] ss:$12 sps:$4 sm:$0xff]  }
 0xed5   : > { %5335 = vmatprep.subr.bf16.mxu0 %v13980_v27 }
 0xed8   : > { %5336 = vmatpush2.bf16.msra.mxu0 %v13978_v25  ;;  %v17217_v25 = vpack.c.bf16 %v4806_v53, %v4805_v63  ;;  %v14014_v63 = vld [vmem:[#allocation10 + $0x1d0] ss:$12 sps:$4 sm:$0xff]   ;;  %v19246_v53 = vld [vmem:[#allocation50_spill] sm:$0xff] }
 0xed9   : > { %5337 = vmatprep.subr.bf16.mxu0 %v13986_v15  ;;  %v14005_v15 = vld [vmem:[#allocation10 + $0x218] ss:$12 sps:$4 sm:$0xff]  }
 0xedc   : > { %5338 = vmatpush2.bf16.msra.mxu0 %v13984_v40 }
 0xedd   : > { %5339 = vmatprep.subr.bf16.mxu0 %v13992_v42 }
 0xee0   : > { %5340 = vmatpush2.bf16.msra.mxu0 %v13990_v52 }
 0xee1   : > { %5341 = vmatprep.subr.bf16.mxu0 %v13998_v4 }
 0xee4   : > { %5342 = vmatpush2.bf16.msra.mxu0 %v13996_v32 }
 0xee5   : > { %13334 = vmatprep.subr.bf16.mxu0 %v14002_v11 }
 0xf67   : > { %v13328_v33 = vpop.f32.mrf.mxu0 }
 0xf69   : > { %v4668_v6 = vpop.f32.mrf.mxu0 }
 0xf6b   : > { %v13329_v12 = vpop.f32.mrf.mxu0 }
 0xf6c   : > { %v13570_v3 = vpack.i.bf16 %v13329_v12, %v13328_v33  ;;  %v19240_v12 = vld [vmem:[#allocation58_spill] sm:$0xff] }
 0xf6d   : > { %v4671_v47 = vpop.f32.mrf.mxu0 }
 0xf6e   : > { %v13560_v61 = vpack.i.bf16 %v4671_v47, %v4668_v6  ;;  %v14006_v6 = vld [vmem:[#allocation10 + $0x80] ss:$12 sps:$4 sm:$0xff]  }
 0xf6f   : > { %v13332_v2 = vpop.f32.mrf.mxu0 }
 0xf70   : > { %13561 = vrot.lane.b32.xlu1 %v13560_v61, %s15525_s2  ;;  %v19241_v61 = vld [vmem:[#allocation56_spill] sm:$0xff] }
 0xf71   : > { %v4684_v59 = vpop.f32.mrf.mxu0 }
 0xf73   : > { %v13333_v57 = vpop.f32.mrf.mxu0 }
 0xf74   : > { %13566 = vrot.lane.b32.xlu1 %v13565_v21, %s15525_s2  ;;  %v13600_v9 = vpack.i.bf16 %v13333_v57, %v13332_v2 }
 0xf75   : > { %v4687_v0 = vpop.f32.mrf.mxu0 }
 0xf76   : > { %v13590_v28 = vpack.i.bf16 %v4687_v0, %v4684_v59 }
 0xf78   : > { %13571 = vrot.lane.b32.xlu1 %v13570_v3, %s15525_s2  ;;  %13591 = vrot.lane.b32.xlu0 %v13590_v28, %s15525_s2 }
 0xf7c   : > { %13581 = vrot.lane.b32.xlu1 %v19236_v41, %s15525_s2  ;;  %13596 = vrot.lane.b32.xlu0 %v13595_v13, %s15525_s2 }
 0xf80   : > { %13586 = vrot.lane.b32.xlu1 %v13585_v56, %s15525_s2  ;;  %13606 = vrot.lane.b32.xlu0 %v19237_v38, %s15525_s2  ;;  %v14010_v38 = vld [vmem:[#allocation10 + $0x110] ss:$12 sps:$4 sm:$0xff]  }
 0xf84   : > { %13601 = vrot.lane.b32.xlu1 %v13600_v9, %s15525_s2  ;;  %v14011_v9 = vld [vmem:[#allocation10 + $0x1e8] ss:$12 sps:$4 sm:$0xff]  }
 0xf88   : > { %13611 = vrot.lane.b32.xlu1 %v19238_v17, %s15525_s2  ;;  %v19242_v17 = vld [vmem:[#allocation53_spill] sm:$0xff] }
 0xfe2   : > { %v13562_v44 = vpop.permute.xlu1 %13561 }
 0xfe3   : > { %v13564_v8 = vunpack.i.h.bf16 %v13562_v44  ;;  %v13563_v29 = vunpack.i.l.bf16 %v13562_v44  ;;  %v19243_v44 = vld [vmem:[#allocation54_spill] sm:$0xff] }
 0xfe5   : > { %v4812_v1 = vsel %vm2958_vm0, %v17098_v36, %v13564_v8  ;;  %v4811_v54 = vsel %vm2958_vm0, %v17094_v16, %v13563_v29  ;;  %v19244_v29 = vld [vmem:[#allocation62_spill] sm:$0xff] }
 0xfe6   : > { %v17203_v50 = vpack.c.bf16 %v4812_v1, %v4811_v54  ;;  %v13567_v39 = vpop.permute.xlu1 %13566 }
 0xfe7   : > { %v13569_v37 = vunpack.i.h.bf16 %v13567_v39  ;;  %v13568_v23 = vunpack.i.l.bf16 %v13567_v39  ;;  %v14012_v39 = vld [vmem:[#allocation10 + $0x50] ss:$12 sps:$4 sm:$0xff]  }
 0xfe8   : > { %5417 = vmatmul.mubr.bf16.vlgmr.msra.gmra.mxu1 %v17203_v50 }
 0xfe9   : > { %v4796_v36 = vsel %vm2958_vm0, %v16594_v10, %v13569_v37  ;;  %v4795_v16 = vsel %vm2958_vm0, %v19239_v62, %v13568_v23  ;;  %12827 = vmatpush3.bf16.msra.mxu1 %v14000_v18  ;;  %5426 = vmatprep.mubr.bf16.mxu1 %v19234_v48  ;;  %v14013_v23 = vld [vmem:[#allocation10 + $0xf8] ss:$12 sps:$4 sm:$0xff]  }
 0xfea   : > { %v17215_v45 = vpack.c.bf16 %v4796_v36, %v4795_v16  ;;  %v13572_v34 = vpop.permute.xlu1 %13571  ;;  %v13592_v14 = vpop.permute.xlu0 %13591  ;;  %12828 = vmatprep.subr.bf16.mxu1 %v14001_v31  ;;  %v19247_v62 = vld [vmem:[#allocation52_spill] sm:$0xff] }
 0xfeb   : > { %v13574_v27 = vunpack.i.h.bf16 %v13572_v34  ;;  %v13573_v55 = vunpack.i.l.bf16 %v13572_v34  ;;  %v13594_v52 = vunpack.i.h.bf16 %v13592_v14  ;;  %v13593_v19 = vunpack.i.l.bf16 %v13592_v14 }
 0xfec   : > { %5344 = vmatmul.mubr.bf16.vlgmr.msra.gmra.mxu0 %v17215_v45 }
 0xfed   : > { %v4814_v10 = vsel %vm2958_vm0, %v17096_v5, %v13574_v27  ;;  %v4813_v40 = vsel %vm2958_vm0, %v17092_v22, %v13573_v55  ;;  %5353 = vmatprep.mubr.bf16.mxu0 %v17217_v25  ;;  %12829 = vmatpush3.bf16.msra.mxu1 %v14003_v60  ;;  %v14008_v5 = vld [vmem:[#allocation10 + $0x200] ss:$12 sps:$4 sm:$0xff]   ;;  %v4816_v22 = vsel %vm2958_vm0, %v17106_v7, %v13594_v52  ;;  %v14009_v7 = vld [vmem:[#allocation10 + $0x68] ss:$12 sps:$4 sm:$0xff]   ;;  %v14015_v27 = vld [vmem:[#allocation10 + $0x38] ss:$12 sps:$4 sm:$0xff]  }
 0xfee   : > { %v17225_v42 = vpack.c.bf16 %v4814_v10, %v4813_v40  ;;  %13335 = vmatpush3.bf16.msra.mxu0 %v14002_v11  ;;  %v13582_v33 = vpop.permute.xlu1 %13581  ;;  %v13597_v49 = vpop.permute.xlu0 %13596  ;;  %12830 = vmatprep.subr.bf16.mxu1 %v14004_v46  ;;  %v4815_v2 = vsel %vm2958_vm0, %v17102_v35, %v13593_v19  ;;  %v14016_v40 = vld [vmem:[#allocation10 + $0xe0] ss:$12 sps:$4 sm:$0xff]   ;;  %v14017_v52 = vld [vmem:[#allocation10 + $0x1b8] ss:$12 sps:$4 sm:$0xff]  }
 0xfef   : > { %v13584_v32 = vunpack.i.h.bf16 %v13582_v33  ;;  %v13583_v4 = vunpack.i.l.bf16 %v13582_v33  ;;  %13336 = vmatprep.subr.bf16.mxu0 %v14005_v15  ;;  %v13599_v21 = vunpack.i.h.bf16 %v13597_v49  ;;  %v13598_v57 = vunpack.i.l.bf16 %v13597_v49  ;;  %v14018_v33 = vld [vmem:[#allocation10 + $0x20] ss:$12 sps:$4 sm:$0xff]  }
 0xff0   : > { %5427 = vmatmul.mubr.bf16.gmra.mxu1 %v17225_v42  ;;  %v17240_v35 = vpack.c.bf16 %v4816_v22, %v4815_v2  ;;  %v19248_v49 = vld [vmem:[#allocation61_spill] sm:$0xff]  ;;  %v14022_v22 = vld [vmem:[#allocation10 + $0x188] ss:$12 sps:$4 sm:$0xff]  }
 0xff1   : > { %v4798_v47 = vsel %vm2958_vm0, %v19240_v12, %v13584_v32  ;;  %v4797_v11 = vsel %vm2958_vm0, %v19241_v61, %v13583_v4  ;;  %5436 = vmatprep.mubr.bf16.mxu1 %v19234_v48  ;;  %12831 = vmatpush3.bf16.msra.mxu1 %v14006_v6  ;;  %v4800_v51 = vsel %vm2958_vm0, %v19244_v29, %v13599_v21  ;;  %v19249_v32 = vld [vmem:[#allocation59_spill] sm:$0xff] }
 0xff2   : > { %v17237_v59 = vpack.c.bf16 %v4798_v47, %v4797_v11  ;;  %13337 = vmatpush3.bf16.msra.mxu0 %v14005_v15  ;;  %v13587_v0 = vpop.permute.xlu1 %13586  ;;  %v13607_v3 = vpop.permute.xlu0 %13606  ;;  %12832 = vmatprep.subr.bf16.mxu1 %v14007_v58  ;;  %v4799_v1 = vsel %vm2958_vm0, %v19245_v24, %v13598_v57  ;;  %v14020_v4 = vld [vmem:[#allocation10 + $0x1a0] ss:$12 sps:$4 sm:$0xff]  }
 0xff3   : > { %v13589_v28 = vunpack.i.h.bf16 %v13587_v0  ;;  %v13588_v13 = vunpack.i.l.bf16 %v13587_v0  ;;  %v13609_v41 = vunpack.i.h.bf16 %v13607_v3  ;;  %v13608_v56 = vunpack.i.l.bf16 %v13607_v3  ;;  %13338 = vmatprep.subr.bf16.mxu0 %v14008_v5 }
 0xff4   : > { %5354 = vmatmul.mubr.bf16.gmra.mxu0 %v17237_v59  ;;  %v4825_v34 = vpack.c.bf16 %v4800_v51, %v4799_v1 }
 0xff5   : > { %v4807_v43 = vsel %vm2958_vm0, %v19242_v17, %v13588_v13  ;;  %v4808_v8 = vsel %vm2958_vm0, %v19243_v44, %v13589_v28  ;;  %12833 = vmatpush3.bf16.msra.mxu1 %v14009_v7  ;;  %v4809_v36 = vsel %vm2958_vm0, %v19246_v53, %v13608_v56  ;;  %v4810_v16 = vsel %vm2958_vm0, %v19247_v62, %v13609_v41  ;;  %v19250_v53 = vld [vmem:[#allocation32_spill] sm:$0xff] }
 0xff6   : > { %13339 = vmatpush3.bf16.msra.mxu0 %v14008_v5  ;;  %v13602_v54 = vpop.permute.xlu1 %13601  ;;  %v4826_v18 = vpack.c.bf16 %v4808_v8, %v4807_v43  ;;  %12834 = vmatprep.subr.bf16.mxu1 %v14010_v38  ;;  %v4829_v60 = vpack.c.bf16 %v4810_v16, %v4809_v36  ;;  %v14021_v5 = vld [vmem:[#allocation10 + $0x8] ss:$12 sps:$4 sm:$0xff]  }
 0xff7   : > { %v13604_v31 = vunpack.i.h.bf16 %v13602_v54  ;;  %v13603_v37 = vunpack.i.l.bf16 %v13602_v54  ;;  %13340 = vmatprep.subr.bf16.mxu0 %v14011_v9 }
 0xff8   : > { %5363 = vmatprep.mubr.bf16.mxu0 %v4826_v18  ;;  %5437 = vmatmul.mubr.bf16.gmra.mxu1 %v17240_v35 }
 0xff9   : > { %5446 = vmatprep.mubr.bf16.mxu1 %v19234_v48  ;;  %12835 = vmatpush3.bf16.msra.mxu1 %v14012_v39  ;;  %v4818_v55 = vsel %vm2958_vm0, %v17104_v30, %v13604_v31  ;;  %v4817_v46 = vsel %vm2958_vm0, %v17100_v20, %v13603_v37  ;;  %v14019_v20 = vld [vmem:[#allocation10 + $0xc8] ss:$12 sps:$4 sm:$0xff]   ;;  %v5611_v31 = vld [vmem:[#allocation11] sm:$0x7] }
 0xffa   : > { %13341 = vmatpush3.bf16.msra.mxu0 %v14011_v9  ;;  %v13612_v14 = vpop.permute.xlu1 %13611  ;;  %12836 = vmatprep.subr.bf16.mxu1 %v14013_v23  ;;  %v4830_v19 = vpack.c.bf16 %v4818_v55, %v4817_v46  ;;  %v15075_v23 = vld [vmem:[%s15811_s14 + $0x8] sm:$0xff]  ;;  %v17306_v36 = vrot.slane %v5611_v31, %v19250_v53 }
 0xffb   : > { %v13614_v15 = vunpack.i.h.bf16 %v13612_v14  ;;  %v13613_v10 = vunpack.i.l.bf16 %v13612_v14  ;;  %13342 = vmatprep.subr.bf16.mxu0 %v14014_v63 }
 0xffc   : > { %5364 = vmatmul.mubr.bf16.gmra.mxu0 %v4825_v34 }
 0xffd   : > { %5373 = vmatprep.mubr.bf16.mxu0 %v4829_v60  ;;  %12837 = vmatpush3.bf16.msra.mxu1 %v14015_v27  ;;  %v4802_v6 = vsel %vm2958_vm0, %v19248_v49, %v13614_v15  ;;  %v4801_v30 = vsel %vm2958_vm0, %v19249_v32, %v13613_v10 }
 0xffe   : > { %13343 = vmatpush3.bf16.msra.mxu0 %v14014_v63  ;;  %12838 = vmatprep.subr.bf16.mxu1 %v14016_v40  ;;  %v4828_v58 = vpack.c.bf16 %v4802_v6, %v4801_v30 }
 0xfff   : > { %13344 = vmatprep.subr.bf16.mxu0 %v14017_v52 }
0x1000   : > { %5447 = vmatmul.mubr.bf16.gmra.mxu1 %v4830_v19 }
0x1001   : > { %5489 = vmatprep.mubr.bf16.mxu1 %v17170_v26  ;;  %12839 = vmatpush3.bf16.msra.mxu1 %v14018_v33 }
0x1002   : > { %13345 = vmatpush3.bf16.msra.mxu0 %v14017_v52  ;;  %12840 = vmatprep.subr.bf16.mxu1 %v14019_v20  ;;  %v19253_v20 = vld [vmem:[#allocation33_spill] sm:$0xff] }
0x1003   : > { %13346 = vmatprep.subr.bf16.mxu0 %v14020_v4 }
0x1004   : > { %5374 = vmatmul.mubr.bf16.gmra.mxu0 %v4828_v58 }
0x1005   : > { %13350 = vmatprep.mubr.bf16.mxu0 %v17203_v50  ;;  %12841 = vmatpush3.bf16.msra.mxu1 %v14021_v5  ;;  %v15078_v5 = vld [vmem:[%s15811_s14 + $0x18] sm:$0xff] }
0x1006   : > { %13347 = vmatpush3.bf16.msra.mxu0 %v14020_v4  ;;  %v17317_v4 = vrot.slane %v5611_v31, %v19253_v20 }
0x1007   : > { %13348 = vmatprep.subr.bf16.mxu0 %v14022_v22 }
0x1008   : > { %5490 = vmatmul.mubr.bf16.vlgmr.msra.gmra.mxu1 %v17215_v45 }
0x1009   : > { %5497 = vmatprep.mubr.bf16.mxu1 %v17217_v25 }
0x100a   : > { %13349 = vmatpush3.bf16.msra.mxu0 %v14022_v22 }
0x100d   : > { %13351 = vmatmul.mubr.bf16.vlgmr.msra.gmra.mxu0 %v17225_v42 }
0x100e   : > { %13354 = vmatprep.mubr.bf16.mxu0 %v17240_v35 }
0x1010   : > { %5498 = vmatmul.mubr.bf16.gmra.mxu1 %v17237_v59 }
0x1011   : > { %5505 = vmatprep.mubr.bf16.mxu1 %v4826_v18 }
0x1015   : > { %13355 = vmatmul.mubr.bf16.gmra.mxu0 %v4830_v19  ;;  %v15077_v19 = vld [vmem:[%s15811_s14 + $0x20] sm:$0xff] }
0x1016   : > { %7811 = vmatprep.mubr.bf16.mxu0 %v19234_v48 }
0x1018   : > { %5506 = vmatmul.mubr.bf16.gmra.mxu1 %v4825_v34  ;;  %v15076_v34 = vld [vmem:[%s15811_s14] sm:$0xff] }
0x1019   : > { %5513 = vmatprep.mubr.bf16.mxu1 %v4829_v60  ;;  %v19251_v60 = vld [vmem:[#allocation34_spill] sm:$0xff] }
0x101a   : > { %v17310_v27 = vrot.slane %v5611_v31, %v19251_v60 }
0x1020   : > { %5514 = vmatmul.mubr.bf16.gmra.mxu1 %v4828_v58 }
0x10a8   : > { %v5418_v26 = vpop.f32.mrf.mxu1 }
0x10aa   : > { %v5420_v50 = vpop.f32.mrf.mxu1 }
0x10ac   : > { %v5345_v12 = vpop.f32.mrf.mxu0  ;;  %v5422_v45 = vpop.f32.mrf.mxu1 }
0x10ad   : > { %v5419_v18 = vadd.f32 %v5418_v26, %v5345_v12  ;;  %v15079_v26 = vld [vmem:[%s15811_s14 + $0x38] sm:$0xff] }
0x10ae   : > { %v5347_v47 = vpop.f32.mrf.mxu0  ;;  %v5424_v25 = vpop.f32.mrf.mxu1 }
0x10af   : > { %v5421_v1 = vadd.f32 %v5420_v50, %v5347_v47  ;;  %v5587_v14 = vadd.f32 %v15076_v34, %v5419_v18 }
0x10b0   : > { %v5349_v61 = vpop.f32.mrf.mxu0  ;;  %v5428_v11 = vpop.f32.mrf.mxu1 }
0x10b1   : > { %v5588_v63 = vadd.f32 %v15075_v23, %v5421_v1  ;;  %v5423_v55 = vadd.f32 %v5422_v45, %v5349_v61  ;;  %v17320_v58 = vadd.f32 %v17310_v27, %v5587_v14  ;;  %v15080_v61 = vld [vmem:[%s15811_s14 + $0x10] sm:$0xff] }
0x10b2   : > { %v5351_v42 = vpop.f32.mrf.mxu0  ;;  %v5430_v2 = vpop.f32.mrf.mxu1  ;;  %v15082_v14 = vld [vmem:[%s15811_s14 + $0x50] sm:$0xff] }
0x10b3   : > { %v5425_v62 = vadd.f32 %v5424_v25, %v5351_v42  ;;  %v17313_v52 = vadd.f32 %v17306_v36, %v5588_v63  ;;  %19254 = vst [vmem:[#allocation49_spill] sm:$0xff] %v17320_v58  ;;  %v5590_v22 = vadd.f32 %v15078_v5, %v5423_v55  ;;  %v15083_v55 = vld [vmem:[%s15811_s14 + $0x28] sm:$0xff] }
0x10b4   : > { %v5355_v21 = vpop.f32.mrf.mxu0  ;;  %v17272_v57 = vpop.f32.mrf.mxu1  ;;  %v15086_v5 = vld [vmem:[%s15811_s14 + $0x68] sm:$0xff] }
0x10b5   : > { %19252 = vst [vmem:[#allocation55_spill] sm:$0xff] %v17313_v52  ;;  %v5591_v33 = vadd.f32 %v15077_v19, %v5425_v62  ;;  %v5429_v49 = vadd.f32 %v5428_v11, %v5355_v21  ;;  %v5654_v18 = vadd.f32 %v17313_v52, %v17320_v58  ;;  %v17336_v23 = vadd.f32 %v17310_v27, %v5590_v22 }
0x10b6   : > { %v5357_v59 = vpop.f32.mrf.mxu0  ;;  %v5434_v0 = vpop.f32.mrf.mxu1 }
0x10b7   : > { %v5431_v46 = vadd.f32 %v5430_v2, %v5357_v59  ;;  %v17326_v42 = vadd.f32 %v17306_v36, %v5591_v33  ;;  %v15081_v2 = vld [vmem:[%s15811_s14 + $0x30] sm:$0xff]  ;;  %19257 = vst [vmem:[#allocation47_spill] sm:$0xff] %v17336_v23 }
0x10b8   : > { %v5359_v3 = vpop.f32.mrf.mxu0  ;;  %v17274_v7 = vpop.f32.mrf.mxu1  ;;  %v5593_v21 = vadd.f32 %v15081_v2, %v5429_v49 }
0x10b9   : > { %v5594_v50 = vadd.f32 %v15079_v26, %v5431_v46  ;;  %19255 = vst [vmem:[#allocation51_spill] sm:$0xff] %v17326_v42 }
0x10ba   : > { %v5361_v28 = vpop.f32.mrf.mxu0  ;;  %v17276_v13 = vpop.f32.mrf.mxu1 }
0x10bb   : > { %v5435_v47 = vadd.f32 %v5434_v0, %v5361_v28  ;;  %v17339_v63 = vadd.f32 %v17306_v36, %v5594_v50 }
0x10bc   : > { %v17278_v41 = vpop.f32.mrf.mxu0  ;;  %v17280_v56 = vpop.f32.mrf.mxu1 }
0x10bd   : > { %19258 = vst [vmem:[#allocation46_spill] sm:$0xff] %v17339_v63  ;;  %v5439_v19 = vadd.f32 %v17274_v7, %v17278_v41 }
0x10be   : > { %v5367_v38 = vpop.f32.mrf.mxu0  ;;  %v17282_v9 = vpop.f32.mrf.mxu1 }
0x10bf   : > { %v5441_v62 = vadd.f32 %v17276_v13, %v5367_v38  ;;  %v5658_v13 = vadd.f32 %v17326_v42, %v17336_v23  ;;  %v15084_v38 = vld [vmem:[%s15811_s14 + $0x48] sm:$0xff] }
0x10c0   : > { %v17284_v35 = vpop.f32.mrf.mxu0  ;;  %v17286_v17 = vpop.f32.mrf.mxu1 }
0x10c1   : > { %v5600_v22 = vadd.f32 %v15086_v5, %v5441_v62 }
0x10c2   : > { %v17288_v43 = vpop.f32.mrf.mxu0  ;;  %v17290_v44 = vpop.f32.mrf.mxu1 }
0x10c3   : > { %v5445_v7 = vadd.f32 %v17282_v9, %v17288_v43  ;;  %v5443_v9 = vadd.f32 %v17280_v56, %v17284_v35 }
0x10c4   : > { %v17292_v8 = vpop.f32.mrf.mxu0  ;;  %v17294_v29 = vpop.f32.mrf.mxu1 }
0x10c6   : > { %v17296_v51 = vpop.f32.mrf.mxu0  ;;  %v17298_v24 = vpop.f32.mrf.mxu1 }
0x10c7   : > { %v5451_v56 = vadd.f32 %v17290_v44, %v17296_v51  ;;  %v15091_v44 = vld [vmem:[%s15811_s14 + $0x70] sm:$0xff] }
0x10c8   : > { %v17300_v54 = vpop.f32.mrf.mxu0  ;;  %v12842_v39 = vpop.f32.mrf.mxu1 }
0x10ca   : > { %v17302_v37 = vpop.f32.mrf.mxu0  ;;  %v12843_v16 = vpop.f32.mrf.mxu1 }
0x10cb   : > { %v12844_v40 = vadd.f32 %v12843_v16, %v12842_v39  ;;  %v5433_v39 = vadd.f32 %v17272_v57, %v5359_v3  ;;  %v5597_v57 = vadd.f32 %v15082_v14, %v5435_v47 }
0x10cc   : > { %v12845_v15 = vpop.f32.mrf.mxu1 }
0x10cd   : > { %v13352_v10 = vpop.f32.mrf.mxu0  ;;  %v5596_v49 = vadd.f32 %v15084_v38, %v5433_v39 }
0x10ce   : > { %v12846_v6 = vpop.f32.mrf.mxu1 }
0x10cf   : > { %v5556_v32 = vpop.f32.mrf.mxu0  ;;  %v12847_v25 = vadd.f32 %v12846_v6, %v12845_v15  ;;  %v15085_v6 = vld [vmem:[%s15811_s14 + $0x40] sm:$0xff] }
0x10d0   : > { %v5557_v30 = vadd.f32 %v12844_v40, %v5556_v32  ;;  %v12848_v12 = vpop.f32.mrf.mxu1  ;;  %v17348_v40 = vadd.f32 %v17310_v27, %v5593_v21  ;;  %v17375_v21 = vadd.f32 %v17310_v27, %v5596_v49 }
0x10d1   : > { %v13353_v45 = vpop.f32.mrf.mxu0 }
0x10d2   : > { %v5589_v11 = vadd.f32 %v15080_v61, %v5557_v30  ;;  %v12849_v59 = vpop.f32.mrf.mxu1  ;;  %19259 = vst [vmem:[#allocation45_spill] sm:$0xff] %v17348_v40  ;;  %v5662_v50 = vadd.f32 %v17339_v63, %v17348_v40  ;;  %19263 = vst [vmem:[#allocation41_spill] sm:$0xff] %v17375_v21 }
0x10d3   : > { %v5559_v1 = vpop.f32.mrf.mxu0  ;;  %v12850_v0 = vadd.f32 %v12849_v59, %v12848_v12  ;;  %v17365_v12 = vadd.f32 %v17306_v36, %v5597_v57  ;;  %v15088_v59 = vld [vmem:[%s15811_s14 + $0x58] sm:$0xff] }
0x10d4   : > { %v17333_v31 = vadd.f32 %v17317_v4, %v5589_v11  ;;  %v5560_v28 = vadd.f32 %v12847_v25, %v5559_v1  ;;  %v12851_v16 = vpop.f32.mrf.mxu1  ;;  %v15087_v11 = vld [vmem:[%s15811_s14 + $0x60] sm:$0xff] }
0x10d5   : > { %v17342_v34 = vpop.f32.mrf.mxu0  ;;  %v5565_v3 = vadd.f32 %v13352_v10, %v12850_v0  ;;  %19261 = vst [vmem:[#allocation43_spill] sm:$0xff] %v17365_v12  ;;  %v5599_v2 = vadd.f32 %v15087_v11, %v5439_v19  ;;  %v15089_v0 = vld [vmem:[%s15811_s14 + $0x80] sm:$0xff]  ;;  %v5666_v57 = vadd.f32 %v17365_v12, %v17375_v21 }
0x10d6   : > { %19256 = vst [vmem:[#allocation48_spill] sm:$0xff] %v17333_v31  ;;  %v5592_v46 = vadd.f32 %v15083_v55, %v5560_v28  ;;  %v5655_v15 = vadd.f32 %v5654_v18, %v17333_v31  ;;  %v12852_v33 = vpop.f32.mrf.mxu1  ;;  %v5603_v28 = vadd.f32 %v15089_v0, %v5445_v7  ;;  %v15090_v55 = vld [vmem:[%s15811_s14 + $0x78] sm:$0xff]  ;;  %v15096_v0 = vld [vmem:[%s15811_s14 + $0xa8] sm:$0xff] }
0x10d7   : > { %v5595_v32 = vadd.f32 %v15085_v6, %v5565_v3  ;;  %v12853_v30 = vadd.f32 %v12852_v33, %v12851_v16  ;;  %v5572_v41 = vpop.f32.mrf.mxu0  ;;  %v17391_v3 = vadd.f32 %v17310_v27, %v5599_v2 }
0x10d8   : > { %v17357_v10 = vadd.f32 %v17317_v4, %v5592_v46  ;;  %5656 = vadd.xlane.f32.xlu0 %v5655_v15  ;;  %v12854_v26 = vpop.f32.mrf.mxu1  ;;  %v5602_v46 = vadd.f32 %v15090_v55, %v5443_v9  ;;  %v5449_v15 = vadd.f32 %v17286_v17, %v17292_v8  ;;  %v17399_v38 = vadd.f32 %v17306_v36, %v5603_v28 }
0x10d9   : > { %v17368_v47 = vadd.f32 %v17317_v4, %v5595_v32  ;;  %v5568_v25 = vadd.f32 %v13353_v45, %v12853_v30  ;;  %v17380_v45 = vadd.f32 %v17306_v36, %v5600_v22  ;;  %v13357_v62 = vpop.f32.mrf.mxu0  ;;  %19266 = vst [vmem:[#allocation35_spill] sm:$0xff] %v17391_v3  ;;  %v15092_v30 = vld [vmem:[%s15811_s14 + $0x98] sm:$0xff]  ;;  %v5455_v17 = vadd.f32 %v17298_v24, %v17302_v37 }
0x10da   : > { %19260 = vst [vmem:[#allocation44_spill] sm:$0xff] %v17357_v10  ;;  %v5659_v61 = vadd.f32 %v5658_v13, %v17357_v10  ;;  %v12855_v43 = vpop.f32.mrf.mxu1  ;;  %19267 = vst [vmem:[#allocation36_spill] sm:$0xff] %v17399_v38  ;;  %v5606_v5 = vadd.f32 %v15092_v30, %v5451_v56  ;;  %v17410_v7 = vadd.f32 %v17310_v27, %v5602_v46  ;;  %v14031_v30 = vld [vmem:[#allocation16 + $0x1e4] ss:$48 sps:$4 sm:$0xff]  }
0x10db   : > { %19262 = vst [vmem:[#allocation42_spill] sm:$0xff] %v17368_v47  ;;  %v5598_v1 = vadd.f32 %v15088_v59, %v5568_v25  ;;  %v12856_v18 = vadd.f32 %v12855_v43, %v12854_v26  ;;  %v5663_v39 = vadd.f32 %v5662_v50, %v17368_v47  ;;  %19264 = vst [vmem:[#allocation40_spill] sm:$0xff] %v17380_v45  ;;  %v5575_v49 = vpop.f32.mrf.mxu0  ;;  %v15095_v59 = vld [vmem:[%s15811_s14 + $0xb0] sm:$0xff] }
0x10dc   : > { %5660 = vadd.xlane.f32.xlu1 %v5659_v61  ;;  %v12857_v16 = vpop.f32.mrf.mxu1  ;;  %v5670_v32 = vadd.f32 %v17380_v45, %v17391_v3  ;;  %19269 = vst [vmem:[#allocation38_spill] sm:$0xff] %v17410_v7  ;;  %v5453_v25 = vadd.f32 %v17294_v29, %v17300_v54  ;;  %v15094_v61 = vld [vmem:[%s15811_s14 + $0x88] sm:$0xff]  ;;  %v5674_v9 = vadd.f32 %v17399_v38, %v17410_v7 }
0x10dd   : > { %v17386_v35 = vadd.f32 %v17317_v4, %v5598_v1  ;;  %v5573_v14 = vadd.f32 %v12856_v18, %v5572_v41  ;;  %5664 = vadd.xlane.f32.xlu0 %v5663_v39  ;;  %v15093_v41 = vld [vmem:[%s15811_s14 + $0x90] sm:$0xff]  ;;  %v17420_v43 = vadd.f32 %v17306_v36, %v5606_v5  ;;  %v5609_v1 = vadd.f32 %v15095_v59, %v5455_v17  ;;  %v14049_v17 = vld [vmem:[#allocation16 + $0x8a4] ss:$48 sps:$4 sm:$0xff]  }
0x10de   : > { %v12858_v19 = vpop.f32.mrf.mxu1  ;;  %v5605_v26 = vadd.f32 %v15093_v41, %v5449_v15  ;;  %v5608_v28 = vadd.f32 %v15096_v0, %v5453_v25  ;;  %v14047_v5 = vld [vmem:[#allocation16 + $0x8a0] ss:$48 sps:$4 sm:$0xff]   ;;  %7779 = vmatprep.subr.bf16.mxu0 %v14049_v17  ;;  %v14040_v25 = vld [vmem:[#allocation16 + $0xc4] ss:$48 sps:$4 sm:$0xff]  }
0x10df   : > { %19265 = vst [vmem:[#allocation39_spill] sm:$0xff] %v17386_v35  ;;  %v5601_v51 = vadd.f32 %v15091_v44, %v5573_v14  ;;  %v12859_v33 = vadd.f32 %v12858_v19, %v12857_v16  ;;  %v5667_v13 = vadd.f32 %v5666_v57, %v17386_v35  ;;  %19270 = vst [vmem:[#allocation57_spill] sm:$0xff] %v17420_v43  ;;  %v15097_v16 = vld [vmem:[%s15811_s14 + $0xa0] sm:$0xff]  ;;  %v15098_v44 = vld [vmem:[%s15811_s14 + $0xb8] sm:$0xff]  ;;  %7780 = vmatpush1.bf16.msra.mxu0 %v14047_v5 }
0x10e0   : > { %v12860_v6 = vpop.f32.mrf.mxu1  ;;  %v17428_v54 = vadd.f32 %v17310_v27, %v5605_v26  ;;  %v17434_v55 = vadd.f32 %v17306_v36, %v5609_v1  ;;  %v17442_v19 = vadd.f32 %v17310_v27, %v5608_v28  ;;  %v14026_v27 = vld [vmem:[#allocation16 + $0x240] ss:$48 sps:$4 sm:$0xff]   ;;  %v14037_v26 = vld [vmem:[#allocation16 + $0x124] ss:$48 sps:$4 sm:$0xff]  }
0x10e1   : > { %v17407_v8 = vadd.f32 %v17317_v4, %v5601_v51  ;;  %v5576_v22 = vadd.f32 %v12859_v33, %v5575_v49  ;;  %5668 = vadd.xlane.f32.xlu0 %v5667_v13  ;;  %v14023_v49 = vld [vmem:[#allocation16 + $0x2a0] ss:$48 sps:$4 sm:$0xff]  }
0x10e2   : > { %v12861_v50 = vpop.f32.mrf.mxu1  ;;  %19272 = vst [vmem:[#allocation56_spill] sm:$0xff] %v17428_v54  ;;  %19273 = vst [vmem:[#allocation53_spill] sm:$0xff] %v17434_v55  ;;  %v5678_v15 = vadd.f32 %v17420_v43, %v17428_v54  ;;  %v5682_v36 = vadd.f32 %v17434_v55, %v17442_v19  ;;  %v14032_v41 = vld [vmem:[#allocation16 + $0x180] ss:$48 sps:$4 sm:$0xff]  }
0x10e3   : > { %19268 = vst [vmem:[#allocation37_spill] sm:$0xff] %v17407_v8  ;;  %v5604_v11 = vadd.f32 %v15094_v61, %v5576_v22  ;;  %v12862_v24 = vadd.f32 %v12861_v50, %v12860_v6  ;;  %v5671_v37 = vadd.f32 %v5670_v32, %v17407_v8  ;;  %19275 = vst [vmem:[#allocation62_spill] sm:$0xff] %v17442_v19  ;;  %v14025_v6 = vld [vmem:[#allocation16 + $0x2a4] ss:$48 sps:$4 sm:$0xff]   ;;  %v14035_v50 = vld [vmem:[#allocation16 + $0x120] ss:$48 sps:$4 sm:$0xff]  }
0x10e4   : > { %v12863_v2 = vpop.f32.mrf.mxu1  ;;  %v14028_v32 = vld [vmem:[#allocation16 + $0x244] ss:$48 sps:$4 sm:$0xff]   ;;  %7706 = vmatprep.subr.bf16.mxu1 %v14025_v6  ;;  %v14038_v61 = vld [vmem:[#allocation16 + $0xc0] ss:$48 sps:$4 sm:$0xff]  }
0x10e5   : > { %v17424_v18 = vadd.f32 %v17317_v4, %v5604_v11  ;;  %v5581_v29 = vadd.f32 %v17342_v34, %v12862_v24  ;;  %5672 = vadd.xlane.f32.xlu1 %v5671_v37  ;;  %7707 = vmatpush1.bf16.msra.mxu1 %v14023_v49  ;;  %v14034_v22 = vld [vmem:[#allocation16 + $0x184] ss:$48 sps:$4 sm:$0xff]   ;;  %v14041_v24 = vld [vmem:[#allocation16 + $0x60] ss:$48 sps:$4 sm:$0xff]  }
0x10e6   : > { %v12864_v39 = vpop.f32.mrf.mxu1  ;;  %7708 = vmatprep.subr.bf16.mxu1 %v14028_v32  ;;  %v14043_v11 = vld [vmem:[#allocation16 + $0x64] ss:$48 sps:$4 sm:$0xff]   ;;  %v14050_v59 = vld [vmem:[#allocation16 + $0x5a0] ss:$48 sps:$4 sm:$0xff]  }
0x10e7   : > { %19271 = vst [vmem:[#allocation58_spill] sm:$0xff] %v17424_v18  ;;  %v5607_v56 = vadd.f32 %v15097_v16, %v5581_v29  ;;  %v12865_v14 = vadd.f32 %v12864_v39, %v12863_v2  ;;  %v5675_v57 = vadd.f32 %v5674_v9, %v17424_v18  ;;  %v14046_v37 = vld [vmem:[#allocation16 + $0x4] ss:$48 sps:$4 sm:$0xff]   ;;  %v14044_v2 = vld [vmem:[#allocation16] ss:$48 sps:$4 sm:$0xff]  }
0x10e8   : > { %v14052_v9 = vld [vmem:[#allocation16 + $0x5a4] ss:$48 sps:$4 sm:$0xff]  }
0x10e9   : > { %v17437_v46 = vadd.f32 %v17317_v4, %v5607_v56  ;;  %v5584_v34 = vadd.f32 %v13357_v62, %v12865_v14  ;;  %5676 = vadd.xlane.f32.xlu0 %v5675_v57  ;;  %7709 = vmatpush1.bf16.msra.mxu1 %v14026_v27 }
0x10ea   : > { %7710 = vmatprep.subr.bf16.mxu1 %v14031_v30 }
0x10eb   : > { %19274 = vst [vmem:[#allocation54_spill] sm:$0xff] %v17437_v46  ;;  %v5610_v51 = vadd.f32 %v15098_v44, %v5584_v34  ;;  %v5679_v33 = vadd.f32 %v5678_v15, %v17437_v46 }
0x10ed   : > { %v17447_v13 = vadd.f32 %v17317_v4, %v5610_v51  ;;  %5680 = vadd.xlane.f32.xlu1 %v5679_v33  ;;  %v14029_v4 = vld [vmem:[#allocation16 + $0x1e0] ss:$48 sps:$4 sm:$0xff]  }
0x10ee   : > { %7711 = vmatpush1.bf16.msra.mxu1 %v14029_v4 }
0x10ef   : > { %19276 = vst [vmem:[#allocation60_spill] sm:$0xff] %v17447_v13  ;;  %v5683_v62 = vadd.f32 %v5682_v36, %v17447_v13  ;;  %7712 = vmatprep.subr.bf16.mxu1 %v14034_v22 }
0x10f1   : > { %5684 = vadd.xlane.f32.xlu0 %v5683_v62 }
0x10f2   : > { %7713 = vmatpush1.bf16.msra.mxu1 %v14032_v41 }
0x10f3   : > { %7714 = vmatprep.subr.bf16.mxu1 %v14037_v26 }
0x10f6   : > { %7715 = vmatpush1.bf16.msra.mxu1 %v14035_v50 }
0x10f7   : > { %7716 = vmatprep.subr.bf16.mxu1 %v14040_v25 }
0x10fa   : > { %7717 = vmatpush1.bf16.msra.mxu1 %v14038_v61 }
0x10fb   : > { %7718 = vmatprep.subr.bf16.mxu1 %v14043_v11 }
0x10fe   : > { %7719 = vmatpush1.bf16.msra.mxu1 %v14041_v24 }
0x10ff   : > { %7720 = vmatprep.subr.bf16.mxu1 %v14046_v37 }
0x1102   : > { %7721 = vmatpush1.bf16.msra.mxu1 %v14044_v2 }
0x1103   : > { %7722 = vmatprep.subr.bf16.mxu1 %v14052_v9 }
0x1106   : > { %7723 = vmatpush2.bf16.msra.mxu1 %v14050_v59 }
0x1161   : > { %v5657_v1 = vpop.xlane.xlu0 %5656 }
0x1162   : > { %v5686_v29 = vmul.f32 0.0026041667, %v5657_v1 }
0x1164   : > { %v17453_v39 = vsub.f32 %v17320_v58, %v5686_v29  ;;  %v17456_v0 = vsub.f32 %v17313_v52, %v5686_v29  ;;  %v17459_v28 = vsub.f32 %v17333_v31, %v5686_v29  ;;  %v14095_v31 = vld [vmem:[#allocation16 + $0x2a8] ss:$48 sps:$4 sm:$0xff]   ;;  %v14491_v58 = vld [vmem:[#allocation19 + $0x1f8] ss:$12 sps:$4 sm:$0xff]  }
0x1165   : > { %v5661_v16 = vpop.xlane.xlu1 %5660 }
0x1166   : > { %v5718_v56 = vmul.f32 %v17453_v39, %v17453_v39  ;;  %v5719_v14 = vmul.f32 %v17456_v0, %v17456_v0  ;;  %v5687_v57 = vmul.f32 0.0026041667, %v5661_v16  ;;  %v5665_v34 = vpop.xlane.xlu0 %5664  ;;  %v5720_v36 = vmul.f32 %v17459_v28, %v17459_v28 }
0x1167   : > { %v5688_v33 = vmul.f32 0.0026041667, %v5665_v34 }
0x1168   : > { %v17466_v15 = vsub.f32 %v17336_v23, %v5687_v57  ;;  %v17469_v44 = vsub.f32 %v17326_v42, %v5687_v57  ;;  %v17472_v51 = vsub.f32 %v17357_v10, %v5687_v57  ;;  %v5742_v62 = vadd.f32 %v5719_v14, %v5718_v56  ;;  %v14496_v42 = vld [vmem:[#allocation19 + $0x13c] ss:$12 sps:$4 sm:$0xff]  }
0x1169   : > { %v17481_v32 = vsub.f32 %v17348_v40, %v5688_v33  ;;  %v17484_v27 = vsub.f32 %v17339_v63, %v5688_v33  ;;  %v17487_v30 = vsub.f32 %v17368_v47, %v5688_v33 }
0x116a   : > { %v5721_v49 = vmul.f32 %v17466_v15, %v17466_v15  ;;  %v5722_v6 = vmul.f32 %v17469_v44, %v17469_v44  ;;  %v5669_v5 = vpop.xlane.xlu0 %5668  ;;  %v5743_v17 = vadd.f32 %v5742_v62, %v5720_v36  ;;  %v5723_v4 = vmul.f32 %v17472_v51, %v17472_v51 }
0x116b   : > { %v5724_v22 = vmul.f32 %v17481_v32, %v17481_v32  ;;  %v5725_v41 = vmul.f32 %v17484_v27, %v17484_v27  ;;  %v5689_v26 = vmul.f32 0.0026041667, %v5669_v5  ;;  %v5726_v2 = vmul.f32 %v17487_v30, %v17487_v30 }
0x116c   : > { %v5746_v50 = vadd.f32 %v5722_v6, %v5721_v49  ;;  %5744 = vadd.xlane.f32.xlu1 %v5743_v17 }
0x116d   : > { %v17496_v25 = vsub.f32 %v17375_v21, %v5689_v26  ;;  %v17499_v61 = vsub.f32 %v17365_v12, %v5689_v26  ;;  %v17502_v11 = vsub.f32 %v17386_v35, %v5689_v26  ;;  %v5750_v9 = vadd.f32 %v5725_v41, %v5724_v22  ;;  %v14073_v35 = vld [vmem:[#allocation16 + $0x724] ss:$48 sps:$4 sm:$0xff]  }
0x116e   : > { %v5747_v24 = vadd.f32 %v5746_v50, %v5723_v4  ;;  %v5673_v37 = vpop.xlane.xlu1 %5672 }
0x116f   : > { %v5727_v59 = vmul.f32 %v17496_v25, %v17496_v25  ;;  %v5728_v1 = vmul.f32 %v17499_v61, %v17499_v61  ;;  %v5690_v29 = vmul.f32 0.0026041667, %v5673_v37  ;;  %v5751_v16 = vadd.f32 %v5750_v9, %v5726_v2 }
0x1170   : > { %5748 = vadd.xlane.f32.xlu0 %v5747_v24  ;;  %v5729_v56 = vmul.f32 %v17502_v11, %v17502_v11 }
0x1171   : > { %v17513_v14 = vsub.f32 %v17391_v3, %v5690_v29  ;;  %v17516_v57 = vsub.f32 %v17380_v45, %v5690_v29  ;;  %v17519_v34 = vsub.f32 %v17407_v8, %v5690_v29  ;;  %v5754_v33 = vadd.f32 %v5728_v1, %v5727_v59  ;;  %5752 = vadd.xlane.f32.xlu1 %v5751_v16  ;;  %v14065_v8 = vld [vmem:[#allocation16 + $0x780] ss:$48 sps:$4 sm:$0xff]  }
0x1172   : > { %v5677_v36 = vpop.xlane.xlu0 %5676 }
0x1173   : > { %v5730_v62 = vmul.f32 %v17513_v14, %v17513_v14  ;;  %v5731_v49 = vmul.f32 %v17516_v57, %v17516_v57  ;;  %v5691_v6 = vmul.f32 0.0026041667, %v5677_v36  ;;  %v5755_v5 = vadd.f32 %v5754_v33, %v5729_v56  ;;  %v14055_v33 = vld [vmem:[#allocation16 + $0x844] ss:$48 sps:$4 sm:$0xff]  }
0x1174   : > { %v5732_v17 = vmul.f32 %v17519_v34, %v17519_v34  ;;  %7781 = vmatprep.subr.bf16.mxu0 %v14055_v33 }
0x1175   : > { %v17528_v4 = vsub.f32 %v17410_v7, %v5691_v6  ;;  %v17531_v22 = vsub.f32 %v17399_v38, %v5691_v6  ;;  %v17534_v41 = vsub.f32 %v17424_v18, %v5691_v6  ;;  %5756 = vadd.xlane.f32.xlu0 %v5755_v5  ;;  %v5758_v26 = vadd.f32 %v5731_v49, %v5730_v62  ;;  %v14053_v62 = vld [vmem:[#allocation16 + $0x840] ss:$48 sps:$4 sm:$0xff]   ;;  %v14058_v6 = vld [vmem:[#allocation16 + $0x544] ss:$48 sps:$4 sm:$0xff]  }
0x1176   : > { %v5681_v50 = vpop.xlane.xlu1 %5680  ;;  %v14056_v49 = vld [vmem:[#allocation16 + $0x540] ss:$48 sps:$4 sm:$0xff]   ;;  %7724 = vmatprep.subr.bf16.mxu1 %v14058_v6  ;;  %7782 = vmatpush1.bf16.msra.mxu0 %v14053_v62 }
0x1177   : > { %v5733_v24 = vmul.f32 %v17528_v4, %v17528_v4  ;;  %v5734_v37 = vmul.f32 %v17531_v22, %v17531_v22  ;;  %v5692_v2 = vmul.f32 0.0026041667, %v5681_v50  ;;  %v5759_v9 = vadd.f32 %v5758_v26, %v5732_v17  ;;  %v14059_v18 = vld [vmem:[#allocation16 + $0x7e0] ss:$48 sps:$4 sm:$0xff]   ;;  %7725 = vmatpush2.bf16.msra.mxu1 %v14056_v49  ;;  %v14070_v49 = vld [vmem:[#allocation16 + $0x484] ss:$48 sps:$4 sm:$0xff]  }
0x1178   : > { %v5735_v59 = vmul.f32 %v17534_v41, %v17534_v41  ;;  %v14062_v6 = vld [vmem:[#allocation16 + $0x4e0] ss:$48 sps:$4 sm:$0xff]  }
0x1179   : > { %v17543_v1 = vsub.f32 %v17428_v54, %v5692_v2  ;;  %v17546_v29 = vsub.f32 %v17420_v43, %v5692_v2  ;;  %v17549_v16 = vsub.f32 %v17437_v46, %v5692_v2  ;;  %5760 = vadd.xlane.f32.xlu1 %v5759_v9  ;;  %v5762_v56 = vadd.f32 %v5734_v37, %v5733_v24 }
0x117a   : > { %v5685_v36 = vpop.xlane.xlu0 %5684 }
0x117b   : > { %v5736_v5 = vmul.f32 %v17543_v1, %v17543_v1  ;;  %v5737_v17 = vmul.f32 %v17546_v29, %v17546_v29  ;;  %v5693_v26 = vmul.f32 0.0026041667, %v5685_v36  ;;  %v5763_v50 = vadd.f32 %v5762_v56, %v5735_v59  ;;  %v14061_v36 = vld [vmem:[#allocation16 + $0x7e4] ss:$48 sps:$4 sm:$0xff]  }
0x117c   : > { %v5738_v2 = vmul.f32 %v17549_v16, %v17549_v16  ;;  %v14064_v59 = vld [vmem:[#allocation16 + $0x4e4] ss:$48 sps:$4 sm:$0xff]   ;;  %7783 = vmatprep.subr.bf16.mxu0 %v14061_v36 }
0x117d   : > { %v17558_v24 = vsub.f32 %v17442_v19, %v5693_v26  ;;  %v17561_v37 = vsub.f32 %v17434_v55, %v5693_v26  ;;  %v17564_v9 = vsub.f32 %v17447_v13, %v5693_v26  ;;  %5764 = vadd.xlane.f32.xlu0 %v5763_v50  ;;  %v5766_v46 = vadd.f32 %v5737_v17, %v5736_v5  ;;  %v14067_v26 = vld [vmem:[#allocation16 + $0x784] ss:$48 sps:$4 sm:$0xff]   ;;  %v14068_v13 = vld [vmem:[#allocation16 + $0x480] ss:$48 sps:$4 sm:$0xff]   ;;  %v14106_v19 = vld [vmem:[#allocation16 + $0x84c] ss:$48 sps:$4 sm:$0xff]  }
0x117e   : > { %7726 = vmatprep.subr.bf16.mxu1 %v14064_v59  ;;  %7784 = vmatpush1.bf16.msra.mxu0 %v14059_v18  ;;  %v14076_v18 = vld [vmem:[#allocation16 + $0x424] ss:$48 sps:$4 sm:$0xff]   ;;  %v14077_v59 = vld [vmem:[#allocation16 + $0x6c0] ss:$48 sps:$4 sm:$0xff]  }
0x117f   : > { %v5739_v56 = vmul.f32 %v17558_v24, %v17558_v24  ;;  %v5740_v33 = vmul.f32 %v17561_v37, %v17561_v37  ;;  %v5767_v62 = vadd.f32 %v5766_v46, %v5738_v2  ;;  %v5741_v5 = vmul.f32 %v17564_v9, %v17564_v9  ;;  %7727 = vmatpush2.bf16.msra.mxu1 %v14062_v6  ;;  %v14071_v46 = vld [vmem:[#allocation16 + $0x720] ss:$48 sps:$4 sm:$0xff]   ;;  %v14079_v36 = vld [vmem:[#allocation16 + $0x6c4] ss:$48 sps:$4 sm:$0xff]  }
0x1180   : > { %7785 = vmatprep.subr.bf16.mxu0 %v14067_v26  ;;  %7728 = vmatprep.subr.bf16.mxu1 %v14070_v49  ;;  %v14074_v2 = vld [vmem:[#allocation16 + $0x420] ss:$48 sps:$4 sm:$0xff]   ;;  %v14097_v49 = vld [vmem:[#allocation16 + $0x2ac] ss:$48 sps:$4 sm:$0xff]  }
0x1181   : > { %5768 = vadd.xlane.f32.xlu1 %v5767_v62  ;;  %v5770_v17 = vadd.f32 %v5740_v33, %v5739_v56  ;;  %v14082_v56 = vld [vmem:[#allocation16 + $0x3c4] ss:$48 sps:$4 sm:$0xff]   ;;  %v14080_v33 = vld [vmem:[#allocation16 + $0x3c0] ss:$48 sps:$4 sm:$0xff]  }
0x1182   : > { %7786 = vmatpush1.bf16.msra.mxu0 %v14065_v8  ;;  %v14085_v62 = vld [vmem:[#allocation16 + $0x664] ss:$48 sps:$4 sm:$0xff]   ;;  %v14083_v6 = vld [vmem:[#allocation16 + $0x660] ss:$48 sps:$4 sm:$0xff]  }
0x1183   : > { %v5771_v50 = vadd.f32 %v5770_v17, %v5741_v5  ;;  %7787 = vmatprep.subr.bf16.mxu0 %v14073_v35  ;;  %7729 = vmatpush2.bf16.msra.mxu1 %v14068_v13  ;;  %v14088_v8 = vld [vmem:[#allocation16 + $0x364] ss:$48 sps:$4 sm:$0xff]   ;;  %v14086_v26 = vld [vmem:[#allocation16 + $0x360] ss:$48 sps:$4 sm:$0xff]  }
0x1184   : > { %7730 = vmatprep.subr.bf16.mxu1 %v14076_v18  ;;  %v14091_v35 = vld [vmem:[#allocation16 + $0x604] ss:$48 sps:$4 sm:$0xff]   ;;  %v14089_v13 = vld [vmem:[#allocation16 + $0x600] ss:$48 sps:$4 sm:$0xff]  }
0x1185   : > { %5772 = vadd.xlane.f32.xlu0 %v5771_v50  ;;  %v14094_v5 = vld [vmem:[#allocation16 + $0x304] ss:$48 sps:$4 sm:$0xff]   ;;  %v14092_v17 = vld [vmem:[#allocation16 + $0x300] ss:$48 sps:$4 sm:$0xff]   ;;  %v14100_v50 = vld [vmem:[#allocation16 + $0x8ac] ss:$48 sps:$4 sm:$0xff]  }
0x1186   : > { %7788 = vmatpush1.bf16.msra.mxu0 %v14071_v46 }
0x1187   : > { %7789 = vmatprep.subr.bf16.mxu0 %v14079_v36  ;;  %7731 = vmatpush2.bf16.msra.mxu1 %v14074_v2 }
0x1188   : > { %7732 = vmatprep.subr.bf16.mxu1 %v14082_v56 }
0x118a   : > { %7790 = vmatpush1.bf16.msra.mxu0 %v14077_v59 }
0x118b   : > { %7791 = vmatprep.subr.bf16.mxu0 %v14085_v62  ;;  %7733 = vmatpush2.bf16.msra.mxu1 %v14080_v33 }
0x118c   : > { %7734 = vmatprep.subr.bf16.mxu1 %v14088_v8 }
0x118e   : > { %7792 = vmatpush1.bf16.msra.mxu0 %v14083_v6 }
0x118f   : > { %7793 = vmatprep.subr.bf16.mxu0 %v14091_v35  ;;  %7735 = vmatpush2.bf16.msra.mxu1 %v14086_v26 }
0x1190   : > { %7736 = vmatprep.subr.bf16.mxu1 %v14094_v5 }
0x1192   : > { %7794 = vmatpush1.bf16.msra.mxu0 %v14089_v13 }
0x1193   : > { %7852 = vmatprep.subr.bf16.mxu0 %v14097_v49  ;;  %7737 = vmatpush2.bf16.msra.mxu1 %v14092_v17  ;;  %v5652_v17 = vld [vmem:[#allocation13] sm:$0x7] }
0x1194   : > { %7925 = vmatprep.subr.bf16.mxu1 %v14100_v50 }
0x11f5   : > { %v5745_v46 = vpop.xlane.xlu1 %5744 }
0x11f6   : > { %v5774_v18 = vmul.f32 0.0026041667, %v5745_v46  ;;  %v5653_v46 = vld [vmem:[#allocation14] sm:$0x7] }
0x11f8   : > { %v5782_v2 = vadd.f32 1e-05, %v5774_v18  ;;  %v17573_v18 = vrot.slane %v5652_v17, %v19250_v53 }
0x11f9   : > { %v5749_v36 = vpop.xlane.xlu0 %5748 }
0x11fa   : > { %v5775_v59 = vmul.f32 0.0026041667, %v5749_v36  ;;  %15047 = vrsqrt.f32 %v5782_v2  ;;  %v5753_v33 = vpop.xlane.xlu1 %5752  ;;  %v17576_v2 = vrot.slane %v5652_v17, %v19253_v20 }
0x11fb   : > { %v5776_v62 = vmul.f32 0.0026041667, %v5753_v33 }
0x11fc   : > { %v5783_v56 = vadd.f32 1e-05, %v5775_v59 }
0x11fd   : > { %v5784_v6 = vadd.f32 1e-05, %v5776_v62 }
0x11fe   : > { %15049 = vrsqrt.f32 %v5783_v56  ;;  %v5757_v8 = vpop.xlane.xlu0 %5756 }
0x11ff   : > { %v5777_v26 = vmul.f32 0.0026041667, %v5757_v8  ;;  %15051 = vrsqrt.f32 %v5784_v6  ;;  %v17582_v6 = vrot.slane %v5652_v17, %v19251_v60 }
0x1201   : > { %v5785_v35 = vadd.f32 1e-05, %v5777_v26  ;;  %v17585_v26 = vrot.slane %v5653_v46, %v19250_v53 }
0x1202   : > { %v5761_v13 = vpop.xlane.xlu1 %5760 }
0x1203   : > { %15053 = vrsqrt.f32 %v5785_v35  ;;  %v5778_v5 = vmul.f32 0.0026041667, %v5761_v13 }
0x1205   : > { %v5786_v49 = vadd.f32 1e-05, %v5778_v5 }
0x1206   : > { %v5765_v50 = vpop.xlane.xlu0 %5764 }
0x1207   : > { %v15048_v36 = vpop.eup %15047  ;;  %15055 = vrsqrt.f32 %v5786_v49  ;;  %v5779_v59 = vmul.f32 0.0026041667, %v5765_v50  ;;  %v17590_v50 = vrot.slane %v5653_v46, %v19253_v20 }
0x1208   : > { %v5799_v56 = vmul.f32 %v15048_v36, %v17456_v0  ;;  %v5800_v33 = vmul.f32 %v15048_v36, %v17459_v28  ;;  %v5798_v62 = vmul.f32 %v15048_v36, %v17453_v39 }
0x1209   : > { %v5787_v8 = vadd.f32 1e-05, %v5779_v59  ;;  %v17597_v59 = vrot.slane %v5653_v46, %v19251_v60 }
0x120a   : > { %v5769_v13 = vpop.xlane.xlu1 %5768  ;;  %v5839_v5 = vmul.f32 %v17573_v18, %v5799_v56  ;;  %v5840_v49 = vmul.f32 %v17576_v2, %v5800_v33  ;;  %v5838_v36 = vmul.f32 %v17582_v6, %v5798_v62 }
0x120b   : > { %v15050_v35 = vpop.eup %15049  ;;  %15057 = vrsqrt.f32 %v5787_v8  ;;  %v5780_v0 = vmul.f32 0.0026041667, %v5769_v13 }
0x120c   : > { %v5802_v39 = vmul.f32 %v15050_v35, %v17469_v44  ;;  %v5803_v28 = vmul.f32 %v15050_v35, %v17472_v51  ;;  %v5801_v17 = vmul.f32 %v15050_v35, %v17466_v15  ;;  %v15052_v47 = vpop.eup %15051  ;;  %v5879_v10 = vadd.f32 %v17585_v26, %v5839_v5 }
0x120d   : > { %v5788_v56 = vadd.f32 1e-05, %v5780_v0  ;;  %v5880_v44 = vadd.f32 %v17590_v50, %v5840_v49  ;;  %v5805_v15 = vmul.f32 %v15052_v47, %v17484_v27  ;;  %v5806_v62 = vmul.f32 %v15052_v47, %v17487_v30 }
0x120e   : > { %v5842_v33 = vmul.f32 %v17573_v18, %v5802_v39  ;;  %v5843_v8 = vmul.f32 %v17576_v2, %v5803_v28  ;;  %v5773_v13 = vpop.xlane.xlu0 %5772  ;;  %v5841_v51 = vmul.f32 %v17582_v6, %v5801_v17  ;;  %v5878_v5 = vadd.f32 %v17597_v59, %v5838_v36 }
0x120f   : > { %15059 = vrsqrt.f32 %v5788_v56  ;;  %v5781_v46 = vmul.f32 0.0026041667, %v5773_v13  ;;  %v5845_v49 = vmul.f32 %v17573_v18, %v5805_v15  ;;  %v5804_v17 = vmul.f32 %v15052_v47, %v17481_v32  ;;  %v14098_v56 = vld [vmem:[#allocation16 + $0x8a8] ss:$48 sps:$4 sm:$0xff]   ;;  %v14103_v13 = vld [vmem:[#allocation16 + $0x24c] ss:$48 sps:$4 sm:$0xff]  }
0x1210   : > { %v5882_v35 = vadd.f32 %v17585_v26, %v5842_v33  ;;  %v5883_v0 = vadd.f32 %v17590_v50, %v5843_v8  ;;  %v15054_v39 = vpop.eup %15053  ;;  %v5881_v28 = vadd.f32 %v17597_v59, %v5841_v51  ;;  %v14104_v15 = vld [vmem:[#allocation16 + $0x848] ss:$48 sps:$4 sm:$0xff]  }
0x1211   : > { %v5789_v55 = vadd.f32 1e-05, %v5781_v46  ;;  %v5808_v33 = vmul.f32 %v15054_v39, %v17499_v61  ;;  %v5809_v36 = vmul.f32 %v15054_v39, %v17502_v11  ;;  %v5807_v32 = vmul.f32 %v15054_v39, %v17496_v25  ;;  %v14101_v61 = vld [vmem:[#allocation16 + $0x248] ss:$48 sps:$4 sm:$0xff]  }
0x1212   : > { %v17612_v27 = vpack.c.bf16 %v5882_v35, %v5879_v10  ;;  %v17614_v30 = vpack.c.bf16 %v5883_v0, %v5880_v44  ;;  %v17617_v8 = vpack.c.bf16 %v5881_v28, %v5878_v5  ;;  %v5846_v10 = vmul.f32 %v17576_v2, %v5806_v62  ;;  %v14112_v0 = vld [vmem:[#allocation16 + $0x7ec] ss:$48 sps:$4 sm:$0xff]  }
0x1213   : > { %15061 = vrsqrt.f32 %v5789_v55  ;;  %v5848_v47 = vmul.f32 %v17573_v18, %v5808_v33  ;;  %v5885_v51 = vadd.f32 %v17585_v26, %v5845_v49  ;;  %v5849_v11 = vmul.f32 %v17576_v2, %v5809_v36  ;;  %v14110_v33 = vld [vmem:[#allocation16 + $0x7e8] ss:$48 sps:$4 sm:$0xff]   ;;  %v14115_v36 = vld [vmem:[#allocation16 + $0x18c] ss:$48 sps:$4 sm:$0xff]  }
0x1214   : > { %7738 = vmatprep.mubr.bf16.mxu1 %v17612_v27  ;;  %7812 = vmatmul.mubr.bf16.vlgmr.msra.gmra.mxu0 %v17614_v30  ;;  %v15056_v44 = vpop.eup %15055  ;;  %v5844_v55 = vmul.f32 %v17582_v6, %v5804_v17  ;;  %v5847_v62 = vmul.f32 %v17582_v6, %v5807_v32  ;;  %v5886_v5 = vadd.f32 %v17590_v50, %v5846_v10  ;;  %v14118_v32 = vld [vmem:[#allocation16 + $0x78c] ss:$48 sps:$4 sm:$0xff]  }
0x1215   : > { %7853 = vmatpush1.bf16.msra.mxu0 %v14095_v31  ;;  %7739 = vmatmul.mubr.bf16.vlgmr.msra.gmra.mxu1 %v17617_v8  ;;  %v5888_v46 = vadd.f32 %v17585_v26, %v5848_v47  ;;  %v5811_v25 = vmul.f32 %v15056_v44, %v17516_v57  ;;  %v14109_v31 = vld [vmem:[#allocation16 + $0x1ec] ss:$48 sps:$4 sm:$0xff]   ;;  %v5889_v35 = vadd.f32 %v17590_v50, %v5849_v11 }
0x1216   : > { %7926 = vmatpush1.bf16.msra.mxu1 %v14098_v56  ;;  %7854 = vmatprep.subr.bf16.mxu0 %v14103_v13  ;;  %v5887_v28 = vadd.f32 %v17597_v59, %v5847_v62  ;;  %v5812_v49 = vmul.f32 %v15056_v44, %v17519_v34  ;;  %v14107_v56 = vld [vmem:[#allocation16 + $0x1e8] ss:$48 sps:$4 sm:$0xff]   ;;  %v5884_v57 = vadd.f32 %v17597_v59, %v5844_v55 }
0x1217   : > { %7927 = vmatprep.subr.bf16.mxu1 %v14106_v19  ;;  %7821 = vmatprep.mubr.bf16.mxu0 %v19234_v48  ;;  %v17634_v39 = vpack.c.bf16 %v5888_v46, %v5885_v51  ;;  %v5810_v19 = vmul.f32 %v15056_v44, %v17513_v14  ;;  %v17642_v13 = vpack.c.bf16 %v5889_v35, %v5886_v5 }
0x1218   : > { %v15058_v17 = vpop.eup %15057  ;;  %v5851_v10 = vmul.f32 %v17573_v18, %v5811_v25  ;;  %v17646_v34 = vpack.c.bf16 %v5887_v28, %v5884_v57  ;;  %v5852_v51 = vmul.f32 %v17576_v2, %v5812_v49  ;;  %v14119_v57 = vld [vmem:[#allocation16 + $0x128] ss:$48 sps:$4 sm:$0xff]  }
0x1219   : > { %7855 = vmatpush1.bf16.msra.mxu0 %v14101_v61  ;;  %7748 = vmatprep.mubr.bf16.mxu1 %v17634_v39  ;;  %v5814_v47 = vmul.f32 %v15058_v17, %v17531_v22  ;;  %v5815_v61 = vmul.f32 %v15058_v17, %v17534_v41  ;;  %v5813_v14 = vmul.f32 %v15058_v17, %v17528_v4  ;;  %v14113_v22 = vld [vmem:[#allocation16 + $0x188] ss:$48 sps:$4 sm:$0xff]  }
0x121a   : > { %7928 = vmatpush1.bf16.msra.mxu1 %v14104_v15  ;;  %7856 = vmatprep.subr.bf16.mxu0 %v14109_v31  ;;  %v5850_v15 = vmul.f32 %v17582_v6, %v5810_v19  ;;  %v14116_v4 = vld [vmem:[#allocation16 + $0x788] ss:$48 sps:$4 sm:$0xff]   ;;  %v5891_v41 = vadd.f32 %v17585_v26, %v5851_v10  ;;  %v14121_v31 = vld [vmem:[#allocation16 + $0x12c] ss:$48 sps:$4 sm:$0xff]   ;;  %v5892_v49 = vadd.f32 %v17590_v50, %v5852_v51 }
0x121b   : > { %7929 = vmatprep.subr.bf16.mxu1 %v14112_v0  ;;  %v5854_v44 = vmul.f32 %v17573_v18, %v5814_v47  ;;  %v5855_v55 = vmul.f32 %v17576_v2, %v5815_v61  ;;  %v5853_v46 = vmul.f32 %v17582_v6, %v5813_v14  ;;  %v14124_v0 = vld [vmem:[#allocation16 + $0x72c] ss:$48 sps:$4 sm:$0xff]   ;;  %v14122_v47 = vld [vmem:[#allocation16 + $0x728] ss:$48 sps:$4 sm:$0xff]  }
0x121c   : > { %7822 = vmatmul.mubr.bf16.gmra.mxu0 %v17642_v13  ;;  %v15060_v11 = vpop.eup %15059  ;;  %v14127_v10 = vld [vmem:[#allocation16 + $0xcc] ss:$48 sps:$4 sm:$0xff]  }
0x121d   : > { %7857 = vmatpush1.bf16.msra.mxu0 %v14107_v56  ;;  %7749 = vmatmul.mubr.bf16.gmra.mxu1 %v17646_v34  ;;  %v5894_v62 = vadd.f32 %v17585_v26, %v5854_v44  ;;  %v5817_v25 = vmul.f32 %v15060_v11, %v17546_v29  ;;  %v5895_v35 = vadd.f32 %v17590_v50, %v5855_v55  ;;  %v14130_v14 = vld [vmem:[#allocation16 + $0x6cc] ss:$48 sps:$4 sm:$0xff]   ;;  %v14128_v55 = vld [vmem:[#allocation16 + $0x6c8] ss:$48 sps:$4 sm:$0xff]  }
0x121e   : > { %7930 = vmatpush1.bf16.msra.mxu1 %v14110_v33  ;;  %7858 = vmatprep.subr.bf16.mxu0 %v14115_v36  ;;  %v5893_v5 = vadd.f32 %v17597_v59, %v5853_v46  ;;  %v5818_v17 = vmul.f32 %v15060_v11, %v17549_v16  ;;  %v5890_v29 = vadd.f32 %v17597_v59, %v5850_v15  ;;  %v14136_v46 = vld [vmem:[#allocation16 + $0x66c] ss:$48 sps:$4 sm:$0xff]  }
0x121f   : > { %7931 = vmatprep.subr.bf16.mxu1 %v14118_v32  ;;  %7831 = vmatprep.mubr.bf16.mxu0 %v19234_v48  ;;  %v17663_v28 = vpack.c.bf16 %v5894_v62, %v5891_v41  ;;  %v5857_v19 = vmul.f32 %v17573_v18, %v5817_v25  ;;  %v5816_v33 = vmul.f32 %v15060_v11, %v17543_v1  ;;  %v14131_v62 = vld [vmem:[#allocation16 + $0x68] ss:$48 sps:$4 sm:$0xff]  }
0x1220   : > { %v15062_v56 = vpop.eup %15061  ;;  %v17671_v36 = vpack.c.bf16 %v5895_v35, %v5892_v49  ;;  %v17675_v61 = vpack.c.bf16 %v5893_v5, %v5890_v29  ;;  %v5858_v51 = vmul.f32 %v17576_v2, %v5818_v17  ;;  %v14142_v5 = vld [vmem:[#allocation16 + $0x60c] ss:$48 sps:$4 sm:$0xff]   ;;  %v14148_v17 = vld [vmem:[#allocation16 + $0x2b4] ss:$48 sps:$4 sm:$0xff]  }
0x1221   : > { %7859 = vmatpush1.bf16.msra.mxu0 %v14113_v22  ;;  %7758 = vmatprep.mubr.bf16.mxu1 %v17663_v28  ;;  %v5820_v32 = vmul.f32 %v15062_v56, %v17561_v37  ;;  %v5821_v16 = vmul.f32 %v15062_v56, %v17564_v9  ;;  %v5819_v44 = vmul.f32 %v15062_v56, %v17558_v24  ;;  %v14125_v37 = vld [vmem:[#allocation16 + $0xc8] ss:$48 sps:$4 sm:$0xff]   ;;  %v14145_v49 = vld [vmem:[#allocation16 + $0x5ac] ss:$48 sps:$4 sm:$0xff]  }
0x1222   : > { %7932 = vmatpush1.bf16.msra.mxu1 %v14116_v4  ;;  %7860 = vmatprep.subr.bf16.mxu0 %v14121_v31  ;;  %v5856_v9 = vmul.f32 %v17582_v6, %v5816_v33  ;;  %v5897_v24 = vadd.f32 %v17585_v26, %v5857_v19  ;;  %v14134_v31 = vld [vmem:[#allocation16 + $0x668] ss:$48 sps:$4 sm:$0xff]   ;;  %v14151_v29 = vld [vmem:[#allocation16 + $0x54c] ss:$48 sps:$4 sm:$0xff]   ;;  %v14154_v19 = vld [vmem:[#allocation16 + $0x254] ss:$48 sps:$4 sm:$0xff]  }
0x1223   : > { %7933 = vmatprep.subr.bf16.mxu1 %v14124_v0  ;;  %v5860_v1 = vmul.f32 %v17573_v18, %v5820_v32  ;;  %v5861_v11 = vmul.f32 %v17576_v2, %v5821_v16  ;;  %v5859_v22 = vmul.f32 %v17582_v6, %v5819_v44  ;;  %v14133_v2 = vld [vmem:[#allocation16 + $0x6c] ss:$48 sps:$4 sm:$0xff]   ;;  %v5898_v6 = vadd.f32 %v17590_v50, %v5858_v51  ;;  %v14143_v56 = vld [vmem:[#allocation16 + $0x5a8] ss:$48 sps:$4 sm:$0xff]   ;;  %v14160_v32 = vld [vmem:[#allocation16 + $0x1f4] ss:$48 sps:$4 sm:$0xff]  }
0x1224   : > { %7832 = vmatmul.mubr.bf16.gmra.mxu0 %v17671_v36  ;;  %v5896_v25 = vadd.f32 %v17597_v59, %v5856_v9  ;;  %v14139_v0 = vld [vmem:[#allocation16 + $0xc] ss:$48 sps:$4 sm:$0xff]   ;;  %v14149_v33 = vld [vmem:[#allocation16 + $0x548] ss:$48 sps:$4 sm:$0xff]   ;;  %v14172_v9 = vld [vmem:[#allocation16 + $0x134] ss:$48 sps:$4 sm:$0xff]  }
0x1225   : > { %7861 = vmatpush1.bf16.msra.mxu0 %v14119_v57  ;;  %7759 = vmatmul.mubr.bf16.gmra.mxu1 %v17675_v61  ;;  %v5900_v15 = vadd.f32 %v17585_v26, %v5860_v1  ;;  %v5901_v18 = vadd.f32 %v17590_v50, %v5861_v11  ;;  %v5899_v4 = vadd.f32 %v17597_v59, %v5859_v22  ;;  %v14137_v50 = vld [vmem:[#allocation16 + $0x8] ss:$48 sps:$4 sm:$0xff]   ;;  %v14146_v57 = vld [vmem:[#allocation16 + $0x2b0] ss:$48 sps:$4 sm:$0xff]   ;;  %v14163_v44 = vld [vmem:[#allocation16 + $0x48c] ss:$48 sps:$4 sm:$0xff]  }
0x1226   : > { %7934 = vmatpush1.bf16.msra.mxu1 %v14122_v47  ;;  %7862 = vmatprep.subr.bf16.mxu0 %v14127_v10  ;;  %v14140_v59 = vld [vmem:[#allocation16 + $0x608] ss:$48 sps:$4 sm:$0xff]   ;;  %v14152_v47 = vld [vmem:[#allocation16 + $0x250] ss:$48 sps:$4 sm:$0xff]   ;;  %v14157_v10 = vld [vmem:[#allocation16 + $0x4ec] ss:$48 sps:$4 sm:$0xff]  }
0x1227   : > { %7935 = vmatprep.subr.bf16.mxu1 %v14130_v14  ;;  %7841 = vmatprep.mubr.bf16.mxu0 %v19234_v48  ;;  %v17690_v41 = vpack.c.bf16 %v5900_v15, %v5897_v24  ;;  %v17695_v26 = vpack.c.bf16 %v5901_v18, %v5898_v6  ;;  %v17697_v35 = vpack.c.bf16 %v5899_v4, %v5896_v25  ;;  %v14155_v16 = vld [vmem:[#allocation16 + $0x4e8] ss:$48 sps:$4 sm:$0xff]   ;;  %v14158_v14 = vld [vmem:[#allocation16 + $0x1f0] ss:$48 sps:$4 sm:$0xff]   ;;  %v14166_v1 = vld [vmem:[#allocation16 + $0x194] ss:$48 sps:$4 sm:$0xff]  }
0x1228   : > { %v14161_v51 = vld [vmem:[#allocation16 + $0x488] ss:$48 sps:$4 sm:$0xff]   ;;  %v14164_v11 = vld [vmem:[#allocation16 + $0x190] ss:$48 sps:$4 sm:$0xff]   ;;  %v14175_v24 = vld [vmem:[#allocation16 + $0x3cc] ss:$48 sps:$4 sm:$0xff]  }
0x1229   : > { %7863 = vmatpush1.bf16.msra.mxu0 %v14125_v37  ;;  %7768 = vmatprep.mubr.bf16.mxu1 %v17690_v41  ;;  %v14169_v37 = vld [vmem:[#allocation16 + $0x42c] ss:$48 sps:$4 sm:$0xff]   ;;  %v14167_v22 = vld [vmem:[#allocation16 + $0x428] ss:$48 sps:$4 sm:$0xff]   ;;  %v14178_v15 = vld [vmem:[#allocation16 + $0xd4] ss:$48 sps:$4 sm:$0xff]  }
0x122a   : > { %7936 = vmatpush1.bf16.msra.mxu1 %v14128_v55  ;;  %7864 = vmatprep.subr.bf16.mxu0 %v14133_v2  ;;  %v14170_v55 = vld [vmem:[#allocation16 + $0x130] ss:$48 sps:$4 sm:$0xff]   ;;  %v14173_v18 = vld [vmem:[#allocation16 + $0x3c8] ss:$48 sps:$4 sm:$0xff]   ;;  %v14184_v4 = vld [vmem:[#allocation16 + $0x74] ss:$48 sps:$4 sm:$0xff]  }
0x122b   : > { %7937 = vmatprep.subr.bf16.mxu1 %v14136_v46  ;;  %v14176_v2 = vld [vmem:[#allocation16 + $0xd0] ss:$48 sps:$4 sm:$0xff]   ;;  %v14181_v46 = vld [vmem:[#allocation16 + $0x36c] ss:$48 sps:$4 sm:$0xff]   ;;  %v14179_v6 = vld [vmem:[#allocation16 + $0x368] ss:$48 sps:$4 sm:$0xff]  }
0x122c   : > { %7842 = vmatmul.mubr.bf16.gmra.mxu0 %v17695_v26  ;;  %v14187_v25 = vld [vmem:[#allocation16 + $0x30c] ss:$48 sps:$4 sm:$0xff]  }
0x122d   : > { %7865 = vmatpush1.bf16.msra.mxu0 %v14131_v62  ;;  %7769 = vmatmul.mubr.bf16.gmra.mxu1 %v17697_v35  ;;  %v14182_v62 = vld [vmem:[#allocation16 + $0x70] ss:$48 sps:$4 sm:$0xff]  }
0x122e   : > { %7884 = vmatprep.mubr.bf16.mxu0 %v17612_v27  ;;  %7938 = vmatpush1.bf16.msra.mxu1 %v14134_v31  ;;  %v14190_v31 = vld [vmem:[#allocation16 + $0x14] ss:$48 sps:$4 sm:$0xff]  }
0x122f   : > { %7866 = vmatprep.subr.bf16.mxu0 %v14139_v0  ;;  %7939 = vmatprep.subr.bf16.mxu1 %v14142_v5  ;;  %v14185_v0 = vld [vmem:[#allocation16 + $0x308] ss:$48 sps:$4 sm:$0xff]   ;;  %v14188_v5 = vld [vmem:[#allocation16 + $0x10] ss:$48 sps:$4 sm:$0xff]  }
0x1230   : > { %7957 = vmatprep.mubr.bf16.mxu1 %v19234_v48 }
0x1231   : > { %7867 = vmatpush1.bf16.msra.mxu0 %v14137_v50  ;;  %v14193_v50 = vld [vmem:[#allocation16 + $0x8b4] ss:$48 sps:$4 sm:$0xff]  }
0x1232   : > { %7940 = vmatpush1.bf16.msra.mxu1 %v14140_v59  ;;  %7868 = vmatprep.subr.bf16.mxu0 %v14145_v49  ;;  %v14196_v59 = vld [vmem:[#allocation16 + $0x5b4] ss:$48 sps:$4 sm:$0xff]   ;;  %v14191_v49 = vld [vmem:[#allocation16 + $0x8b0] ss:$48 sps:$4 sm:$0xff]  }
0x1233   : > { %7998 = vmatprep.subr.bf16.mxu1 %v14148_v17  ;;  %v14194_v17 = vld [vmem:[#allocation16 + $0x5b0] ss:$48 sps:$4 sm:$0xff]  }
0x1235   : > { %7869 = vmatpush2.bf16.msra.mxu0 %v14143_v56  ;;  %7958 = vmatmul.mubr.bf16.vlgmr.msra.gmra.mxu1 %v17614_v30  ;;  %v14199_v56 = vld [vmem:[#allocation16 + $0x854] ss:$48 sps:$4 sm:$0xff]  }
0x1236   : > { %7999 = vmatpush1.bf16.msra.mxu1 %v14146_v57  ;;  %7870 = vmatprep.subr.bf16.mxu0 %v14151_v29  ;;  %v14202_v57 = vld [vmem:[#allocation16 + $0x554] ss:$48 sps:$4 sm:$0xff]   ;;  %v14197_v29 = vld [vmem:[#allocation16 + $0x850] ss:$48 sps:$4 sm:$0xff]  }
0x1237   : > { %8000 = vmatprep.subr.bf16.mxu1 %v14154_v19  ;;  %7967 = vmatprep.mubr.bf16.mxu1 %v19234_v48  ;;  %v14200_v19 = vld [vmem:[#allocation16 + $0x550] ss:$48 sps:$4 sm:$0xff]  }
0x1239   : > { %7871 = vmatpush2.bf16.msra.mxu0 %v14149_v33  ;;  %v14205_v33 = vld [vmem:[#allocation16 + $0x7f4] ss:$48 sps:$4 sm:$0xff]  }
0x123a   : > { %8001 = vmatpush1.bf16.msra.mxu1 %v14152_v47  ;;  %7872 = vmatprep.subr.bf16.mxu0 %v14157_v10  ;;  %v14208_v47 = vld [vmem:[#allocation16 + $0x4f4] ss:$48 sps:$4 sm:$0xff]   ;;  %v14203_v10 = vld [vmem:[#allocation16 + $0x7f0] ss:$48 sps:$4 sm:$0xff]  }
0x123b   : > { %8002 = vmatprep.subr.bf16.mxu1 %v14160_v32  ;;  %v14206_v32 = vld [vmem:[#allocation16 + $0x4f0] ss:$48 sps:$4 sm:$0xff]  }
0x123d   : > { %7873 = vmatpush2.bf16.msra.mxu0 %v14155_v16  ;;  %7968 = vmatmul.mubr.bf16.gmra.mxu1 %v17642_v13  ;;  %v14211_v16 = vld [vmem:[#allocation16 + $0x794] ss:$48 sps:$4 sm:$0xff]  }
0x123e   : > { %8003 = vmatpush1.bf16.msra.mxu1 %v14158_v14  ;;  %7874 = vmatprep.subr.bf16.mxu0 %v14163_v44  ;;  %v14214_v14 = vld [vmem:[#allocation16 + $0x494] ss:$48 sps:$4 sm:$0xff]   ;;  %v14209_v44 = vld [vmem:[#allocation16 + $0x790] ss:$48 sps:$4 sm:$0xff]  }
0x123f   : > { %8004 = vmatprep.subr.bf16.mxu1 %v14166_v1  ;;  %7977 = vmatprep.mubr.bf16.mxu1 %v19234_v48  ;;  %v14212_v1 = vld [vmem:[#allocation16 + $0x490] ss:$48 sps:$4 sm:$0xff]  }
0x1241   : > { %7875 = vmatpush2.bf16.msra.mxu0 %v14161_v51  ;;  %v14217_v51 = vld [vmem:[#allocation16 + $0x734] ss:$48 sps:$4 sm:$0xff]  }
0x1242   : > { %8005 = vmatpush1.bf16.msra.mxu1 %v14164_v11  ;;  %7876 = vmatprep.subr.bf16.mxu0 %v14169_v37  ;;  %v14220_v11 = vld [vmem:[#allocation16 + $0x434] ss:$48 sps:$4 sm:$0xff]   ;;  %v14215_v37 = vld [vmem:[#allocation16 + $0x730] ss:$48 sps:$4 sm:$0xff]  }
0x1243   : > { %8006 = vmatprep.subr.bf16.mxu1 %v14172_v9  ;;  %v14218_v9 = vld [vmem:[#allocation16 + $0x430] ss:$48 sps:$4 sm:$0xff]  }
0x1245   : > { %7877 = vmatpush2.bf16.msra.mxu0 %v14167_v22  ;;  %7978 = vmatmul.mubr.bf16.gmra.mxu1 %v17671_v36  ;;  %v14223_v22 = vld [vmem:[#allocation16 + $0x6d4] ss:$48 sps:$4 sm:$0xff]  }
0x1246   : > { %8007 = vmatpush1.bf16.msra.mxu1 %v14170_v55  ;;  %7878 = vmatprep.subr.bf16.mxu0 %v14175_v24  ;;  %v14226_v55 = vld [vmem:[#allocation16 + $0x3d4] ss:$48 sps:$4 sm:$0xff]   ;;  %v14221_v24 = vld [vmem:[#allocation16 + $0x6d0] ss:$48 sps:$4 sm:$0xff]  }
0x1247   : > { %8008 = vmatprep.subr.bf16.mxu1 %v14178_v15  ;;  %7987 = vmatprep.mubr.bf16.mxu1 %v19234_v48  ;;  %v14224_v15 = vld [vmem:[#allocation16 + $0x3d0] ss:$48 sps:$4 sm:$0xff]  }
0x1249   : > { %7879 = vmatpush2.bf16.msra.mxu0 %v14173_v18  ;;  %v14229_v18 = vld [vmem:[#allocation16 + $0x674] ss:$48 sps:$4 sm:$0xff]  }
0x124a   : > { %8009 = vmatpush1.bf16.msra.mxu1 %v14176_v2  ;;  %7880 = vmatprep.subr.bf16.mxu0 %v14181_v46  ;;  %v14232_v2 = vld [vmem:[#allocation16 + $0x374] ss:$48 sps:$4 sm:$0xff]   ;;  %v14227_v46 = vld [vmem:[#allocation16 + $0x670] ss:$48 sps:$4 sm:$0xff]  }
0x124b   : > { %8010 = vmatprep.subr.bf16.mxu1 %v14184_v4  ;;  %v14230_v4 = vld [vmem:[#allocation16 + $0x370] ss:$48 sps:$4 sm:$0xff]  }
0x124d   : > { %7881 = vmatpush2.bf16.msra.mxu0 %v14179_v6  ;;  %7988 = vmatmul.mubr.bf16.gmra.mxu1 %v17695_v26  ;;  %v14235_v6 = vld [vmem:[#allocation16 + $0x614] ss:$48 sps:$4 sm:$0xff]  }
0x124e   : > { %8011 = vmatpush1.bf16.msra.mxu1 %v14182_v62  ;;  %8030 = vmatprep.mubr.bf16.mxu1 %v17612_v27  ;;  %v14238_v62 = vld [vmem:[#allocation16 + $0x314] ss:$48 sps:$4 sm:$0xff]  }
0x124f   : > { %7882 = vmatprep.subr.bf16.mxu0 %v14187_v25  ;;  %8012 = vmatprep.subr.bf16.mxu1 %v14190_v31  ;;  %v14233_v25 = vld [vmem:[#allocation16 + $0x610] ss:$48 sps:$4 sm:$0xff]  }
0x1250   : > { %v14236_v31 = vld [vmem:[#allocation16 + $0x310] ss:$48 sps:$4 sm:$0xff]  }
0x1251   : > { %7883 = vmatpush2.bf16.msra.mxu0 %v14185_v0  ;;  %v14241_v0 = vld [vmem:[#allocation16 + $0x2bc] ss:$48 sps:$4 sm:$0xff]  }
0x1252   : > { %8013 = vmatpush1.bf16.msra.mxu1 %v14188_v5  ;;  %8071 = vmatprep.subr.bf16.mxu0 %v14193_v50  ;;  %v14244_v5 = vld [vmem:[#allocation16 + $0x8bc] ss:$48 sps:$4 sm:$0xff]   ;;  %v14239_v50 = vld [vmem:[#allocation16 + $0x2b8] ss:$48 sps:$4 sm:$0xff]  }
0x1253   : > { %8014 = vmatprep.subr.bf16.mxu1 %v14196_v59  ;;  %v14242_v59 = vld [vmem:[#allocation16 + $0x8b8] ss:$48 sps:$4 sm:$0xff]  }
0x1254   : > { %7885 = vmatmul.mubr.bf16.vlgmr.msra.gmra.mxu0 %v17617_v8 }
0x1255   : > { %7894 = vmatprep.mubr.bf16.mxu0 %v17634_v39  ;;  %8072 = vmatpush1.bf16.msra.mxu0 %v14191_v49  ;;  %v14247_v49 = vld [vmem:[#allocation16 + $0x25c] ss:$48 sps:$4 sm:$0xff]  }
0x1256   : > { %8015 = vmatpush2.bf16.msra.mxu1 %v14194_v17  ;;  %8073 = vmatprep.subr.bf16.mxu0 %v14199_v56  ;;  %v14250_v17 = vld [vmem:[#allocation16 + $0x85c] ss:$48 sps:$4 sm:$0xff]   ;;  %v14245_v56 = vld [vmem:[#allocation16 + $0x258] ss:$48 sps:$4 sm:$0xff]  }
0x1257   : > { %8016 = vmatprep.subr.bf16.mxu1 %v14202_v57  ;;  %v14248_v57 = vld [vmem:[#allocation16 + $0x858] ss:$48 sps:$4 sm:$0xff]  }
0x1259   : > { %8074 = vmatpush1.bf16.msra.mxu0 %v14197_v29  ;;  %v14253_v29 = vld [vmem:[#allocation16 + $0x1fc] ss:$48 sps:$4 sm:$0xff]  }
0x125a   : > { %8017 = vmatpush2.bf16.msra.mxu1 %v14200_v19  ;;  %8075 = vmatprep.subr.bf16.mxu0 %v14205_v33  ;;  %v14256_v19 = vld [vmem:[#allocation16 + $0x7fc] ss:$48 sps:$4 sm:$0xff]   ;;  %v14251_v33 = vld [vmem:[#allocation16 + $0x1f8] ss:$48 sps:$4 sm:$0xff]  }
0x125b   : > { %8018 = vmatprep.subr.bf16.mxu1 %v14208_v47  ;;  %v14254_v47 = vld [vmem:[#allocation16 + $0x7f8] ss:$48 sps:$4 sm:$0xff]  }
0x125c   : > { %7895 = vmatmul.mubr.bf16.gmra.mxu0 %v17646_v34 }
0x125d   : > { %7904 = vmatprep.mubr.bf16.mxu0 %v17663_v28  ;;  %8076 = vmatpush1.bf16.msra.mxu0 %v14203_v10  ;;  %v14259_v10 = vld [vmem:[#allocation16 + $0x19c] ss:$48 sps:$4 sm:$0xff]  }
0x125e   : > { %8019 = vmatpush2.bf16.msra.mxu1 %v14206_v32  ;;  %8077 = vmatprep.subr.bf16.mxu0 %v14211_v16  ;;  %v14262_v32 = vld [vmem:[#allocation16 + $0x79c] ss:$48 sps:$4 sm:$0xff]   ;;  %v14257_v16 = vld [vmem:[#allocation16 + $0x198] ss:$48 sps:$4 sm:$0xff]  }
0x125f   : > { %8020 = vmatprep.subr.bf16.mxu1 %v14214_v14  ;;  %v14260_v14 = vld [vmem:[#allocation16 + $0x798] ss:$48 sps:$4 sm:$0xff]  }
0x1261   : > { %8078 = vmatpush1.bf16.msra.mxu0 %v14209_v44  ;;  %v14265_v44 = vld [vmem:[#allocation16 + $0x13c] ss:$48 sps:$4 sm:$0xff]  }
0x1262   : > { %8021 = vmatpush2.bf16.msra.mxu1 %v14212_v1  ;;  %8079 = vmatprep.subr.bf16.mxu0 %v14217_v51  ;;  %v14268_v1 = vld [vmem:[#allocation16 + $0x73c] ss:$48 sps:$4 sm:$0xff]   ;;  %v14263_v51 = vld [vmem:[#allocation16 + $0x138] ss:$48 sps:$4 sm:$0xff]  }
0x1263   : > { %8022 = vmatprep.subr.bf16.mxu1 %v14220_v11  ;;  %v14266_v11 = vld [vmem:[#allocation16 + $0x738] ss:$48 sps:$4 sm:$0xff]  }
0x1264   : > { %7905 = vmatmul.mubr.bf16.gmra.mxu0 %v17675_v61 }
0x1265   : > { %7914 = vmatprep.mubr.bf16.mxu0 %v17690_v41  ;;  %8080 = vmatpush1.bf16.msra.mxu0 %v14215_v37  ;;  %v14271_v37 = vld [vmem:[#allocation16 + $0xdc] ss:$48 sps:$4 sm:$0xff]  }
0x1266   : > { %8023 = vmatpush2.bf16.msra.mxu1 %v14218_v9  ;;  %8081 = vmatprep.subr.bf16.mxu0 %v14223_v22  ;;  %v14274_v9 = vld [vmem:[#allocation16 + $0x6dc] ss:$48 sps:$4 sm:$0xff]   ;;  %v14269_v22 = vld [vmem:[#allocation16 + $0xd8] ss:$48 sps:$4 sm:$0xff]  }
0x1267   : > { %8024 = vmatprep.subr.bf16.mxu1 %v14226_v55  ;;  %v14272_v55 = vld [vmem:[#allocation16 + $0x6d8] ss:$48 sps:$4 sm:$0xff]  }
0x1269   : > { %8082 = vmatpush1.bf16.msra.mxu0 %v14221_v24  ;;  %v14277_v24 = vld [vmem:[#allocation16 + $0x7c] ss:$48 sps:$4 sm:$0xff]  }
0x126a   : > { %8025 = vmatpush2.bf16.msra.mxu1 %v14224_v15  ;;  %8083 = vmatprep.subr.bf16.mxu0 %v14229_v18  ;;  %v14280_v15 = vld [vmem:[#allocation16 + $0x67c] ss:$48 sps:$4 sm:$0xff]   ;;  %v14275_v18 = vld [vmem:[#allocation16 + $0x78] ss:$48 sps:$4 sm:$0xff]  }
0x126b   : > { %8026 = vmatprep.subr.bf16.mxu1 %v14232_v2  ;;  %v14278_v2 = vld [vmem:[#allocation16 + $0x678] ss:$48 sps:$4 sm:$0xff]  }
0x126c   : > { %7915 = vmatmul.mubr.bf16.gmra.mxu0 %v17697_v35 }
0x126d   : > { %8084 = vmatpush1.bf16.msra.mxu0 %v14227_v46  ;;  %8103 = vmatprep.mubr.bf16.mxu0 %v19234_v48  ;;  %v14283_v46 = vld [vmem:[#allocation16 + $0x1c] ss:$48 sps:$4 sm:$0xff]  }
0x126e   : > { %8027 = vmatpush2.bf16.msra.mxu1 %v14230_v4  ;;  %8085 = vmatprep.subr.bf16.mxu0 %v14235_v6  ;;  %v14286_v4 = vld [vmem:[#allocation16 + $0x61c] ss:$48 sps:$4 sm:$0xff]   ;;  %v14281_v6 = vld [vmem:[#allocation16 + $0x18] ss:$48 sps:$4 sm:$0xff]  }
0x126f   : > { %8028 = vmatprep.subr.bf16.mxu1 %v14238_v62  ;;  %v14284_v62 = vld [vmem:[#allocation16 + $0x618] ss:$48 sps:$4 sm:$0xff]  }
0x1271   : > { %8086 = vmatpush1.bf16.msra.mxu0 %v14233_v25  ;;  %v14289_v25 = vld [vmem:[#allocation16 + $0x5bc] ss:$48 sps:$4 sm:$0xff]  }
0x1272   : > { %8029 = vmatpush2.bf16.msra.mxu1 %v14236_v31  ;;  %8144 = vmatprep.subr.bf16.mxu0 %v14241_v0  ;;  %v14292_v31 = vld [vmem:[#allocation16 + $0x2c4] ss:$48 sps:$4 sm:$0xff]   ;;  %v14287_v0 = vld [vmem:[#allocation16 + $0x5b8] ss:$48 sps:$4 sm:$0xff]  }
0x1273   : > { %8217 = vmatprep.subr.bf16.mxu1 %v14244_v5  ;;  %v14290_v5 = vld [vmem:[#allocation16 + $0x2c0] ss:$48 sps:$4 sm:$0xff]  }
0x1274   : > { %8104 = vmatmul.mubr.bf16.vlgmr.msra.gmra.mxu0 %v17614_v30 }
0x1275   : > { %8031 = vmatmul.mubr.bf16.vlgmr.msra.gmra.mxu1 %v17617_v8  ;;  %8145 = vmatpush1.bf16.msra.mxu0 %v14239_v50  ;;  %v14295_v50 = vld [vmem:[#allocation16 + $0x55c] ss:$48 sps:$4 sm:$0xff]  }
0x1276   : > { %8040 = vmatprep.mubr.bf16.mxu1 %v17634_v39  ;;  %8218 = vmatpush1.bf16.msra.mxu1 %v14242_v59  ;;  %v14298_v59 = vld [vmem:[#allocation16 + $0x264] ss:$48 sps:$4 sm:$0xff]  }
0x1277   : > { %8146 = vmatprep.subr.bf16.mxu0 %v14247_v49  ;;  %8219 = vmatprep.subr.bf16.mxu1 %v14250_v17  ;;  %v14293_v49 = vld [vmem:[#allocation16 + $0x558] ss:$48 sps:$4 sm:$0xff]   ;;  %v14296_v17 = vld [vmem:[#allocation16 + $0x260] ss:$48 sps:$4 sm:$0xff]  }
0x1278   : > { %8113 = vmatprep.mubr.bf16.mxu0 %v19234_v48 }
0x1279   : > { %8147 = vmatpush1.bf16.msra.mxu0 %v14245_v56  ;;  %v14301_v56 = vld [vmem:[#allocation16 + $0x4fc] ss:$48 sps:$4 sm:$0xff]  }
0x127a   : > { %8220 = vmatpush1.bf16.msra.mxu1 %v14248_v57  ;;  %8148 = vmatprep.subr.bf16.mxu0 %v14253_v29  ;;  %v14304_v57 = vld [vmem:[#allocation16 + $0x204] ss:$48 sps:$4 sm:$0xff]   ;;  %v14299_v29 = vld [vmem:[#allocation16 + $0x4f8] ss:$48 sps:$4 sm:$0xff]  }
0x127b   : > { %8221 = vmatprep.subr.bf16.mxu1 %v14256_v19  ;;  %v14302_v19 = vld [vmem:[#allocation16 + $0x200] ss:$48 sps:$4 sm:$0xff]  }
0x127c   : > { %8114 = vmatmul.mubr.bf16.gmra.mxu0 %v17642_v13 }
0x127d   : > { %8041 = vmatmul.mubr.bf16.gmra.mxu1 %v17646_v34  ;;  %8149 = vmatpush1.bf16.msra.mxu0 %v14251_v33  ;;  %v14307_v33 = vld [vmem:[#allocation16 + $0x49c] ss:$48 sps:$4 sm:$0xff]  }
0x127e   : > { %8050 = vmatprep.mubr.bf16.mxu1 %v17663_v28  ;;  %8222 = vmatpush1.bf16.msra.mxu1 %v14254_v47  ;;  %v14310_v47 = vld [vmem:[#allocation16 + $0x1a4] ss:$48 sps:$4 sm:$0xff]  }
0x127f   : > { %8150 = vmatprep.subr.bf16.mxu0 %v14259_v10  ;;  %8223 = vmatprep.subr.bf16.mxu1 %v14262_v32  ;;  %v14305_v10 = vld [vmem:[#allocation16 + $0x498] ss:$48 sps:$4 sm:$0xff]   ;;  %v14308_v32 = vld [vmem:[#allocation16 + $0x1a0] ss:$48 sps:$4 sm:$0xff]  }
0x1280   : > { %8123 = vmatprep.mubr.bf16.mxu0 %v19234_v48 }
0x1281   : > { %8151 = vmatpush1.bf16.msra.mxu0 %v14257_v16  ;;  %v14313_v16 = vld [vmem:[#allocation16 + $0x43c] ss:$48 sps:$4 sm:$0xff]  }
0x1282   : > { %8224 = vmatpush1.bf16.msra.mxu1 %v14260_v14  ;;  %8152 = vmatprep.subr.bf16.mxu0 %v14265_v44  ;;  %v14316_v14 = vld [vmem:[#allocation16 + $0x144] ss:$48 sps:$4 sm:$0xff]   ;;  %v14311_v44 = vld [vmem:[#allocation16 + $0x438] ss:$48 sps:$4 sm:$0xff]  }
0x1283   : > { %8225 = vmatprep.subr.bf16.mxu1 %v14268_v1  ;;  %v14314_v1 = vld [vmem:[#allocation16 + $0x140] ss:$48 sps:$4 sm:$0xff]  }
0x1284   : > { %8124 = vmatmul.mubr.bf16.gmra.mxu0 %v17671_v36 }
0x1285   : > { %8051 = vmatmul.mubr.bf16.gmra.mxu1 %v17675_v61  ;;  %8153 = vmatpush1.bf16.msra.mxu0 %v14263_v51  ;;  %v14319_v51 = vld [vmem:[#allocation16 + $0x3dc] ss:$48 sps:$4 sm:$0xff]  }
0x1286   : > { %8060 = vmatprep.mubr.bf16.mxu1 %v17690_v41  ;;  %8226 = vmatpush1.bf16.msra.mxu1 %v14266_v11  ;;  %v14322_v11 = vld [vmem:[#allocation16 + $0xe4] ss:$48 sps:$4 sm:$0xff]  }
0x1287   : > { %8154 = vmatprep.subr.bf16.mxu0 %v14271_v37  ;;  %8227 = vmatprep.subr.bf16.mxu1 %v14274_v9  ;;  %v14317_v37 = vld [vmem:[#allocation16 + $0x3d8] ss:$48 sps:$4 sm:$0xff]   ;;  %v14320_v9 = vld [vmem:[#allocation16 + $0xe0] ss:$48 sps:$4 sm:$0xff]  }
0x1288   : > { %8133 = vmatprep.mubr.bf16.mxu0 %v19234_v48 }
0x1289   : > { %8155 = vmatpush1.bf16.msra.mxu0 %v14269_v22  ;;  %v14325_v22 = vld [vmem:[#allocation16 + $0x37c] ss:$48 sps:$4 sm:$0xff]  }
0x128a   : > { %8228 = vmatpush1.bf16.msra.mxu1 %v14272_v55  ;;  %8156 = vmatprep.subr.bf16.mxu0 %v14277_v24  ;;  %v14328_v55 = vld [vmem:[#allocation16 + $0x84] ss:$48 sps:$4 sm:$0xff]   ;;  %v14323_v24 = vld [vmem:[#allocation16 + $0x378] ss:$48 sps:$4 sm:$0xff]  }
0x128b   : > { %8229 = vmatprep.subr.bf16.mxu1 %v14280_v15  ;;  %v14326_v15 = vld [vmem:[#allocation16 + $0x80] ss:$48 sps:$4 sm:$0xff]  }
0x128c   : > { %8134 = vmatmul.mubr.bf16.gmra.mxu0 %v17695_v26 }
0x128d   : > { %8061 = vmatmul.mubr.bf16.gmra.mxu1 %v17697_v35  ;;  %8157 = vmatpush1.bf16.msra.mxu0 %v14275_v18  ;;  %v14331_v18 = vld [vmem:[#allocation16 + $0x31c] ss:$48 sps:$4 sm:$0xff]  }
0x128e   : > { %8176 = vmatprep.mubr.bf16.mxu0 %v17612_v27  ;;  %8230 = vmatpush1.bf16.msra.mxu1 %v14278_v2  ;;  %v14334_v2 = vld [vmem:[#allocation16 + $0x24] ss:$48 sps:$4 sm:$0xff]  }
0x128f   : > { %8158 = vmatprep.subr.bf16.mxu0 %v14283_v46  ;;  %8231 = vmatprep.subr.bf16.mxu1 %v14286_v4  ;;  %v14329_v46 = vld [vmem:[#allocation16 + $0x318] ss:$48 sps:$4 sm:$0xff]   ;;  %v14332_v4 = vld [vmem:[#allocation16 + $0x20] ss:$48 sps:$4 sm:$0xff]  }
0x1290   : > { %8249 = vmatprep.mubr.bf16.mxu1 %v19234_v48 }
0x1291   : > { %8159 = vmatpush1.bf16.msra.mxu0 %v14281_v6  ;;  %v14337_v6 = vld [vmem:[#allocation16 + $0x8c4] ss:$48 sps:$4 sm:$0xff]  }
0x1292   : > { %8232 = vmatpush1.bf16.msra.mxu1 %v14284_v62  ;;  %8160 = vmatprep.subr.bf16.mxu0 %v14289_v25  ;;  %v14340_v62 = vld [vmem:[#allocation16 + $0x5c4] ss:$48 sps:$4 sm:$0xff]   ;;  %v14335_v25 = vld [vmem:[#allocation16 + $0x8c0] ss:$48 sps:$4 sm:$0xff]  }
0x1293   : > { %8290 = vmatprep.subr.bf16.mxu1 %v14292_v31  ;;  %v14338_v31 = vld [vmem:[#allocation16 + $0x5c0] ss:$48 sps:$4 sm:$0xff]  }
0x1295   : > { %8161 = vmatpush2.bf16.msra.mxu0 %v14287_v0  ;;  %8250 = vmatmul.mubr.bf16.vlgmr.msra.gmra.mxu1 %v17614_v30  ;;  %v14343_v0 = vld [vmem:[#allocation16 + $0x864] ss:$48 sps:$4 sm:$0xff]  }
0x1296   : > { %8291 = vmatpush1.bf16.msra.mxu1 %v14290_v5  ;;  %8162 = vmatprep.subr.bf16.mxu0 %v14295_v50  ;;  %v14346_v5 = vld [vmem:[#allocation16 + $0x564] ss:$48 sps:$4 sm:$0xff]   ;;  %v14341_v50 = vld [vmem:[#allocation16 + $0x860] ss:$48 sps:$4 sm:$0xff]  }
0x1297   : > { %8292 = vmatprep.subr.bf16.mxu1 %v14298_v59  ;;  %8259 = vmatprep.mubr.bf16.mxu1 %v19234_v48  ;;  %v14344_v59 = vld [vmem:[#allocation16 + $0x560] ss:$48 sps:$4 sm:$0xff]  }
0x1299   : > { %8163 = vmatpush2.bf16.msra.mxu0 %v14293_v49  ;;  %v14349_v49 = vld [vmem:[#allocation16 + $0x804] ss:$48 sps:$4 sm:$0xff]  }
0x129a   : > { %8293 = vmatpush1.bf16.msra.mxu1 %v14296_v17  ;;  %8164 = vmatprep.subr.bf16.mxu0 %v14301_v56  ;;  %v14352_v17 = vld [vmem:[#allocation16 + $0x504] ss:$48 sps:$4 sm:$0xff]   ;;  %v14347_v56 = vld [vmem:[#allocation16 + $0x800] ss:$48 sps:$4 sm:$0xff]  }
0x129b   : > { %8294 = vmatprep.subr.bf16.mxu1 %v14304_v57  ;;  %v14350_v57 = vld [vmem:[#allocation16 + $0x500] ss:$48 sps:$4 sm:$0xff]  }
0x129d   : > { %8165 = vmatpush2.bf16.msra.mxu0 %v14299_v29  ;;  %8260 = vmatmul.mubr.bf16.gmra.mxu1 %v17642_v13  ;;  %v14355_v29 = vld [vmem:[#allocation16 + $0x7a4] ss:$48 sps:$4 sm:$0xff]  }
0x129e   : > { %8295 = vmatpush1.bf16.msra.mxu1 %v14302_v19  ;;  %8166 = vmatprep.subr.bf16.mxu0 %v14307_v33  ;;  %v14358_v19 = vld [vmem:[#allocation16 + $0x4a4] ss:$48 sps:$4 sm:$0xff]   ;;  %v14353_v33 = vld [vmem:[#allocation16 + $0x7a0] ss:$48 sps:$4 sm:$0xff]  }
0x129f   : > { %8296 = vmatprep.subr.bf16.mxu1 %v14310_v47  ;;  %8269 = vmatprep.mubr.bf16.mxu1 %v19234_v48  ;;  %v14356_v47 = vld [vmem:[#allocation16 + $0x4a0] ss:$48 sps:$4 sm:$0xff]  }
0x12a1   : > { %8167 = vmatpush2.bf16.msra.mxu0 %v14305_v10  ;;  %v14361_v10 = vld [vmem:[#allocation16 + $0x744] ss:$48 sps:$4 sm:$0xff]  }
0x12a2   : > { %8297 = vmatpush1.bf16.msra.mxu1 %v14308_v32  ;;  %8168 = vmatprep.subr.bf16.mxu0 %v14313_v16  ;;  %v14364_v32 = vld [vmem:[#allocation16 + $0x444] ss:$48 sps:$4 sm:$0xff]   ;;  %v14359_v16 = vld [vmem:[#allocation16 + $0x740] ss:$48 sps:$4 sm:$0xff]  }
0x12a3   : > { %8298 = vmatprep.subr.bf16.mxu1 %v14316_v14  ;;  %v14362_v14 = vld [vmem:[#allocation16 + $0x440] ss:$48 sps:$4 sm:$0xff]  }
0x12a5   : > { %8169 = vmatpush2.bf16.msra.mxu0 %v14311_v44  ;;  %8270 = vmatmul.mubr.bf16.gmra.mxu1 %v17671_v36  ;;  %v14367_v44 = vld [vmem:[#allocation16 + $0x6e4] ss:$48 sps:$4 sm:$0xff]  }
0x12a6   : > { %8299 = vmatpush1.bf16.msra.mxu1 %v14314_v1  ;;  %8170 = vmatprep.subr.bf16.mxu0 %v14319_v51  ;;  %v14370_v1 = vld [vmem:[#allocation16 + $0x3e4] ss:$48 sps:$4 sm:$0xff]   ;;  %v14365_v51 = vld [vmem:[#allocation16 + $0x6e0] ss:$48 sps:$4 sm:$0xff]  }
0x12a7   : > { %8300 = vmatprep.subr.bf16.mxu1 %v14322_v11  ;;  %8279 = vmatprep.mubr.bf16.mxu1 %v19234_v48  ;;  %v14368_v11 = vld [vmem:[#allocation16 + $0x3e0] ss:$48 sps:$4 sm:$0xff]  }
0x12a9   : > { %8171 = vmatpush2.bf16.msra.mxu0 %v14317_v37  ;;  %v14373_v37 = vld [vmem:[#allocation16 + $0x684] ss:$48 sps:$4 sm:$0xff]  }
0x12aa   : > { %8301 = vmatpush1.bf16.msra.mxu1 %v14320_v9  ;;  %8172 = vmatprep.subr.bf16.mxu0 %v14325_v22  ;;  %v14376_v9 = vld [vmem:[#allocation16 + $0x384] ss:$48 sps:$4 sm:$0xff]   ;;  %v14371_v22 = vld [vmem:[#allocation16 + $0x680] ss:$48 sps:$4 sm:$0xff]  }
0x12ab   : > { %8302 = vmatprep.subr.bf16.mxu1 %v14328_v55  ;;  %v14374_v55 = vld [vmem:[#allocation16 + $0x380] ss:$48 sps:$4 sm:$0xff]  }
0x12ad   : > { %8173 = vmatpush2.bf16.msra.mxu0 %v14323_v24  ;;  %8280 = vmatmul.mubr.bf16.gmra.mxu1 %v17695_v26  ;;  %v14379_v24 = vld [vmem:[#allocation16 + $0x624] ss:$48 sps:$4 sm:$0xff]  }
0x12ae   : > { %8303 = vmatpush1.bf16.msra.mxu1 %v14326_v15  ;;  %8322 = vmatprep.mubr.bf16.mxu1 %v17612_v27  ;;  %v14382_v15 = vld [vmem:[#allocation16 + $0x324] ss:$48 sps:$4 sm:$0xff]  }
0x12af   : > { %8174 = vmatprep.subr.bf16.mxu0 %v14331_v18  ;;  %8304 = vmatprep.subr.bf16.mxu1 %v14334_v2  ;;  %v14377_v18 = vld [vmem:[#allocation16 + $0x620] ss:$48 sps:$4 sm:$0xff]  }
0x12b0   : > { %v14380_v2 = vld [vmem:[#allocation16 + $0x320] ss:$48 sps:$4 sm:$0xff]  }
0x12b1   : > { %8175 = vmatpush2.bf16.msra.mxu0 %v14329_v46  ;;  %v14385_v46 = vld [vmem:[#allocation16 + $0x2cc] ss:$48 sps:$4 sm:$0xff]  }
0x12b2   : > { %8305 = vmatpush1.bf16.msra.mxu1 %v14332_v4  ;;  %8363 = vmatprep.subr.bf16.mxu0 %v14337_v6  ;;  %v14388_v4 = vld [vmem:[#allocation16 + $0x8cc] ss:$48 sps:$4 sm:$0xff]   ;;  %v14383_v6 = vld [vmem:[#allocation16 + $0x2c8] ss:$48 sps:$4 sm:$0xff]  }
0x12b3   : > { %8306 = vmatprep.subr.bf16.mxu1 %v14340_v62  ;;  %v14386_v62 = vld [vmem:[#allocation16 + $0x8c8] ss:$48 sps:$4 sm:$0xff]  }
0x12b4   : > { %8177 = vmatmul.mubr.bf16.vlgmr.msra.gmra.mxu0 %v17617_v8 }
0x12b5   : > { %8186 = vmatprep.mubr.bf16.mxu0 %v17634_v39  ;;  %8364 = vmatpush1.bf16.msra.mxu0 %v14335_v25  ;;  %v14391_v25 = vld [vmem:[#allocation16 + $0x26c] ss:$48 sps:$4 sm:$0xff]  }
0x12b6   : > { %8307 = vmatpush2.bf16.msra.mxu1 %v14338_v31  ;;  %8365 = vmatprep.subr.bf16.mxu0 %v14343_v0  ;;  %v14394_v31 = vld [vmem:[#allocation16 + $0x86c] ss:$48 sps:$4 sm:$0xff]  }
0x12b7   : > { %8308 = vmatprep.subr.bf16.mxu1 %v14346_v5  ;;  %v14389_v5 = vld [vmem:[#allocation16 + $0x268] ss:$48 sps:$4 sm:$0xff]  }
0x12b9   : > { %8366 = vmatpush1.bf16.msra.mxu0 %v14341_v50 }
0x12ba   : > { %8309 = vmatpush2.bf16.msra.mxu1 %v14344_v59  ;;  %8367 = vmatprep.subr.bf16.mxu0 %v14349_v49  ;;  %v14392_v59 = vld [vmem:[#allocation16 + $0x868] ss:$48 sps:$4 sm:$0xff]   ;;  %v14397_v49 = vld [vmem:[#allocation16 + $0x20c] ss:$48 sps:$4 sm:$0xff]  }
0x12bb   : > { %8310 = vmatprep.subr.bf16.mxu1 %v14352_v17 }
0x12bc   : > { %8187 = vmatmul.mubr.bf16.gmra.mxu0 %v17646_v34 }
0x12bd   : > { %8196 = vmatprep.mubr.bf16.mxu0 %v17663_v28  ;;  %8368 = vmatpush1.bf16.msra.mxu0 %v14347_v56  ;;  %v14400_v56 = vld [vmem:[#allocation16 + $0x80c] ss:$48 sps:$4 sm:$0xff]  }
0x12be   : > { %8311 = vmatpush2.bf16.msra.mxu1 %v14350_v57  ;;  %8369 = vmatprep.subr.bf16.mxu0 %v14355_v29  ;;  %v14395_v29 = vld [vmem:[#allocation16 + $0x208] ss:$48 sps:$4 sm:$0xff]  }
0x12bf   : > { %8312 = vmatprep.subr.bf16.mxu1 %v14358_v19 }
0x12c1   : > { %8370 = vmatpush1.bf16.msra.mxu0 %v14353_v33  ;;  %v14398_v33 = vld [vmem:[#allocation16 + $0x808] ss:$48 sps:$4 sm:$0xff]  }
0x12c2   : > { %8313 = vmatpush2.bf16.msra.mxu1 %v14356_v47  ;;  %8371 = vmatprep.subr.bf16.mxu0 %v14361_v10  ;;  %v14403_v10 = vld [vmem:[#allocation16 + $0x1ac] ss:$48 sps:$4 sm:$0xff]  }
0x12c3   : > { %8314 = vmatprep.subr.bf16.mxu1 %v14364_v32  ;;  %v14406_v32 = vld [vmem:[#allocation16 + $0x7ac] ss:$48 sps:$4 sm:$0xff]  }
0x12c4   : > { %8197 = vmatmul.mubr.bf16.gmra.mxu0 %v17675_v61 }
0x12c5   : > { %8206 = vmatprep.mubr.bf16.mxu0 %v17690_v41  ;;  %8372 = vmatpush1.bf16.msra.mxu0 %v14359_v16 }
0x12c6   : > { %8315 = vmatpush2.bf16.msra.mxu1 %v14362_v14  ;;  %8373 = vmatprep.subr.bf16.mxu0 %v14367_v44  ;;  %v14401_v14 = vld [vmem:[#allocation16 + $0x1a8] ss:$48 sps:$4 sm:$0xff]  }
0x12c7   : > { %8316 = vmatprep.subr.bf16.mxu1 %v14370_v1  ;;  %v14404_v1 = vld [vmem:[#allocation16 + $0x7a8] ss:$48 sps:$4 sm:$0xff]  }
0x12c9   : > { %8374 = vmatpush1.bf16.msra.mxu0 %v14365_v51  ;;  %v14409_v51 = vld [vmem:[#allocation16 + $0x14c] ss:$48 sps:$4 sm:$0xff]  }
0x12ca   : > { %8317 = vmatpush2.bf16.msra.mxu1 %v14368_v11  ;;  %8375 = vmatprep.subr.bf16.mxu0 %v14373_v37  ;;  %v14412_v37 = vld [vmem:[#allocation16 + $0x74c] ss:$48 sps:$4 sm:$0xff]  }
0x12cb   : > { %8318 = vmatprep.subr.bf16.mxu1 %v14376_v9 }
0x12cc   : > { %8207 = vmatmul.mubr.bf16.gmra.mxu0 %v17697_v35 }
0x12cd   : > { %8376 = vmatpush1.bf16.msra.mxu0 %v14371_v22  ;;  %8395 = vmatprep.mubr.bf16.mxu0 %v19234_v48  ;;  %v14407_v22 = vld [vmem:[#allocation16 + $0x148] ss:$48 sps:$4 sm:$0xff]  }
0x12ce   : > { %8319 = vmatpush2.bf16.msra.mxu1 %v14374_v55  ;;  %8377 = vmatprep.subr.bf16.mxu0 %v14379_v24  ;;  %v14410_v24 = vld [vmem:[#allocation16 + $0x748] ss:$48 sps:$4 sm:$0xff]  }
0x12cf   : > { %8320 = vmatprep.subr.bf16.mxu1 %v14382_v15 }
0x12d1   : > { %8378 = vmatpush1.bf16.msra.mxu0 %v14377_v18  ;;  %v14415_v18 = vld [vmem:[#allocation16 + $0xec] ss:$48 sps:$4 sm:$0xff]  }
0x12d2   : > { %8321 = vmatpush2.bf16.msra.mxu1 %v14380_v2  ;;  %8436 = vmatprep.subr.bf16.mxu0 %v14385_v46  ;;  %v14418_v2 = vld [vmem:[#allocation16 + $0x6ec] ss:$48 sps:$4 sm:$0xff]  }
0x12d3   : > { %8509 = vmatprep.subr.bf16.mxu1 %v14388_v4  ;;  %v14413_v4 = vld [vmem:[#allocation16 + $0xe8] ss:$48 sps:$4 sm:$0xff]  }
0x12d4   : > { %8396 = vmatmul.mubr.bf16.vlgmr.msra.gmra.mxu0 %v17614_v30  ;;  %v17755_v50 = vpop.f32.mrf.mxu0 }
0x12d5   : > { %8323 = vmatmul.mubr.bf16.vlgmr.msra.gmra.mxu1 %v17617_v8  ;;  %8437 = vmatpush1.bf16.msra.mxu0 %v14383_v6  ;;  %v17753_v0 = vpop.f32.mrf.mxu1 }
0x12d6   : > { %8332 = vmatprep.mubr.bf16.mxu1 %v17634_v39  ;;  %8510 = vmatpush1.bf16.msra.mxu1 %v14386_v62  ;;  %v17763_v19 = vpop.f32.mrf.mxu0  ;;  %v14416_v62 = vld [vmem:[#allocation16 + $0x6e8] ss:$48 sps:$4 sm:$0xff]  }
0x12d7   : > { %v17758_v17 = vpop.f32.mrf.mxu1  ;;  %8438 = vmatprep.subr.bf16.mxu0 %v14391_v25  ;;  %8511 = vmatprep.subr.bf16.mxu1 %v14394_v31  ;;  %v14421_v25 = vld [vmem:[#allocation16 + $0x8c] ss:$48 sps:$4 sm:$0xff]  }
0x12d8   : > { %8405 = vmatprep.mubr.bf16.mxu0 %v19234_v48  ;;  %v17771_v44 = vpop.f32.mrf.mxu0 }
0x12d9   : > { %8439 = vmatpush1.bf16.msra.mxu0 %v14389_v5  ;;  %v17761_v57 = vpop.f32.mrf.mxu1  ;;  %v14424_v5 = vld [vmem:[#allocation16 + $0x68c] ss:$48 sps:$4 sm:$0xff]  }
0x12da   : > { %8512 = vmatpush1.bf16.msra.mxu1 %v14392_v59  ;;  %8440 = vmatprep.subr.bf16.mxu0 %v14397_v49  ;;  %v17779_v55 = vpop.f32.mrf.mxu0  ;;  %v14419_v49 = vld [vmem:[#allocation16 + $0x88] ss:$48 sps:$4 sm:$0xff]  }
0x12db   : > { %v17765_v47 = vpop.f32.mrf.mxu1  ;;  %8513 = vmatprep.subr.bf16.mxu1 %v14400_v56 }
0x12dc   : > { %8406 = vmatmul.mubr.bf16.gmra.mxu0 %v17642_v13  ;;  %v17787_v6 = vpop.f32.mrf.mxu0 }
0x12dd   : > { %8333 = vmatmul.mubr.bf16.gmra.mxu1 %v17646_v34  ;;  %8441 = vmatpush1.bf16.msra.mxu0 %v14395_v29  ;;  %v17769_v16 = vpop.f32.mrf.mxu1  ;;  %v14422_v29 = vld [vmem:[#allocation16 + $0x688] ss:$48 sps:$4 sm:$0xff]  }
0x12de   : > { %8342 = vmatprep.mubr.bf16.mxu1 %v17663_v28  ;;  %8514 = vmatpush1.bf16.msra.mxu1 %v14398_v33  ;;  %v17795_v56 = vpop.f32.mrf.mxu0 }
0x12df   : > { %v17774_v11 = vpop.f32.mrf.mxu1  ;;  %8442 = vmatprep.subr.bf16.mxu0 %v14403_v10  ;;  %8515 = vmatprep.subr.bf16.mxu1 %v14406_v32  ;;  %v14427_v10 = vld [vmem:[#allocation16 + $0x2c] ss:$48 sps:$4 sm:$0xff]  }
0x12e0   : > { %8415 = vmatprep.mubr.bf16.mxu0 %v19234_v48  ;;  %v14430_v32 = vld [vmem:[#allocation16 + $0x62c] ss:$48 sps:$4 sm:$0xff]  }
0x12e1   : > { %8443 = vmatpush1.bf16.msra.mxu0 %v14401_v14  ;;  %v17777_v9 = vpop.f32.mrf.mxu1 }
0x12e2   : > { %8516 = vmatpush1.bf16.msra.mxu1 %v14404_v1  ;;  %8444 = vmatprep.subr.bf16.mxu0 %v14409_v51  ;;  %v14425_v1 = vld [vmem:[#allocation16 + $0x28] ss:$48 sps:$4 sm:$0xff]   ;;  %v17803_v51 = vpop.f32.mrf.mxu0 }
0x12e3   : > { %v17781_v15 = vpop.f32.mrf.mxu1  ;;  %8517 = vmatprep.subr.bf16.mxu1 %v14412_v37  ;;  %v14428_v37 = vld [vmem:[#allocation16 + $0x628] ss:$48 sps:$4 sm:$0xff]  }
0x12e4   : > { %8416 = vmatmul.mubr.bf16.gmra.mxu0 %v17671_v36 }
0x12e5   : > { %8343 = vmatmul.mubr.bf16.gmra.mxu1 %v17675_v61  ;;  %8445 = vmatpush1.bf16.msra.mxu0 %v14407_v22  ;;  %v17785_v46 = vpop.f32.mrf.mxu1  ;;  %v14433_v22 = vld [vmem:[#allocation16 + $0x5cc] ss:$48 sps:$4 sm:$0xff]  }
0x12e6   : > { %8352 = vmatprep.mubr.bf16.mxu1 %v17690_v41  ;;  %8518 = vmatpush1.bf16.msra.mxu1 %v14410_v24 }
0x12e7   : > { %v17790_v31 = vpop.f32.mrf.mxu1  ;;  %8446 = vmatprep.subr.bf16.mxu0 %v14415_v18  ;;  %8519 = vmatprep.subr.bf16.mxu1 %v14418_v2  ;;  %v14436_v18 = vld [vmem:[#allocation19 + $0xac] ss:$12 sps:$4 sm:$0xff]  }
0x12e8   : > { %8425 = vmatprep.mubr.bf16.mxu0 %v19234_v48 }
0x12e9   : > { %8447 = vmatpush1.bf16.msra.mxu0 %v14413_v4  ;;  %v17793_v59 = vpop.f32.mrf.mxu1  ;;  %v14431_v4 = vld [vmem:[#allocation16 + $0x5c8] ss:$48 sps:$4 sm:$0xff]  }
0x12ea   : > { %8520 = vmatpush1.bf16.msra.mxu1 %v14416_v62  ;;  %8448 = vmatprep.subr.bf16.mxu0 %v14421_v25  ;;  %v17811_v62 = vpop.f32.mrf.mxu0  ;;  %v14434_v25 = vld [vmem:[#allocation19 + $0xa8] ss:$12 sps:$4 sm:$0xff]  }
0x12eb   : > { %v17797_v33 = vpop.f32.mrf.mxu1  ;;  %8521 = vmatprep.subr.bf16.mxu1 %v14424_v5 }
0x12ec   : > { %8426 = vmatmul.mubr.bf16.gmra.mxu0 %v17695_v26 }
0x12ed   : > { %8353 = vmatmul.mubr.bf16.gmra.mxu1 %v17697_v35  ;;  %8449 = vmatpush1.bf16.msra.mxu0 %v14419_v49  ;;  %v17801_v14 = vpop.f32.mrf.mxu1  ;;  %v14442_v49 = vld [vmem:[#allocation19 + $0x94] ss:$12 sps:$4 sm:$0xff]  }
0x12ee   : > { %8468 = vmatprep.mubr.bf16.mxu0 %v17612_v27  ;;  %8522 = vmatpush1.bf16.msra.mxu1 %v14422_v29  ;;  %v14439_v27 = vld [vmem:[#allocation16 + $0x56c] ss:$48 sps:$4 sm:$0xff]   ;;  %v14437_v29 = vld [vmem:[#allocation16 + $0x568] ss:$48 sps:$4 sm:$0xff]  }
0x12ef   : > { %v17806_v24 = vpop.f32.mrf.mxu1  ;;  %8450 = vmatprep.subr.bf16.mxu0 %v14427_v10  ;;  %8523 = vmatprep.subr.bf16.mxu1 %v14430_v32  ;;  %v17816_v10 = vpop.f32.mrf.mxu0  ;;  %v14440_v32 = vld [vmem:[#allocation19 + $0x90] ss:$12 sps:$4 sm:$0xff]  }
0x12f0   : > { %8541 = vmatprep.mubr.bf16.mxu1 %v19234_v48 }
0x12f1   : > { %8451 = vmatpush1.bf16.msra.mxu0 %v14425_v1  ;;  %v17809_v2 = vpop.f32.mrf.mxu1  ;;  %v14445_v1 = vld [vmem:[#allocation16 + $0x50c] ss:$48 sps:$4 sm:$0xff]  }
0x12f2   : > { %8524 = vmatpush1.bf16.msra.mxu1 %v14428_v37  ;;  %8452 = vmatprep.subr.bf16.mxu0 %v14433_v22  ;;  %v14448_v37 = vld [vmem:[#allocation19 + $0x7c] ss:$12 sps:$4 sm:$0xff]  }
0x12f3   : > { %v17813_v5 = vpop.f32.mrf.mxu1  ;;  %10663 = vmatprep.subr.bf16.mxu1 %v14436_v18  ;;  %v14443_v22 = vld [vmem:[#allocation16 + $0x508] ss:$48 sps:$4 sm:$0xff]   ;;  %v17821_v18 = vpop.f32.mrf.mxu0 }
0x12f5   : > { %8453 = vmatpush2.bf16.msra.mxu0 %v14431_v4  ;;  %8542 = vmatmul.mubr.bf16.vlgmr.msra.gmra.mxu1 %v17614_v30  ;;  %v17818_v43 = vpop.f32.mrf.mxu1  ;;  %v14446_v30 = vld [vmem:[#allocation19 + $0x78] ss:$12 sps:$4 sm:$0xff]   ;;  %v14451_v4 = vld [vmem:[#allocation16 + $0x4ac] ss:$48 sps:$4 sm:$0xff]   ;;  %v17832_v38 = vpop.f32.mrf.mxu0 }
0x12f6   : > { %10664 = vmatpush1.bf16.msra.mxu1 %v14434_v25  ;;  %8454 = vmatprep.subr.bf16.mxu0 %v14439_v27  ;;  %v14454_v25 = vld [vmem:[#allocation19 + $0x64] ss:$12 sps:$4 sm:$0xff]   ;;  %v17825_v27 = vld [vmem:[#allocation17] sm:$0xff] }
0x12f7   : > { %10665 = vmatprep.subr.bf16.mxu1 %v14442_v49  ;;  %8551 = vmatprep.mubr.bf16.mxu1 %v19234_v48  ;;  %v17823_v54 = vpop.f32.mrf.mxu1  ;;  %v14449_v49 = vld [vmem:[#allocation16 + $0x4a8] ss:$48 sps:$4 sm:$0xff]   ;;  %v17841_v3 = vpop.f32.mrf.mxu0 }
0x12f9   : > { %8455 = vmatpush2.bf16.msra.mxu0 %v14437_v29  ;;  %v17830_v29 = vrot.slane %v17825_v27, %v19250_v53  ;;  %v17834_v7 = vpop.f32.mrf.mxu1  ;;  %v17848_v63 = vpop.f32.mrf.mxu0 }
0x12fa   : > { %10666 = vmatpush1.bf16.msra.mxu1 %v14440_v32  ;;  %8456 = vmatprep.subr.bf16.mxu0 %v14445_v1  ;;  %v14452_v32 = vld [vmem:[#allocation19 + $0x60] ss:$12 sps:$4 sm:$0xff]  }
0x12fb   : > { %10667 = vmatprep.subr.bf16.mxu1 %v14448_v37  ;;  %v14457_v1 = vld [vmem:[#allocation16 + $0x44c] ss:$48 sps:$4 sm:$0xff]   ;;  %v14460_v37 = vld [vmem:[#allocation19 + $0x4c] ss:$12 sps:$4 sm:$0xff]   ;;  %v7743_v45 = vadd.f32 %v17758_v17, %v17830_v29  ;;  %v17843_v12 = vpop.f32.mrf.mxu1 }
0x12fc   : > { %v14464_v17 = vld [vmem:[#allocation19 + $0x30] ss:$12 sps:$4 sm:$0xff]  }
0x12fd   : > { %8457 = vmatpush2.bf16.msra.mxu0 %v14443_v22  ;;  %8552 = vmatmul.mubr.bf16.gmra.mxu1 %v17642_v13  ;;  %v7747_v13 = vadd.f32 %v17765_v47, %v17830_v29  ;;  %v14455_v22 = vld [vmem:[#allocation16 + $0x448] ss:$48 sps:$4 sm:$0xff]  }
0x12fe   : > { %10668 = vmatpush1.bf16.msra.mxu1 %v14446_v30  ;;  %8458 = vmatprep.subr.bf16.mxu0 %v14451_v4  ;;  %v14458_v30 = vld [vmem:[#allocation19 + $0x48] ss:$12 sps:$4 sm:$0xff]   ;;  %v14463_v4 = vld [vmem:[#allocation16 + $0x3ec] ss:$48 sps:$4 sm:$0xff]   ;;  %v14461_v47 = vld [vmem:[#allocation16 + $0x3e8] ss:$48 sps:$4 sm:$0xff]  }
0x12ff   : > { %10669 = vmatprep.subr.bf16.mxu1 %v14454_v25  ;;  %8561 = vmatprep.mubr.bf16.mxu1 %v19234_v48  ;;  %v14466_v25 = vld [vmem:[#allocation19 + $0x34] ss:$12 sps:$4 sm:$0xff]   ;;  %v7820_v21 = vadd.f32 %v17779_v55, %v7747_v13  ;;  %v14467_v55 = vld [vmem:[#allocation16 + $0x388] ss:$48 sps:$4 sm:$0xff]  }
0x1301   : > { %8459 = vmatpush2.bf16.msra.mxu0 %v14449_v49  ;;  %v7816_v49 = vadd.f32 %v17763_v19, %v7743_v45  ;;  %v8595_v40 = vmax.f32 %v7820_v21, 0.0  ;;  %v14470_v45 = vld [vmem:[#allocation19 + $0x18] ss:$12 sps:$4 sm:$0xff]  }
0x1302   : > { %10670 = vmatpush1.bf16.msra.mxu1 %v14452_v32  ;;  %8460 = vmatprep.subr.bf16.mxu0 %v14457_v1  ;;  %v14469_v32 = vld [vmem:[#allocation16 + $0x38c] ss:$48 sps:$4 sm:$0xff]   ;;  %v17850_v1 = vpop.f32.mrf.mxu1 }
0x1303   : > { %10671 = vmatprep.subr.bf16.mxu1 %v14460_v37  ;;  %19277 = vst [vmem:[#allocation50_spill] sm:$0xff] %v17850_v1  ;;  %v14472_v37 = vld [vmem:[#allocation19 + $0x1c] ss:$12 sps:$4 sm:$0xff]   ;;  %v8583_v13 = vmax.f32 %v7816_v49, 0.0 }
0x1304   : > { %v17855_v19 = vpop.f32.mrf.mxu1 }
0x1305   : > { %8461 = vmatpush2.bf16.msra.mxu0 %v14455_v22  ;;  %8562 = vmatmul.mubr.bf16.gmra.mxu1 %v17671_v36  ;;  %v17853_v36 = vpop.f32.mrf.mxu0  ;;  %v14475_v22 = vld [vmem:[#allocation16 + $0x32c] ss:$48 sps:$4 sm:$0xff]  }
0x1306   : > { %10672 = vmatpush1.bf16.msra.mxu1 %v14458_v30  ;;  %8462 = vmatprep.subr.bf16.mxu0 %v14463_v4  ;;  %v14478_v30 = vld [vmem:[#allocation19 + $0x4] ss:$12 sps:$4 sm:$0xff]   ;;  %v17857_v4 = vpack.c.bf16 %v8595_v40, %v8583_v13  ;;  %v17863_v49 = vpop.f32.mrf.mxu1  ;;  %v14490_v13 = vld [vmem:[#allocation19 + $0x154] ss:$12 sps:$4 sm:$0xff]  }
0x1307   : > { %10673 = vmatprep.subr.bf16.mxu1 %v14466_v25  ;;  %8571 = vmatprep.mubr.bf16.mxu1 %v19234_v48  ;;  %v14473_v48 = vld [vmem:[#allocation16 + $0x328] ss:$48 sps:$4 sm:$0xff]   ;;  %v17860_v21 = vpop.f32.mrf.mxu0 }
0x1308   : > { %19278 = vst [vmem:[#allocation52_spill] sm:$0xff] %v17857_v4  ;;  %v14476_v25 = vld [vmem:[#allocation19] ss:$12 sps:$4 sm:$0xff]  }
0x1309   : > { %8463 = vmatpush2.bf16.msra.mxu0 %v14461_v47  ;;  %v14481_v47 = vld [vmem:[#allocation19 + $0x22c] ss:$12 sps:$4 sm:$0xff]   ;;  %v17865_v40 = vpop.f32.mrf.mxu0 }
0x130a   : > { %10674 = vmatpush1.bf16.msra.mxu1 %v14464_v17  ;;  %8464 = vmatprep.subr.bf16.mxu0 %v14469_v32  ;;  %v14484_v17 = vld [vmem:[#allocation19 + $0x16c] ss:$12 sps:$4 sm:$0xff]   ;;  %v14479_v32 = vld [vmem:[#allocation19 + $0x228] ss:$12 sps:$4 sm:$0xff]  }
0x130b   : > { %10675 = vmatprep.subr.bf16.mxu1 %v14472_v37  ;;  %v14487_v37 = vld [vmem:[#allocation19 + $0x214] ss:$12 sps:$4 sm:$0xff]  }
0x130d   : > { %8465 = vmatpush2.bf16.msra.mxu0 %v14467_v55  ;;  %8572 = vmatmul.mubr.bf16.gmra.mxu1 %v17695_v26  ;;  %v14482_v26 = vld [vmem:[#allocation19 + $0x168] ss:$12 sps:$4 sm:$0xff]   ;;  %v17867_v55 = vpop.f32.mrf.mxu1 }
0x130e   : > { %10676 = vmatpush1.bf16.msra.mxu1 %v14470_v45  ;;  %10695 = vmatprep.mubr.bf16.mxu1 %v17857_v4 }
0x130f   : > { %8466 = vmatprep.subr.bf16.mxu0 %v14475_v22  ;;  %10677 = vmatprep.subr.bf16.mxu1 %v14478_v30  ;;  %v14485_v22 = vld [vmem:[#allocation19 + $0x210] ss:$12 sps:$4 sm:$0xff]  }
0x1311   : > { %8467 = vmatpush2.bf16.msra.mxu0 %v14473_v48  ;;  %v14488_v48 = vld [vmem:[#allocation19 + $0x150] ss:$12 sps:$4 sm:$0xff]  }
0x1312   : > { %10678 = vmatpush1.bf16.msra.mxu1 %v14476_v25  ;;  %10736 = vmatprep.subr.bf16.mxu0 %v14481_v47  ;;  %v14493_v25 = vld [vmem:[#allocation19 + $0x1fc] ss:$12 sps:$4 sm:$0xff]   ;;  %v17873_v47 = vpop.f32.mrf.mxu1 }
0x1313   : > { %10679 = vmatprep.subr.bf16.mxu1 %v14484_v17  ;;  %19279 = vst [vmem:[#allocation61_spill] sm:$0xff] %v17873_v47  ;;  %v19280_v17 = vld [vmem:[#allocation31_spill] sm:$0xff] }
0x1314   : > { %v17869_v45 = vpop.f32.mrf.mxu0  ;;  %8469 = vmatmul.mubr.bf16.vlgmr.msra.gmra.mxu0 %v17617_v8  ;;  %v19111_v52 = vsub.s32 3, %v19280_v17  ;;  %v17878_v4 = vpop.f32.mrf.mxu1 }
0x1315   : > { %8478 = vmatprep.mubr.bf16.mxu0 %v17634_v39  ;;  %10737 = vmatpush1.bf16.msra.mxu0 %v14479_v32  ;;  %v14494_v39 = vld [vmem:[#allocation19 + $0x138] ss:$12 sps:$4 sm:$0xff]   ;;  %19281 = vst [vmem:[#allocation59_spill] sm:$0xff] %v17878_v4 }
0x1316   : > { %v7888_v30 = vpop.f32.mrf.mxu0  ;;  %10680 = vmatpush2.bf16.msra.mxu1 %v14482_v26  ;;  %10738 = vmatprep.subr.bf16.mxu0 %v14487_v37  ;;  %v14499_v32 = vld [vmem:[#allocation19 + $0x1e4] ss:$12 sps:$4 sm:$0xff]   ;;  %v17891_v53 = vpop.f32.mrf.mxu1 }
0x1317   : > { %10681 = vmatprep.subr.bf16.mxu1 %v14490_v13  ;;  %v14502_v26 = vld [vmem:[#allocation19 + $0x124] ss:$12 sps:$4 sm:$0xff]   ;;  %v17886_v13 = vrot.slane %v17825_v27, %v19111_v52  ;;  %19282 = vst [vmem:[#allocation31_spill] sm:$0xff] %v17891_v53 }
0x1318   : > { %v17875_v23 = vpop.f32.mrf.mxu0  ;;  %v17899_v1 = vpop.f32.mrf.mxu1 }
0x1319   : > { %10739 = vmatpush1.bf16.msra.mxu0 %v14485_v22  ;;  %v14497_v22 = vld [vmem:[#allocation19 + $0x1e0] ss:$12 sps:$4 sm:$0xff]   ;;  %v7889_v52 = vadd.f32 %v7888_v30, %v17886_v13  ;;  %v17907_v30 = vrot.slane %v17825_v27, %v19251_v60  ;;  %v14520_v60 = vld [vmem:[#allocation19 + $0xdc] ss:$12 sps:$4 sm:$0xff]  }
0x131a   : > { %v7892_v8 = vpop.f32.mrf.mxu0  ;;  %10682 = vmatpush2.bf16.msra.mxu1 %v14488_v48  ;;  %10740 = vmatprep.subr.bf16.mxu0 %v14493_v25  ;;  %v14500_v25 = vld [vmem:[#allocation19 + $0x120] ss:$12 sps:$4 sm:$0xff]  }
0x131b   : > { %10683 = vmatprep.subr.bf16.mxu1 %v14496_v42  ;;  %v14505_v42 = vld [vmem:[#allocation19 + $0x1cc] ss:$12 sps:$4 sm:$0xff]   ;;  %v7893_v47 = vadd.f32 %v7892_v8, %v17886_v13  ;;  %v14514_v8 = vld [vmem:[#allocation19 + $0xf4] ss:$12 sps:$4 sm:$0xff]  }
0x131c   : > { %v17880_v37 = vpop.f32.mrf.mxu0  ;;  %8479 = vmatmul.mubr.bf16.gmra.mxu0 %v17646_v34  ;;  %v14508_v34 = vld [vmem:[#allocation19 + $0x10c] ss:$12 sps:$4 sm:$0xff]  }
0x131d   : > { %8488 = vmatprep.mubr.bf16.mxu0 %v17663_v28  ;;  %10741 = vmatpush1.bf16.msra.mxu0 %v14491_v58  ;;  %v14503_v28 = vld [vmem:[#allocation19 + $0x1c8] ss:$12 sps:$4 sm:$0xff]   ;;  %v7966_v53 = vadd.f32 %v17843_v12, %v7893_v47  ;;  %v14512_v12 = vld [vmem:[#allocation19 + $0xf0] ss:$12 sps:$4 sm:$0xff]  }
0x131e   : > { %v17889_v48 = vpop.f32.mrf.mxu0  ;;  %10684 = vmatpush2.bf16.msra.mxu1 %v14494_v39  ;;  %10742 = vmatprep.subr.bf16.mxu0 %v14499_v32  ;;  %v14506_v39 = vld [vmem:[#allocation19 + $0x108] ss:$12 sps:$4 sm:$0xff]  }
0x131f   : > { %10685 = vmatprep.subr.bf16.mxu1 %v14502_v26  ;;  %v14511_v32 = vld [vmem:[#allocation19 + $0x1b4] ss:$12 sps:$4 sm:$0xff]   ;;  %v14517_v47 = vld [vmem:[#allocation19 + $0x19c] ss:$12 sps:$4 sm:$0xff]  }
0x1320   : > { %v17894_v4 = vpop.f32.mrf.mxu0 }
0x1321   : > { %10743 = vmatpush1.bf16.msra.mxu0 %v14497_v22  ;;  %v7962_v22 = vadd.f32 %v17823_v54, %v7889_v52  ;;  %v7757_v52 = vadd.f32 %v17781_v15, %v17830_v29 }
0x1322   : > { %v17897_v58 = vpop.f32.mrf.mxu0  ;;  %10686 = vmatpush2.bf16.msra.mxu1 %v14500_v25  ;;  %10744 = vmatprep.subr.bf16.mxu0 %v14505_v42  ;;  %v14509_v25 = vld [vmem:[#allocation19 + $0x1b0] ss:$12 sps:$4 sm:$0xff]  }
0x1323   : > { %10687 = vmatprep.subr.bf16.mxu1 %v14508_v34  ;;  %v7745_v34 = vadd.f32 %v17761_v57, %v17907_v30 }
0x1324   : > { %v17902_v26 = vpop.f32.mrf.mxu0  ;;  %8489 = vmatmul.mubr.bf16.gmra.mxu0 %v17675_v61  ;;  %v17915_v61 = vpop.f32.mrf.mxu1 }
0x1325   : > { %19283 = vst [vmem:[#allocation63_spill] sm:$0xff] %v17902_v26  ;;  %8498 = vmatprep.mubr.bf16.mxu0 %v17690_v41  ;;  %10745 = vmatpush1.bf16.msra.mxu0 %v14503_v28  ;;  %19284 = vst [vmem:[#allocation64_spill] sm:$0xff] %v17915_v61  ;;  %v8597_v26 = vmax.f32 %v7966_v53, 0.0  ;;  %v7741_v41 = vadd.f32 %v17753_v0, %v17907_v30  ;;  %v8585_v28 = vmax.f32 %v7962_v22, 0.0  ;;  %v14518_v53 = vld [vmem:[#allocation19 + $0xd8] ss:$12 sps:$4 sm:$0xff]  }
0x1326   : > { %v17911_v42 = vpop.f32.mrf.mxu0  ;;  %10688 = vmatpush2.bf16.msra.mxu1 %v14506_v39  ;;  %10746 = vmatprep.subr.bf16.mxu0 %v14511_v32  ;;  %v14515_v39 = vld [vmem:[#allocation19 + $0x198] ss:$12 sps:$4 sm:$0xff]   ;;  %v7753_v32 = vadd.f32 %v17774_v11, %v17830_v29  ;;  %v7818_v61 = vadd.f32 %v17771_v44, %v7745_v34  ;;  %v17928_v15 = vpop.f32.mrf.mxu1  ;;  %v7830_v22 = vadd.f32 %v17811_v62, %v7757_v52 }
0x1327   : > { %10689 = vmatprep.subr.bf16.mxu1 %v14514_v8  ;;  %v14523_v8 = vld [vmem:[#allocation19 + $0x184] ss:$12 sps:$4 sm:$0xff]   ;;  %v7814_v11 = vadd.f32 %v17755_v50, %v7741_v41  ;;  %v7755_v62 = vadd.f32 %v17777_v9, %v17907_v30  ;;  %v7767_v41 = vadd.f32 %v17797_v33, %v17830_v29  ;;  %v7763_v9 = vadd.f32 %v17790_v31, %v17830_v29 }
0x1328   : > { %v17919_v54 = vpop.f32.mrf.mxu0  ;;  %v14526_v0 = vld [vmem:[#allocation19 + $0xc4] ss:$12 sps:$4 sm:$0xff]   ;;  %v7826_v44 = vadd.f32 %v17795_v56, %v7753_v32  ;;  %v8594_v34 = vmax.f32 %v7818_v61, 0.0  ;;  %v17943_v52 = vpop.f32.mrf.mxu1  ;;  %v8619_v50 = vmax.f32 %v7830_v22, 0.0  ;;  %v14527_v32 = vld [vmem:[#allocation19 + $0x2e8] ss:$12 sps:$4 sm:$0xff]  }
0x1329   : > { %19285 = vst [vmem:[#allocation65_spill] sm:$0xff] %v17919_v54  ;;  %10747 = vmatpush1.bf16.msra.mxu0 %v14509_v25  ;;  %v17930_v54 = vpack.c.bf16 %v8597_v26, %v8585_v28  ;;  %v14529_v26 = vld [vmem:[#allocation19 + $0x2ec] ss:$12 sps:$4 sm:$0xff]   ;;  %v8582_v56 = vmax.f32 %v7814_v11, 0.0  ;;  %v7828_v33 = vadd.f32 %v17803_v51, %v7755_v62  ;;  %v14535_v11 = vld [vmem:[#allocation19 + $0x2d4] ss:$12 sps:$4 sm:$0xff]  }
0x132a   : > { %v17925_v57 = vpop.f32.mrf.mxu0  ;;  %10690 = vmatpush2.bf16.msra.mxu1 %v14512_v12  ;;  %10748 = vmatprep.subr.bf16.mxu0 %v14517_v47  ;;  %v14521_v12 = vld [vmem:[#allocation19 + $0x180] ss:$12 sps:$4 sm:$0xff]   ;;  %v8607_v61 = vmax.f32 %v7826_v44, 0.0  ;;  %v17958_v22 = vpop.f32.mrf.mxu1  ;;  %v14541_v62 = vld [vmem:[#allocation19 + $0x2bc] ss:$12 sps:$4 sm:$0xff]  }
0x132b   : > { %10691 = vmatprep.subr.bf16.mxu1 %v14520_v60  ;;  %19286 = vst [vmem:[#allocation66_spill] sm:$0xff] %v17930_v54  ;;  %v14524_v60 = vld [vmem:[#allocation19 + $0xc0] ss:$12 sps:$4 sm:$0xff]  }
0x132c   : > { %v17933_v25 = vpop.f32.mrf.mxu0  ;;  %8499 = vmatmul.mubr.bf16.gmra.mxu0 %v17697_v35  ;;  %v14532_v35 = vld [vmem:[#allocation19 + $0x3ac] ss:$12 sps:$4 sm:$0xff]   ;;  %v17961_v44 = vpack.c.bf16 %v8619_v50, %v8607_v61  ;;  %v14544_v50 = vld [vmem:[#allocation19 + $0x37c] ss:$12 sps:$4 sm:$0xff]  }
0x132d   : > { %10749 = vmatpush1.bf16.msra.mxu0 %v14515_v39  ;;  %10768 = vmatprep.mubr.bf16.mxu0 %v17930_v54  ;;  %v7751_v39 = vadd.f32 %v17769_v16, %v17907_v30  ;;  %v14538_v16 = vld [vmem:[#allocation19 + $0x394] ss:$12 sps:$4 sm:$0xff]   ;;  %v14539_v61 = vld [vmem:[#allocation19 + $0x2b8] ss:$12 sps:$4 sm:$0xff]  }
0x132e   : > { %v17939_v47 = vpop.f32.mrf.mxu0  ;;  %10692 = vmatpush2.bf16.msra.mxu1 %v14518_v53  ;;  %10750 = vmatprep.subr.bf16.mxu0 %v14523_v8  ;;  %v14530_v8 = vld [vmem:[#allocation19 + $0x3a8] ss:$12 sps:$4 sm:$0xff]  }
0x132f   : > { %10693 = vmatprep.subr.bf16.mxu1 %v14526_v0  ;;  %v17955_v0 = vpack.c.bf16 %v8594_v34, %v8582_v56  ;;  %v7824_v31 = vadd.f32 %v17787_v6, %v7751_v39  ;;  %v14536_v34 = vld [vmem:[#allocation19 + $0x390] ss:$12 sps:$4 sm:$0xff]   ;;  %v7777_v56 = vadd.f32 %v17813_v5, %v17830_v29  ;;  %v7761_v39 = vadd.f32 %v17785_v46, %v17907_v30 }
0x1330   : > { %v17947_v28 = vpop.f32.mrf.mxu0  ;;  %v14547_v46 = vld [vmem:[#allocation19 + $0x2a4] ss:$12 sps:$4 sm:$0xff]  }
0x1331   : > { %10751 = vmatpush1.bf16.msra.mxu0 %v14521_v12  ;;  %v7840_v12 = vadd.f32 %v17841_v3, %v7767_v41  ;;  %v8618_v3 = vmax.f32 %v7828_v33, 0.0  ;;  %v6228_v33 = vsub.s32 5, %v19280_v17 }
0x1332   : > { %v17953_v53 = vpop.f32.mrf.mxu0  ;;  %10694 = vmatpush2.bf16.msra.mxu1 %v14524_v60  ;;  %10752 = vmatprep.subr.bf16.mxu0 %v14529_v26  ;;  %v14533_v60 = vld [vmem:[#allocation19 + $0x2d0] ss:$12 sps:$4 sm:$0xff]   ;;  %v7836_v26 = vadd.f32 %v17821_v18, %v7763_v9  ;;  %v8606_v18 = vmax.f32 %v7824_v31, 0.0 }
0x1333   : > { %10809 = vmatprep.subr.bf16.mxu1 %v14532_v35  ;;  %v7765_v35 = vadd.f32 %v17793_v59, %v17907_v30  ;;  %v8643_v41 = vmax.f32 %v7840_v12, 0.0  ;;  %v7773_v59 = vadd.f32 %v17806_v24, %v17830_v29  ;;  %v14550_v31 = vld [vmem:[#allocation19 + $0x364] ss:$12 sps:$4 sm:$0xff]   ;;  %v7834_v24 = vadd.f32 %v17816_v10, %v7761_v39 }
0x1334   : > { %v17968_v51 = vpop.f32.mrf.mxu0  ;;  %v8631_v9 = vmax.f32 %v7836_v26, 0.0  ;;  %v7775_v10 = vadd.f32 %v17809_v2, %v17907_v30 }
0x1335   : > { %v17964_v54 = vpop.f32.mrf.mxu1  ;;  %10696 = vmatmul.mubr.bf16.vlgmr.msra.gmra.mxu1 %v17955_v0  ;;  %10753 = vmatpush2.bf16.msra.mxu0 %v14527_v32  ;;  %v7838_v5 = vadd.f32 %v17832_v38, %v7765_v35  ;;  %v17994_v38 = vrot.slane %v17825_v27, %v6228_v33  ;;  %v14553_v35 = vld [vmem:[#allocation19 + $0x28c] ss:$12 sps:$4 sm:$0xff]   ;;  %v8630_v39 = vmax.f32 %v7834_v24, 0.0 }
0x1336   : > { %10705 = vmatprep.mubr.bf16.mxu1 %v17961_v44  ;;  %10810 = vmatpush1.bf16.msra.mxu1 %v14530_v8  ;;  %v8107_v8 = vpop.f32.mrf.mxu0  ;;  %v17986_v26 = vpack.c.bf16 %v8643_v41, %v8631_v9 }
0x1337   : > { %v8034_v6 = vpop.f32.mrf.mxu1  ;;  %10754 = vmatprep.subr.bf16.mxu0 %v14535_v11  ;;  %10811 = vmatprep.subr.bf16.mxu1 %v14538_v16  ;;  %v14542_v11 = vld [vmem:[#allocation19 + $0x378] ss:$12 sps:$4 sm:$0xff]   ;;  %v17982_v16 = vpack.c.bf16 %v8618_v3, %v8606_v18 }
0x1338   : > { %v17996_v3 = vpop.f32.mrf.mxu0 }
0x1339   : > { %v17977_v32 = vpop.f32.mrf.mxu1  ;;  %10755 = vmatpush2.bf16.msra.mxu0 %v14533_v60  ;;  %v7850_v60 = vadd.f32 %v17865_v40, %v7777_v56  ;;  %v14548_v40 = vld [vmem:[#allocation19 + $0x360] ss:$12 sps:$4 sm:$0xff]  }
0x133a   : > { %10812 = vmatpush1.bf16.msra.mxu1 %v14536_v34  ;;  %10756 = vmatprep.subr.bf16.mxu0 %v14541_v62  ;;  %v14545_v34 = vld [vmem:[#allocation19 + $0x2a0] ss:$12 sps:$4 sm:$0xff]   ;;  %v7846_v62 = vadd.f32 %v17853_v36, %v7773_v59  ;;  %v14551_v59 = vld [vmem:[#allocation19 + $0x288] ss:$12 sps:$4 sm:$0xff]   ;;  %v8111_v2 = vpop.f32.mrf.mxu0 }
0x133b   : > { %v8038_v12 = vpop.f32.mrf.mxu1  ;;  %10813 = vmatprep.subr.bf16.mxu1 %v14544_v50  ;;  %v8642_v50 = vmax.f32 %v7838_v5, 0.0  ;;  %v14556_v56 = vld [vmem:[#allocation19 + $0x34c] ss:$12 sps:$4 sm:$0xff]   ;;  %v8667_v36 = vmax.f32 %v7850_v60, 0.0  ;;  %v14554_v5 = vld [vmem:[#allocation19 + $0x348] ss:$12 sps:$4 sm:$0xff]  }
0x133c   : > { %v8039_v18 = vadd.f32 %v8038_v12, %v17994_v38  ;;  %v8655_v33 = vmax.f32 %v7846_v62, 0.0  ;;  %v14559_v60 = vld [vmem:[#allocation19 + $0x274] ss:$12 sps:$4 sm:$0xff]  }
0x133d   : > { %v17989_v29 = vpop.f32.mrf.mxu1  ;;  %10706 = vmatmul.mubr.bf16.gmra.mxu1 %v17982_v16  ;;  %10757 = vmatpush2.bf16.msra.mxu0 %v14539_v61  ;;  %v7771_v61 = vadd.f32 %v17801_v14, %v17907_v30  ;;  %v14562_v14 = vld [vmem:[#allocation19 + $0x334] ss:$12 sps:$4 sm:$0xff]   ;;  %v18016_v30 = vrot.slane %v17825_v27, %v19253_v20 }
0x133e   : > { %10715 = vmatprep.mubr.bf16.mxu1 %v17986_v26  ;;  %10814 = vmatpush1.bf16.msra.mxu1 %v14542_v11  ;;  %v8035_v11 = vadd.f32 %v8034_v6, %v17994_v38  ;;  %v8112_v24 = vadd.f32 %v8111_v2, %v8039_v18 }
0x133f   : > { %v18001_v41 = vpop.f32.mrf.mxu1  ;;  %10758 = vmatprep.subr.bf16.mxu0 %v14547_v46  ;;  %10815 = vmatprep.subr.bf16.mxu1 %v14550_v31  ;;  %v18009_v46 = vpack.c.bf16 %v8642_v50, %v8630_v39  ;;  %v7848_v31 = vadd.f32 %v17860_v21, %v7775_v10  ;;  %v7844_v6 = vadd.f32 %v17848_v63, %v7771_v61  ;;  %v14557_v21 = vld [vmem:[#allocation19 + $0x270] ss:$12 sps:$4 sm:$0xff]   ;;  %v18026_v50 = vpop.f32.mrf.mxu0 }
0x1340   : > { %v14560_v10 = vld [vmem:[#allocation19 + $0x330] ss:$12 sps:$4 sm:$0xff]   ;;  %v7903_v63 = vadd.f32 %v17897_v58, %v17886_v13 }
0x1341   : > { %v18006_v9 = vpop.f32.mrf.mxu1  ;;  %10759 = vmatpush2.bf16.msra.mxu0 %v14545_v34  ;;  %v18018_v34 = vpack.c.bf16 %v8667_v36, %v8655_v33  ;;  %v8666_v36 = vmax.f32 %v7848_v31, 0.0  ;;  %v14568_v39 = vld [vmem:[#allocation19 + $0x31c] ss:$12 sps:$4 sm:$0xff]   ;;  %v8654_v61 = vmax.f32 %v7844_v6, 0.0  ;;  %v14566_v31 = vld [vmem:[#allocation19 + $0x318] ss:$12 sps:$4 sm:$0xff]  }
0x1342   : > { %10816 = vmatpush1.bf16.msra.mxu1 %v14548_v40  ;;  %10760 = vmatprep.subr.bf16.mxu0 %v14553_v35  ;;  %v7891_v40 = vadd.f32 %v17875_v23, %v18016_v30  ;;  %v8108_v35 = vadd.f32 %v8107_v8, %v8035_v11  ;;  %v7887_v23 = vadd.f32 %v17869_v45, %v18016_v30  ;;  %v8599_v8 = vmax.f32 %v8112_v24, 0.0  ;;  %v14563_v11 = vld [vmem:[#allocation19 + $0x258] ss:$12 sps:$4 sm:$0xff]  }
0x1343   : > { %v18012_v12 = vpop.f32.mrf.mxu1  ;;  %10817 = vmatprep.subr.bf16.mxu1 %v14556_v56  ;;  %v14565_v56 = vld [vmem:[#allocation19 + $0x25c] ss:$12 sps:$4 sm:$0xff]   ;;  %v7976_v45 = vadd.f32 %v17867_v55, %v7903_v63  ;;  %v14574_v24 = vld [vmem:[#allocation19 + $0x304] ss:$12 sps:$4 sm:$0xff]   ;;  %v7901_v55 = vadd.f32 %v17894_v4, %v18016_v30  ;;  %v7897_v4 = vadd.f32 %v17880_v37, %v18016_v30 }
0x1344   : > { %v7964_v2 = vadd.f32 %v17834_v7, %v7891_v40  ;;  %v8587_v58 = vmax.f32 %v8108_v35, 0.0  ;;  %v7960_v6 = vadd.f32 %v17818_v43, %v7887_v23  ;;  %v14569_v35 = vld [vmem:[#allocation19 + $0x240] ss:$12 sps:$4 sm:$0xff]  }
0x1345   : > { %v18021_v62 = vpop.f32.mrf.mxu1  ;;  %10716 = vmatmul.mubr.bf16.gmra.mxu1 %v18009_v46  ;;  %10761 = vmatpush2.bf16.msra.mxu0 %v14551_v59  ;;  %v7899_v59 = vadd.f32 %v17889_v48, %v17886_v13  ;;  %v14571_v48 = vld [vmem:[#allocation19 + $0x244] ss:$12 sps:$4 sm:$0xff]   ;;  %v14572_v43 = vld [vmem:[#allocation19 + $0x300] ss:$12 sps:$4 sm:$0xff]   ;;  %v8621_v63 = vmax.f32 %v7976_v45, 0.0 }
0x1346   : > { %10725 = vmatprep.mubr.bf16.mxu1 %v18018_v34  ;;  %10818 = vmatpush1.bf16.msra.mxu1 %v14554_v5  ;;  %v18040_v5 = vpop.f32.mrf.mxu0  ;;  %v14580_v23 = vld [vmem:[#allocation19 + $0x46c] ss:$12 sps:$4 sm:$0xff]   ;;  %v14578_v45 = vld [vmem:[#allocation19 + $0x468] ss:$12 sps:$4 sm:$0xff]  }
0x1347   : > { %v18031_v18 = vpop.f32.mrf.mxu1  ;;  %10762 = vmatprep.subr.bf16.mxu0 %v14559_v60  ;;  %10819 = vmatprep.subr.bf16.mxu1 %v14562_v14  ;;  %v18042_v60 = vpack.c.bf16 %v8666_v36, %v8654_v61  ;;  %v7972_v7 = vadd.f32 %v17855_v19, %v7899_v59  ;;  %v14577_v36 = vld [vmem:[#allocation19 + $0x52c] ss:$12 sps:$4 sm:$0xff]   ;;  %v7913_v19 = vadd.f32 %v17925_v57, %v17886_v13 }
0x1348   : > { %v7909_v59 = vadd.f32 %v17911_v42, %v17886_v13  ;;  %v7974_v57 = vadd.f32 %v17863_v49, %v7901_v55  ;;  %v14586_v42 = vld [vmem:[#allocation19 + $0x454] ss:$12 sps:$4 sm:$0xff]   ;;  %v14581_v55 = vld [vmem:[#allocation19 + $0x510] ss:$12 sps:$4 sm:$0xff]  }
0x1349   : > { %v18037_v33 = vpop.f32.mrf.mxu1  ;;  %10763 = vmatpush2.bf16.msra.mxu0 %v14557_v21  ;;  %v18048_v21 = vpack.c.bf16 %v8599_v8, %v8587_v58  ;;  %v8584_v8 = vmax.f32 %v7960_v6, 0.0  ;;  %v8609_v61 = vmax.f32 %v7972_v7, 0.0  ;;  %v7986_v37 = vadd.f32 %v17899_v1, %v7913_v19  ;;  %v19290_v7 = vld [vmem:[#allocation50_spill] sm:$0xff] }
0x134a   : > { %10820 = vmatpush1.bf16.msra.mxu1 %v14560_v10  ;;  %10764 = vmatprep.subr.bf16.mxu0 %v14565_v56  ;;  %v8596_v10 = vmax.f32 %v7964_v2, 0.0  ;;  %v18056_v56 = vpop.f32.mrf.mxu0  ;;  %v14575_v2 = vld [vmem:[#allocation19 + $0x528] ss:$12 sps:$4 sm:$0xff]  }
0x134b   : > { %v18045_v14 = vpop.f32.mrf.mxu1  ;;  %10821 = vmatprep.subr.bf16.mxu1 %v14568_v39  ;;  %19287 = vst [vmem:[#allocation67_spill] sm:$0xff] %v18048_v21  ;;  %v18077_v6 = vpack.c.bf16 %v8621_v63, %v8609_v61  ;;  %v14584_v63 = vld [vmem:[#allocation19 + $0x450] ss:$12 sps:$4 sm:$0xff]  }
0x134c   : > { %v18069_v58 = vpack.c.bf16 %v8596_v10, %v8584_v8  ;;  %v19291_v10 = vld [vmem:[#allocation59_spill] sm:$0xff]  ;;  %v8645_v8 = vmax.f32 %v7986_v37, 0.0 }
0x134d   : > { %v18051_v40 = vpop.f32.mrf.mxu1  ;;  %10726 = vmatmul.mubr.bf16.gmra.mxu1 %v18042_v60  ;;  %10765 = vmatpush2.bf16.msra.mxu0 %v14563_v11  ;;  %19289 = vst [vmem:[#allocation69_spill] sm:$0xff] %v18077_v6  ;;  %v7982_v49 = vadd.f32 %v19291_v10, %v7909_v59  ;;  %v14592_v59 = vld [vmem:[#allocation19 + $0x43c] ss:$12 sps:$4 sm:$0xff]  }
0x134e   : > { %10822 = vmatpush1.bf16.msra.mxu1 %v14566_v31  ;;  %10841 = vmatprep.mubr.bf16.mxu1 %v18048_v21  ;;  %19288 = vst [vmem:[#allocation68_spill] sm:$0xff] %v18069_v58  ;;  %v18072_v31 = vpop.f32.mrf.mxu0  ;;  %v19294_v37 = vld [vmem:[#allocation31_spill] sm:$0xff] }
0x134f   : > { %v18061_v39 = vpop.f32.mrf.mxu1  ;;  %10766 = vmatprep.subr.bf16.mxu0 %v14571_v48  ;;  %10823 = vmatprep.subr.bf16.mxu1 %v14574_v24  ;;  %v14583_v48 = vld [vmem:[#allocation19 + $0x514] ss:$12 sps:$4 sm:$0xff]   ;;  %v8633_v10 = vmax.f32 %v7982_v49, 0.0 }
0x1350   : > { %v18085_v19 = vpop.f32.mrf.mxu0 }
0x1351   : > { %v18067_v11 = vpop.f32.mrf.mxu1  ;;  %10767 = vmatpush2.bf16.msra.mxu0 %v14569_v35  ;;  %v7970_v35 = vadd.f32 %v19290_v7, %v7897_v4  ;;  %v7923_v4 = vadd.f32 %v17953_v53, %v17886_v13  ;;  %v14590_v53 = vld [vmem:[#allocation19 + $0x438] ss:$12 sps:$4 sm:$0xff]   ;;  %v18103_v49 = vpack.c.bf16 %v8645_v8, %v8633_v10  ;;  %v14596_v8 = vld [vmem:[#allocation19 + $0x420] ss:$12 sps:$4 sm:$0xff]  }
0x1352   : > { %10824 = vmatpush1.bf16.msra.mxu1 %v14572_v43  ;;  %10882 = vmatprep.subr.bf16.mxu0 %v14577_v36  ;;  %v8620_v43 = vmax.f32 %v7974_v57, 0.0  ;;  %v19292_v36 = vld [vmem:[#allocation65_spill] sm:$0xff]  ;;  %v19293_v57 = vld [vmem:[#allocation63_spill] sm:$0xff] }
0x1353   : > { %v18075_v24 = vpop.f32.mrf.mxu1  ;;  %10825 = vmatprep.subr.bf16.mxu1 %v14580_v23  ;;  %v7911_v1 = vadd.f32 %v19292_v36, %v18016_v30  ;;  %v14589_v23 = vld [vmem:[#allocation19 + $0x4fc] ss:$12 sps:$4 sm:$0xff]   ;;  %v7907_v7 = vadd.f32 %v19293_v57, %v18016_v30  ;;  %v7919_v36 = vadd.f32 %v17939_v47, %v17886_v13  ;;  %v14598_v13 = vld [vmem:[#allocation19 + $0x424] ss:$12 sps:$4 sm:$0xff]   ;;  %v19295_v47 = vld [vmem:[#allocation61_spill] sm:$0xff] }
0x1354   : > { %10769 = vmatmul.mubr.bf16.vlgmr.msra.gmra.mxu0 %v18069_v58  ;;  %v18098_v58 = vpop.f32.mrf.mxu0  ;;  %v14604_v57 = vld [vmem:[#allocation19 + $0x40c] ss:$12 sps:$4 sm:$0xff]  }
0x1355   : > { %10778 = vmatprep.mubr.bf16.mxu0 %v18077_v6  ;;  %10883 = vmatpush1.bf16.msra.mxu0 %v14575_v2  ;;  %v18089_v61 = vpop.f32.mrf.mxu1  ;;  %v8608_v2 = vmax.f32 %v7970_v35, 0.0  ;;  %v7984_v6 = vadd.f32 %v19294_v37, %v7911_v1  ;;  %v7996_v35 = vadd.f32 %v17958_v22, %v7923_v4  ;;  %v14593_v1 = vld [vmem:[#allocation19 + $0x4e0] ss:$12 sps:$4 sm:$0xff]   ;;  %v7921_v22 = vadd.f32 %v17947_v28, %v18016_v30  ;;  %v14599_v28 = vld [vmem:[#allocation19 + $0x4c8] ss:$12 sps:$4 sm:$0xff]  }
0x1356   : > { %10826 = vmatpush2.bf16.msra.mxu1 %v14578_v45  ;;  %10884 = vmatprep.subr.bf16.mxu0 %v14583_v48  ;;  %v14587_v45 = vld [vmem:[#allocation19 + $0x4f8] ss:$12 sps:$4 sm:$0xff]  }
0x1357   : > { %10827 = vmatprep.subr.bf16.mxu1 %v14586_v42  ;;  %v18095_v48 = vpack.c.bf16 %v8620_v43, %v8608_v2  ;;  %v14595_v42 = vld [vmem:[#allocation19 + $0x4e4] ss:$12 sps:$4 sm:$0xff]   ;;  %v18101_v21 = vpop.f32.mrf.mxu1  ;;  %v7992_v43 = vadd.f32 %v17928_v15, %v7919_v36  ;;  %v14601_v4 = vld [vmem:[#allocation19 + $0x4cc] ss:$12 sps:$4 sm:$0xff]  }
0x1359   : > { %10885 = vmatpush1.bf16.msra.mxu0 %v14581_v55  ;;  %v7980_v55 = vadd.f32 %v19295_v47, %v7907_v7  ;;  %v18113_v2 = vpop.f32.mrf.mxu1  ;;  %v7917_v7 = vadd.f32 %v17933_v25, %v18016_v30  ;;  %v8657_v10 = vmax.f32 %v7992_v43, 0.0  ;;  %v14610_v25 = vld [vmem:[#allocation19 + $0x3f4] ss:$12 sps:$4 sm:$0xff]   ;;  %v19296_v30 = vld [vmem:[#allocation64_spill] sm:$0xff] }
0x135a   : > { %10828 = vmatpush2.bf16.msra.mxu1 %v14584_v63  ;;  %10886 = vmatprep.subr.bf16.mxu0 %v14589_v23  ;;  %v8644_v63 = vmax.f32 %v7984_v6, 0.0  ;;  %v18111_v23 = vpop.f32.mrf.mxu0  ;;  %v6224_v6 = vsub.s32 4, %v19280_v17 }
0x135b   : > { %10829 = vmatprep.subr.bf16.mxu1 %v14592_v59  ;;  %v8669_v59 = vmax.f32 %v7996_v35, 0.0  ;;  %v8632_v15 = vmax.f32 %v7980_v55, 0.0  ;;  %v18123_v35 = vpop.f32.mrf.mxu1  ;;  %v7990_v47 = vadd.f32 %v19296_v30, %v7917_v7 }
0x135c   : > { %10779 = vmatmul.mubr.bf16.gmra.mxu0 %v18095_v48  ;;  %v18121_v37 = vpop.f32.mrf.mxu0  ;;  %v18130_v55 = vrot.slane %v17825_v27, %v6224_v6 }
0x135d   : > { %10788 = vmatprep.mubr.bf16.mxu0 %v18103_v49  ;;  %10887 = vmatpush1.bf16.msra.mxu0 %v14587_v45  ;;  %v18118_v36 = vpack.c.bf16 %v8644_v63, %v8632_v15  ;;  %v7994_v45 = vadd.f32 %v17943_v52, %v7921_v22  ;;  %v14605_v52 = vld [vmem:[#allocation19 + $0x4b0] ss:$12 sps:$4 sm:$0xff]   ;;  %v8049_v15 = vadd.f32 %v18012_v12, %v17994_v38 }
0x135e   : > { %10830 = vmatpush2.bf16.msra.mxu1 %v14590_v53  ;;  %10888 = vmatprep.subr.bf16.mxu0 %v14595_v42  ;;  %v14602_v53 = vld [vmem:[#allocation19 + $0x408] ss:$12 sps:$4 sm:$0xff]   ;;  %v14608_v63 = vld [vmem:[#allocation19 + $0x3f0] ss:$12 sps:$4 sm:$0xff]   ;;  %v8033_v7 = vadd.f32 %v17964_v54, %v18130_v55 }
0x135f   : > { %10831 = vmatprep.subr.bf16.mxu1 %v14598_v13  ;;  %v14607_v42 = vld [vmem:[#allocation19 + $0x4b4] ss:$12 sps:$4 sm:$0xff]   ;;  %v18125_v13 = vpack.c.bf16 %v8669_v59, %v8657_v10  ;;  %v8668_v43 = vmax.f32 %v7994_v45, 0.0  ;;  %v14613_v22 = vld [vmem:[#allocation19 + $0x49c] ss:$12 sps:$4 sm:$0xff]   ;;  %v8122_v54 = vadd.f32 %v18072_v31, %v8049_v15  ;;  %v8043_v15 = vadd.f32 %v17989_v29, %v18130_v55 }
0x1360   : > { %v14616_v59 = vld [vmem:[#allocation19 + $0x3dc] ss:$12 sps:$4 sm:$0xff]   ;;  %v14611_v10 = vld [vmem:[#allocation19 + $0x498] ss:$12 sps:$4 sm:$0xff]   ;;  %v8106_v30 = vadd.f32 %v17968_v51, %v8033_v7  ;;  %v6236_v51 = vsub.s32 7, %v19280_v17 }
0x1361   : > { %10889 = vmatpush1.bf16.msra.mxu0 %v14593_v1  ;;  %v18133_v1 = vpop.f32.mrf.mxu0  ;;  %v14622_v12 = vld [vmem:[#allocation19 + $0x3c4] ss:$12 sps:$4 sm:$0xff]   ;;  %v14628_v31 = vld [vmem:[#allocation19 + $0x6ac] ss:$12 sps:$4 sm:$0xff]   ;;  %v14623_v7 = vld [vmem:[#allocation19 + $0x5e8] ss:$12 sps:$4 sm:$0xff]  }
0x1362   : > { %10832 = vmatpush2.bf16.msra.mxu1 %v14596_v8  ;;  %10890 = vmatprep.subr.bf16.mxu0 %v14601_v4  ;;  %v8037_v8 = vadd.f32 %v17977_v32, %v18130_v55  ;;  %v18137_v4 = vpop.f32.mrf.mxu1  ;;  %v14614_v32 = vld [vmem:[#allocation19 + $0x3d8] ss:$12 sps:$4 sm:$0xff]   ;;  %v14631_v29 = vld [vmem:[#allocation19 + $0x5d4] ss:$12 sps:$4 sm:$0xff]  }
0x1363   : > { %10833 = vmatprep.subr.bf16.mxu1 %v14604_v57  ;;  %v8656_v57 = vmax.f32 %v7990_v47, 0.0  ;;  %v18147_v45 = vpop.f32.mrf.mxu0 }
0x1364   : > { %10789 = vmatmul.mubr.bf16.gmra.mxu0 %v18118_v36 }
0x1365   : > { %10798 = vmatprep.mubr.bf16.mxu0 %v18125_v13  ;;  %10891 = vmatpush1.bf16.msra.mxu0 %v14599_v28  ;;  %v18143_v6 = vpack.c.bf16 %v8668_v43, %v8656_v57  ;;  %v8045_v28 = vadd.f32 %v18001_v41, %v17994_v38  ;;  %v14617_v41 = vld [vmem:[#allocation19 + $0x480] ss:$12 sps:$4 sm:$0xff]   ;;  %v8586_v57 = vmax.f32 %v8106_v30, 0.0 }
0x1366   : > { %10834 = vmatpush2.bf16.msra.mxu1 %v14602_v53  ;;  %10892 = vmatprep.subr.bf16.mxu0 %v14607_v42  ;;  %v14619_v53 = vld [vmem:[#allocation19 + $0x484] ss:$12 sps:$4 sm:$0xff]   ;;  %v8110_v42 = vadd.f32 %v17996_v3, %v8037_v8  ;;  %v14620_v43 = vld [vmem:[#allocation19 + $0x3c0] ss:$12 sps:$4 sm:$0xff]  }
0x1367   : > { %10835 = vmatprep.subr.bf16.mxu1 %v14610_v25  ;;  %v18150_v25 = vpop.f32.mrf.mxu1  ;;  %v8118_v47 = vadd.f32 %v18040_v5, %v8045_v28  ;;  %v14625_v3 = vld [vmem:[#allocation19 + $0x5ec] ss:$12 sps:$4 sm:$0xff]   ;;  %v8059_v5 = vadd.f32 %v18045_v14, %v17994_v38  ;;  %v18175_v14 = vrot.slane %v17825_v27, %v6236_v51  ;;  %v14632_v27 = vld [vmem:[#allocation19 + $0x690] ss:$12 sps:$4 sm:$0xff]  }
0x1368   : > { %v14640_v51 = vld [vmem:[#allocation19 + $0x67c] ss:$12 sps:$4 sm:$0xff]  }
0x1369   : > { %10893 = vmatpush1.bf16.msra.mxu0 %v14605_v52  ;;  %v18156_v52 = vpop.f32.mrf.mxu0  ;;  %v18160_v8 = vpop.f32.mrf.mxu1  ;;  %v8132_v30 = vadd.f32 %v18121_v37, %v8059_v5  ;;  %v8057_v37 = vadd.f32 %v18037_v33, %v18130_v55 }
0x136a   : > { %10836 = vmatpush2.bf16.msra.mxu1 %v14608_v63  ;;  %10894 = vmatprep.subr.bf16.mxu0 %v14613_v22  ;;  %v8598_v63 = vmax.f32 %v8110_v42, 0.0  ;;  %v8047_v22 = vadd.f32 %v18006_v9, %v18130_v55  ;;  %v8055_v9 = vadd.f32 %v18031_v18, %v17994_v38 }
0x136b   : > { %10837 = vmatprep.subr.bf16.mxu1 %v14616_v59  ;;  %v8623_v59 = vmax.f32 %v8122_v54, 0.0  ;;  %v8141_v28 = vpop.f32.mrf.mxu0  ;;  %v14634_v54 = vld [vmem:[#allocation19 + $0x694] ss:$12 sps:$4 sm:$0xff]  }
0x136c   : > { %10799 = vmatmul.mubr.bf16.gmra.mxu0 %v18143_v6  ;;  %v8120_v42 = vadd.f32 %v18056_v56, %v8047_v22  ;;  %v14629_v56 = vld [vmem:[#allocation19 + $0x5d0] ss:$12 sps:$4 sm:$0xff]  }
0x136d   : > { %10895 = vmatpush1.bf16.msra.mxu0 %v14611_v10  ;;  %v8611_v10 = vmax.f32 %v8118_v47, 0.0  ;;  %v8116_v47 = vadd.f32 %v18026_v50, %v8043_v15  ;;  %v8053_v15 = vadd.f32 %v18021_v62, %v18130_v55 }
0x136e   : > { %10838 = vmatpush2.bf16.msra.mxu1 %v14614_v32  ;;  %10896 = vmatprep.subr.bf16.mxu0 %v14619_v53  ;;  %v14626_v32 = vld [vmem:[#allocation19 + $0x6a8] ss:$12 sps:$4 sm:$0xff]   ;;  %v18169_v53 = vpack.c.bf16 %v8598_v63, %v8586_v57  ;;  %v8622_v22 = vmax.f32 %v8120_v42, 0.0 }
0x136f   : > { %10839 = vmatprep.subr.bf16.mxu1 %v14622_v12  ;;  %v18172_v12 = vpop.f32.mrf.mxu1  ;;  %v18180_v18 = vpack.c.bf16 %v8623_v59, %v8611_v10  ;;  %v14637_v63 = vld [vmem:[#allocation19 + $0x5bc] ss:$12 sps:$4 sm:$0xff]   ;;  %v8647_v59 = vmax.f32 %v8132_v30, 0.0  ;;  %v8610_v57 = vmax.f32 %v8116_v47, 0.0  ;;  %v8065_v10 = vadd.f32 %v18061_v39, %v17994_v38  ;;  %v14643_v30 = vld [vmem:[#allocation19 + $0x5a4] ss:$12 sps:$4 sm:$0xff]  }
0x1370   : > { %v14646_v47 = vld [vmem:[#allocation19 + $0x664] ss:$12 sps:$4 sm:$0xff]   ;;  %v8126_v39 = vadd.f32 %v18085_v19, %v8053_v15  ;;  %v8063_v15 = vadd.f32 %v18051_v40, %v18130_v55  ;;  %v14658_v40 = vld [vmem:[#allocation19 + $0x634] ss:$12 sps:$4 sm:$0xff]  }
0x1371   : > { %10897 = vmatpush1.bf16.msra.mxu0 %v14617_v41  ;;  %v18199_v42 = vpack.c.bf16 %v8622_v22, %v8610_v57 }
0x1372   : > { %10840 = vmatpush2.bf16.msra.mxu1 %v14620_v43  ;;  %10898 = vmatprep.subr.bf16.mxu0 %v14625_v3  ;;  %v8128_v43 = vadd.f32 %v18098_v58, %v8055_v9  ;;  %v8069_v58 = vadd.f32 %v18075_v24, %v17994_v38  ;;  %v8130_v24 = vadd.f32 %v18111_v23, %v8057_v37  ;;  %v14641_v23 = vld [vmem:[#allocation19 + $0x5a0] ss:$12 sps:$4 sm:$0xff]   ;;  %v8634_v57 = vmax.f32 %v8126_v39, 0.0 }
0x1373   : > { %10955 = vmatprep.subr.bf16.mxu1 %v14628_v31  ;;  %v18188_v31 = vpop.f32.mrf.mxu1  ;;  %v8067_v37 = vadd.f32 %v18067_v11, %v18130_v55  ;;  %v15099_v55 = vld [vmem:[#allocation17] sm:$0xff]  ;;  %v8136_v39 = vadd.f32 %v18133_v1, %v8063_v15  ;;  %v14664_v1 = vld [vmem:[#allocation19 + $0x61c] ss:$12 sps:$4 sm:$0xff]  }
0x1374   : > { %v18178_v41 = vpop.f32.mrf.mxu0  ;;  %v8635_v33 = vmax.f32 %v8128_v43, 0.0  ;;  %v8646_v22 = vmax.f32 %v8130_v24, 0.0  ;;  %v14662_v15 = vld [vmem:[#allocation19 + $0x618] ss:$12 sps:$4 sm:$0xff]  }
0x1375   : > { %10842 = vmatmul.mubr.bf16.vlgmr.msra.gmra.mxu1 %v18169_v53  ;;  %10899 = vmatpush2.bf16.msra.mxu0 %v14623_v7  ;;  %v14635_v7 = vld [vmem:[#allocation19 + $0x5b8] ss:$12 sps:$4 sm:$0xff]   ;;  %v8140_v24 = vadd.f32 %v18156_v52, %v8067_v37  ;;  %v14653_v52 = vld [vmem:[#allocation19 + $0x570] ss:$12 sps:$4 sm:$0xff]  }
0x1376   : > { %v8180_v3 = vpop.f32.mrf.mxu0  ;;  %10851 = vmatprep.mubr.bf16.mxu1 %v18180_v18  ;;  %10956 = vmatpush1.bf16.msra.mxu1 %v14626_v32  ;;  %v14638_v32 = vld [vmem:[#allocation19 + $0x678] ss:$12 sps:$4 sm:$0xff]   ;;  %v18208_v38 = vpack.c.bf16 %v8647_v59, %v8635_v33  ;;  %v14647_v33 = vld [vmem:[#allocation19 + $0x588] ss:$12 sps:$4 sm:$0xff]  }
0x1377   : > { %v8181_v50 = vadd.f32 %v8180_v3, %v18175_v14  ;;  %10900 = vmatprep.subr.bf16.mxu0 %v14631_v29  ;;  %10957 = vmatprep.subr.bf16.mxu1 %v14634_v54  ;;  %v18202_v29 = vpop.f32.mrf.mxu1 }
0x1378   : > { %v18193_v5 = vpop.f32.mrf.mxu0 }
0x1379   : > { %10901 = vmatpush2.bf16.msra.mxu0 %v14629_v56  ;;  %v8254_v54 = vadd.f32 %v18101_v21, %v8181_v50  ;;  %v8142_v56 = vadd.f32 %v8141_v28, %v8069_v58  ;;  %v8138_v21 = vadd.f32 %v18147_v45, %v8065_v10  ;;  %v14649_v28 = vld [vmem:[#allocation19 + $0x58c] ss:$12 sps:$4 sm:$0xff]   ;;  %v18217_v50 = vpop.f32.mrf.mxu1  ;;  %v6232_v45 = vsub.s32 6, %v19280_v17 }
0x137a   : > { %v8184_v9 = vpop.f32.mrf.mxu0  ;;  %10958 = vmatpush1.bf16.msra.mxu1 %v14632_v27  ;;  %10902 = vmatprep.subr.bf16.mxu0 %v14637_v63  ;;  %v14644_v63 = vld [vmem:[#allocation19 + $0x660] ss:$12 sps:$4 sm:$0xff]  }
0x137b   : > { %v8185_v62 = vadd.f32 %v8184_v9, %v18175_v14  ;;  %10959 = vmatprep.subr.bf16.mxu1 %v14640_v51  ;;  %v8589_v19 = vmax.f32 %v8254_v54, 0.0  ;;  %v14652_v51 = vld [vmem:[#allocation19 + $0x64c] ss:$12 sps:$4 sm:$0xff]   ;;  %v8671_v59 = vmax.f32 %v8142_v56, 0.0  ;;  %v8659_v11 = vmax.f32 %v8138_v21, 0.0  ;;  %v18227_v54 = vpop.f32.mrf.mxu1 }
0x137c   : > { %v18206_v43 = vpop.f32.mrf.mxu0  ;;  %v14650_v9 = vld [vmem:[#allocation19 + $0x648] ss:$12 sps:$4 sm:$0xff]   ;;  %v14656_v21 = vld [vmem:[#allocation19 + $0x630] ss:$12 sps:$4 sm:$0xff]  }
0x137d   : > { %v8258_v3 = vadd.f32 %v18123_v35, %v8185_v62  ;;  %10852 = vmatmul.mubr.bf16.gmra.mxu1 %v18199_v42  ;;  %10903 = vmatpush2.bf16.msra.mxu0 %v14635_v7  ;;  %v14655_v62 = vld [vmem:[#allocation19 + $0x574] ss:$12 sps:$4 sm:$0xff]   ;;  %v18234_v56 = vpack.c.bf16 %v8671_v59, %v8659_v11  ;;  %v14659_v59 = vld [vmem:[#allocation19 + $0x558] ss:$12 sps:$4 sm:$0xff]  }
0x137e   : > { %v8190_v27 = vpop.f32.mrf.mxu0  ;;  %10861 = vmatprep.mubr.bf16.mxu1 %v18208_v38  ;;  %10960 = vmatpush1.bf16.msra.mxu1 %v14638_v32  ;;  %v18224_v32 = vpack.c.bf16 %v8646_v22, %v8634_v57  ;;  %v18241_v22 = vpop.f32.mrf.mxu1 }
0x137f   : > { %v8601_v35 = vmax.f32 %v8258_v3, 0.0  ;;  %10904 = vmatprep.subr.bf16.mxu0 %v14643_v30  ;;  %10961 = vmatprep.subr.bf16.mxu1 %v14646_v47  ;;  %v18230_v30 = vrot.slane %v15099_v55, %v6232_v45 }
0x1380   : > { %v8192_v58 = vpop.f32.mrf.mxu0 }
0x1381   : > { %10905 = vmatpush2.bf16.msra.mxu0 %v14641_v23  ;;  %v18222_v7 = vpack.c.bf16 %v8601_v35, %v8589_v19  ;;  %v8183_v3 = vadd.f32 %v18193_v5, %v18230_v30  ;;  %v8179_v19 = vadd.f32 %v18178_v41, %v18230_v30  ;;  %v8658_v5 = vmax.f32 %v8136_v39, 0.0 }
0x1382   : > { %v8194_v10 = vpop.f32.mrf.mxu0  ;;  %10962 = vmatpush1.bf16.msra.mxu1 %v14644_v63  ;;  %10906 = vmatprep.subr.bf16.mxu0 %v14649_v28  ;;  %v14661_v63 = vld [vmem:[#allocation19 + $0x55c] ss:$12 sps:$4 sm:$0xff]   ;;  %v8670_v28 = vmax.f32 %v8140_v24, 0.0  ;;  %v8193_v55 = vadd.f32 %v8192_v58, %v18230_v30 }
0x1383   : > { %10914 = vmatprep.mubr.bf16.mxu0 %v18222_v7  ;;  %10963 = vmatprep.subr.bf16.mxu1 %v14652_v51  ;;  %v8195_v37 = vadd.f32 %v8194_v10, %v18175_v14  ;;  %v8191_v51 = vadd.f32 %v8190_v27, %v18175_v14  ;;  %v8256_v45 = vadd.f32 %v18113_v2, %v8183_v3  ;;  %v18252_v10 = vpop.f32.mrf.mxu1  ;;  %v14665_v2 = vld [vmem:[#allocation19 + $0x540] ss:$12 sps:$4 sm:$0xff]  }
0x1384   : > { %v18232_v47 = vpop.f32.mrf.mxu0  ;;  %v18250_v11 = vpack.c.bf16 %v8670_v28, %v8658_v5  ;;  %v8252_v24 = vadd.f32 %v18089_v61, %v8179_v19  ;;  %v8189_v28 = vadd.f32 %v18206_v43, %v18230_v30  ;;  %v14683_v19 = vld [vmem:[#allocation19 + $0x828] ss:$12 sps:$4 sm:$0xff]   ;;  %v18273_v43 = vld [vmem:[#allocation17 + $0x8] sm:$0xf] }
0x1385   : > { %10862 = vmatmul.mubr.bf16.gmra.mxu1 %v18224_v32  ;;  %10907 = vmatpush2.bf16.msra.mxu0 %v14647_v33  ;;  %v14667_v33 = vld [vmem:[#allocation19 + $0x544] ss:$12 sps:$4 sm:$0xff]   ;;  %v8268_v41 = vadd.f32 %v18172_v12, %v8195_v37  ;;  %v14685_v12 = vld [vmem:[#allocation19 + $0x82c] ss:$12 sps:$4 sm:$0xff]   ;;  %v18261_v3 = vpop.f32.mrf.mxu1 }
0x1386   : > { %v8200_v23 = vpop.f32.mrf.mxu0  ;;  %10871 = vmatprep.mubr.bf16.mxu1 %v18234_v56  ;;  %10964 = vmatpush1.bf16.msra.mxu1 %v14650_v9  ;;  %v14670_v9 = vld [vmem:[#allocation19 + $0x604] ss:$12 sps:$4 sm:$0xff]  }
0x1387   : > { %10908 = vmatprep.subr.bf16.mxu0 %v14655_v62  ;;  %10965 = vmatprep.subr.bf16.mxu1 %v14658_v40  ;;  %v8264_v62 = vadd.f32 %v18150_v25, %v8191_v51  ;;  %v8600_v40 = vmax.f32 %v8256_v45, 0.0  ;;  %v8588_v25 = vmax.f32 %v8252_v24, 0.0  ;;  %v8201_v58 = vadd.f32 %v8200_v23, %v18175_v14  ;;  %v14671_v45 = vld [vmem:[#allocation19 + $0x768] ss:$12 sps:$4 sm:$0xff]  }
0x1388   : > { %v18246_v35 = vpop.f32.mrf.mxu0  ;;  %v8266_v51 = vadd.f32 %v18160_v8, %v8193_v55  ;;  %v14676_v23 = vld [vmem:[#allocation19 + $0x754] ss:$12 sps:$4 sm:$0xff]   ;;  %v19298_v8 = vld [vmem:[#allocation32_spill] sm:$0xff] }
0x1389   : > { %10909 = vmatpush2.bf16.msra.mxu0 %v14653_v52  ;;  %v14668_v52 = vld [vmem:[#allocation19 + $0x600] ss:$12 sps:$4 sm:$0xff]   ;;  %v18269_v5 = vpack.c.bf16 %v8600_v40, %v8588_v25 }
0x138a   : > { %v8204_v57 = vpop.f32.mrf.mxu0  ;;  %10966 = vmatpush1.bf16.msra.mxu1 %v14656_v21  ;;  %10910 = vmatprep.subr.bf16.mxu0 %v14661_v63  ;;  %v8625_v21 = vmax.f32 %v8268_v41, 0.0  ;;  %v14673_v63 = vld [vmem:[#allocation19 + $0x76c] ss:$12 sps:$4 sm:$0xff]   ;;  %v8624_v55 = vmax.f32 %v8266_v51, 0.0 }
0x138b   : > { %10967 = vmatprep.subr.bf16.mxu1 %v14664_v1  ;;  %v8205_v61 = vadd.f32 %v8204_v57, %v18175_v14  ;;  %v8613_v1 = vmax.f32 %v8264_v62, 0.0  ;;  %v14691_v57 = vld [vmem:[#allocation19 + $0x814] ss:$12 sps:$4 sm:$0xff]   ;;  %v18283_v62 = vrot.slane %v18273_v43, %v19298_v8 }
0x138c   : > { %v18256_v27 = vpop.f32.mrf.mxu0 }
0x138d   : > { %10872 = vmatmul.mubr.bf16.gmra.mxu1 %v18250_v11  ;;  %10911 = vmatpush2.bf16.msra.mxu0 %v14659_v59  ;;  %v18275_v41 = vpack.c.bf16 %v8625_v21, %v8613_v1  ;;  %v14697_v21 = vld [vmem:[#allocation19 + $0x7fc] ss:$12 sps:$4 sm:$0xff]   ;;  %v8199_v1 = vadd.f32 %v18232_v47, %v18230_v30  ;;  %v14703_v47 = vld [vmem:[#allocation19 + $0x7e4] ss:$12 sps:$4 sm:$0xff]  }
0x138e   : > { %v8210_v39 = vpop.f32.mrf.mxu0  ;;  %10968 = vmatpush1.bf16.msra.mxu1 %v14662_v15  ;;  %10912 = vmatprep.subr.bf16.mxu0 %v14667_v33  ;;  %v8287_v15 = vpop.f32.mrf.mxu1  ;;  %v8278_v33 = vadd.f32 %v18227_v54, %v8205_v61  ;;  %v14689_v54 = vld [vmem:[#allocation19 + $0x810] ss:$12 sps:$4 sm:$0xff]  }
0x138f   : > { %10969 = vmatprep.subr.bf16.mxu1 %v14670_v9  ;;  %19297 = vst [vmem:[#allocation50_spill] sm:$0xff] %v18275_v41  ;;  %v8262_v9 = vadd.f32 %v18137_v4, %v8189_v28  ;;  %v8203_v4 = vadd.f32 %v18246_v35, %v18230_v30  ;;  %v8211_v51 = vadd.f32 %v8210_v39, %v18175_v14 }
0x1390   : > { %v18266_v37 = vpop.f32.mrf.mxu0  ;;  %v8649_v61 = vmax.f32 %v8278_v33, 0.0 }
0x1391   : > { %10913 = vmatpush2.bf16.msra.mxu0 %v14665_v2  ;;  %v8274_v2 = vadd.f32 %v18202_v29, %v8201_v58  ;;  %v14679_v29 = vld [vmem:[#allocation19 + $0x73c] ss:$12 sps:$4 sm:$0xff]   ;;  %v8612_v28 = vmax.f32 %v8262_v9, 0.0  ;;  %v14677_v9 = vld [vmem:[#allocation19 + $0x738] ss:$12 sps:$4 sm:$0xff]  }
0x1392   : > { %v8214_v59 = vpop.f32.mrf.mxu0  ;;  %10970 = vmatpush1.bf16.msra.mxu1 %v14668_v52  ;;  %11028 = vmatprep.subr.bf16.mxu0 %v14685_v12  ;;  %v14674_v12 = vld [vmem:[#allocation19 + $0x750] ss:$12 sps:$4 sm:$0xff]  }
0x1393   : > { %10971 = vmatprep.subr.bf16.mxu1 %v14673_v63  ;;  %v8215_v63 = vadd.f32 %v8214_v59, %v18175_v14  ;;  %v8637_v35 = vmax.f32 %v8274_v2, 0.0  ;;  %v18300_v33 = vpack.c.bf16 %v8624_v55, %v8612_v28  ;;  %v8276_v59 = vadd.f32 %v18217_v50, %v8203_v4  ;;  %v14682_v2 = vld [vmem:[#allocation19 + $0x724] ss:$12 sps:$4 sm:$0xff]  }
0x1394   : > { %v18278_v24 = vpop.f32.mrf.mxu0  ;;  %10915 = vmatmul.mubr.bf16.vlgmr.msra.gmra.mxu0 %v18269_v5  ;;  %v8272_v14 = vadd.f32 %v18188_v31, %v8199_v1  ;;  %v8284_v50 = vadd.f32 %v18252_v10, %v8211_v51  ;;  %v14688_v10 = vld [vmem:[#allocation19 + $0x70c] ss:$12 sps:$4 sm:$0xff]  }
0x1395   : > { %v18286_v40 = vpop.f32.mrf.mxu1  ;;  %10924 = vmatprep.mubr.bf16.mxu0 %v18275_v41  ;;  %11029 = vmatpush1.bf16.msra.mxu0 %v14683_v19  ;;  %v8288_v8 = vadd.f32 %v8287_v15, %v8215_v63  ;;  %v18303_v41 = vpack.c.bf16 %v8649_v61, %v8637_v35  ;;  %v14701_v15 = vld [vmem:[#allocation19 + $0x7e0] ss:$12 sps:$4 sm:$0xff]  }
0x1396   : > { %v8399_v52 = vpop.f32.mrf.mxu0  ;;  %10972 = vmatpush2.bf16.msra.mxu1 %v14671_v45  ;;  %11030 = vmatprep.subr.bf16.mxu0 %v14691_v57  ;;  %v14695_v57 = vld [vmem:[#allocation19 + $0x7f8] ss:$12 sps:$4 sm:$0xff]   ;;  %v14680_v61 = vld [vmem:[#allocation19 + $0x720] ss:$12 sps:$4 sm:$0xff]   ;;  %v8636_v1 = vmax.f32 %v8272_v14, 0.0 }
0x1397   : > { %v8326_v25 = vpop.f32.mrf.mxu1  ;;  %10973 = vmatprep.subr.bf16.mxu1 %v14676_v23  ;;  %19299 = vst [vmem:[#allocation59_spill] sm:$0xff] %v18303_v41  ;;  %v14709_v63 = vld [vmem:[#allocation19 + $0x7cc] ss:$12 sps:$4 sm:$0xff]  }
0x1398   : > { %v8327_v58 = vadd.f32 %v8326_v25, %v18283_v62  ;;  %v18295_v19 = vpop.f32.mrf.mxu0 }
0x1399   : > { %v18298_v45 = vpop.f32.mrf.mxu1  ;;  %11031 = vmatpush1.bf16.msra.mxu0 %v14689_v54 }
0x139a   : > { %v8403_v23 = vpop.f32.mrf.mxu0  ;;  %10974 = vmatpush2.bf16.msra.mxu1 %v14674_v12  ;;  %11032 = vmatprep.subr.bf16.mxu0 %v14697_v21  ;;  %v8400_v39 = vadd.f32 %v8399_v52, %v8327_v58  ;;  %v8648_v12 = vmax.f32 %v8276_v59, 0.0  ;;  %v8213_v21 = vadd.f32 %v18266_v37, %v18230_v30  ;;  %v8209_v58 = vadd.f32 %v18256_v27, %v18230_v30  ;;  %v14714_v30 = vld [vmem:[#allocation19 + $0x7b4] ss:$12 sps:$4 sm:$0xff]  }
0x139b   : > { %v8330_v25 = vpop.f32.mrf.mxu1  ;;  %10975 = vmatprep.subr.bf16.mxu1 %v14679_v29  ;;  %v8673_v29 = vmax.f32 %v8288_v8, 0.0  ;;  %v8661_v37 = vmax.f32 %v8284_v50, 0.0 }
0x139c   : > { %v8331_v54 = vadd.f32 %v8330_v25, %v18283_v62  ;;  %v18307_v55 = vpop.f32.mrf.mxu0  ;;  %10925 = vmatmul.mubr.bf16.gmra.mxu0 %v18300_v33  ;;  %v8591_v35 = vmax.f32 %v8400_v39, 0.0  ;;  %v8286_v8 = vadd.f32 %v18261_v3, %v8213_v21  ;;  %v14694_v39 = vld [vmem:[#allocation19 + $0x6f4] ss:$12 sps:$4 sm:$0xff]   ;;  %v14712_v21 = vld [vmem:[#allocation19 + $0x7b0] ss:$12 sps:$4 sm:$0xff]  }
0x139d   : > { %v18311_v4 = vpop.f32.mrf.mxu1  ;;  %10934 = vmatprep.mubr.bf16.mxu0 %v18303_v41  ;;  %11033 = vmatpush1.bf16.msra.mxu0 %v14695_v57  ;;  %v18329_v14 = vpack.c.bf16 %v8673_v29, %v8661_v37  ;;  %v19302_v3 = vld [vmem:[#allocation34_spill] sm:$0xff] }
0x139e   : > { %v8404_v31 = vadd.f32 %v8403_v23, %v8331_v54  ;;  %v18316_v52 = vpop.f32.mrf.mxu0  ;;  %10976 = vmatpush2.bf16.msra.mxu1 %v14677_v9  ;;  %11034 = vmatprep.subr.bf16.mxu0 %v14703_v47  ;;  %v14707_v23 = vld [vmem:[#allocation19 + $0x7c8] ss:$12 sps:$4 sm:$0xff]   ;;  %v18324_v9 = vpack.c.bf16 %v8648_v12, %v8636_v1  ;;  %v8282_v54 = vadd.f32 %v18241_v22, %v8209_v58  ;;  %v14692_v22 = vld [vmem:[#allocation19 + $0x6f0] ss:$12 sps:$4 sm:$0xff]  }
0x139f   : > { %v8336_v28 = vpop.f32.mrf.mxu1  ;;  %10977 = vmatprep.subr.bf16.mxu1 %v14682_v2  ;;  %v14686_v2 = vld [vmem:[#allocation19 + $0x708] ss:$12 sps:$4 sm:$0xff]   ;;  %19301 = vst [vmem:[#allocation63_spill] sm:$0xff] %v18329_v14 }
0x13a0   : > { %v8603_v51 = vmax.f32 %v8404_v31, 0.0  ;;  %v18320_v57 = vpop.f32.mrf.mxu0  ;;  %19300 = vst [vmem:[#allocation65_spill] sm:$0xff] %v18324_v9  ;;  %v8672_v31 = vmax.f32 %v8286_v8, 0.0  ;;  %v14700_v1 = vld [vmem:[#allocation19 + $0x6dc] ss:$12 sps:$4 sm:$0xff]   ;;  %v8660_v58 = vmax.f32 %v8282_v54, 0.0 }
0x13a1   : > { %v18322_v59 = vpop.f32.mrf.mxu1  ;;  %11035 = vmatpush1.bf16.msra.mxu0 %v14701_v15  ;;  %v18338_v15 = vrot.slane %v18273_v43, %v19302_v3  ;;  %v14717_v8 = vld [vmem:[#allocation19 + $0x798] ss:$12 sps:$4 sm:$0xff]  }
0x13a2   : > { %v8413_v47 = vpop.f32.mrf.mxu0  ;;  %10978 = vmatpush2.bf16.msra.mxu1 %v14680_v61  ;;  %v18327_v25 = vpack.c.bf16 %v8603_v51, %v8591_v35  ;;  %11036 = vmatprep.subr.bf16.mxu0 %v14709_v63  ;;  %v14719_v63 = vld [vmem:[#allocation19 + $0x79c] ss:$12 sps:$4 sm:$0xff]  }
0x13a3   : > { %v8340_v27 = vpop.f32.mrf.mxu1  ;;  %10979 = vmatprep.subr.bf16.mxu1 %v14688_v10  ;;  %v8329_v29 = vadd.f32 %v18298_v45, %v18338_v15  ;;  %v8325_v37 = vadd.f32 %v18286_v40, %v18338_v15  ;;  %v14698_v45 = vld [vmem:[#allocation19 + $0x6d8] ss:$12 sps:$4 sm:$0xff]  }
0x13a4   : > { %v18332_v50 = vpop.f32.mrf.mxu0  ;;  %10935 = vmatmul.mubr.bf16.gmra.mxu0 %v18324_v9  ;;  %10987 = vmatprep.mubr.bf16.mxu1 %v18327_v25  ;;  %v8341_v35 = vadd.f32 %v8340_v27, %v18283_v62 }
0x13a5   : > { %v18340_v12 = vpop.f32.mrf.mxu1  ;;  %10944 = vmatprep.mubr.bf16.mxu0 %v18329_v14  ;;  %11037 = vmatpush1.bf16.msra.mxu0 %v14707_v23  ;;  %v8402_v54 = vadd.f32 %v18295_v19, %v8329_v29  ;;  %v14706_v14 = vld [vmem:[#allocation19 + $0x6c4] ss:$12 sps:$4 sm:$0xff]   ;;  %v8398_v40 = vadd.f32 %v18278_v24, %v8325_v37  ;;  %v8339_v29 = vadd.f32 %v18322_v59, %v18338_v15 }
0x13a6   : > { %v18343_v61 = vpop.f32.mrf.mxu0  ;;  %10980 = vmatpush2.bf16.msra.mxu1 %v14686_v2  ;;  %11038 = vmatprep.subr.bf16.mxu0 %v14714_v30  ;;  %v18352_v2 = vpack.c.bf16 %v8672_v31, %v8660_v58  ;;  %v8337_v30 = vadd.f32 %v8336_v28, %v18283_v62  ;;  %v8414_v9 = vadd.f32 %v8413_v47, %v8341_v35  ;;  %v14722_v31 = vld [vmem:[#allocation19 + $0x780] ss:$12 sps:$4 sm:$0xff]   ;;  %v14710_v58 = vld [vmem:[#allocation19 + $0x170] ss:$12 sps:$4 sm:$0xff]  }
0x13a7   : > { %v8346_v10 = vpop.f32.mrf.mxu1  ;;  %10981 = vmatprep.subr.bf16.mxu1 %v14694_v39  ;;  %v14724_v39 = vld [vmem:[#allocation19 + $0x784] ss:$12 sps:$4 sm:$0xff]   ;;  %v8602_v19 = vmax.f32 %v8402_v54, 0.0  ;;  %v8590_v37 = vmax.f32 %v8398_v40, 0.0  ;;  %v14734_v40 = vld [vmem:[#allocation19 + $0x8d4] ss:$12 sps:$4 sm:$0xff]  }
0x13a8   : > { %v18348_v51 = vpop.f32.mrf.mxu0  ;;  %19303 = vst [vmem:[#allocation31_spill] sm:$0xff] %v18352_v2  ;;  %v8410_v28 = vadd.f32 %v18316_v52, %v8337_v30  ;;  %v8627_v24 = vmax.f32 %v8414_v9, 0.0  ;;  %v8335_v52 = vadd.f32 %v18311_v4, %v18338_v15  ;;  %v14727_v30 = vld [vmem:[#allocation19 + $0x8e8] ss:$12 sps:$4 sm:$0xff]   ;;  %v14711_v59 = vld [vmem:[#allocation19 + $0xb0] ss:$12 sps:$4 sm:$0xff]   ;;  %v8412_v9 = vadd.f32 %v18320_v57, %v8339_v29 }
0x13a9   : > { %v8348_v23 = vpop.f32.mrf.mxu1  ;;  %11039 = vmatpush1.bf16.msra.mxu0 %v14712_v21  ;;  %v18371_v54 = vpack.c.bf16 %v8602_v19, %v8590_v37  ;;  %v14716_v57 = vld [vmem:[#allocation19 + $0x98] ss:$12 sps:$4 sm:$0xff]   ;;  %v14720_v29 = vld [vmem:[#allocation19 + $0x140] ss:$12 sps:$4 sm:$0xff]  }
0x13aa   : > { %10982 = vmatpush2.bf16.msra.mxu1 %v14692_v22  ;;  %11040 = vmatprep.subr.bf16.mxu0 %v14719_v63  ;;  %v8423_v3 = vpop.f32.mrf.mxu0  ;;  %v14704_v22 = vld [vmem:[#allocation19 + $0x6c0] ss:$12 sps:$4 sm:$0xff]   ;;  %v8349_v19 = vadd.f32 %v8348_v23, %v18338_v15  ;;  %v14737_v37 = vld [vmem:[#allocation19 + $0x8b8] ss:$12 sps:$4 sm:$0xff]  }
0x13ab   : > { %v8350_v27 = vpop.f32.mrf.mxu1  ;;  %10983 = vmatprep.subr.bf16.mxu1 %v14700_v1  ;;  %v14729_v63 = vld [vmem:[#allocation19 + $0x8ec] ss:$12 sps:$4 sm:$0xff]  }
0x13ac   : > { %10945 = vmatmul.mubr.bf16.gmra.mxu0 %v18352_v2  ;;  %v18363_v1 = vpop.f32.mrf.mxu0  ;;  %v8351_v35 = vadd.f32 %v8350_v27, %v18283_v62  ;;  %v14715_v27 = vld [vmem:[#allocation19 + $0x158] ss:$12 sps:$4 sm:$0xff]   ;;  %v14721_v23 = vld [vmem:[#allocation19 + $0x80] ss:$12 sps:$4 sm:$0xff]  }
0x13ad   : > { %v18358_v21 = vpop.f32.mrf.mxu1  ;;  %11041 = vmatpush1.bf16.msra.mxu0 %v14717_v8 }
0x13ae   : > { %10984 = vmatpush2.bf16.msra.mxu1 %v14698_v45  ;;  %11042 = vmatprep.subr.bf16.mxu0 %v14724_v39  ;;  %v8615_v45 = vmax.f32 %v8410_v28, 0.0  ;;  %v8347_v39 = vadd.f32 %v8346_v10, %v18283_v62  ;;  %v8424_v2 = vadd.f32 %v8423_v3, %v8351_v35  ;;  %v14732_v10 = vld [vmem:[#allocation19 + $0x8d0] ss:$12 sps:$4 sm:$0xff]  }
0x13af   : > { %v8356_v47 = vpop.f32.mrf.mxu1  ;;  %10985 = vmatprep.subr.bf16.mxu1 %v14706_v14  ;;  %v8429_v14 = vpop.f32.mrf.mxu0 }
0x13b0   : > { %v18374_v41 = vpack.c.bf16 %v8627_v24, %v8615_v45  ;;  %v8420_v28 = vadd.f32 %v18343_v61, %v8347_v39  ;;  %v8345_v61 = vadd.f32 %v18340_v12, %v18338_v15 }
0x13b1   : > { %v18368_v8 = vpop.f32.mrf.mxu1  ;;  %11043 = vmatpush1.bf16.msra.mxu0 %v14722_v31  ;;  %v8408_v31 = vadd.f32 %v18307_v55, %v8335_v52  ;;  %v8431_v3 = vpop.f32.mrf.mxu0 }
0x13b2   : > { %10986 = vmatpush2.bf16.msra.mxu1 %v14704_v22  ;;  %11044 = vmatprep.subr.bf16.mxu0 %v14729_v63  ;;  %v14739_v22 = vld [vmem:[#allocation19 + $0x8bc] ss:$12 sps:$4 sm:$0xff]   ;;  %v8626_v63 = vmax.f32 %v8412_v9, 0.0  ;;  %v8639_v52 = vmax.f32 %v8420_v28, 0.0  ;;  %v14744_v9 = vld [vmem:[#allocation19 + $0x8a4] ss:$12 sps:$4 sm:$0xff]   ;;  %v8359_v28 = vadd.f32 %v18368_v8, %v18338_v15 }
0x13b3   : > { %12878 = vmatprep.subr.bf16.mxu1 %v14710_v58  ;;  %v8360_v4 = vpop.f32.mrf.mxu1  ;;  %v8651_v58 = vmax.f32 %v8424_v2, 0.0  ;;  %v8614_v35 = vmax.f32 %v8408_v31, 0.0  ;;  %v8422_v2 = vadd.f32 %v18348_v51, %v8349_v19  ;;  %v8433_v39 = vpop.f32.mrf.mxu0  ;;  %v14726_v51 = vld [vmem:[#allocation19 + $0x68] ss:$12 sps:$4 sm:$0xff]   ;;  %v14749_v31 = vld [vmem:[#allocation19 + $0x88c] ss:$12 sps:$4 sm:$0xff]   ;;  %v8355_v19 = vadd.f32 %v18358_v21, %v18338_v15 }
0x13b4   : > { %v8361_v55 = vadd.f32 %v8360_v4, %v18283_v62  ;;  %v8418_v4 = vadd.f32 %v18332_v50, %v8345_v61  ;;  %v14735_v8 = vld [vmem:[#allocation19 + $0xf8] ss:$12 sps:$4 sm:$0xff]   ;;  %v14754_v61 = vld [vmem:[#allocation19 + $0x874] ss:$12 sps:$4 sm:$0xff]   ;;  %v14752_v15 = vld [vmem:[#allocation19 + $0x870] ss:$12 sps:$4 sm:$0xff]  }
0x13b5   : > { %10988 = vmatmul.mubr.bf16.vlgmr.msra.gmra.mxu1 %v18371_v54  ;;  %11045 = vmatpush2.bf16.msra.mxu0 %v14727_v30  ;;  %v18382_v24 = vpop.f32.mrf.mxu1  ;;  %v8357_v30 = vadd.f32 %v8356_v47, %v18283_v62  ;;  %v18387_v45 = vpack.c.bf16 %v8626_v63, %v8614_v35  ;;  %v18392_v12 = vpack.c.bf16 %v8651_v58, %v8639_v52  ;;  %v14742_v62 = vld [vmem:[#allocation19 + $0x8a0] ss:$12 sps:$4 sm:$0xff]   ;;  %v14731_v58 = vld [vmem:[#allocation19 + $0x50] ss:$12 sps:$4 sm:$0xff]   ;;  %v14736_v21 = vld [vmem:[#allocation19 + $0x38] ss:$12 sps:$4 sm:$0xff]  }
0x13b6   : > { %10997 = vmatprep.mubr.bf16.mxu1 %v18374_v41  ;;  %12879 = vmatpush3.bf16.msra.mxu1 %v14711_v59  ;;  %v14725_v59 = vld [vmem:[#allocation19 + $0x128] ss:$12 sps:$4 sm:$0xff]   ;;  %v8638_v50 = vmax.f32 %v8418_v4, 0.0  ;;  %v8432_v35 = vadd.f32 %v8431_v3, %v8359_v28  ;;  %v14740_v3 = vld [vmem:[#allocation19 + $0xe0] ss:$12 sps:$4 sm:$0xff]  }
0x13b7   : > { %12880 = vmatprep.subr.bf16.mxu1 %v14715_v27  ;;  %11046 = vmatprep.subr.bf16.mxu0 %v14734_v40  ;;  %v8434_v27 = vadd.f32 %v8433_v39, %v8361_v55  ;;  %v18390_v40 = vpop.f32.mrf.mxu1  ;;  %v8430_v47 = vadd.f32 %v8429_v14, %v8357_v30  ;;  %v14747_v14 = vld [vmem:[#allocation19 + $0x888] ss:$12 sps:$4 sm:$0xff]   ;;  %v8428_v30 = vadd.f32 %v18363_v1, %v8355_v19  ;;  %v14741_v1 = vld [vmem:[#allocation19 + $0x20] ss:$12 sps:$4 sm:$0xff]   ;;  %v14767_v28 = vld [vmem:[#allocation19 + $0x2f0] ss:$12 sps:$4 sm:$0xff]  }
0x13b8   : > { %v14745_v4 = vld [vmem:[#allocation19 + $0xc8] ss:$12 sps:$4 sm:$0xff]   ;;  %v19305_v19 = vsub.s32 3, %v19280_v17  ;;  %v14760_v17 = vld [vmem:[#allocation19 + $0x440] ss:$12 sps:$4 sm:$0xff]  }
0x13b9   : > { %11047 = vmatpush2.bf16.msra.mxu0 %v14732_v10  ;;  %v8650_v10 = vmax.f32 %v8422_v2, 0.0  ;;  %v18399_v63 = vpop.f32.mrf.mxu1  ;;  %v8674_v2 = vmax.f32 %v8432_v35, 0.0  ;;  %v18427_v35 = vrot.slane %v18273_v43, %v19253_v20 }
0x13ba   : > { %12881 = vmatpush3.bf16.msra.mxu1 %v14716_v57  ;;  %11048 = vmatprep.subr.bf16.mxu0 %v14739_v22  ;;  %v14730_v57 = vld [vmem:[#allocation19 + $0x110] ss:$12 sps:$4 sm:$0xff]   ;;  %v8675_v22 = vmax.f32 %v8434_v27, 0.0 }
0x13bb   : > { %12882 = vmatprep.subr.bf16.mxu1 %v14720_v29  ;;  %v8663_v29 = vmax.f32 %v8430_v47, 0.0  ;;  %v18403_v55 = vpack.c.bf16 %v8650_v10, %v8638_v50  ;;  %v14746_v10 = vld [vmem:[#allocation19 + $0x8] ss:$12 sps:$4 sm:$0xff]   ;;  %v14751_v50 = vld [vmem:[#allocation19 + $0x3b0] ss:$12 sps:$4 sm:$0xff]  }
0x13bd   : > { %10998 = vmatmul.mubr.bf16.gmra.mxu1 %v18387_v45  ;;  %11049 = vmatpush2.bf16.msra.mxu0 %v14737_v37  ;;  %v18405_v37 = vpop.f32.mrf.mxu1  ;;  %v18407_v52 = vpack.c.bf16 %v8675_v22, %v8663_v29  ;;  %v14755_v29 = vld [vmem:[#allocation19 + $0x458] ss:$12 sps:$4 sm:$0xff]  }
0x13be   : > { %11007 = vmatprep.mubr.bf16.mxu1 %v18392_v12  ;;  %12883 = vmatpush3.bf16.msra.mxu1 %v14721_v23  ;;  %v14759_v23 = vld [vmem:[#allocation19 + $0x85c] ss:$12 sps:$4 sm:$0xff]  }
0x13bf   : > { %12884 = vmatprep.subr.bf16.mxu1 %v14725_v59  ;;  %11050 = vmatprep.subr.bf16.mxu0 %v14744_v9  ;;  %v18412_v39 = vpop.f32.mrf.mxu1  ;;  %v8662_v59 = vmax.f32 %v8428_v30, 0.0  ;;  %v14757_v9 = vld [vmem:[#allocation19 + $0x858] ss:$12 sps:$4 sm:$0xff]  }
0x13c0   : > { %v14756_v30 = vld [vmem:[#allocation19 + $0x398] ss:$12 sps:$4 sm:$0xff]  }
0x13c1   : > { %11051 = vmatpush2.bf16.msra.mxu0 %v14742_v62  ;;  %v18414_v27 = vpack.c.bf16 %v8674_v2, %v8662_v59  ;;  %v14764_v62 = vld [vmem:[#allocation19 + $0x844] ss:$12 sps:$4 sm:$0xff]   ;;  %v18416_v47 = vpop.f32.mrf.mxu1  ;;  %v14761_v59 = vld [vmem:[#allocation19 + $0x380] ss:$12 sps:$4 sm:$0xff]  }
0x13c2   : > { %12885 = vmatpush3.bf16.msra.mxu1 %v14726_v51  ;;  %11052 = vmatprep.subr.bf16.mxu0 %v14749_v31  ;;  %v14762_v51 = vld [vmem:[#allocation19 + $0x840] ss:$12 sps:$4 sm:$0xff]  }
0x13c3   : > { %12886 = vmatprep.subr.bf16.mxu1 %v14730_v57  ;;  %v19304_v31 = vld [vmem:[#allocation52_spill] sm:$0xff]  ;;  %v8557_v22 = vpop.f32.mrf.mxu1 }
0x13c4   : > { %v14750_v57 = vld [vmem:[#allocation19 + $0x470] ss:$12 sps:$4 sm:$0xff]  }
0x13c5   : > { %11008 = vmatmul.mubr.bf16.gmra.mxu1 %v18403_v55  ;;  %11053 = vmatpush2.bf16.msra.mxu0 %v14747_v14  ;;  %v18423_v14 = vrot.slane %v18273_v43, %v19305_v19  ;;  %v14769_v19 = vld [vmem:[#allocation19 + $0x410] ss:$12 sps:$4 sm:$0xff]  }
0x13c6   : > { %11017 = vmatprep.mubr.bf16.mxu1 %v18407_v52  ;;  %12887 = vmatpush3.bf16.msra.mxu1 %v14731_v58  ;;  %v8559_v58 = vpop.f32.mrf.mxu1 }
0x13c7   : > { %12888 = vmatprep.subr.bf16.mxu1 %v14735_v8  ;;  %11054 = vmatprep.subr.bf16.mxu0 %v14754_v61 }
0x13c9   : > { %11055 = vmatpush2.bf16.msra.mxu0 %v14752_v15 }
0x13ca   : > { %12889 = vmatpush3.bf16.msra.mxu1 %v14736_v21  ;;  %11056 = vmatprep.subr.bf16.mxu0 %v14759_v23  ;;  %v18432_v21 = vpop.f32.mrf.mxu1 }
0x13cb   : > { %12890 = vmatprep.subr.bf16.mxu1 %v14740_v3 }
0x13cd   : > { %11018 = vmatmul.mubr.bf16.gmra.mxu1 %v18414_v27  ;;  %11057 = vmatpush2.bf16.msra.mxu0 %v14757_v9 }
0x13ce   : > { %12891 = vmatpush3.bf16.msra.mxu1 %v14741_v1  ;;  %11133 = vmatprep.mubr.bf16.mxu1 %v19304_v31  ;;  %v14765_v1 = vld [vmem:[#allocation19 + $0x428] ss:$12 sps:$4 sm:$0xff]  }
0x13cf   : > { %12892 = vmatprep.subr.bf16.mxu1 %v14745_v4  ;;  %11058 = vmatprep.subr.bf16.mxu0 %v14764_v62  ;;  %v18439_v4 = vpop.f32.mrf.mxu1 }
0x13d1   : > { %11059 = vmatpush2.bf16.msra.mxu0 %v14762_v51 }
0x13d2   : > { %12893 = vmatpush3.bf16.msra.mxu1 %v14746_v10  ;;  %12918 = vmatprep.subr.bf16.mxu0 %v14767_v28 }
0x13d3   : > { %12958 = vmatprep.subr.bf16.mxu1 %v14750_v57 }
0x13d4   : > { %v8470_v8 = vpop.f32.mrf.mxu0 }
0x13d5   : > { %11134 = vmatmul.mubr.bf16.vlgmr.msra.gmra.mxu1 %v17955_v0  ;;  %v8471_v23 = vadd.f32 %v8470_v8, %v18427_v35 }
0x13d6   : > { %v8472_v61 = vpop.f32.mrf.mxu0  ;;  %11141 = vmatprep.mubr.bf16.mxu1 %v17961_v44  ;;  %12959 = vmatpush3.bf16.msra.mxu1 %v14751_v50 }
0x13d7   : > { %v8473_v15 = vadd.f32 %v8472_v61, %v18423_v14  ;;  %12960 = vmatprep.subr.bf16.mxu1 %v14755_v29  ;;  %v8544_v62 = vadd.f32 %v18382_v24, %v8471_v23  ;;  %v8567_v29 = vpop.f32.mrf.mxu1 }
0x13d8   : > { %v8474_v2 = vpop.f32.mrf.mxu0 }
0x13d9   : > { %v8475_v43 = vadd.f32 %v8474_v2, %v18427_v35  ;;  %v8546_v0 = vadd.f32 %v18390_v40, %v8473_v15  ;;  %v14766_v40 = vld [vmem:[#allocation19 + $0x368] ss:$12 sps:$4 sm:$0xff]   ;;  %v8592_v8 = vmax.f32 %v8544_v62, 0.0  ;;  %v14772_v62 = vld [vmem:[#allocation19 + $0x218] ss:$12 sps:$4 sm:$0xff]  }
0x13da   : > { %v8476_v3 = vpop.f32.mrf.mxu0  ;;  %12961 = vmatpush3.bf16.msra.mxu1 %v14756_v30  ;;  %v14768_v30 = vld [vmem:[#allocation19 + $0x230] ss:$12 sps:$4 sm:$0xff]  }
0x13db   : > { %v8548_v44 = vadd.f32 %v18399_v63, %v8475_v43  ;;  %v8477_v9 = vadd.f32 %v8476_v3, %v18423_v14  ;;  %12962 = vmatprep.subr.bf16.mxu1 %v14760_v17  ;;  %v8593_v63 = vmax.f32 %v8546_v0, 0.0  ;;  %v14770_v17 = vld [vmem:[#allocation19 + $0x350] ss:$12 sps:$4 sm:$0xff]   ;;  %v14771_v3 = vld [vmem:[#allocation19 + $0x2d8] ss:$12 sps:$4 sm:$0xff]   ;;  %v8569_v0 = vpop.f32.mrf.mxu1 }
0x13dc   : > { %v8480_v51 = vpop.f32.mrf.mxu0 }
0x13dd   : > { %v8550_v31 = vadd.f32 %v18405_v37, %v8477_v9  ;;  %11142 = vmatmul.mubr.bf16.gmra.mxu1 %v17982_v16  ;;  %v8604_v10 = vmax.f32 %v8548_v44, 0.0  ;;  %v8481_v24 = vadd.f32 %v8480_v51, %v18427_v35  ;;  %v14774_v51 = vld [vmem:[#allocation19 + $0x338] ss:$12 sps:$4 sm:$0xff]  }
0x13de   : > { %v8482_v28 = vpop.f32.mrf.mxu0  ;;  %11149 = vmatprep.mubr.bf16.mxu1 %v17986_v26  ;;  %12963 = vmatpush3.bf16.msra.mxu1 %v14761_v59  ;;  %v14773_v59 = vld [vmem:[#allocation19 + $0x3f8] ss:$12 sps:$4 sm:$0xff]  }
0x13df   : > { %v8605_v57 = vmax.f32 %v8550_v31, 0.0  ;;  %v8483_v50 = vadd.f32 %v8482_v28, %v18423_v14  ;;  %12964 = vmatprep.subr.bf16.mxu1 %v14765_v1  ;;  %v18450_v15 = vpack.c.bf16 %v8604_v10, %v8592_v8  ;;  %v8554_v44 = vadd.f32 %v18412_v39, %v8481_v24  ;;  %v14775_v31 = vld [vmem:[#allocation19 + $0x2c0] ss:$12 sps:$4 sm:$0xff]  }
0x13e0   : > { %v8484_v61 = vpop.f32.mrf.mxu0  ;;  %v14777_v39 = vld [vmem:[#allocation19 + $0x3e0] ss:$12 sps:$4 sm:$0xff]  }
0x13e1   : > { %v8485_v37 = vadd.f32 %v8484_v61, %v18427_v35  ;;  %v18448_v16 = vpack.c.bf16 %v8605_v57, %v8593_v63  ;;  %v8556_v23 = vadd.f32 %v18416_v47, %v8483_v50  ;;  %v8573_v63 = vpop.f32.mrf.mxu1  ;;  %v14778_v61 = vld [vmem:[#allocation19 + $0x320] ss:$12 sps:$4 sm:$0xff]  }
0x13e2   : > { %v8486_v26 = vpop.f32.mrf.mxu0  ;;  %12965 = vmatpush3.bf16.msra.mxu1 %v14766_v40 }
0x13e3   : > { %v8558_v2 = vadd.f32 %v8557_v22, %v8485_v37  ;;  %v8487_v43 = vadd.f32 %v8486_v26, %v18423_v14  ;;  %11060 = vmatprep.mubr.bf16.mxu0 %v18448_v16  ;;  %12966 = vmatprep.subr.bf16.mxu1 %v14769_v19  ;;  %v8617_v10 = vmax.f32 %v8556_v23, 0.0  ;;  %v14781_v23 = vld [vmem:[#allocation19 + $0x3c8] ss:$12 sps:$4 sm:$0xff]  }
0x13e4   : > { %v8490_v9 = vpop.f32.mrf.mxu0  ;;  %11061 = vmatmul.mubr.bf16.vlgmr.msra.gmra.mxu0 %v18450_v15 }
0x13e5   : > { %v8560_v1 = vadd.f32 %v8559_v58, %v8487_v43  ;;  %11150 = vmatmul.mubr.bf16.gmra.mxu1 %v18009_v46  ;;  %12919 = vmatpush3.bf16.msra.mxu0 %v14768_v30  ;;  %v8628_v47 = vmax.f32 %v8558_v2, 0.0  ;;  %v8616_v58 = vmax.f32 %v8554_v44, 0.0  ;;  %v8491_v46 = vadd.f32 %v8490_v9, %v18427_v35  ;;  %v8575_v2 = vpop.f32.mrf.mxu1  ;;  %v14780_v44 = vld [vmem:[#allocation19 + $0x1e8] ss:$12 sps:$4 sm:$0xff]  }
0x13e6   : > { %v8492_v22 = vpop.f32.mrf.mxu0  ;;  %11157 = vmatprep.mubr.bf16.mxu1 %v18018_v34  ;;  %12967 = vmatpush3.bf16.msra.mxu1 %v14770_v17  ;;  %v14776_v34 = vld [vmem:[#allocation19 + $0x200] ss:$12 sps:$4 sm:$0xff]   ;;  %v14779_v17 = vld [vmem:[#allocation19 + $0x2a8] ss:$12 sps:$4 sm:$0xff]  }
0x13e7   : > { %v8629_v28 = vmax.f32 %v8560_v1, 0.0  ;;  %v8493_v40 = vadd.f32 %v8492_v22, %v18423_v14  ;;  %12920 = vmatprep.subr.bf16.mxu0 %v14771_v3  ;;  %12968 = vmatprep.subr.bf16.mxu1 %v14773_v59  ;;  %v18464_v8 = vpack.c.bf16 %v8628_v47, %v8616_v58  ;;  %v8564_v43 = vadd.f32 %v18432_v21, %v8491_v46  ;;  %v19306_v9 = vld [vmem:[#allocation67_spill] sm:$0xff]  ;;  %v14785_v21 = vld [vmem:[#allocation19 + $0x770] ss:$12 sps:$4 sm:$0xff]  }
0x13e8   : > { %v8494_v57 = vpop.f32.mrf.mxu0  ;;  %v14782_v1 = vld [vmem:[#allocation19 + $0x308] ss:$12 sps:$4 sm:$0xff]  }
0x13e9   : > { %v8495_v50 = vadd.f32 %v8494_v57, %v18427_v35  ;;  %12921 = vmatpush3.bf16.msra.mxu0 %v14772_v62  ;;  %v18462_v19 = vpack.c.bf16 %v8629_v28, %v8617_v10  ;;  %v8566_v37 = vadd.f32 %v18439_v4, %v8493_v40  ;;  %v14783_v62 = vld [vmem:[#allocation19 + $0x290] ss:$12 sps:$4 sm:$0xff]  }
0x13ea   : > { %v8496_v24 = vpop.f32.mrf.mxu0  ;;  %12969 = vmatpush3.bf16.msra.mxu1 %v14774_v51  ;;  %12922 = vmatprep.subr.bf16.mxu0 %v14775_v31  ;;  %v8577_v31 = vpop.f32.mrf.mxu1  ;;  %v14786_v57 = vld [vmem:[#allocation19 + $0x6b0] ss:$12 sps:$4 sm:$0xff]  }
0x13eb   : > { %v8568_v30 = vadd.f32 %v8567_v29, %v8495_v50  ;;  %v8497_v26 = vadd.f32 %v8496_v24, %v18423_v14  ;;  %11070 = vmatprep.mubr.bf16.mxu0 %v18462_v19  ;;  %12970 = vmatprep.subr.bf16.mxu1 %v14777_v39  ;;  %v8641_v47 = vmax.f32 %v8566_v37, 0.0  ;;  %v14784_v39 = vld [vmem:[#allocation19 + $0x1d0] ss:$12 sps:$4 sm:$0xff]   ;;  %v14789_v37 = vld [vmem:[#allocation19 + $0x758] ss:$12 sps:$4 sm:$0xff]  }
0x13ec   : > { %v8500_v3 = vpop.f32.mrf.mxu0  ;;  %11071 = vmatmul.mubr.bf16.gmra.mxu0 %v18464_v8 }
0x13ed   : > { %v8570_v59 = vadd.f32 %v8569_v0, %v8497_v26  ;;  %11158 = vmatmul.mubr.bf16.gmra.mxu1 %v18042_v60  ;;  %12923 = vmatpush3.bf16.msra.mxu0 %v14776_v34  ;;  %v8652_v4 = vmax.f32 %v8568_v30, 0.0  ;;  %v8640_v0 = vmax.f32 %v8564_v43, 0.0  ;;  %v8501_v60 = vadd.f32 %v8500_v3, %v18427_v35 }
0x13ee   : > { %v8502_v29 = vpop.f32.mrf.mxu0  ;;  %12971 = vmatpush3.bf16.msra.mxu1 %v14778_v61  ;;  %11263 = vmatprep.mubr.bf16.mxu1 %v19306_v9  ;;  %v14787_v61 = vld [vmem:[#allocation19 + $0x278] ss:$12 sps:$4 sm:$0xff]   ;;  %v14794_v9 = vld [vmem:[#allocation19 + $0x680] ss:$12 sps:$4 sm:$0xff]  }
0x13ef   : > { %v8653_v22 = vmax.f32 %v8570_v59, 0.0  ;;  %v8503_v51 = vadd.f32 %v8502_v29, %v18423_v14  ;;  %12924 = vmatprep.subr.bf16.mxu0 %v14779_v17  ;;  %12972 = vmatprep.subr.bf16.mxu1 %v14781_v23  ;;  %v18478_v58 = vpack.c.bf16 %v8652_v4, %v8640_v0  ;;  %v8574_v30 = vadd.f32 %v8573_v63, %v8501_v60  ;;  %v14788_v17 = vld [vmem:[#allocation19 + $0x1b8] ss:$12 sps:$4 sm:$0xff]   ;;  %v14793_v59 = vld [vmem:[#allocation19 + $0x740] ss:$12 sps:$4 sm:$0xff]  }
0x13f0   : > { %v8504_v10 = vpop.f32.mrf.mxu0  ;;  %v14792_v29 = vld [vmem:[#allocation19 + $0x1a0] ss:$12 sps:$4 sm:$0xff]   ;;  %v14800_v60 = vld [vmem:[#allocation19 + $0x530] ss:$12 sps:$4 sm:$0xff]  }
0x13f1   : > { %v8505_v28 = vadd.f32 %v8504_v10, %v18427_v35  ;;  %12925 = vmatpush3.bf16.msra.mxu0 %v14780_v44  ;;  %v18476_v40 = vpack.c.bf16 %v8653_v22, %v8641_v47  ;;  %v8576_v50 = vadd.f32 %v8575_v2, %v8503_v51  ;;  %v8579_v35 = vpop.f32.mrf.mxu1  ;;  %v14790_v2 = vld [vmem:[#allocation19 + $0x698] ss:$12 sps:$4 sm:$0xff]   ;;  %v8664_v44 = vmax.f32 %v8574_v30, 0.0  ;;  %v19307_v47 = vld [vmem:[#allocation66_spill] sm:$0xff]  ;;  %v14796_v22 = vld [vmem:[#allocation19 + $0x188] ss:$12 sps:$4 sm:$0xff]  }
0x13f2   : > { %v8506_v46 = vpop.f32.mrf.mxu0  ;;  %12973 = vmatpush3.bf16.msra.mxu1 %v14782_v1  ;;  %12926 = vmatprep.subr.bf16.mxu0 %v14783_v62  ;;  %v14797_v1 = vld [vmem:[#allocation19 + $0x728] ss:$12 sps:$4 sm:$0xff]   ;;  %v14799_v51 = vld [vmem:[#allocation19 + $0x5f0] ss:$12 sps:$4 sm:$0xff]   ;;  %v14803_v10 = vld [vmem:[#allocation19 + $0x5d8] ss:$12 sps:$4 sm:$0xff]  }
0x13f3   : > { %v8578_v34 = vadd.f32 %v8577_v31, %v8505_v28  ;;  %v8507_v24 = vadd.f32 %v8506_v46, %v18423_v14  ;;  %11080 = vmatprep.mubr.bf16.mxu0 %v18476_v40  ;;  %13038 = vmatprep.subr.bf16.mxu1 %v14785_v21  ;;  %v14791_v14 = vld [vmem:[#allocation19 + $0x260] ss:$12 sps:$4 sm:$0xff]   ;;  %v8665_v43 = vmax.f32 %v8576_v50, 0.0  ;;  %v14798_v21 = vld [vmem:[#allocation19 + $0x668] ss:$12 sps:$4 sm:$0xff]  }
0x13f4   : > { %11081 = vmatmul.mubr.bf16.gmra.mxu0 %v18478_v58  ;;  %v14801_v31 = vld [vmem:[#allocation19 + $0x710] ss:$12 sps:$4 sm:$0xff]   ;;  %v14807_v50 = vld [vmem:[#allocation19 + $0x5c0] ss:$12 sps:$4 sm:$0xff]  }
0x13f5   : > { %v8580_v26 = vadd.f32 %v8579_v35, %v8507_v24  ;;  %12927 = vmatpush3.bf16.msra.mxu0 %v14784_v39  ;;  %11264 = vmatmul.mubr.bf16.vlgmr.msra.gmra.mxu1 %v18169_v53  ;;  %v8676_v23 = vmax.f32 %v8578_v34, 0.0  ;;  %v18485_v63 = vpop.f32.mrf.mxu1  ;;  %v14802_v28 = vld [vmem:[#allocation19 + $0x650] ss:$12 sps:$4 sm:$0xff]   ;;  %v14806_v34 = vld [vmem:[#allocation19 + $0x638] ss:$12 sps:$4 sm:$0xff]  }
0x13f6   : > { %11271 = vmatprep.mubr.bf16.mxu1 %v18180_v18  ;;  %13039 = vmatpush3.bf16.msra.mxu1 %v14786_v57  ;;  %v14795_v18 = vld [vmem:[#allocation19 + $0x248] ss:$12 sps:$4 sm:$0xff]   ;;  %v19308_v39 = vld [vmem:[#allocation68_spill] sm:$0xff] }
0x13f7   : > { %v8677_v3 = vmax.f32 %v8580_v26, 0.0  ;;  %12928 = vmatprep.subr.bf16.mxu0 %v14787_v61  ;;  %13040 = vmatprep.subr.bf16.mxu1 %v14789_v37  ;;  %v18489_v53 = vpack.c.bf16 %v8676_v23, %v8664_v44  ;;  %v18493_v62 = vpop.f32.mrf.mxu1  ;;  %v19309_v57 = vld [vmem:[#allocation69_spill] sm:$0xff]  ;;  %v14809_v24 = vld [vmem:[#allocation19 + $0x6e0] ss:$12 sps:$4 sm:$0xff]   ;;  %v14824_v44 = vld [vmem:[#allocation19 + $0x830] ss:$12 sps:$4 sm:$0xff]  }
0x13f8   : > { %v14808_v37 = vld [vmem:[#allocation19 + $0x500] ss:$12 sps:$4 sm:$0xff]   ;;  %v14811_v35 = vld [vmem:[#allocation19 + $0x5a8] ss:$12 sps:$4 sm:$0xff]  }
0x13f9   : > { %12929 = vmatpush3.bf16.msra.mxu0 %v14788_v17  ;;  %v18487_v4 = vpack.c.bf16 %v8677_v3, %v8665_v43  ;;  %v18498_v0 = vpop.f32.mrf.mxu1  ;;  %v14810_v30 = vld [vmem:[#allocation19 + $0x620] ss:$12 sps:$4 sm:$0xff]   ;;  %v14815_v17 = vld [vmem:[#allocation19 + $0x590] ss:$12 sps:$4 sm:$0xff]   ;;  %v14814_v23 = vld [vmem:[#allocation19 + $0x608] ss:$12 sps:$4 sm:$0xff]  }
0x13fa   : > { %13041 = vmatpush3.bf16.msra.mxu1 %v14790_v2  ;;  %12930 = vmatprep.subr.bf16.mxu0 %v14791_v14  ;;  %v14817_v14 = vld [vmem:[#allocation19 + $0x578] ss:$12 sps:$4 sm:$0xff]   ;;  %v14820_v3 = vld [vmem:[#allocation19 + $0x4a0] ss:$12 sps:$4 sm:$0xff]  }
0x13fb   : > { %11090 = vmatprep.mubr.bf16.mxu0 %v18487_v4  ;;  %13042 = vmatprep.subr.bf16.mxu1 %v14793_v59  ;;  %v18501_v46 = vpop.f32.mrf.mxu1  ;;  %v14821_v59 = vld [vmem:[#allocation19 + $0x548] ss:$12 sps:$4 sm:$0xff]  }
0x13fc   : > { %11091 = vmatmul.mubr.bf16.gmra.mxu0 %v18489_v53 }
0x13fd   : > { %12931 = vmatpush3.bf16.msra.mxu0 %v14792_v29  ;;  %11198 = vmatprep.mubr.bf16.mxu0 %v19307_v47  ;;  %v18506_v61 = vpop.f32.mrf.mxu1  ;;  %v14825_v29 = vld [vmem:[#allocation19 + $0x8d8] ss:$12 sps:$4 sm:$0xff]  }
0x13fe   : > { %11272 = vmatmul.mubr.bf16.gmra.mxu1 %v18199_v42  ;;  %12932 = vmatprep.subr.bf16.mxu0 %v14795_v18  ;;  %v14805_v42 = vld [vmem:[#allocation19 + $0x6f8] ss:$12 sps:$4 sm:$0xff]   ;;  %v19310_v18 = vld [vmem:[#allocation50_spill] sm:$0xff] }
0x13ff   : > { %11279 = vmatprep.mubr.bf16.mxu1 %v18208_v38  ;;  %13043 = vmatpush3.bf16.msra.mxu1 %v14794_v9  ;;  %v14804_v38 = vld [vmem:[#allocation19 + $0x518] ss:$12 sps:$4 sm:$0xff]   ;;  %v18509_v26 = vpop.f32.mrf.mxu1 }
0x1400   : > { %13044 = vmatprep.subr.bf16.mxu1 %v14797_v1  ;;  %v14828_v1 = vld [vmem:[#allocation19 + $0x800] ss:$12 sps:$4 sm:$0xff]  }
0x1401   : > { %12933 = vmatpush3.bf16.msra.mxu0 %v14796_v22  ;;  %v18514_v2 = vpop.f32.mrf.mxu1 }
0x1402   : > { %12998 = vmatprep.subr.bf16.mxu0 %v14799_v51  ;;  %v19312_v51 = vld [vmem:[#allocation59_spill] sm:$0xff] }
0x1403   : > { %13045 = vmatpush3.bf16.msra.mxu1 %v14798_v21 }
0x1404   : > { %11199 = vmatmul.mubr.bf16.vlgmr.msra.gmra.mxu0 %v19308_v39  ;;  %13046 = vmatprep.subr.bf16.mxu1 %v14801_v31 }
0x1405   : > { %11206 = vmatprep.mubr.bf16.mxu0 %v19309_v57  ;;  %12999 = vmatpush3.bf16.msra.mxu0 %v14800_v60  ;;  %v14832_v60 = vld [vmem:[#allocation19 + $0x7d0] ss:$12 sps:$4 sm:$0xff]   ;;  %v14835_v57 = vld [vmem:[#allocation19 + $0x860] ss:$12 sps:$4 sm:$0xff]  }
0x1406   : > { %11280 = vmatmul.mubr.bf16.gmra.mxu1 %v18224_v32  ;;  %13000 = vmatprep.subr.bf16.mxu0 %v14803_v10  ;;  %v14813_v32 = vld [vmem:[#allocation19 + $0x6c8] ss:$12 sps:$4 sm:$0xff]   ;;  %v14833_v10 = vld [vmem:[#allocation19 + $0x878] ss:$12 sps:$4 sm:$0xff]  }
0x1407   : > { %11287 = vmatprep.mubr.bf16.mxu1 %v18234_v56  ;;  %13047 = vmatpush3.bf16.msra.mxu1 %v14802_v28  ;;  %v14812_v56 = vld [vmem:[#allocation19 + $0x4e8] ss:$12 sps:$4 sm:$0xff]  }
0x1408   : > { %13048 = vmatprep.subr.bf16.mxu1 %v14805_v42  ;;  %v19316_v42 = vld [vmem:[#allocation63_spill] sm:$0xff] }
0x1409   : > { %13001 = vmatpush3.bf16.msra.mxu0 %v14804_v38 }
0x140a   : > { %13002 = vmatprep.subr.bf16.mxu0 %v14807_v50 }
0x140b   : > { %13049 = vmatpush3.bf16.msra.mxu1 %v14806_v34  ;;  %v14836_v34 = vld [vmem:[#allocation19 + $0x7a0] ss:$12 sps:$4 sm:$0xff]  }
0x140c   : > { %11207 = vmatmul.mubr.bf16.gmra.mxu0 %v18095_v48  ;;  %13050 = vmatprep.subr.bf16.mxu1 %v14809_v24  ;;  %v14816_v48 = vld [vmem:[#allocation19 + $0x4d0] ss:$12 sps:$4 sm:$0xff]   ;;  %v14837_v24 = vld [vmem:[#allocation19 + $0x848] ss:$12 sps:$4 sm:$0xff]  }
0x140d   : > { %11214 = vmatprep.mubr.bf16.mxu0 %v18103_v49  ;;  %13003 = vmatpush3.bf16.msra.mxu0 %v14808_v37  ;;  %v18517_v49 = vpop.f32.mrf.mxu1 }
0x140e   : > { %11288 = vmatmul.mubr.bf16.gmra.mxu1 %v18250_v11  ;;  %13004 = vmatprep.subr.bf16.mxu0 %v14811_v35  ;;  %v14818_v11 = vld [vmem:[#allocation19 + $0x4b8] ss:$12 sps:$4 sm:$0xff]  }
0x140f   : > { %13051 = vmatpush3.bf16.msra.mxu1 %v14810_v30  ;;  %11393 = vmatprep.mubr.bf16.mxu1 %v18327_v25  ;;  %v14819_v25 = vld [vmem:[#allocation19 + $0x560] ss:$12 sps:$4 sm:$0xff]   ;;  %v18522_v43 = vpop.f32.mrf.mxu1  ;;  %v19317_v30 = vld [vmem:[#allocation31_spill] sm:$0xff] }
0x1410   : > { %13052 = vmatprep.subr.bf16.mxu1 %v14813_v32  ;;  %v14838_v32 = vld [vmem:[#allocation19 + $0x788] ss:$12 sps:$4 sm:$0xff]  }
0x1411   : > { %13005 = vmatpush3.bf16.msra.mxu0 %v14812_v56 }
0x1412   : > { %13006 = vmatprep.subr.bf16.mxu0 %v14815_v17 }
0x1413   : > { %13053 = vmatpush3.bf16.msra.mxu1 %v14814_v23 }
0x1414   : > { %11215 = vmatmul.mubr.bf16.gmra.mxu0 %v18118_v36  ;;  %v18525_v36 = vpop.f32.mrf.mxu1 }
0x1415   : > { %11222 = vmatprep.mubr.bf16.mxu0 %v18125_v13  ;;  %13007 = vmatpush3.bf16.msra.mxu0 %v14816_v48  ;;  %v14822_v13 = vld [vmem:[#allocation19 + $0x488] ss:$12 sps:$4 sm:$0xff]  }
0x1416   : > { %11394 = vmatmul.mubr.bf16.vlgmr.msra.gmra.mxu1 %v18371_v54  ;;  %13008 = vmatprep.subr.bf16.mxu0 %v14817_v14  ;;  %v14823_v54 = vld [vmem:[#allocation19 + $0x8f0] ss:$12 sps:$4 sm:$0xff]  }
0x1417   : > { %11401 = vmatprep.mubr.bf16.mxu1 %v18374_v41  ;;  %v18530_v41 = vpop.f32.mrf.mxu1 }
0x1419   : > { %13009 = vmatpush3.bf16.msra.mxu0 %v14818_v11 }
0x141a   : > { %13010 = vmatprep.subr.bf16.mxu0 %v14819_v25 }
0x141c   : > { %11223 = vmatmul.mubr.bf16.gmra.mxu0 %v18143_v6  ;;  %v18533_v6 = vpop.f32.mrf.mxu1 }
0x141d   : > { %13011 = vmatpush3.bf16.msra.mxu0 %v14820_v3  ;;  %11328 = vmatprep.mubr.bf16.mxu0 %v18222_v7  ;;  %v14826_v7 = vld [vmem:[#allocation19 + $0x818] ss:$12 sps:$4 sm:$0xff]  }
0x141e   : > { %11402 = vmatmul.mubr.bf16.gmra.mxu1 %v18387_v45  ;;  %13012 = vmatprep.subr.bf16.mxu0 %v14821_v59  ;;  %v14827_v45 = vld [vmem:[#allocation19 + $0x8c0] ss:$12 sps:$4 sm:$0xff]   ;;  %v18540_v9 = vpop.f32.mrf.mxu1 }
0x141f   : > { %11409 = vmatprep.mubr.bf16.mxu1 %v18392_v12  ;;  %v18538_v12 = vpop.f32.mrf.mxu0 }
0x1420   : > { %v18545_v22 = vpop.f32.mrf.mxu1 }
0x1421   : > { %13013 = vmatpush3.bf16.msra.mxu0 %v14822_v13  ;;  %v18542_v47 = vpop.f32.mrf.mxu0  ;;  %19311 = vst [vmem:[#allocation61_spill] sm:$0xff] %v18545_v22 }
0x1422   : > { %13078 = vmatprep.subr.bf16.mxu0 %v14823_v54  ;;  %v18551_v31 = vpop.f32.mrf.mxu1 }
0x1423   : > { %v18549_v21 = vpop.f32.mrf.mxu0  ;;  %19313 = vst [vmem:[#allocation64_spill] sm:$0xff] %v18551_v31 }
0x1424   : > { %11329 = vmatmul.mubr.bf16.vlgmr.msra.gmra.mxu0 %v18269_v5  ;;  %v14829_v5 = vld [vmem:[#allocation19 + $0x8a8] ss:$12 sps:$4 sm:$0xff]   ;;  %v18556_v39 = vpop.f32.mrf.mxu1 }
0x1425   : > { %11336 = vmatprep.mubr.bf16.mxu0 %v19310_v18  ;;  %13079 = vmatpush3.bf16.msra.mxu0 %v14824_v44  ;;  %v18553_v28 = vpop.f32.mrf.mxu0  ;;  %19315 = vst [vmem:[#allocation52_spill] sm:$0xff] %v18556_v39 }
0x1426   : > { %11410 = vmatmul.mubr.bf16.gmra.mxu1 %v18403_v55  ;;  %13080 = vmatprep.subr.bf16.mxu0 %v14825_v29  ;;  %v14830_v55 = vld [vmem:[#allocation19 + $0x7e8] ss:$12 sps:$4 sm:$0xff]  }
0x1427   : > { %11417 = vmatprep.mubr.bf16.mxu1 %v18407_v52  ;;  %v14831_v52 = vld [vmem:[#allocation19 + $0x890] ss:$12 sps:$4 sm:$0xff]   ;;  %v18561_v50 = vpop.f32.mrf.mxu0 }
0x1429   : > { %13081 = vmatpush3.bf16.msra.mxu0 %v14826_v7  ;;  %v18565_v35 = vpop.f32.mrf.mxu0 }
0x142a   : > { %13082 = vmatprep.subr.bf16.mxu0 %v14827_v45 }
0x142b   : > { %v18571_v17 = vpop.f32.mrf.mxu0 }
0x142c   : > { %11337 = vmatmul.mubr.bf16.gmra.mxu0 %v18300_v33  ;;  %v19314_v33 = vld [vmem:[#allocation65_spill] sm:$0xff] }
0x142d   : > { %11344 = vmatprep.mubr.bf16.mxu0 %v19312_v51  ;;  %13083 = vmatpush3.bf16.msra.mxu0 %v14828_v1  ;;  %v18575_v48 = vpop.f32.mrf.mxu0 }
0x142e   : > { %11418 = vmatmul.mubr.bf16.gmra.mxu1 %v18414_v27  ;;  %13084 = vmatprep.subr.bf16.mxu0 %v14829_v5  ;;  %v14834_v27 = vld [vmem:[#allocation19 + $0x7b8] ss:$12 sps:$4 sm:$0xff]  }
0x142f   : > { %v18581_v11 = vpop.f32.mrf.mxu0 }
0x1431   : > { %13085 = vmatpush3.bf16.msra.mxu0 %v14830_v55  ;;  %v18585_v25 = vpop.f32.mrf.mxu0 }
0x1432   : > { %13086 = vmatprep.subr.bf16.mxu0 %v14831_v52 }
0x1433   : > { %v18591_v59 = vpop.f32.mrf.mxu0 }
0x1434   : > { %11345 = vmatmul.mubr.bf16.gmra.mxu0 %v19314_v33 }
0x1435   : > { %11352 = vmatprep.mubr.bf16.mxu0 %v19316_v42  ;;  %13087 = vmatpush3.bf16.msra.mxu0 %v14832_v60  ;;  %v18559_v38 = vpop.f32.mrf.mxu1 }
0x1436   : > { %13088 = vmatprep.subr.bf16.mxu0 %v14833_v10 }
0x1437   : > { %v18563_v37 = vpop.f32.mrf.mxu1 }
0x1439   : > { %13089 = vmatpush3.bf16.msra.mxu0 %v14834_v27  ;;  %v18569_v56 = vpop.f32.mrf.mxu1 }
0x143a   : > { %13090 = vmatprep.subr.bf16.mxu0 %v14835_v57 }
0x143b   : > { %v18573_v23 = vpop.f32.mrf.mxu1 }
0x143c   : > { %11353 = vmatmul.mubr.bf16.gmra.mxu0 %v19317_v30 }
0x143d   : > { %13091 = vmatpush3.bf16.msra.mxu0 %v14836_v34  ;;  %11458 = vmatprep.mubr.bf16.mxu0 %v18448_v16  ;;  %v18579_v14 = vpop.f32.mrf.mxu1 }
0x143e   : > { %13092 = vmatprep.subr.bf16.mxu0 %v14837_v24 }
0x143f   : > { %v18583_v16 = vpop.f32.mrf.mxu1 }
0x1441   : > { %13093 = vmatpush3.bf16.msra.mxu0 %v14838_v32  ;;  %v18589_v3 = vpop.f32.mrf.mxu1 }
0x1443   : > { %v18593_v13 = vpop.f32.mrf.mxu1 }
0x1444   : > { %11459 = vmatmul.mubr.bf16.vlgmr.msra.gmra.mxu0 %v18450_v15  ;;  %v18595_v15 = vpop.f32.mrf.mxu0 }
0x1445   : > { %11466 = vmatprep.mubr.bf16.mxu0 %v18462_v19  ;;  %v18599_v19 = vpop.f32.mrf.mxu1 }
0x1446   : > { %v18601_v54 = vpop.f32.mrf.mxu0 }
0x1447   : > { %19318 = vst [vmem:[#allocation67_spill] sm:$0xff] %v18601_v54  ;;  %v18603_v44 = vpop.f32.mrf.mxu1 }
0x144c   : > { %11467 = vmatmul.mubr.bf16.gmra.mxu0 %v18464_v8  ;;  %v18605_v8 = vpop.f32.mrf.mxu0 }
0x144d   : > { %11474 = vmatprep.mubr.bf16.mxu0 %v18476_v40  ;;  %19319 = vst [vmem:[#allocation66_spill] sm:$0xff] %v18605_v8  ;;  %v18608_v40 = vpop.f32.mrf.mxu1 }
0x144e   : > { %19320 = vst [vmem:[#allocation68_spill] sm:$0xff] %v18608_v40  ;;  %v18610_v29 = vpop.f32.mrf.mxu0 }
0x144f   : > { %19321 = vst [vmem:[#allocation69_spill] sm:$0xff] %v18610_v29  ;;  %v18612_v18 = vpop.f32.mrf.mxu1 }
0x1450   : > { %19322 = vst [vmem:[#allocation50_spill] sm:$0xff] %v18612_v18  ;;  %v18614_v7 = vpop.f32.mrf.mxu0 }
0x1451   : > { %19323 = vst [vmem:[#allocation59_spill] sm:$0xff] %v18614_v7 }
0x1454   : > { %11475 = vmatmul.mubr.bf16.gmra.mxu0 %v18478_v58  ;;  %v10916_v58 = vpop.f32.mrf.mxu0 }
0x1455   : > { %11482 = vmatprep.mubr.bf16.mxu0 %v18487_v4  ;;  %v18616_v4 = vpop.f32.mrf.mxu1 }
0x1456   : > { %19324 = vst [vmem:[#allocation65_spill] sm:$0xff] %v18616_v4  ;;  %v10918_v45 = vpop.f32.mrf.mxu0 }
0x1457   : > { %v18618_v1 = vpop.f32.mrf.mxu1 }
0x1458   : > { %19325 = vst [vmem:[#allocation63_spill] sm:$0xff] %v18618_v1  ;;  %v10920_v5 = vpop.f32.mrf.mxu0 }
0x1459   : > { %v18620_v51 = vpop.f32.mrf.mxu1 }
0x145a   : > { %19326 = vst [vmem:[#allocation31_spill] sm:$0xff] %v18620_v51  ;;  %v18622_v55 = vpop.f32.mrf.mxu0 }
0x145c   : > { %11483 = vmatmul.mubr.bf16.gmra.mxu0 %v18489_v53  ;;  %v18624_v53 = vpop.f32.mrf.mxu1  ;;  %v18626_v60 = vpop.f32.mrf.mxu0 }
0x145d   : > { %19327 = vst [vmem:[#allocation70_spill] sm:$0xff] %v18624_v53 }
0x145e   : > { %v18630_v42 = vpop.f32.mrf.mxu0 }
0x1460   : > { %v18636_v34 = vpop.f32.mrf.mxu0 }
0x1462   : > { %v18642_v32 = vpop.f32.mrf.mxu0 }
0x1464   : > { %v18648_v51 = vpop.f32.mrf.mxu0 }
0x1466   : > { %v18654_v29 = vpop.f32.mrf.mxu0 }
0x1467   : > { %19331 = vst [vmem:[#allocation74_spill] sm:$0xff] %v18654_v29  ;;  %v19342_v29 = vld [vmem:[#allocation34_spill] sm:$0xff] }
0x1468   : > { %v18660_v8 = vpop.f32.mrf.mxu0 }
0x1469   : > { %19334 = vst [vmem:[#allocation77_spill] sm:$0xff] %v18660_v8  ;;  %v19344_v8 = vld [vmem:[#allocation32_spill] sm:$0xff] }
0x146a   : > { %v18666_v54 = vpop.f32.mrf.mxu0 }
0x146b   : > { %19337 = vst [vmem:[#allocation80_spill] sm:$0xff] %v18666_v54 }
0x1475   : > { %v10989_v52 = vpop.f32.mrf.mxu1 }
0x1477   : > { %v10991_v10 = vpop.f32.mrf.mxu1 }
0x1479   : > { %v18628_v33 = vpop.f32.mrf.mxu1 }
0x147b   : > { %v18632_v27 = vpop.f32.mrf.mxu1 }
0x147d   : > { %v18634_v57 = vpop.f32.mrf.mxu1 }
0x147f   : > { %v18638_v24 = vpop.f32.mrf.mxu1 }
0x1481   : > { %v18640_v30 = vpop.f32.mrf.mxu1 }
0x1483   : > { %v18644_v20 = vpop.f32.mrf.mxu1 }
0x1485   : > { %v18646_v53 = vpop.f32.mrf.mxu1 }
0x1486   : > { %19328 = vst [vmem:[#allocation71_spill] sm:$0xff] %v18646_v53  ;;  %v18670_v53 = vld [vmem:[#allocation20] sm:$0x7] }
0x1487   : > { %v18650_v7 = vpop.f32.mrf.mxu1  ;;  %19339 = vst [vmem:[#allocation82_spill] sm:$0xff] %v18670_v53 }
0x1488   : > { %19329 = vst [vmem:[#allocation72_spill] sm:$0xff] %v18650_v7 }
0x1489   : > { %v18652_v1 = vpop.f32.mrf.mxu1 }
0x148a   : > { %19330 = vst [vmem:[#allocation73_spill] sm:$0xff] %v18652_v1  ;;  %v18674_v1 = vpop.f32.mrf.mxu0 }
0x148b   : > { %v18656_v39 = vpop.f32.mrf.mxu1  ;;  %19341 = vst [vmem:[#allocation84_spill] sm:$0xff] %v18674_v1 }
0x148c   : > { %19332 = vst [vmem:[#allocation75_spill] sm:$0xff] %v18656_v39  ;;  %v18678_v39 = vrot.slane %v18670_v53, %v19342_v29  ;;  %v18688_v54 = vpop.f32.mrf.mxu0 }
0x148d   : > { %v18658_v4 = vpop.f32.mrf.mxu1  ;;  %19346 = vst [vmem:[#allocation85_spill] sm:$0xff] %v18688_v54 }
0x148e   : > { %19333 = vst [vmem:[#allocation76_spill] sm:$0xff] %v18658_v4 }
0x148f   : > { %v18662_v31 = vpop.f32.mrf.mxu1 }
0x1490   : > { %19335 = vst [vmem:[#allocation78_spill] sm:$0xff] %v18662_v31  ;;  %v18684_v31 = vrot.slane %v18670_v53, %v19344_v8  ;;  %v10702_v8 = vadd.f32 %v18498_v0, %v18678_v39 }
0x1491   : > { %v18664_v18 = vpop.f32.mrf.mxu1 }
0x1492   : > { %19336 = vst [vmem:[#allocation79_spill] sm:$0xff] %v18664_v18  ;;  %v10700_v1 = vadd.f32 %v18493_v62, %v18684_v31  ;;  %v10775_v62 = vadd.f32 %v18549_v21, %v10702_v8 }
0x1493   : > { %v18668_v22 = vpop.f32.mrf.mxu1 }
0x1494   : > { %19338 = vst [vmem:[#allocation81_spill] sm:$0xff] %v18668_v22  ;;  %v10698_v22 = vadd.f32 %v18485_v63, %v18678_v39  ;;  %v10704_v63 = vadd.f32 %v18501_v46, %v18684_v31  ;;  %v10710_v46 = vadd.f32 %v18509_v26, %v18684_v31 }
0x1495   : > { %v18672_v7 = vpop.f32.mrf.mxu1 }
0x1496   : > { %19340 = vst [vmem:[#allocation83_spill] sm:$0xff] %v18672_v7  ;;  %v10771_v29 = vadd.f32 %v18538_v12, %v10698_v22 }
0x1497   : > { %v18680_v4 = vpop.f32.mrf.mxu1 }
0x1498   : > { %19343 = vst [vmem:[#allocation34_spill] sm:$0xff] %v18680_v4  ;;  %v18699_v4 = vpop.f32.mrf.mxu0  ;;  %v10844_v53 = vadd.f32 %v18559_v38, %v10771_v29  ;;  %v10848_v38 = vadd.f32 %v18569_v56, %v10775_v62  ;;  %v10783_v56 = vadd.f32 %v18565_v35, %v10710_v46 }
0x1499   : > { %v18686_v18 = vpop.f32.mrf.mxu1 }
0x149a   : > { %19345 = vst [vmem:[#allocation32_spill] sm:$0xff] %v18686_v18  ;;  %v10773_v18 = vadd.f32 %v18542_v47, %v10700_v1  ;;  %v10917_v22 = vadd.f32 %v10916_v58, %v10844_v53  ;;  %v18715_v0 = vpop.f32.mrf.mxu0  ;;  %v10777_v47 = vadd.f32 %v18553_v28, %v10704_v63  ;;  %v10921_v58 = vadd.f32 %v10920_v5, %v10848_v38 }
0x149b   : > { %v18692_v7 = vpop.f32.mrf.mxu1  ;;  %v10712_v28 = vadd.f32 %v18514_v2, %v18678_v39  ;;  %v10714_v63 = vadd.f32 %v18517_v49, %v18684_v31  ;;  %v10856_v2 = vadd.f32 %v18583_v16, %v10783_v56  ;;  %v10718_v49 = vadd.f32 %v18522_v43, %v18678_v39 }
0x149c   : > { %19347 = vst [vmem:[#allocation86_spill] sm:$0xff] %v18692_v7  ;;  %v10846_v12 = vadd.f32 %v18563_v37, %v10773_v18  ;;  %v10708_v7 = vadd.f32 %v18506_v61, %v18678_v39  ;;  %v10990_v29 = vadd.f32 %v10989_v52, %v10917_v22  ;;  %v10850_v18 = vadd.f32 %v18573_v23, %v10777_v47 }
0x149d   : > { %v18697_v40 = vpop.f32.mrf.mxu1  ;;  %v10785_v62 = vadd.f32 %v18571_v17, %v10712_v28  ;;  %v10787_v17 = vadd.f32 %v18575_v48, %v10714_v63  ;;  %v10791_v43 = vadd.f32 %v18581_v11, %v10718_v49  ;;  %v10722_v28 = vadd.f32 %v18530_v41, %v18678_v39  ;;  %v19362_v49 = vld [vmem:[#allocation61_spill] sm:$0xff] }
0x149e   : > { %19348 = vst [vmem:[#allocation87_spill] sm:$0xff] %v18697_v40  ;;  %v10919_v1 = vadd.f32 %v10918_v45, %v10846_v12  ;;  %v10781_v21 = vadd.f32 %v18561_v50, %v10708_v7  ;;  %v10923_v26 = vadd.f32 %v18622_v55, %v10850_v18  ;;  %v10994_v50 = vadd.f32 %v18628_v33, %v10921_v58  ;;  %v19350_v7 = vld [vmem:[#allocation49_spill] sm:$0xff]  ;;  %v19351_v55 = vld [vmem:[#allocation55_spill] sm:$0xff] }
0x149f   : > { %v18705_v54 = vpop.f32.mrf.mxu1  ;;  %v10858_v16 = vadd.f32 %v18589_v3, %v10785_v62  ;;  %v10860_v48 = vadd.f32 %v18593_v13, %v10787_v17  ;;  %v10864_v11 = vadd.f32 %v18599_v19, %v10791_v43  ;;  %v10795_v41 = vadd.f32 %v18591_v59, %v10722_v28  ;;  %v19357_v59 = vld [vmem:[#allocation68_spill] sm:$0xff] }
0x14a0   : > { %19349 = vst [vmem:[#allocation88_spill] sm:$0xff] %v18705_v54  ;;  %v10992_v61 = vadd.f32 %v10991_v10, %v10919_v1  ;;  %v10854_v45 = vadd.f32 %v18579_v14, %v10781_v21  ;;  %v10996_v12 = vadd.f32 %v18632_v27, %v10923_v26  ;;  %v10929_v27 = vadd.f32 %v18630_v42, %v10856_v2  ;;  %v19352_v1 = vld [vmem:[#allocation47_spill] sm:$0xff] }
0x14a1   : > { %v18711_v40 = vpop.f32.mrf.mxu1  ;;  %v10931_v18 = vadd.f32 %v18636_v34, %v10858_v16  ;;  %v10933_v56 = vadd.f32 %v18642_v32, %v10860_v48  ;;  %v10728_v62 = vadd.f32 %v18540_v9, %v18678_v39  ;;  %v10868_v2 = vadd.f32 %v19357_v59, %v10795_v41  ;;  %v19363_v9 = vld [vmem:[#allocation67_spill] sm:$0xff]  ;;  %v19374_v41 = vld [vmem:[#allocation52_spill] sm:$0xff] }
0x14a2   : > { %v10927_v14 = vadd.f32 %v18626_v60, %v10854_v45  ;;  %v11002_v42 = vadd.f32 %v18638_v24, %v10929_v27  ;;  %v19354_v24 = vld [vmem:[#allocation45_spill] sm:$0xff]  ;;  %v10730_v17 = vadd.f32 %v19362_v49, %v18684_v31  ;;  %v19379_v59 = vld [vmem:[#allocation40_spill] sm:$0xff] }
0x14a3   : > { %v18719_v54 = vpop.f32.mrf.mxu1  ;;  %v11004_v34 = vadd.f32 %v18640_v30, %v10931_v18  ;;  %v11006_v32 = vadd.f32 %v18644_v20, %v10933_v56  ;;  %v19355_v30 = vld [vmem:[#allocation46_spill] sm:$0xff]  ;;  %v19360_v20 = vld [vmem:[#allocation41_spill] sm:$0xff]  ;;  %v10801_v16 = vadd.f32 %v19363_v9, %v10728_v62  ;;  %v19368_v18 = vld [vmem:[#allocation64_spill] sm:$0xff] }
0x14a4   : > { %v11062_v37 = vpop.f32.mrf.mxu0  ;;  %v11000_v38 = vadd.f32 %v18634_v57, %v10927_v14  ;;  %v19353_v57 = vld [vmem:[#allocation51_spill] sm:$0xff]  ;;  %v19372_v56 = vld [vmem:[#allocation73_spill] sm:$0xff]  ;;  %v19383_v49 = vld [vmem:[#allocation76_spill] sm:$0xff] }
0x14a5   : > { %v11063_v53 = vadd.f32 %v11062_v37, %v10990_v29  ;;  %v18725_v8 = vpop.f32.mrf.mxu1  ;;  %v10720_v37 = vadd.f32 %v18525_v36, %v18684_v31  ;;  %v19378_v62 = vld [vmem:[#allocation75_spill] sm:$0xff]  ;;  %v19384_v9 = vld [vmem:[#allocation38_spill] sm:$0xff] }
0x14a6   : > { %v11064_v52 = vpop.f32.mrf.mxu0 }
0x14a7   : > { %v11491_v23 = vadd.f32 %v11063_v53, %v19350_v7  ;;  %v11065_v5 = vadd.f32 %v11064_v52, %v10992_v61  ;;  %v18734_v10 = vpop.f32.mrf.mxu1  ;;  %v10793_v36 = vadd.f32 %v18585_v25, %v10720_v37  ;;  %v10937_v7 = vadd.f32 %v18648_v51, %v10864_v11  ;;  %v19359_v51 = vld [vmem:[#allocation71_spill] sm:$0xff]  ;;  %v19371_v11 = vld [vmem:[#allocation80_spill] sm:$0xff] }
0x14a8   : > { %v11066_v35 = vpop.f32.mrf.mxu0  ;;  %v19367_v37 = vld [vmem:[#allocation43_spill] sm:$0xff] }
0x14a9   : > { %11515 = vst [vmem:[%s18744_s3] sm:$0xff] %v11491_v23  ;;  %v11492_v33 = vadd.f32 %v11065_v5, %v19351_v55  ;;  %v11067_v22 = vadd.f32 %v11066_v35, %v10994_v50  ;;  %v18748_v47 = vpop.f32.mrf.mxu1  ;;  %v10724_v50 = vadd.f32 %v18533_v6, %v18684_v31  ;;  %v10866_v25 = vadd.f32 %v18603_v44, %v10793_v36  ;;  %v19358_v35 = vld [vmem:[#allocation74_spill] sm:$0xff] }
0x14aa   : > { %v11068_v60 = vpop.f32.mrf.mxu0 }
0x14ab   : > { %11516 = vst [vmem:[%s18744_s3 + $0x8] sm:$0xff] %v11492_v33  ;;  %v11494_v29 = vadd.f32 %v11067_v22, %v19352_v1  ;;  %v11069_v46 = vadd.f32 %v11068_v60, %v10996_v12  ;;  %v18758_v21 = vpop.f32.mrf.mxu1  ;;  %v10797_v6 = vadd.f32 %v18595_v15, %v10724_v50  ;;  %v10939_v14 = vadd.f32 %v19358_v35, %v10866_v25  ;;  %v19364_v15 = vld [vmem:[#allocation50_spill] sm:$0xff]  ;;  %v19375_v25 = vld [vmem:[#allocation69_spill] sm:$0xff] }
0x14ac   : > { %v11072_v3 = vpop.f32.mrf.mxu0  ;;  %v11010_v12 = vadd.f32 %v19359_v51, %v10937_v7  ;;  %v19376_v7 = vld [vmem:[#allocation63_spill] sm:$0xff] }
0x14ad   : > { %11518 = vst [vmem:[%s18744_s3 + $0x18] sm:$0xff] %v11494_v29  ;;  %v11495_v58 = vadd.f32 %v11069_v46, %v19353_v57  ;;  %v11073_v61 = vadd.f32 %v11072_v3, %v11000_v38  ;;  %v18768_v53 = vpop.f32.mrf.mxu1  ;;  %v10870_v60 = vadd.f32 %v19364_v15, %v10797_v6  ;;  %v19365_v38 = vld [vmem:[#allocation77_spill] sm:$0xff]  ;;  %v19366_v29 = vld [vmem:[#allocation72_spill] sm:$0xff]  ;;  %v19369_v57 = vld [vmem:[#allocation66_spill] sm:$0xff] }
0x14ae   : > { %v11074_v13 = vpop.f32.mrf.mxu0  ;;  %v10941_v1 = vadd.f32 %v19365_v38, %v10868_v2  ;;  %v11012_v46 = vadd.f32 %v19366_v29, %v10939_v14  ;;  %v19380_v14 = vld [vmem:[#allocation59_spill] sm:$0xff] }
0x14af   : > { %11519 = vst [vmem:[%s18744_s3 + $0x20] sm:$0xff] %v11495_v58  ;;  %v11497_v45 = vadd.f32 %v11073_v61, %v19354_v24  ;;  %v11075_v52 = vadd.f32 %v11074_v13, %v11002_v42  ;;  %v18778_v26 = vpop.f32.mrf.mxu1  ;;  %v10732_v42 = vadd.f32 %v19368_v18, %v18678_v39  ;;  %v10803_v58 = vadd.f32 %v19369_v57, %v10730_v17  ;;  %v19370_v61 = vld [vmem:[#allocation65_spill] sm:$0xff]  ;;  %v19373_v24 = vld [vmem:[#allocation35_spill] sm:$0xff] }
0x14b0   : > { %v11076_v19 = vpop.f32.mrf.mxu0  ;;  %v10874_v28 = vadd.f32 %v19370_v61, %v10801_v16  ;;  %v10943_v13 = vadd.f32 %v19371_v11, %v10870_v60  ;;  %v10734_v39 = vadd.f32 %v19374_v41, %v18684_v31  ;;  %v19388_v61 = vld [vmem:[#allocation79_spill] sm:$0xff] }
0x14b1   : > { %11521 = vst [vmem:[%s18744_s3 + $0x30] sm:$0xff] %v11497_v45  ;;  %v11498_v23 = vadd.f32 %v11075_v52, %v19355_v30  ;;  %v11077_v5 = vadd.f32 %v11076_v19, %v11004_v34  ;;  %v18788_v63 = vpop.f32.mrf.mxu1  ;;  %v11014_v34 = vadd.f32 %v19372_v56, %v10941_v1  ;;  %v10805_v19 = vadd.f32 %v19375_v25, %v10732_v42  ;;  %v19392_v25 = vld [vmem:[#allocation62_spill] sm:$0xff] }
0x14b2   : > { %19356 = vst [vmem:[#allocation49_spill] sm:$0xff] %v18788_v63  ;;  %v11078_v44 = vpop.f32.mrf.mxu0  ;;  %v11016_v6 = vadd.f32 %v19378_v62, %v10943_v13  ;;  %v10807_v51 = vadd.f32 %v19380_v14, %v10734_v39 }
0x14b3   : > { %11522 = vst [vmem:[%s18744_s3 + $0x38] sm:$0xff] %v11498_v23  ;;  %v11500_v55 = vadd.f32 %v11077_v5, %v19360_v20  ;;  %v11079_v33 = vadd.f32 %v11078_v44, %v11006_v32  ;;  %v18798_v22 = vpop.f32.mrf.mxu1  ;;  %v10876_v32 = vadd.f32 %v19376_v7, %v10803_v58  ;;  %v19377_v23 = vld [vmem:[#allocation84_spill] sm:$0xff] }
0x14b4   : > { %19361 = vst [vmem:[#allocation55_spill] sm:$0xff] %v18798_v22  ;;  %v11082_v27 = vpop.f32.mrf.mxu0  ;;  %v10947_v5 = vadd.f32 %v19377_v23, %v10874_v28  ;;  %v19393_v23 = vld [vmem:[#allocation53_spill] sm:$0xff] }
0x14b5   : > { %11524 = vst [vmem:[%s18744_s3 + $0x48] sm:$0xff] %v11500_v55  ;;  %v11501_v43 = vadd.f32 %v11079_v33, %v19367_v37  ;;  %v11083_v48 = vadd.f32 %v11082_v27, %v11010_v12  ;;  %v18808_v3 = vpop.f32.mrf.mxu1  ;;  %v19381_v12 = vld [vmem:[#allocation31_spill] sm:$0xff]  ;;  %v19382_v55 = vld [vmem:[#allocation85_spill] sm:$0xff]  ;;  %v19385_v27 = vld [vmem:[#allocation70_spill] sm:$0xff] }
0x14b6   : > { %v11084_v36 = vpop.f32.mrf.mxu0  ;;  %v10878_v31 = vadd.f32 %v19381_v12, %v10805_v19  ;;  %v10949_v33 = vadd.f32 %v19382_v55, %v10876_v32  ;;  %v11020_v17 = vadd.f32 %v19383_v49, %v10947_v5  ;;  %v10880_v38 = vadd.f32 %v19385_v27, %v10807_v51 }
0x14b7   : > { %11525 = vst [vmem:[%s18744_s3 + $0x50] sm:$0xff] %v11501_v43  ;;  %v11503_v45 = vadd.f32 %v11083_v48, %v19373_v24  ;;  %v11085_v52 = vadd.f32 %v11084_v36, %v11012_v46  ;;  %v18818_v50 = vpop.f32.mrf.mxu1  ;;  %v19386_v46 = vld [vmem:[#allocation78_spill] sm:$0xff]  ;;  %v19387_v43 = vld [vmem:[#allocation36_spill] sm:$0xff] }
0x14b8   : > { %v11086_v30 = vpop.f32.mrf.mxu0  ;;  %v10951_v29 = vadd.f32 %v18699_v4, %v10878_v31  ;;  %v11022_v37 = vadd.f32 %v19386_v46, %v10949_v33  ;;  %v10953_v58 = vadd.f32 %v18715_v0, %v10880_v38  ;;  %v19389_v36 = vld [vmem:[#allocation56_spill] sm:$0xff] }
0x14b9   : > { %11527 = vst [vmem:[%s18744_s3 + $0x60] sm:$0xff] %v11503_v45  ;;  %v11504_v2 = vadd.f32 %v11085_v52, %v19379_v59  ;;  %v11087_v44 = vadd.f32 %v11086_v30, %v11014_v34  ;;  %v18828_v35 = vpop.f32.mrf.mxu1  ;;  %v19390_v34 = vld [vmem:[#allocation81_spill] sm:$0xff] }
0x14ba   : > { %v11088_v20 = vpop.f32.mrf.mxu0  ;;  %v11024_v28 = vadd.f32 %v19388_v61, %v10951_v29  ;;  %v11026_v24 = vadd.f32 %v19390_v34, %v10953_v58  ;;  %v19391_v45 = vld [vmem:[#allocation57_spill] sm:$0xff] }
0x14bb   : > { %11528 = vst [vmem:[%s18744_s3 + $0x68] sm:$0xff] %v11504_v2  ;;  %v11506_v16 = vadd.f32 %v11087_v44, %v19384_v9  ;;  %v11089_v15 = vadd.f32 %v11088_v20, %v11016_v6  ;;  %v18836_v60 = vpop.f32.mrf.mxu1 }
0x14bc   : > { %v11092_v1 = vpop.f32.mrf.mxu0 }
0x14bd   : > { %11530 = vst [vmem:[%s18744_s3 + $0x78] sm:$0xff] %v11506_v16  ;;  %v11507_v48 = vadd.f32 %v11089_v15, %v19387_v43  ;;  %v11093_v18 = vadd.f32 %v11092_v1, %v11020_v17 }
0x14be   : > { %v18843_v42 = vpop.f32.mrf.mxu1  ;;  %v11094_v57 = vpop.f32.mrf.mxu0 }
0x14bf   : > { %11531 = vst [vmem:[%s18744_s3 + $0x80] sm:$0xff] %v11507_v48  ;;  %v11509_v11 = vadd.f32 %v11093_v18, %v19389_v36  ;;  %v11095_v13 = vadd.f32 %v11094_v57, %v11022_v37 }
0x14c0   : > { %v18849_v4 = vpop.f32.mrf.mxu1  ;;  %v11096_v56 = vpop.f32.mrf.mxu0 }
0x14c1   : > { %11533 = vst [vmem:[%s18744_s3 + $0x90] sm:$0xff] %v11509_v11  ;;  %v11510_v52 = vadd.f32 %v11095_v13, %v19391_v45  ;;  %v11097_v41 = vadd.f32 %v11096_v56, %v11024_v28 }
0x14c2   : > { %v18854_v39 = vpop.f32.mrf.mxu1  ;;  %v11098_v0 = vpop.f32.mrf.mxu0 }
0x14c3   : > { %11534 = vst [vmem:[%s18744_s3 + $0x98] sm:$0xff] %v11510_v52  ;;  %v11512_v19 = vadd.f32 %v11097_v41, %v19392_v25  ;;  %v11099_v7 = vadd.f32 %v11098_v0, %v11026_v24  ;;  %v19404_v0 = vld [vmem:[#allocation33_spill] sm:$0xff]  ;;  %v19405_v25 = vld [vmem:[#allocation82_spill] sm:$0xff] }
0x14c4   : > { %v18858_v32 = vpop.f32.mrf.mxu1  ;;  %v12934_v30 = vpop.f32.mrf.mxu0 }
0x14c5   : > { %11536 = vst [vmem:[%s18744_s3 + $0xa8] sm:$0xff] %v11512_v19  ;;  %v11513_v5 = vadd.f32 %v11099_v7, %v19393_v23  ;;  %v18903_v19 = vrot.slane %v19405_v25, %v19404_v0  ;;  %v19406_v7 = vld [vmem:[#allocation83_spill] sm:$0xff]  ;;  %v19407_v23 = vld [vmem:[#allocation34_spill] sm:$0xff] }
0x14c6   : > { %v18862_v62 = vpop.f32.mrf.mxu1  ;;  %v12935_v6 = vpop.f32.mrf.mxu0  ;;  %v19412_v25 = vld [vmem:[#allocation87_spill] sm:$0xff] }
0x14c7   : > { %11537 = vst [vmem:[%s18744_s3 + $0xb0] sm:$0xff] %v11513_v5  ;;  %v12896_v5 = vadd.f32 %v19407_v23, %v19406_v7 }
0x14c8   : > { %v18865_v59 = vpop.f32.mrf.mxu1  ;;  %v12937_v2 = vpop.f32.mrf.mxu0 }
0x14ca   : > { %v18867_v44 = vpop.f32.mrf.mxu1  ;;  %v12938_v14 = vpop.f32.mrf.mxu0 }
0x14cb   : > { %19394 = vst [vmem:[#allocation47_spill] sm:$0xff] %v18867_v44  ;;  %v12939_v0 = vadd.f32 %v12938_v14, %v12937_v2 }
0x14cc   : > { %v12940_v51 = vpop.f32.mrf.mxu0  ;;  %v18869_v12 = vpop.f32.mrf.mxu1 }
0x14cd   : > { %19395 = vst [vmem:[#allocation51_spill] sm:$0xff] %v18869_v12  ;;  %v19411_v12 = vld [vmem:[#allocation86_spill] sm:$0xff] }
0x14ce   : > { %v12941_v31 = vpop.f32.mrf.mxu0  ;;  %v18871_v55 = vpop.f32.mrf.mxu1 }
0x14cf   : > { %19396 = vst [vmem:[#allocation45_spill] sm:$0xff] %v18871_v55 }
0x14d0   : > { %v12943_v20 = vpop.f32.mrf.mxu0  ;;  %v18875_v17 = vpop.f32.mrf.mxu1 }
0x14d1   : > { %19397 = vst [vmem:[#allocation46_spill] sm:$0xff] %v18875_v17 }
0x14d2   : > { %v12944_v33 = vpop.f32.mrf.mxu0  ;;  %v18881_v15 = vpop.f32.mrf.mxu1 }
0x14d3   : > { %19398 = vst [vmem:[#allocation68_spill] sm:$0xff] %v18881_v15  ;;  %v12936_v15 = vadd.f32 %v12935_v6, %v12934_v30  ;;  %v12976_v6 = vadd.f32 %v18818_v50, %v18808_v3 }
0x14d4   : > { %v18873_v49 = vpop.f32.mrf.mxu0  ;;  %v18887_v1 = vpop.f32.mrf.mxu1 }
0x14d5   : > { %19400 = vst [vmem:[#allocation71_spill] sm:$0xff] %v18887_v1 }
0x14d6   : > { %v18877_v9 = vpop.f32.mrf.mxu0  ;;  %v13054_v37 = vpop.f32.mrf.mxu1 }
0x14d8   : > { %v18879_v16 = vpop.f32.mrf.mxu0  ;;  %v13055_v18 = vpop.f32.mrf.mxu1 }
0x14da   : > { %v18883_v27 = vpop.f32.mrf.mxu0  ;;  %v13057_v61 = vpop.f32.mrf.mxu1 }
0x14dc   : > { %v18885_v38 = vpop.f32.mrf.mxu0  ;;  %v13058_v11 = vpop.f32.mrf.mxu1 }
0x14dd   : > { %19399 = vst [vmem:[#allocation74_spill] sm:$0xff] %v18885_v38 }
0x14de   : > { %v18889_v29 = vpop.f32.mrf.mxu0  ;;  %v18895_v34 = vpop.f32.mrf.mxu1 }
0x14df   : > { %19401 = vst [vmem:[#allocation41_spill] sm:$0xff] %v18889_v29  ;;  %v19413_v29 = vld [vmem:[#allocation88_spill] sm:$0xff] }
0x14e0   : > { %v18891_v46 = vpop.f32.mrf.mxu0  ;;  %v13061_v52 = vpop.f32.mrf.mxu1  ;;  %v12902_v38 = vadd.f32 %v19413_v29, %v19412_v25  ;;  %v12905_v29 = vadd.f32 %v18719_v54, %v18711_v40 }
0x14e1   : > { %19402 = vst [vmem:[#allocation61_spill] sm:$0xff] %v18891_v46  ;;  %v19410_v46 = vld [vmem:[#allocation32_spill] sm:$0xff] }
0x14e2   : > { %v18893_v43 = vpop.f32.mrf.mxu0  ;;  %v18909_v17 = vpop.f32.mrf.mxu1  ;;  %v12899_v44 = vadd.f32 %v19411_v12, %v19410_v46  ;;  %v11144_v2 = vadd.f32 %v12902_v38, %v18903_v19  ;;  %v12982_v38 = vadd.f32 %v18849_v4, %v18843_v42  ;;  %v11147_v54 = vadd.f32 %v12905_v29, %v18903_v19 }
0x14e3   : > { %19403 = vst [vmem:[#allocation67_spill] sm:$0xff] %v18893_v43  ;;  %v11136_v43 = vadd.f32 %v12896_v5, %v18903_v19  ;;  %v12985_v42 = vadd.f32 %v18858_v32, %v18854_v39  ;;  %v12914_v39 = vadd.f32 %v18778_v26, %v18768_v53  ;;  %v12988_v32 = vadd.f32 %v18865_v59, %v18862_v62 }
0x14e4   : > { %v13014_v48 = vpop.f32.mrf.mxu0  ;;  %v18920_v7 = vpop.f32.mrf.mxu1  ;;  %v11139_v30 = vadd.f32 %v12899_v44, %v18903_v19  ;;  %v12979_v44 = vadd.f32 %v18836_v60, %v18828_v35 }
0x14e5   : > { %v11201_v63 = vadd.f32 %v12936_v15, %v11136_v43  ;;  %v13065_v53 = vadd.f32 %v18920_v7, %v18909_v17  ;;  %v11160_v59 = vadd.f32 %v12914_v39, %v18903_v19 }
0x14e6   : > { %v13015_v57 = vpop.f32.mrf.mxu0  ;;  %v11204_v12 = vadd.f32 %v12939_v0, %v11139_v30  ;;  %v18930_v14 = vpop.f32.mrf.mxu1 }
0x14e7   : > { %v13016_v5 = vadd.f32 %v13015_v57, %v13014_v48  ;;  %v11266_v46 = vadd.f32 %v12976_v6, %v11201_v63  ;;  %v13056_v48 = vadd.f32 %v13055_v18, %v13054_v37  ;;  %v12908_v63 = vadd.f32 %v18734_v10, %v18725_v8  ;;  %v19414_v6 = vld [vmem:[#allocation48_spill] sm:$0xff] }
0x14e8   : > { %v13017_v58 = vpop.f32.mrf.mxu0  ;;  %v11269_v57 = vadd.f32 %v12979_v44, %v11204_v12  ;;  %v13067_v0 = vpop.f32.mrf.mxu1  ;;  %v12911_v10 = vadd.f32 %v18758_v21, %v18748_v47 }
0x14e9   : > { %v11331_v43 = vadd.f32 %v13016_v5, %v11266_v46  ;;  %v11152_v8 = vadd.f32 %v12908_v63, %v18903_v19  ;;  %v19421_v63 = vld [vmem:[#allocation51_spill] sm:$0xff] }
0x14ea   : > { %v13018_v28 = vpop.f32.mrf.mxu0  ;;  %v13069_v4 = vpop.f32.mrf.mxu1  ;;  %v11155_v21 = vadd.f32 %v12911_v10, %v18903_v19 }
0x14eb   : > { %v13019_v3 = vadd.f32 %v13018_v28, %v13017_v58  ;;  %v11396_v35 = vadd.f32 %v13056_v48, %v11331_v43  ;;  %v19418_v48 = vld [vmem:[#allocation49_spill] sm:$0xff] }
0x14ec   : > { %v13020_v36 = vpop.f32.mrf.mxu0 }
0x14ed   : > { %v11334_v40 = vadd.f32 %v13019_v3, %v11269_v57  ;;  %v19419_v57 = vld [vmem:[#allocation55_spill] sm:$0xff] }
0x14ee   : > { %v13021_v13 = vpop.f32.mrf.mxu0 }
0x14ef   : > { %v13022_v25 = vadd.f32 %v13021_v13, %v13020_v36 }
0x14f0   : > { %v13023_v56 = vpop.f32.mrf.mxu0 }
0x14f2   : > { %v13024_v24 = vpop.f32.mrf.mxu0 }
0x14f3   : > { %v13025_v13 = vadd.f32 %v13024_v24, %v13023_v56  ;;  %v13070_v56 = vpop.f32.mrf.mxu1 }
0x14f4   : > { %v18897_v45 = vpop.f32.mrf.mxu0 }
0x14f6   : > { %v18899_v41 = vpop.f32.mrf.mxu0 }
0x14f8   : > { %v18907_v1 = vpop.f32.mrf.mxu0 }
0x14f9   : > { %19408 = vst [vmem:[#allocation50_spill] sm:$0xff] %v18907_v1 }
0x14fa   : > { %v18911_v55 = vpop.f32.mrf.mxu0 }
0x14fb   : > { %19409 = vst [vmem:[#allocation77_spill] sm:$0xff] %v18911_v55  ;;  %v12942_v55 = vadd.f32 %v12941_v31, %v12940_v51  ;;  %v12945_v31 = vadd.f32 %v12944_v33, %v12943_v20  ;;  %v12948_v20 = vadd.f32 %v18877_v9, %v18873_v49  ;;  %v13059_v33 = vadd.f32 %v13058_v11, %v13057_v61 }
0x14fc   : > { %v18916_v22 = vpop.f32.mrf.mxu0  ;;  %v12951_v49 = vadd.f32 %v18883_v27, %v18879_v16  ;;  %v13062_v9 = vadd.f32 %v13061_v52, %v18895_v34  ;;  %v13028_v27 = vadd.f32 %v18899_v41, %v18897_v45  ;;  %v19415_v34 = vld [vmem:[#allocation44_spill] sm:$0xff]  ;;  %v12917_v45 = vadd.f32 %v19419_v57, %v19418_v48  ;;  %v19420_v41 = vld [vmem:[#allocation47_spill] sm:$0xff] }
0x14fd   : > { %v11209_v50 = vadd.f32 %v12942_v55, %v11144_v2  ;;  %v11212_v28 = vadd.f32 %v12945_v31, %v11147_v54  ;;  %v11399_v12 = vadd.f32 %v13059_v33, %v11334_v40  ;;  %v11217_v11 = vadd.f32 %v12948_v20, %v11152_v8  ;;  %v19426_v8 = vld [vmem:[#allocation67_spill] sm:$0xff] }
0x14fe   : > { %v18922_v23 = vpop.f32.mrf.mxu0  ;;  %v11220_v43 = vadd.f32 %v12951_v49, %v11155_v21  ;;  %v13071_v21 = vadd.f32 %v13070_v56, %v13069_v4 }
0x14ff   : > { %v11274_v58 = vadd.f32 %v12982_v38, %v11209_v50  ;;  %v11277_v2 = vadd.f32 %v12985_v42, %v11212_v28  ;;  %v19416_v50 = vld [vmem:[#allocation74_spill] sm:$0xff]  ;;  %v11282_v26 = vadd.f32 %v12988_v32, %v11217_v11  ;;  %v12991_v38 = vadd.f32 %v19421_v63, %v19420_v41  ;;  %v19430_v32 = vld [vmem:[#allocation68_spill] sm:$0xff] }
0x1500   : > { %v18927_v1 = vpop.f32.mrf.mxu0  ;;  %v13068_v42 = vadd.f32 %v13067_v0, %v18930_v14  ;;  %v19434_v41 = vld [vmem:[#allocation54_spill] sm:$0xff] }
0x1501   : > { %v11339_v18 = vadd.f32 %v13022_v25, %v11274_v58  ;;  %v11342_v16 = vadd.f32 %v13025_v13, %v11277_v2  ;;  %v13072_v25 = vpop.f32.mrf.mxu1  ;;  %v19424_v58 = vld [vmem:[#allocation42_spill] sm:$0xff]  ;;  %v11285_v28 = vadd.f32 %v12991_v38, %v11220_v43  ;;  %v19427_v13 = vld [vmem:[#allocation45_spill] sm:$0xff] }
0x1502   : > { %v18932_v15 = vpop.f32.mrf.mxu0  ;;  %v19423_v54 = vld [vmem:[#allocation77_spill] sm:$0xff] }
0x1503   : > { %v11404_v24 = vadd.f32 %v13062_v9, %v11339_v18  ;;  %v11407_v7 = vadd.f32 %v13065_v53, %v11342_v16  ;;  %v13034_v9 = vadd.f32 %v18922_v23, %v18916_v22  ;;  %v13037_v22 = vadd.f32 %v18932_v15, %v18927_v1  ;;  %v19432_v23 = vld [vmem:[#allocation37_spill] sm:$0xff] }
0x1504   : > { %v13094_v51 = vpop.f32.mrf.mxu0 }
0x1506   : > { %v13095_v30 = vpop.f32.mrf.mxu0 }
0x1507   : > { %v13096_v60 = vadd.f32 %v13095_v30, %v13094_v51  ;;  %v19417_v51 = vld [vmem:[#allocation41_spill] sm:$0xff]  ;;  %v19422_v30 = vld [vmem:[#allocation50_spill] sm:$0xff] }
0x1508   : > { %v13097_v55 = vpop.f32.mrf.mxu0  ;;  %v12954_v31 = vadd.f32 %v19417_v51, %v19416_v50  ;;  %v13031_v40 = vadd.f32 %v19423_v54, %v19422_v30  ;;  %v19435_v54 = vld [vmem:[#allocation60_spill] sm:$0xff] }
0x1509   : > { %v11461_v37 = vadd.f32 %v13096_v60, %v11396_v35  ;;  %v11347_v60 = vadd.f32 %v13028_v27, %v11282_v26  ;;  %v19433_v26 = vld [vmem:[#allocation58_spill] sm:$0xff] }
0x150a   : > { %v13098_v36 = vpop.f32.mrf.mxu0  ;;  %v11225_v33 = vadd.f32 %v12954_v31, %v11160_v59 }
0x150b   : > { %v11493_v5 = vadd.f32 %v11461_v37, %v19414_v6  ;;  %v13099_v46 = vadd.f32 %v13098_v36, %v13097_v55  ;;  %v19425_v37 = vld [vmem:[#allocation61_spill] sm:$0xff]  ;;  %v11163_v36 = vadd.f32 %v12917_v45, %v18903_v19  ;;  %v19428_v6 = vld [vmem:[#allocation46_spill] sm:$0xff]  ;;  %v11412_v2 = vadd.f32 %v13068_v42, %v11347_v60 }
0x150c   : > { %v13100_v61 = vpop.f32.mrf.mxu0  ;;  %v12957_v10 = vadd.f32 %v19426_v8, %v19425_v37 }
0x150d   : > { %11517 = vst [vmem:[%s18744_s3 + $0x10] sm:$0xff] %v11493_v5  ;;  %v11464_v47 = vadd.f32 %v13099_v46, %v11399_v12  ;;  %v12994_v5 = vadd.f32 %v19428_v6, %v19427_v13  ;;  %v13073_v12 = vpop.f32.mrf.mxu1  ;;  %v11350_v46 = vadd.f32 %v13031_v40, %v11285_v28 }
0x150e   : > { %v13101_v29 = vpop.f32.mrf.mxu0  ;;  %v11228_v0 = vadd.f32 %v12957_v10, %v11163_v36  ;;  %v13074_v43 = vadd.f32 %v13073_v12, %v13072_v25 }
0x150f   : > { %v11496_v52 = vadd.f32 %v11464_v47, %v19415_v34  ;;  %v13102_v44 = vadd.f32 %v13101_v29, %v13100_v61  ;;  %v19429_v61 = vld [vmem:[#allocation39_spill] sm:$0xff]  ;;  %v11290_v39 = vadd.f32 %v12994_v5, %v11225_v33  ;;  %v13075_v16 = vpop.f32.mrf.mxu1  ;;  %v11415_v27 = vadd.f32 %v13071_v21, %v11350_v46 }
0x1510   : > { %v13103_v3 = vpop.f32.mrf.mxu0 }
0x1511   : > { %11520 = vst [vmem:[%s18744_s3 + $0x28] sm:$0xff] %v11496_v52  ;;  %v11469_v62 = vadd.f32 %v13102_v44, %v11404_v24  ;;  %v19431_v24 = vld [vmem:[#allocation71_spill] sm:$0xff]  ;;  %v11355_v52 = vadd.f32 %v13034_v9, %v11290_v39  ;;  %v13076_v51 = vpop.f32.mrf.mxu1 }
0x1512   : > { %v13104_v35 = vpop.f32.mrf.mxu0  ;;  %v12997_v29 = vadd.f32 %v19431_v24, %v19430_v32  ;;  %v13077_v15 = vadd.f32 %v13076_v51, %v13075_v16 }
0x1513   : > { %v11499_v17 = vadd.f32 %v11469_v62, %v19424_v58  ;;  %v13105_v55 = vadd.f32 %v13104_v35, %v13103_v3  ;;  %v11420_v59 = vadd.f32 %v13074_v43, %v11355_v52 }
0x1514   : > { %v13106_v20 = vpop.f32.mrf.mxu0  ;;  %v11293_v3 = vadd.f32 %v12997_v29, %v11228_v0 }
0x1515   : > { %11523 = vst [vmem:[%s18744_s3 + $0x40] sm:$0xff] %v11499_v17  ;;  %v11472_v18 = vadd.f32 %v13105_v55, %v11407_v7 }
0x1516   : > { %v13107_v49 = vpop.f32.mrf.mxu0  ;;  %v11358_v53 = vadd.f32 %v13037_v22, %v11293_v3 }
0x1517   : > { %v11502_v11 = vadd.f32 %v11472_v18, %v19429_v61  ;;  %v13108_v47 = vadd.f32 %v13107_v49, %v13106_v20 }
0x1518   : > { %v13109_v14 = vpop.f32.mrf.mxu0  ;;  %v11423_v38 = vadd.f32 %v13077_v15, %v11358_v53 }
0x1519   : > { %11526 = vst [vmem:[%s18744_s3 + $0x58] sm:$0xff] %v11502_v11  ;;  %v11477_v19 = vadd.f32 %v13108_v47, %v11412_v2 }
0x151a   : > { %v13110_v34 = vpop.f32.mrf.mxu0 }
0x151b   : > { %v11505_v44 = vadd.f32 %v11477_v19, %v19432_v23  ;;  %v13111_v4 = vadd.f32 %v13110_v34, %v13109_v14 }
0x151c   : > { %v13112_v56 = vpop.f32.mrf.mxu0 }
0x151d   : > { %11529 = vst [vmem:[%s18744_s3 + $0x70] sm:$0xff] %v11505_v44  ;;  %v11480_v50 = vadd.f32 %v13111_v4, %v11415_v27 }
0x151e   : > { %v13113_v31 = vpop.f32.mrf.mxu0 }
0x151f   : > { %v11508_v62 = vadd.f32 %v11480_v50, %v19433_v26  ;;  %v13114_v48 = vadd.f32 %v13113_v31, %v13112_v56 }
0x1520   : > { %v13115_v1 = vpop.f32.mrf.mxu0 }
0x1521   : > { %11532 = vst [vmem:[%s18744_s3 + $0x88] sm:$0xff] %v11508_v62  ;;  %v11485_v57 = vadd.f32 %v13114_v48, %v11420_v59 }
0x1522   : > { %v13116_v45 = vpop.f32.mrf.mxu0 }
0x1523   : > { %v11511_v63 = vadd.f32 %v11485_v57, %v19434_v41  ;;  %v13117_v25 = vadd.f32 %v13116_v45, %v13115_v1 }
0x1525   : > { %11535 = vst [vmem:[%s18744_s3 + $0xa0] sm:$0xff] %v11511_v63  ;;  %v11488_v30 = vadd.f32 %v13117_v25, %v11423_v38 }
0x1527   : > { %v11514_v40 = vadd.f32 %v11488_v30, %v19435_v54 }
0x1529   : > { %11538 = vst [vmem:[%s18744_s3 + $0xb8] sm:$0xff] %v11514_v40 }
0x152a   : > { %15427 = shalt.err (!%p15424_p11)
}
0x152b   : > { %s15428_s15 = scalar_lea.hbm %s19002_s19, 3072  ;;  %s15432_s2 = scalar_lea.hbm %s19061_s12, 6144 }
0x152c   : > { %p15429_p10 = scmp.ne.s32.totalorder %s19002_s19, %s15428_s15  ;;  %p15433_p2 = scmp.lt.s32.totalorder %s19002_s19, %s19061_s12 }
0x152d   : > { %p15434_p4 = scmp.lt.s32.totalorder %s15432_s2, %s15428_s15 }
0x152e   : > { %p15430_p12 = pnand %p15429_p10, %p19436_p13 }
0x152f   : > { %p15435_p5 = por %p15434_p4, %p15433_p2 }
0x1530   : > { %p15431_p0 = pneg %p15430_p12 }
0x1532   : > { %p15436_p7 = pnand %p15435_p5, %p15431_p0 }
0x1534   : > { %15439 = shalt.err (!%p15436_p7)
}
0x1535   : > { %s15527_s26 = smov 384   ;;  %s15528_s18 = smov 24  }
0x1536   : > { %13432 = dma.vmem_to_hbm [thread:$0]  (%p19436_p13), %s19005_s20, 3072, %s19002_s19, %s11540_s27, %s15527_s26, %s15527_s26, %s15528_s18  }
0x1537 PF: > { %s11569_s16 = sand.u32 1, %s15490_s21   ;;  %p19437_p6 = scmp.ne.s32.totalorder %s19144_s1, 0 }
0x1538   : > { %p19438_p1 = scmp.ge.s32.totalorder %s15502_s24, 2  ;;  %s11570_s5 = scalar_lea.sflag [#allocation4], %s11569_s16 }
0x153a   : > { %p13473_p3 = pnand %p19438_p1, %p19437_p6 }
0x153c   : > { %p13474_p8 = pneg %p13473_p3 }
0x153e   : > { %15485 = dma.done.wait (%p13474_p8), %s11570_s5, 3072  }
0x153f   : > { %15487 = vsyncadd (%p13474_p8), %s11570_s5, 4294964224  ;;  %p31_p9 = scmp.ge.s32.totalorder %s15739_s13, 4   ;;  %s19439_s21 = smov %s15494_s22 }
0x1540   : > { %s19440_s22 = smov %s15498_s23  ;;  %s19441_s23 = smov %s15751_s17 }
0x1541   : > { %s19442_s24 = smov %s15739_s13  ;;  %33 = sbr.rel (!%p31_p9) target bundleno = 18 (0x12), region = 157 }
0x1546   :  { %11575 = vsyncpa [#allocation3], 1 }
0x1547   :  { %11577 = vsyncpa [#allocation3 + $0x1], 1 }
0x1548   :  { %11578 = vsyncpa [#allocation6], 1 }
0x1549   :  { %11579 = vsyncpa [#allocation9], 1 }
0x154a   :  { %11580 = vsyncpa [#allocation12], 1 }
0x154b   :  { %11581 = vsyncpa [#allocation15], 1 }
0x154c   :  { %11582 = vsyncpa [#allocation18], 1 }
0x154d   :  { %11583 = vsyncpa [#allocation21], 1 }
0x154e   :  { %11584 = vsyncpa [#allocation4], 1 }
0x154f   :  { %11586 = vsyncpa [#allocation4 + $0x1], 1 }

</bundles_post_ra>
